<compile_context>
chip_gen: v5e
topology: v5e:2x2
jax: 0.10.0
libtpu: 0.0.40
codegen_flags: <defaults>
</compile_context>

<pallas_src>
import math

import numpy as np
import jax
import jax.numpy as jnp
from jax import lax
from jax.experimental import pallas as pl
from jax.experimental.pallas import tpu as pltpu


CONV_CFGS = ((1, 8, 5, 2), (8, 16, 3, 1), (16, 32, 3, 1), (32, 64, 3, 1))
CONV_STRIDES = tuple(c[3] for c in CONV_CFGS)


# -----------------------------------------------------------------------------
# Exact-ish GELU matching torch.nn.GELU(): erf via Abramowitz & Stegun 7.1.26
# (|err| <= 1.5e-7, i.e. ~f32 precision); built from exp/mul/add/select only.
# -----------------------------------------------------------------------------
def _erf(x):
    p = 0.3275911
    a1, a2, a3, a4, a5 = (0.254829592, -0.284496736, 1.421413741,
                          -1.453152027, 1.061405429)
    ax = jnp.abs(x)
    t = 1.0 / (1.0 + p * ax)
    poly = ((((a5 * t + a4) * t + a3) * t + a2) * t + a1) * t
    y = 1.0 - poly * jnp.exp(-ax * ax)
    return jnp.where(x >= 0.0, y, -y)


def _gelu(x):
    return 0.5 * x * (1.0 + _erf(x * (1.0 / math.sqrt(2.0))))


def _conv_geom(hi, wi):
    h1, w1 = (hi - 5) // 2 + 1, (wi - 5) // 2 + 1
    geom = [(h1, w1)]
    for _ in range(3):
        ph, pw = geom[-1]
        geom.append((ph - 2, pw - 2))
    return geom


# -----------------------------------------------------------------------------
# The single fused kernel: conv stack (4x Conv+BN(eval)+GELU) + LSTM + Linear.
#
# Activation layout (per layer L): rows = h * N + n   (h = output row, n = b*S+s
# image index, N = B*S), lanes = w * C_L + c.  With this layout a 3x3 VALID conv
# is   out_row(h) = sum_ky  in_row(h+ky) @ BW_ky ,
# where BW_ky is a host-prepared banded (W_in*C_in, W_out*C_out) matrix holding
# the kx taps, and the ky shift is an 8-aligned contiguous row slice (+ky*N).
# The 5x5 stride-2 first layer uses the same trick on row-parity slabs of the
# input (ky = 2a+p -> slab p, row shift a), with the stride-2 width pattern
# folded into its banded weight.
# -----------------------------------------------------------------------------
def _fused_forward(imgp, bws, shifts, wih_hw, b, whh, wc, bc, batch, seq, geom):
    n_img = batch * seq
    (h1, w1), (h2, w2), (h3, w3), (h4, w4) = geom
    c1, c2, c3, c4 = (cfg[1] for cfg in CONV_CFGS)
    hh = whh.shape[0]
    o_dim = wc.shape[1]

    def kernel(imgp_ref, bw1_ref, bw2_ref, bw3_ref, bw4_ref,
               s1_ref, s2_ref, s3_ref, s4_ref,
               wih_ref, b_ref, whh_ref, wc_ref, bc_ref,
               out_ref, a1, a2, a3, a4):
        # ---- Layer 1: Conv2d(1,8,5,stride=2) + BN + GELU -------------------
        acc = jnp.zeros((h1 * n_img, w1 * c1), jnp.float32)
        for ky in range(5):
            par, sh = ky & 1, ky // 2
            lhs = imgp_ref[par, sh * n_img:sh * n_img + h1 * n_img, :]
            acc = acc + jnp.dot(lhs, bw1_ref[ky],
                                preferred_element_type=jnp.float32)
        a1[...] = _gelu(acc + s1_ref[...])       # shift broadcast hoisted (1x)

        # ---- Layers 2-4: Conv2d(3x3) + BN + GELU as 3 banded GEMMs each ----
        def conv3(in_ref, bw_ref, s_ref, out_scr):
            m = out_scr.shape[0]
            a = jnp.zeros(out_scr.shape, jnp.float32)
            for ky in range(3):
                a = a + jnp.dot(in_ref[ky * n_img:ky * n_img + m, :],
                                bw_ref[ky],
                                preferred_element_type=jnp.float32)
            out_scr[...] = _gelu(a + s_ref[...])

        conv3(a1, bw2_ref, s2_ref, a2)
        conv3(a2, bw3_ref, s3_ref, a3)
        conv3(a3, bw4_ref, s4_ref, a4)

        # ---- LSTM: gate-fused input projection hoisted out of the loop -----
        # a4 row slabs [h*N : (h+1)*N] are the per-image features of conv row h
        # in (w, c) lane order; wih_hw is regrouped accordingly on the host.
        xg = jnp.dot(a4[0:n_img, :], wih_ref[0],
                     preferred_element_type=jnp.float32)
        for hr in range(1, h4):
            xg = xg + jnp.dot(a4[hr * n_img:(hr + 1) * n_img, :], wih_ref[hr],
                              preferred_element_type=jnp.float32)
        xg = (xg + b_ref[...]).reshape(batch, seq, 4 * hh)

        # ---- Serial recurrence (S static -> fully unrolled, state in vregs) -
        whh_m = whh_ref[...]
        h = jnp.zeros((batch, hh), jnp.float32)
        c = jnp.zeros((batch, hh), jnp.float32)
        for t in range(seq):
            g = xg[:, t, :] + jnp.dot(h, whh_m,
                                      preferred_element_type=jnp.float32)
            gi = jax.nn.sigmoid(g[:, 0 * hh:1 * hh])   # torch gate order i,f,g,o
            gf = jax.nn.sigmoid(g[:, 1 * hh:2 * hh])
            gg = jnp.tanh(g[:, 2 * hh:3 * hh])
            go = jax.nn.sigmoid(g[:, 3 * hh:4 * hh])
            c = gf * c + gi * gg
            h = go * jnp.tanh(c)

        # ---- Classifier fused on the last hidden state ----------------------
        out_ref[...] = (jnp.dot(h, wc_ref[...],
                                preferred_element_type=jnp.float32)
                        + bc_ref[...])

    args = [imgp, *bws, *shifts, wih_hw, b, whh, wc, bc]

    def full(arr):
        nd = arr.ndim
        return pl.BlockSpec(arr.shape, lambda i: (0,) * nd)

    return pl.pallas_call(
        kernel,
        out_shape=jax.ShapeDtypeStruct((batch, o_dim), jnp.float32),
        grid=(1,),
        in_specs=[full(a) for a in args],
        out_specs=pl.BlockSpec((batch, o_dim), lambda i: (0, 0)),
        scratch_shapes=[pltpu.VMEM((h1 * n_img, w1 * c1), jnp.float32),
                        pltpu.VMEM((h2 * n_img, w2 * c2), jnp.float32),
                        pltpu.VMEM((h3 * n_img, w3 * c3), jnp.float32),
                        pltpu.VMEM((h4 * n_img, w4 * c4), jnp.float32)],
        compiler_params=pltpu.CompilerParams(
            dimension_semantics=("arbitrary",)),
    )(*args)


# -----------------------------------------------------------------------------
# Full forward pass
# -----------------------------------------------------------------------------
def forward(x, kp):
    """x: (B, S, 1, H, W) float32  ->  (B, o_dim) float32."""
    B, S, _, Hi, Wi = x.shape
    N = B * S
    geom = _conv_geom(Hi, Wi)

    # TODO(synk): the only remaining XLA glue -- a row-parity split + h-major
    #   interleave of the raw 30 KB input so the in-kernel stride-2 layer sees
    #   aligned row slabs; doing this inside the kernel would need an in-kernel
    #   (n, h) transpose that isn't worth the layout gymnastics.
    img = x.reshape(N, Hi, Wi)
    even = jnp.transpose(img[:, 0::2, :], (1, 0, 2)).reshape((Hi // 2) * N, Wi)
    odd = jnp.transpose(img[:, 1::2, :], (1, 0, 2)).reshape((Hi // 2) * N, Wi)
    imgp = jnp.stack([even, odd], axis=0)              # (2, (Hi//2)*N, Wi)

    return _fused_forward(imgp, kp["bws"], kp["shifts"], kp["wih_hw"],
                          kp["b"], kp["whh"], kp["wc"], kp["bc"], B, S, geom)


# -----------------------------------------------------------------------------
# Deterministic parameter init (synthetic; shapes from the module __init__)
# -----------------------------------------------------------------------------
def init_params(key, h_dim, o_dim):
    keys = jax.random.split(key, 17)
    ki = 0
    convs = []
    for cin, cout, k, _ in CONV_CFGS:
        w = (jax.random.normal(keys[ki], (k, k, cin, cout), jnp.float32)
             / math.sqrt(k * k * cin)); ki += 1
        gamma = 1.0 + 0.1 * jax.random.normal(keys[ki], (cout,), jnp.float32); ki += 1
        beta = 0.1 * jax.random.normal(keys[ki], (cout,), jnp.float32); ki += 1
        run_mean = jnp.zeros((cout,), jnp.float32)
        run_var = jnp.ones((cout,), jnp.float32)
        scale = gamma / jnp.sqrt(run_var + 1e-5)       # BN eval-mode fold
        shift = beta - run_mean * scale
        convs.append((w, scale, shift))

    D = 64 * 2 * 4   # 512, as in LSTM(64*2*4, h_dim)
    s = 1.0 / math.sqrt(h_dim)
    wih = s * jax.random.normal(keys[ki], (D, 4 * h_dim), jnp.float32); ki += 1
    whh = s * jax.random.normal(keys[ki], (h_dim, 4 * h_dim), jnp.float32); ki += 1
    b = s * jax.random.normal(keys[ki], (1, 4 * h_dim), jnp.float32); ki += 1  # b_ih+b_hh
    wc = s * jax.random.normal(keys[ki], (h_dim, o_dim), jnp.float32); ki += 1
    bc = s * jax.random.normal(keys[ki], (1, o_dim), jnp.float32); ki += 1
    return {"convs": convs, "wih": wih, "whh": whh, "b": b, "wc": wc, "bc": bc}


def prepare_params(params, Hi, Wi):
    """One-time repack of the torch-like params into kernel operands."""
    geom = _conv_geom(Hi, Wi)
    convs = params["convs"]

    # Layer 1 banded weight: BW1[ky][2*wo+kx, wo*c1+co] = w[ky,kx,0,co]*scale[co]
    w0 = np.asarray(convs[0][0]) * np.asarray(convs[0][1])        # (5,5,1,c1)
    c1 = w0.shape[-1]
    w1o = geom[0][1]
    bw1 = np.zeros((5, Wi, w1o * c1), np.float32)
    for ky in range(5):
        for wo in range(w1o):
            for kx in range(5):
                bw1[ky, 2 * wo + kx, wo * c1:(wo + 1) * c1] = w0[ky, kx, 0, :]
    bws = [jnp.asarray(bw1)]
    shifts = [jnp.asarray(np.tile(np.asarray(convs[0][2]), w1o)[None, :])]

    # Layers 2-4 banded weights: BW[ky][(wo+kx)*cin+ci, wo*cout+co] = w*scale.
    for li in range(1, 4):
        w = np.asarray(convs[li][0]) * np.asarray(convs[li][1])   # (3,3,cin,cout)
        cin, cout = w.shape[2], w.shape[3]
        win, wout = geom[li - 1][1], geom[li][1]
        bw = np.zeros((3, win * cin, wout * cout), np.float32)
        for ky in range(3):
            for wo in range(wout):
                for kx in range(3):
                    wi = wo + kx
                    bw[ky, wi * cin:(wi + 1) * cin,
                       wo * cout:(wo + 1) * cout] = w[ky, kx]
        bws.append(jnp.asarray(bw))
        shifts.append(jnp.asarray(np.tile(np.asarray(convs[li][2]), wout)[None, :]))

    # LSTM input projection: torch Flatten order is (c, h, w); regroup per conv
    # output row h into (w, c)-ordered 256-row blocks so the kernel consumes the
    # conv scratch layout directly (no transpose, no flat HBM feature store).
    h4, w4 = geom[3]
    c4 = convs[3][0].shape[-1]
    wih = np.asarray(params["wih"]).reshape(c4, h4, w4, -1)
    wih_hw = np.stack(
        [wih[:, h, :, :].transpose(1, 0, 2).reshape(w4 * c4, -1)
         for h in range(h4)], axis=0)                              # (h4, w4*c4, 4H)

    return {"bws": bws, "shifts": shifts, "wih_hw": jnp.asarray(wih_hw),
            "whh": params["whh"], "b": params["b"],
            "wc": params["wc"], "bc": params["bc"]}


# -----------------------------------------------------------------------------
# Pure-JAX reference (same math, torch-like params) for a sanity check
# -----------------------------------------------------------------------------
def reference_forward(x, params):
    B, S, C, Hi, Wi = x.shape
    xn = jnp.transpose(x.reshape(B * S, C, Hi, Wi), (0, 2, 3, 1))
    for (w, scale, shift), stride in zip(params["convs"], CONV_STRIDES):
        y = lax.conv_general_dilated(xn, w, (stride, stride), "VALID",
                                     dimension_numbers=("NHWC", "HWIO", "NHWC"))
        xn = _gelu(y * scale.reshape(1, 1, 1, -1) + shift.reshape(1, 1, 1, -1))
    n, oh, ow, cc = xn.shape
    # torch.nn.Flatten on NCHW flattens in (C, H, W) order.
    feats = jnp.transpose(xn, (0, 3, 1, 2)).reshape(B, S, cc * oh * ow)

    hh = params["whh"].shape[0]

    def step(carry, x_t):
        h, c = carry
        g = x_t @ params["wih"] + h @ params["whh"] + params["b"]
        gi = jax.nn.sigmoid(g[:, 0 * hh:1 * hh])
        gf = jax.nn.sigmoid(g[:, 1 * hh:2 * hh])
        gg = jnp.tanh(g[:, 2 * hh:3 * hh])
        go = jax.nn.sigmoid(g[:, 3 * hh:4 * hh])
        c = gf * c + gi * gg
        h = go * jnp.tanh(c)
        return (h, c), None

    init = (jnp.zeros((B, hh), jnp.float32), jnp.zeros((B, hh), jnp.float32))
    (h, _), _ = lax.scan(step, init, jnp.transpose(feats, (1, 0, 2)))
    return h @ params["wc"] + params["bc"]


if __name__ == "__main__":
    B, S, Hi, Wi = 2, 8, 20, 24       # 20x24 input -> 2x4 after conv stack -> 512 feats
    h_dim, o_dim = 32, 6

    key = jax.random.PRNGKey(0)
    kx_, kp_ = jax.random.split(key)
    x = jax.random.normal(kx_, (B, S, 1, Hi, Wi), jnp.float32)
    params = init_params(kp_, h_dim, o_dim)
    kparams = prepare_params(params, Hi, Wi)      # one-time weight repack

    out = jax.block_until_ready(jax.jit(forward)(x, kparams))
    assert out.shape == (B, o_dim)

    ref = jax.block_until_ready(reference_forward(x, params))
    if not bool(jnp.allclose(out, ref, rtol=2e-3, atol=2e-3)):
        raise AssertionError(
            f"kernel/reference mismatch, max abs diff = {jnp.max(jnp.abs(out - ref))}")

    print("KERNEL_OK")
</pallas_src>

<mosaic_0001>
module attributes {stable_mosaic.version = 11 : i64} {
  func.func @kernel(%arg0: i32, %arg1: memref<2x160x24xf32, #tpu.memory_space<vmem>>, %arg2: memref<5x24x80xf32, #tpu.memory_space<vmem>>, %arg3: memref<3x80x128xf32, #tpu.memory_space<vmem>>, %arg4: memref<3x128x192xf32, #tpu.memory_space<vmem>>, %arg5: memref<3x192x256xf32, #tpu.memory_space<vmem>>, %arg6: memref<1x80xf32, #tpu.memory_space<vmem>>, %arg7: memref<1x128xf32, #tpu.memory_space<vmem>>, %arg8: memref<1x192xf32, #tpu.memory_space<vmem>>, %arg9: memref<1x256xf32, #tpu.memory_space<vmem>>, %arg10: memref<2x256x128xf32, #tpu.memory_space<vmem>>, %arg11: memref<1x128xf32, #tpu.memory_space<vmem>>, %arg12: memref<32x128xf32, #tpu.memory_space<vmem>>, %arg13: memref<32x6xf32, #tpu.memory_space<vmem>>, %arg14: memref<1x6xf32, #tpu.memory_space<vmem>>, %arg15: memref<2x6xf32, #tpu.memory_space<vmem>>, %arg16: memref<128x80xf32, #tpu.memory_space<vmem>>, %arg17: memref<96x128xf32, #tpu.memory_space<vmem>>, %arg18: memref<64x192xf32, #tpu.memory_space<vmem>>, %arg19: memref<32x256xf32, #tpu.memory_space<vmem>>) attributes {dimension_semantics = [#tpu.dimension_semantics<arbitrary>], iteration_bounds = array<i64: 1>, scalar_prefetch = 0 : i64, scratch_operands = 4 : i64, tpu.core_type = #tpu.core_type<tc>, window_params = [{pipeline_mode = #tpu.pipeline_mode<synchronous>, transform_indices = @transform_0, window_bounds = array<i64: 2, 160, 24>}, {pipeline_mode = #tpu.pipeline_mode<synchronous>, transform_indices = @transform_1, window_bounds = array<i64: 5, 24, 80>}, {pipeline_mode = #tpu.pipeline_mode<synchronous>, transform_indices = @transform_2, window_bounds = array<i64: 3, 80, 128>}, {pipeline_mode = #tpu.pipeline_mode<synchronous>, transform_indices = @transform_3, window_bounds = array<i64: 3, 128, 192>}, {pipeline_mode = #tpu.pipeline_mode<synchronous>, transform_indices = @transform_4, window_bounds = array<i64: 3, 192, 256>}, {pipeline_mode = #tpu.pipeline_mode<synchronous>, transform_indices = @transform_5, window_bounds = array<i64: 1, 80>}, {pipeline_mode = #tpu.pipeline_mode<synchronous>, transform_indices = @transform_6, window_bounds = array<i64: 1, 128>}, {pipeline_mode = #tpu.pipeline_mode<synchronous>, transform_indices = @transform_7, window_bounds = array<i64: 1, 192>}, {pipeline_mode = #tpu.pipeline_mode<synchronous>, transform_indices = @transform_8, window_bounds = array<i64: 1, 256>}, {pipeline_mode = #tpu.pipeline_mode<synchronous>, transform_indices = @transform_9, window_bounds = array<i64: 2, 256, 128>}, {pipeline_mode = #tpu.pipeline_mode<synchronous>, transform_indices = @transform_10, window_bounds = array<i64: 1, 128>}, {pipeline_mode = #tpu.pipeline_mode<synchronous>, transform_indices = @transform_11, window_bounds = array<i64: 32, 128>}, {pipeline_mode = #tpu.pipeline_mode<synchronous>, transform_indices = @transform_12, window_bounds = array<i64: 32, 6>}, {pipeline_mode = #tpu.pipeline_mode<synchronous>, transform_indices = @transform_13, window_bounds = array<i64: 1, 6>}, {pipeline_mode = #tpu.pipeline_mode<synchronous>, transform_indices = @transform_14, window_bounds = array<i64: 2, 6>}]} {
    %cst = arith.constant 0.000000e+00 : f32
    %0 = vector.broadcast %cst : f32 to vector<128x80xf32>
    %c0 = arith.constant 0 : index
    %c0_0 = arith.constant 0 : index
    %c0_1 = arith.constant 0 : index
    %1 = vector.load %arg1[%c0, %c0_0, %c0_1] : memref<2x160x24xf32, #tpu.memory_space<vmem>>, vector<1x128x24xf32>
    %2 = vector.shape_cast %1 : vector<1x128x24xf32> to vector<128x24xf32>
    %c0_2 = arith.constant 0 : index
    %c0_3 = arith.constant 0 : index
    %c0_4 = arith.constant 0 : index
    %3 = vector.load %arg2[%c0_2, %c0_3, %c0_4] : memref<5x24x80xf32, #tpu.memory_space<vmem>>, vector<1x24x80xf32>
    %4 = vector.shape_cast %3 : vector<1x24x80xf32> to vector<24x80xf32>
    %cst_5 = arith.constant dense<0.000000e+00> : vector<128x80xf32>
    %5 = tpu.matmul %2, %4, %cst_5 {dimension_numbers = #tpu.dot_dimension_numbers<[1], [0], [0], [1], [0, 0, 1, 1], [], []>} : vector<128x24xf32>, vector<24x80xf32>, vector<128x80xf32> -> vector<128x80xf32>
    %6 = arith.addf %0, %5 : vector<128x80xf32>
    %c1 = arith.constant 1 : index
    %c0_6 = arith.constant 0 : index
    %c0_7 = arith.constant 0 : index
    %7 = vector.load %arg1[%c1, %c0_6, %c0_7] : memref<2x160x24xf32, #tpu.memory_space<vmem>>, vector<1x128x24xf32>
    %8 = vector.shape_cast %7 : vector<1x128x24xf32> to vector<128x24xf32>
    %c1_8 = arith.constant 1 : index
    %c0_9 = arith.constant 0 : index
    %c0_10 = arith.constant 0 : index
    %9 = vector.load %arg2[%c1_8, %c0_9, %c0_10] : memref<5x24x80xf32, #tpu.memory_space<vmem>>, vector<1x24x80xf32>
    %10 = vector.shape_cast %9 : vector<1x24x80xf32> to vector<24x80xf32>
    %cst_11 = arith.constant dense<0.000000e+00> : vector<128x80xf32>
    %11 = tpu.matmul %8, %10, %cst_11 {dimension_numbers = #tpu.dot_dimension_numbers<[1], [0], [0], [1], [0, 0, 1, 1], [], []>} : vector<128x24xf32>, vector<24x80xf32>, vector<128x80xf32> -> vector<128x80xf32>
    %12 = arith.addf %6, %11 : vector<128x80xf32>
    %c0_12 = arith.constant 0 : index
    %c16 = arith.constant 16 : index
    %c0_13 = arith.constant 0 : index
    %13 = vector.load %arg1[%c0_12, %c16, %c0_13] : memref<2x160x24xf32, #tpu.memory_space<vmem>>, vector<1x128x24xf32>
    %14 = vector.shape_cast %13 : vector<1x128x24xf32> to vector<128x24xf32>
    %c2 = arith.constant 2 : index
    %c0_14 = arith.constant 0 : index
    %c0_15 = arith.constant 0 : index
    %15 = vector.load %arg2[%c2, %c0_14, %c0_15] : memref<5x24x80xf32, #tpu.memory_space<vmem>>, vector<1x24x80xf32>
    %16 = vector.shape_cast %15 : vector<1x24x80xf32> to vector<24x80xf32>
    %cst_16 = arith.constant dense<0.000000e+00> : vector<128x80xf32>
    %17 = tpu.matmul %14, %16, %cst_16 {dimension_numbers = #tpu.dot_dimension_numbers<[1], [0], [0], [1], [0, 0, 1, 1], [], []>} : vector<128x24xf32>, vector<24x80xf32>, vector<128x80xf32> -> vector<128x80xf32>
    %18 = arith.addf %12, %17 : vector<128x80xf32>
    %c1_17 = arith.constant 1 : index
    %c16_18 = arith.constant 16 : index
    %c0_19 = arith.constant 0 : index
    %19 = vector.load %arg1[%c1_17, %c16_18, %c0_19] : memref<2x160x24xf32, #tpu.memory_space<vmem>>, vector<1x128x24xf32>
    %20 = vector.shape_cast %19 : vector<1x128x24xf32> to vector<128x24xf32>
    %c3 = arith.constant 3 : index
    %c0_20 = arith.constant 0 : index
    %c0_21 = arith.constant 0 : index
    %21 = vector.load %arg2[%c3, %c0_20, %c0_21] : memref<5x24x80xf32, #tpu.memory_space<vmem>>, vector<1x24x80xf32>
    %22 = vector.shape_cast %21 : vector<1x24x80xf32> to vector<24x80xf32>
    %cst_22 = arith.constant dense<0.000000e+00> : vector<128x80xf32>
    %23 = tpu.matmul %20, %22, %cst_22 {dimension_numbers = #tpu.dot_dimension_numbers<[1], [0], [0], [1], [0, 0, 1, 1], [], []>} : vector<128x24xf32>, vector<24x80xf32>, vector<128x80xf32> -> vector<128x80xf32>
    %24 = arith.addf %18, %23 : vector<128x80xf32>
    %c0_23 = arith.constant 0 : index
    %c32 = arith.constant 32 : index
    %c0_24 = arith.constant 0 : index
    %25 = vector.load %arg1[%c0_23, %c32, %c0_24] : memref<2x160x24xf32, #tpu.memory_space<vmem>>, vector<1x128x24xf32>
    %26 = vector.shape_cast %25 : vector<1x128x24xf32> to vector<128x24xf32>
    %c4 = arith.constant 4 : index
    %c0_25 = arith.constant 0 : index
    %c0_26 = arith.constant 0 : index
    %27 = vector.load %arg2[%c4, %c0_25, %c0_26] : memref<5x24x80xf32, #tpu.memory_space<vmem>>, vector<1x24x80xf32>
    %28 = vector.shape_cast %27 : vector<1x24x80xf32> to vector<24x80xf32>
    %cst_27 = arith.constant dense<0.000000e+00> : vector<128x80xf32>
    %29 = tpu.matmul %26, %28, %cst_27 {dimension_numbers = #tpu.dot_dimension_numbers<[1], [0], [0], [1], [0, 0, 1, 1], [], []>} : vector<128x24xf32>, vector<24x80xf32>, vector<128x80xf32> -> vector<128x80xf32>
    %30 = arith.addf %24, %29 : vector<128x80xf32>
    %c0_28 = arith.constant 0 : index
    %c0_29 = arith.constant 0 : index
    %31 = vector.load %arg6[%c0_28, %c0_29] : memref<1x80xf32, #tpu.memory_space<vmem>>, vector<1x80xf32>
    %32 = vector.broadcast %31 : vector<1x80xf32> to vector<128x80xf32>
    %33 = arith.addf %30, %32 : vector<128x80xf32>
    %cst_30 = arith.constant 5.000000e-01 : f32
    %34 = vector.broadcast %cst_30 : f32 to vector<128x80xf32>
    %35 = arith.mulf %34, %33 : vector<128x80xf32>
    %cst_31 = arith.constant 0.707106769 : f32
    %36 = vector.broadcast %cst_31 : f32 to vector<128x80xf32>
    %37 = arith.mulf %33, %36 : vector<128x80xf32>
    %38 = math.absf %37 : vector<128x80xf32>
    %cst_32 = arith.constant 0.327591091 : f32
    %39 = vector.broadcast %cst_32 : f32 to vector<128x80xf32>
    %40 = arith.mulf %39, %38 : vector<128x80xf32>
    %cst_33 = arith.constant 1.000000e+00 : f32
    %41 = vector.broadcast %cst_33 : f32 to vector<128x80xf32>
    %42 = arith.addf %41, %40 : vector<128x80xf32>
    %cst_34 = arith.constant 1.000000e+00 : f32
    %43 = vector.broadcast %cst_34 : f32 to vector<128x80xf32>
    %44 = arith.divf %43, %42 : vector<128x80xf32>
    %cst_35 = arith.constant 1.06140542 : f32
    %45 = vector.broadcast %cst_35 : f32 to vector<128x80xf32>
    %46 = arith.mulf %45, %44 : vector<128x80xf32>
    %cst_36 = arith.constant -1.45315206 : f32
    %47 = vector.broadcast %cst_36 : f32 to vector<128x80xf32>
    %48 = arith.addf %46, %47 : vector<128x80xf32>
    %49 = arith.mulf %48, %44 : vector<128x80xf32>
    %cst_37 = arith.constant 1.42141378 : f32
    %50 = vector.broadcast %cst_37 : f32 to vector<128x80xf32>
    %51 = arith.addf %49, %50 : vector<128x80xf32>
    %52 = arith.mulf %51, %44 : vector<128x80xf32>
    %cst_38 = arith.constant -0.284496725 : f32
    %53 = vector.broadcast %cst_38 : f32 to vector<128x80xf32>
    %54 = arith.addf %52, %53 : vector<128x80xf32>
    %55 = arith.mulf %54, %44 : vector<128x80xf32>
    %cst_39 = arith.constant 0.254829586 : f32
    %56 = vector.broadcast %cst_39 : f32 to vector<128x80xf32>
    %57 = arith.addf %55, %56 : vector<128x80xf32>
    %58 = arith.mulf %57, %44 : vector<128x80xf32>
    %cst_40 = arith.constant 0.000000e+00 : f32
    %59 = vector.broadcast %cst_40 : f32 to vector<128x80xf32>
    %60 = arith.subf %59, %38 : vector<128x80xf32>
    %61 = arith.mulf %60, %38 : vector<128x80xf32>
    %62 = math.exp %61 : vector<128x80xf32>
    %63 = arith.mulf %58, %62 : vector<128x80xf32>
    %cst_41 = arith.constant 1.000000e+00 : f32
    %64 = vector.broadcast %cst_41 : f32 to vector<128x80xf32>
    %65 = arith.subf %64, %63 : vector<128x80xf32>
    %cst_42 = arith.constant 0.000000e+00 : f32
    %66 = vector.broadcast %cst_42 : f32 to vector<128x80xf32>
    %67 = arith.cmpf oge, %37, %66 : vector<128x80xf32>
    %cst_43 = arith.constant 0.000000e+00 : f32
    %68 = vector.broadcast %cst_43 : f32 to vector<128x80xf32>
    %69 = arith.subf %68, %65 : vector<128x80xf32>
    %70 = arith.select %67, %65, %69 : vector<128x80xi1>, vector<128x80xf32>
    %cst_44 = arith.constant 1.000000e+00 : f32
    %71 = vector.broadcast %cst_44 : f32 to vector<128x80xf32>
    %72 = arith.addf %71, %70 : vector<128x80xf32>
    %73 = arith.mulf %35, %72 : vector<128x80xf32>
    %c0_45 = arith.constant 0 : index
    %c0_46 = arith.constant 0 : index
    %74 = vector.load %arg16[%c0_45, %c0_46] : memref<128x80xf32, #tpu.memory_space<vmem>>, vector<128x80xf32>
    tpu.vector_store %arg16[%c0_45, %c0_46], %73 {strides = array<i32>} : memref<128x80xf32, #tpu.memory_space<vmem>>, vector<128x80xf32>,
    %cst_47 = arith.constant 0.000000e+00 : f32
    %75 = vector.broadcast %cst_47 : f32 to vector<96x128xf32>
    %c0_48 = arith.constant 0 : index
    %c0_49 = arith.constant 0 : index
    %76 = vector.load %arg16[%c0_48, %c0_49] : memref<128x80xf32, #tpu.memory_space<vmem>>, vector<96x80xf32>
    %c0_50 = arith.constant 0 : index
    %c0_51 = arith.constant 0 : index
    %c0_52 = arith.constant 0 : index
    %77 = vector.load %arg3[%c0_50, %c0_51, %c0_52] : memref<3x80x128xf32, #tpu.memory_space<vmem>>, vector<1x80x128xf32>
    %78 = vector.shape_cast %77 : vector<1x80x128xf32> to vector<80x128xf32>
    %cst_53 = arith.constant dense<0.000000e+00> : vector<96x128xf32>
    %79 = tpu.matmul %76, %78, %cst_53 {dimension_numbers = #tpu.dot_dimension_numbers<[1], [0], [0], [1], [0, 0, 1, 1], [], []>} : vector<96x80xf32>, vector<80x128xf32>, vector<96x128xf32> -> vector<96x128xf32>
    %80 = arith.addf %75, %79 : vector<96x128xf32>
    %c16_54 = arith.constant 16 : index
    %c0_55 = arith.constant 0 : index
    %81 = vector.load %arg16[%c16_54, %c0_55] : memref<128x80xf32, #tpu.memory_space<vmem>>, vector<96x80xf32>
    %c1_56 = arith.constant 1 : index
    %c0_57 = arith.constant 0 : index
    %c0_58 = arith.constant 0 : index
    %82 = vector.load %arg3[%c1_56, %c0_57, %c0_58] : memref<3x80x128xf32, #tpu.memory_space<vmem>>, vector<1x80x128xf32>
    %83 = vector.shape_cast %82 : vector<1x80x128xf32> to vector<80x128xf32>
    %cst_59 = arith.constant dense<0.000000e+00> : vector<96x128xf32>
    %84 = tpu.matmul %81, %83, %cst_59 {dimension_numbers = #tpu.dot_dimension_numbers<[1], [0], [0], [1], [0, 0, 1, 1], [], []>} : vector<96x80xf32>, vector<80x128xf32>, vector<96x128xf32> -> vector<96x128xf32>
    %85 = arith.addf %80, %84 : vector<96x128xf32>
    %c32_60 = arith.constant 32 : index
    %c0_61 = arith.constant 0 : index
    %86 = vector.load %arg16[%c32_60, %c0_61] : memref<128x80xf32, #tpu.memory_space<vmem>>, vector<96x80xf32>
    %c2_62 = arith.constant 2 : index
    %c0_63 = arith.constant 0 : index
    %c0_64 = arith.constant 0 : index
    %87 = vector.load %arg3[%c2_62, %c0_63, %c0_64] : memref<3x80x128xf32, #tpu.memory_space<vmem>>, vector<1x80x128xf32>
    %88 = vector.shape_cast %87 : vector<1x80x128xf32> to vector<80x128xf32>
    %cst_65 = arith.constant dense<0.000000e+00> : vector<96x128xf32>
    %89 = tpu.matmul %86, %88, %cst_65 {dimension_numbers = #tpu.dot_dimension_numbers<[1], [0], [0], [1], [0, 0, 1, 1], [], []>} : vector<96x80xf32>, vector<80x128xf32>, vector<96x128xf32> -> vector<96x128xf32>
    %90 = arith.addf %85, %89 : vector<96x128xf32>
    %c0_66 = arith.constant 0 : index
    %c0_67 = arith.constant 0 : index
    %91 = vector.load %arg7[%c0_66, %c0_67] : memref<1x128xf32, #tpu.memory_space<vmem>>, vector<1x128xf32>
    %92 = vector.broadcast %91 : vector<1x128xf32> to vector<96x128xf32>
    %93 = arith.addf %90, %92 : vector<96x128xf32>
    %cst_68 = arith.constant 5.000000e-01 : f32
    %94 = vector.broadcast %cst_68 : f32 to vector<96x128xf32>
    %95 = arith.mulf %94, %93 : vector<96x128xf32>
    %cst_69 = arith.constant 0.707106769 : f32
    %96 = vector.broadcast %cst_69 : f32 to vector<96x128xf32>
    %97 = arith.mulf %93, %96 : vector<96x128xf32>
    %98 = math.absf %97 : vector<96x128xf32>
    %cst_70 = arith.constant 0.327591091 : f32
    %99 = vector.broadcast %cst_70 : f32 to vector<96x128xf32>
    %100 = arith.mulf %99, %98 : vector<96x128xf32>
    %cst_71 = arith.constant 1.000000e+00 : f32
    %101 = vector.broadcast %cst_71 : f32 to vector<96x128xf32>
    %102 = arith.addf %101, %100 : vector<96x128xf32>
    %cst_72 = arith.constant 1.000000e+00 : f32
    %103 = vector.broadcast %cst_72 : f32 to vector<96x128xf32>
    %104 = arith.divf %103, %102 : vector<96x128xf32>
    %cst_73 = arith.constant 1.06140542 : f32
    %105 = vector.broadcast %cst_73 : f32 to vector<96x128xf32>
    %106 = arith.mulf %105, %104 : vector<96x128xf32>
    %cst_74 = arith.constant -1.45315206 : f32
    %107 = vector.broadcast %cst_74 : f32 to vector<96x128xf32>
    %108 = arith.addf %106, %107 : vector<96x128xf32>
    %109 = arith.mulf %108, %104 : vector<96x128xf32>
    %cst_75 = arith.constant 1.42141378 : f32
    %110 = vector.broadcast %cst_75 : f32 to vector<96x128xf32>
    %111 = arith.addf %109, %110 : vector<96x128xf32>
    %112 = arith.mulf %111, %104 : vector<96x128xf32>
    %cst_76 = arith.constant -0.284496725 : f32
    %113 = vector.broadcast %cst_76 : f32 to vector<96x128xf32>
    %114 = arith.addf %112, %113 : vector<96x128xf32>
    %115 = arith.mulf %114, %104 : vector<96x128xf32>
    %cst_77 = arith.constant 0.254829586 : f32
    %116 = vector.broadcast %cst_77 : f32 to vector<96x128xf32>
    %117 = arith.addf %115, %116 : vector<96x128xf32>
    %118 = arith.mulf %117, %104 : vector<96x128xf32>
    %cst_78 = arith.constant 0.000000e+00 : f32
    %119 = vector.broadcast %cst_78 : f32 to vector<96x128xf32>
    %120 = arith.subf %119, %98 : vector<96x128xf32>
    %121 = arith.mulf %120, %98 : vector<96x128xf32>
    %122 = math.exp %121 : vector<96x128xf32>
    %123 = arith.mulf %118, %122 : vector<96x128xf32>
    %cst_79 = arith.constant 1.000000e+00 : f32
    %124 = vector.broadcast %cst_79 : f32 to vector<96x128xf32>
    %125 = arith.subf %124, %123 : vector<96x128xf32>
    %cst_80 = arith.constant 0.000000e+00 : f32
    %126 = vector.broadcast %cst_80 : f32 to vector<96x128xf32>
    %127 = arith.cmpf oge, %97, %126 : vector<96x128xf32>
    %cst_81 = arith.constant 0.000000e+00 : f32
    %128 = vector.broadcast %cst_81 : f32 to vector<96x128xf32>
    %129 = arith.subf %128, %125 : vector<96x128xf32>
    %130 = arith.select %127, %125, %129 : vector<96x128xi1>, vector<96x128xf32>
    %cst_82 = arith.constant 1.000000e+00 : f32
    %131 = vector.broadcast %cst_82 : f32 to vector<96x128xf32>
    %132 = arith.addf %131, %130 : vector<96x128xf32>
    %133 = arith.mulf %95, %132 : vector<96x128xf32>
    %c0_83 = arith.constant 0 : index
    %c0_84 = arith.constant 0 : index
    %134 = vector.load %arg17[%c0_83, %c0_84] : memref<96x128xf32, #tpu.memory_space<vmem>>, vector<96x128xf32>
    tpu.vector_store %arg17[%c0_83, %c0_84], %133 {strides = array<i32>} : memref<96x128xf32, #tpu.memory_space<vmem>>, vector<96x128xf32>,
    %cst_85 = arith.constant 0.000000e+00 : f32
    %135 = vector.broadcast %cst_85 : f32 to vector<64x192xf32>
    %c0_86 = arith.constant 0 : index
    %c0_87 = arith.constant 0 : index
    %136 = vector.load %arg17[%c0_86, %c0_87] : memref<96x128xf32, #tpu.memory_space<vmem>>, vector<64x128xf32>
    %c0_88 = arith.constant 0 : index
    %c0_89 = arith.constant 0 : index
    %c0_90 = arith.constant 0 : index
    %137 = vector.load %arg4[%c0_88, %c0_89, %c0_90] : memref<3x128x192xf32, #tpu.memory_space<vmem>>, vector<1x128x192xf32>
    %138 = vector.shape_cast %137 : vector<1x128x192xf32> to vector<128x192xf32>
    %cst_91 = arith.constant dense<0.000000e+00> : vector<64x192xf32>
    %139 = tpu.matmul %136, %138, %cst_91 {dimension_numbers = #tpu.dot_dimension_numbers<[1], [0], [0], [1], [0, 0, 1, 1], [], []>} : vector<64x128xf32>, vector<128x192xf32>, vector<64x192xf32> -> vector<64x192xf32>
    %140 = arith.addf %135, %139 : vector<64x192xf32>
    %c16_92 = arith.constant 16 : index
    %c0_93 = arith.constant 0 : index
    %141 = vector.load %arg17[%c16_92, %c0_93] : memref<96x128xf32, #tpu.memory_space<vmem>>, vector<64x128xf32>
    %c1_94 = arith.constant 1 : index
    %c0_95 = arith.constant 0 : index
    %c0_96 = arith.constant 0 : index
    %142 = vector.load %arg4[%c1_94, %c0_95, %c0_96] : memref<3x128x192xf32, #tpu.memory_space<vmem>>, vector<1x128x192xf32>
    %143 = vector.shape_cast %142 : vector<1x128x192xf32> to vector<128x192xf32>
    %cst_97 = arith.constant dense<0.000000e+00> : vector<64x192xf32>
    %144 = tpu.matmul %141, %143, %cst_97 {dimension_numbers = #tpu.dot_dimension_numbers<[1], [0], [0], [1], [0, 0, 1, 1], [], []>} : vector<64x128xf32>, vector<128x192xf32>, vector<64x192xf32> -> vector<64x192xf32>
    %145 = arith.addf %140, %144 : vector<64x192xf32>
    %c32_98 = arith.constant 32 : index
    %c0_99 = arith.constant 0 : index
    %146 = vector.load %arg17[%c32_98, %c0_99] : memref<96x128xf32, #tpu.memory_space<vmem>>, vector<64x128xf32>
    %c2_100 = arith.constant 2 : index
    %c0_101 = arith.constant 0 : index
    %c0_102 = arith.constant 0 : index
    %147 = vector.load %arg4[%c2_100, %c0_101, %c0_102] : memref<3x128x192xf32, #tpu.memory_space<vmem>>, vector<1x128x192xf32>
    %148 = vector.shape_cast %147 : vector<1x128x192xf32> to vector<128x192xf32>
    %cst_103 = arith.constant dense<0.000000e+00> : vector<64x192xf32>
    %149 = tpu.matmul %146, %148, %cst_103 {dimension_numbers = #tpu.dot_dimension_numbers<[1], [0], [0], [1], [0, 0, 1, 1], [], []>} : vector<64x128xf32>, vector<128x192xf32>, vector<64x192xf32> -> vector<64x192xf32>
    %150 = arith.addf %145, %149 : vector<64x192xf32>
    %c0_104 = arith.constant 0 : index
    %c0_105 = arith.constant 0 : index
    %151 = vector.load %arg8[%c0_104, %c0_105] : memref<1x192xf32, #tpu.memory_space<vmem>>, vector<1x192xf32>
    %152 = vector.broadcast %151 : vector<1x192xf32> to vector<64x192xf32>
    %153 = arith.addf %150, %152 : vector<64x192xf32>
    %cst_106 = arith.constant 5.000000e-01 : f32
    %154 = vector.broadcast %cst_106 : f32 to vector<64x192xf32>
    %155 = arith.mulf %154, %153 : vector<64x192xf32>
    %cst_107 = arith.constant 0.707106769 : f32
    %156 = vector.broadcast %cst_107 : f32 to vector<64x192xf32>
    %157 = arith.mulf %153, %156 : vector<64x192xf32>
    %158 = math.absf %157 : vector<64x192xf32>
    %cst_108 = arith.constant 0.327591091 : f32
    %159 = vector.broadcast %cst_108 : f32 to vector<64x192xf32>
    %160 = arith.mulf %159, %158 : vector<64x192xf32>
    %cst_109 = arith.constant 1.000000e+00 : f32
    %161 = vector.broadcast %cst_109 : f32 to vector<64x192xf32>
    %162 = arith.addf %161, %160 : vector<64x192xf32>
    %cst_110 = arith.constant 1.000000e+00 : f32
    %163 = vector.broadcast %cst_110 : f32 to vector<64x192xf32>
    %164 = arith.divf %163, %162 : vector<64x192xf32>
    %cst_111 = arith.constant 1.06140542 : f32
    %165 = vector.broadcast %cst_111 : f32 to vector<64x192xf32>
    %166 = arith.mulf %165, %164 : vector<64x192xf32>
    %cst_112 = arith.constant -1.45315206 : f32
    %167 = vector.broadcast %cst_112 : f32 to vector<64x192xf32>
    %168 = arith.addf %166, %167 : vector<64x192xf32>
    %169 = arith.mulf %168, %164 : vector<64x192xf32>
    %cst_113 = arith.constant 1.42141378 : f32
    %170 = vector.broadcast %cst_113 : f32 to vector<64x192xf32>
    %171 = arith.addf %169, %170 : vector<64x192xf32>
    %172 = arith.mulf %171, %164 : vector<64x192xf32>
    %cst_114 = arith.constant -0.284496725 : f32
    %173 = vector.broadcast %cst_114 : f32 to vector<64x192xf32>
    %174 = arith.addf %172, %173 : vector<64x192xf32>
    %175 = arith.mulf %174, %164 : vector<64x192xf32>
    %cst_115 = arith.constant 0.254829586 : f32
    %176 = vector.broadcast %cst_115 : f32 to vector<64x192xf32>
    %177 = arith.addf %175, %176 : vector<64x192xf32>
    %178 = arith.mulf %177, %164 : vector<64x192xf32>
    %cst_116 = arith.constant 0.000000e+00 : f32
    %179 = vector.broadcast %cst_116 : f32 to vector<64x192xf32>
    %180 = arith.subf %179, %158 : vector<64x192xf32>
    %181 = arith.mulf %180, %158 : vector<64x192xf32>
    %182 = math.exp %181 : vector<64x192xf32>
    %183 = arith.mulf %178, %182 : vector<64x192xf32>
    %cst_117 = arith.constant 1.000000e+00 : f32
    %184 = vector.broadcast %cst_117 : f32 to vector<64x192xf32>
    %185 = arith.subf %184, %183 : vector<64x192xf32>
    %cst_118 = arith.constant 0.000000e+00 : f32
    %186 = vector.broadcast %cst_118 : f32 to vector<64x192xf32>
    %187 = arith.cmpf oge, %157, %186 : vector<64x192xf32>
    %cst_119 = arith.constant 0.000000e+00 : f32
    %188 = vector.broadcast %cst_119 : f32 to vector<64x192xf32>
    %189 = arith.subf %188, %185 : vector<64x192xf32>
    %190 = arith.select %187, %185, %189 : vector<64x192xi1>, vector<64x192xf32>
    %cst_120 = arith.constant 1.000000e+00 : f32
    %191 = vector.broadcast %cst_120 : f32 to vector<64x192xf32>
    %192 = arith.addf %191, %190 : vector<64x192xf32>
    %193 = arith.mulf %155, %192 : vector<64x192xf32>
    %c0_121 = arith.constant 0 : index
    %c0_122 = arith.constant 0 : index
    %194 = vector.load %arg18[%c0_121, %c0_122] : memref<64x192xf32, #tpu.memory_space<vmem>>, vector<64x192xf32>
    tpu.vector_store %arg18[%c0_121, %c0_122], %193 {strides = array<i32>} : memref<64x192xf32, #tpu.memory_space<vmem>>, vector<64x192xf32>,
    %cst_123 = arith.constant 0.000000e+00 : f32
    %195 = vector.broadcast %cst_123 : f32 to vector<32x256xf32>
    %c0_124 = arith.constant 0 : index
    %c0_125 = arith.constant 0 : index
    %196 = vector.load %arg18[%c0_124, %c0_125] : memref<64x192xf32, #tpu.memory_space<vmem>>, vector<32x192xf32>
    %c0_126 = arith.constant 0 : index
    %c0_127 = arith.constant 0 : index
    %c0_128 = arith.constant 0 : index
    %197 = vector.load %arg5[%c0_126, %c0_127, %c0_128] : memref<3x192x256xf32, #tpu.memory_space<vmem>>, vector<1x192x256xf32>
    %198 = vector.shape_cast %197 : vector<1x192x256xf32> to vector<192x256xf32>
    %cst_129 = arith.constant dense<0.000000e+00> : vector<32x256xf32>
    %199 = tpu.matmul %196, %198, %cst_129 {dimension_numbers = #tpu.dot_dimension_numbers<[1], [0], [0], [1], [0, 0, 1, 1], [], []>} : vector<32x192xf32>, vector<192x256xf32>, vector<32x256xf32> -> vector<32x256xf32>
    %200 = arith.addf %195, %199 : vector<32x256xf32>
    %c16_130 = arith.constant 16 : index
    %c0_131 = arith.constant 0 : index
    %201 = vector.load %arg18[%c16_130, %c0_131] : memref<64x192xf32, #tpu.memory_space<vmem>>, vector<32x192xf32>
    %c1_132 = arith.constant 1 : index
    %c0_133 = arith.constant 0 : index
    %c0_134 = arith.constant 0 : index
    %202 = vector.load %arg5[%c1_132, %c0_133, %c0_134] : memref<3x192x256xf32, #tpu.memory_space<vmem>>, vector<1x192x256xf32>
    %203 = vector.shape_cast %202 : vector<1x192x256xf32> to vector<192x256xf32>
    %cst_135 = arith.constant dense<0.000000e+00> : vector<32x256xf32>
    %204 = tpu.matmul %201, %203, %cst_135 {dimension_numbers = #tpu.dot_dimension_numbers<[1], [0], [0], [1], [0, 0, 1, 1], [], []>} : vector<32x192xf32>, vector<192x256xf32>, vector<32x256xf32> -> vector<32x256xf32>
    %205 = arith.addf %200, %204 : vector<32x256xf32>
    %c32_136 = arith.constant 32 : index
    %c0_137 = arith.constant 0 : index
    %206 = vector.load %arg18[%c32_136, %c0_137] : memref<64x192xf32, #tpu.memory_space<vmem>>, vector<32x192xf32>
    %c2_138 = arith.constant 2 : index
    %c0_139 = arith.constant 0 : index
    %c0_140 = arith.constant 0 : index
    %207 = vector.load %arg5[%c2_138, %c0_139, %c0_140] : memref<3x192x256xf32, #tpu.memory_space<vmem>>, vector<1x192x256xf32>
    %208 = vector.shape_cast %207 : vector<1x192x256xf32> to vector<192x256xf32>
    %cst_141 = arith.constant dense<0.000000e+00> : vector<32x256xf32>
    %209 = tpu.matmul %206, %208, %cst_141 {dimension_numbers = #tpu.dot_dimension_numbers<[1], [0], [0], [1], [0, 0, 1, 1], [], []>} : vector<32x192xf32>, vector<192x256xf32>, vector<32x256xf32> -> vector<32x256xf32>
    %210 = arith.addf %205, %209 : vector<32x256xf32>
    %c0_142 = arith.constant 0 : index
    %c0_143 = arith.constant 0 : index
    %211 = vector.load %arg9[%c0_142, %c0_143] : memref<1x256xf32, #tpu.memory_space<vmem>>, vector<1x256xf32>
    %212 = vector.broadcast %211 : vector<1x256xf32> to vector<32x256xf32>
    %213 = arith.addf %210, %212 : vector<32x256xf32>
    %cst_144 = arith.constant 5.000000e-01 : f32
    %214 = vector.broadcast %cst_144 : f32 to vector<32x256xf32>
    %215 = arith.mulf %214, %213 : vector<32x256xf32>
    %cst_145 = arith.constant 0.707106769 : f32
    %216 = vector.broadcast %cst_145 : f32 to vector<32x256xf32>
    %217 = arith.mulf %213, %216 : vector<32x256xf32>
    %218 = math.absf %217 : vector<32x256xf32>
    %cst_146 = arith.constant 0.327591091 : f32
    %219 = vector.broadcast %cst_146 : f32 to vector<32x256xf32>
    %220 = arith.mulf %219, %218 : vector<32x256xf32>
    %cst_147 = arith.constant 1.000000e+00 : f32
    %221 = vector.broadcast %cst_147 : f32 to vector<32x256xf32>
    %222 = arith.addf %221, %220 : vector<32x256xf32>
    %cst_148 = arith.constant 1.000000e+00 : f32
    %223 = vector.broadcast %cst_148 : f32 to vector<32x256xf32>
    %224 = arith.divf %223, %222 : vector<32x256xf32>
    %cst_149 = arith.constant 1.06140542 : f32
    %225 = vector.broadcast %cst_149 : f32 to vector<32x256xf32>
    %226 = arith.mulf %225, %224 : vector<32x256xf32>
    %cst_150 = arith.constant -1.45315206 : f32
    %227 = vector.broadcast %cst_150 : f32 to vector<32x256xf32>
    %228 = arith.addf %226, %227 : vector<32x256xf32>
    %229 = arith.mulf %228, %224 : vector<32x256xf32>
    %cst_151 = arith.constant 1.42141378 : f32
    %230 = vector.broadcast %cst_151 : f32 to vector<32x256xf32>
    %231 = arith.addf %229, %230 : vector<32x256xf32>
    %232 = arith.mulf %231, %224 : vector<32x256xf32>
    %cst_152 = arith.constant -0.284496725 : f32
    %233 = vector.broadcast %cst_152 : f32 to vector<32x256xf32>
    %234 = arith.addf %232, %233 : vector<32x256xf32>
    %235 = arith.mulf %234, %224 : vector<32x256xf32>
    %cst_153 = arith.constant 0.254829586 : f32
    %236 = vector.broadcast %cst_153 : f32 to vector<32x256xf32>
    %237 = arith.addf %235, %236 : vector<32x256xf32>
    %238 = arith.mulf %237, %224 : vector<32x256xf32>
    %cst_154 = arith.constant 0.000000e+00 : f32
    %239 = vector.broadcast %cst_154 : f32 to vector<32x256xf32>
    %240 = arith.subf %239, %218 : vector<32x256xf32>
    %241 = arith.mulf %240, %218 : vector<32x256xf32>
    %242 = math.exp %241 : vector<32x256xf32>
    %243 = arith.mulf %238, %242 : vector<32x256xf32>
    %cst_155 = arith.constant 1.000000e+00 : f32
    %244 = vector.broadcast %cst_155 : f32 to vector<32x256xf32>
    %245 = arith.subf %244, %243 : vector<32x256xf32>
    %cst_156 = arith.constant 0.000000e+00 : f32
    %246 = vector.broadcast %cst_156 : f32 to vector<32x256xf32>
    %247 = arith.cmpf oge, %217, %246 : vector<32x256xf32>
    %cst_157 = arith.constant 0.000000e+00 : f32
    %248 = vector.broadcast %cst_157 : f32 to vector<32x256xf32>
    %249 = arith.subf %248, %245 : vector<32x256xf32>
    %250 = arith.select %247, %245, %249 : vector<32x256xi1>, vector<32x256xf32>
    %cst_158 = arith.constant 1.000000e+00 : f32
    %251 = vector.broadcast %cst_158 : f32 to vector<32x256xf32>
    %252 = arith.addf %251, %250 : vector<32x256xf32>
    %253 = arith.mulf %215, %252 : vector<32x256xf32>
    %c0_159 = arith.constant 0 : index
    %c0_160 = arith.constant 0 : index
    %254 = vector.load %arg19[%c0_159, %c0_160] : memref<32x256xf32, #tpu.memory_space<vmem>>, vector<32x256xf32>
    tpu.vector_store %arg19[%c0_159, %c0_160], %253 {strides = array<i32>} : memref<32x256xf32, #tpu.memory_space<vmem>>, vector<32x256xf32>,
    %c0_161 = arith.constant 0 : index
    %c0_162 = arith.constant 0 : index
    %255 = vector.load %arg19[%c0_161, %c0_162] : memref<32x256xf32, #tpu.memory_space<vmem>>, vector<16x256xf32>
    %c0_163 = arith.constant 0 : index
    %c0_164 = arith.constant 0 : index
    %c0_165 = arith.constant 0 : index
    %256 = vector.load %arg10[%c0_163, %c0_164, %c0_165] : memref<2x256x128xf32, #tpu.memory_space<vmem>>, vector<1x256x128xf32>
    %257 = vector.shape_cast %256 : vector<1x256x128xf32> to vector<256x128xf32>
    %cst_166 = arith.constant dense<0.000000e+00> : vector<16x128xf32>
    %258 = tpu.matmul %255, %257, %cst_166 {dimension_numbers = #tpu.dot_dimension_numbers<[1], [0], [0], [1], [0, 0, 1, 1], [], []>} : vector<16x256xf32>, vector<256x128xf32>, vector<16x128xf32> -> vector<16x128xf32>
    %c16_167 = arith.constant 16 : index
    %c0_168 = arith.constant 0 : index
    %259 = vector.load %arg19[%c16_167, %c0_168] : memref<32x256xf32, #tpu.memory_space<vmem>>, vector<16x256xf32>
    %c1_169 = arith.constant 1 : index
    %c0_170 = arith.constant 0 : index
    %c0_171 = arith.constant 0 : index
    %260 = vector.load %arg10[%c1_169, %c0_170, %c0_171] : memref<2x256x128xf32, #tpu.memory_space<vmem>>, vector<1x256x128xf32>
    %261 = vector.shape_cast %260 : vector<1x256x128xf32> to vector<256x128xf32>
    %cst_172 = arith.constant dense<0.000000e+00> : vector<16x128xf32>
    %262 = tpu.matmul %259, %261, %cst_172 {dimension_numbers = #tpu.dot_dimension_numbers<[1], [0], [0], [1], [0, 0, 1, 1], [], []>} : vector<16x256xf32>, vector<256x128xf32>, vector<16x128xf32> -> vector<16x128xf32>
    %263 = arith.addf %258, %262 : vector<16x128xf32>
    %c0_173 = arith.constant 0 : index
    %c0_174 = arith.constant 0 : index
    %264 = vector.load %arg11[%c0_173, %c0_174] : memref<1x128xf32, #tpu.memory_space<vmem>>, vector<1x128xf32>
    %265 = vector.broadcast %264 : vector<1x128xf32> to vector<16x128xf32>
    %266 = arith.addf %263, %265 : vector<16x128xf32>
    %267 = vector.shape_cast %266 : vector<16x128xf32> to vector<2x8x128xf32>
    %c0_175 = arith.constant 0 : index
    %c0_176 = arith.constant 0 : index
    %268 = vector.load %arg12[%c0_175, %c0_176] : memref<32x128xf32, #tpu.memory_space<vmem>>, vector<32x128xf32>
    %cst_177 = arith.constant 0.000000e+00 : f32
    %269 = vector.broadcast %cst_177 : f32 to vector<2x32xf32>
    %cst_178 = arith.constant 0.000000e+00 : f32
    %270 = vector.broadcast %cst_178 : f32 to vector<2x32xf32>
    %271 = vector.extract_strided_slice %267 {offsets = [0, 0, 0], sizes = [2, 1, 128], strides = [1, 1, 1]} : vector<2x8x128xf32> to vector<2x1x128xf32>
    %272 = vector.shape_cast %271 : vector<2x1x128xf32> to vector<2x128xf32>
    %cst_179 = arith.constant dense<0.000000e+00> : vector<2x128xf32>
    %273 = tpu.matmul %269, %268, %cst_179 {dimension_numbers = #tpu.dot_dimension_numbers<[1], [0], [0], [1], [0, 0, 1, 1], [], []>} : vector<2x32xf32>, vector<32x128xf32>, vector<2x128xf32> -> vector<2x128xf32>
    %274 = arith.addf %272, %273 : vector<2x128xf32>
    %275 = vector.extract_strided_slice %274 {offsets = [0, 0], sizes = [2, 32], strides = [1, 1]} : vector<2x128xf32> to vector<2x32xf32>
    %276 = arith.negf %275 : vector<2x32xf32>
    %277 = math.exp %276 : vector<2x32xf32>
    %cst_180 = arith.constant 1.000000e+00 : f32
    %278 = vector.broadcast %cst_180 : f32 to vector<2x32xf32>
    %279 = arith.addf %278, %277 : vector<2x32xf32>
    %280 = arith.divf %278, %279 : vector<2x32xf32>
    %281 = vector.extract_strided_slice %274 {offsets = [0, 32], sizes = [2, 32], strides = [1, 1]} : vector<2x128xf32> to vector<2x32xf32>
    %282 = arith.negf %281 : vector<2x32xf32>
    %283 = math.exp %282 : vector<2x32xf32>
    %cst_181 = arith.constant 1.000000e+00 : f32
    %284 = vector.broadcast %cst_181 : f32 to vector<2x32xf32>
    %285 = arith.addf %284, %283 : vector<2x32xf32>
    %286 = arith.divf %284, %285 : vector<2x32xf32>
    %287 = vector.extract_strided_slice %274 {offsets = [0, 64], sizes = [2, 32], strides = [1, 1]} : vector<2x128xf32> to vector<2x32xf32>
    %288 = math.tanh %287 : vector<2x32xf32>
    %289 = vector.extract_strided_slice %274 {offsets = [0, 96], sizes = [2, 32], strides = [1, 1]} : vector<2x128xf32> to vector<2x32xf32>
    %290 = arith.negf %289 : vector<2x32xf32>
    %291 = math.exp %290 : vector<2x32xf32>
    %cst_182 = arith.constant 1.000000e+00 : f32
    %292 = vector.broadcast %cst_182 : f32 to vector<2x32xf32>
    %293 = arith.addf %292, %291 : vector<2x32xf32>
    %294 = arith.divf %292, %293 : vector<2x32xf32>
    %295 = arith.mulf %286, %270 : vector<2x32xf32>
    %296 = arith.mulf %280, %288 : vector<2x32xf32>
    %297 = arith.addf %295, %296 : vector<2x32xf32>
    %298 = math.tanh %297 : vector<2x32xf32>
    %299 = arith.mulf %294, %298 : vector<2x32xf32>
    %300 = vector.extract_strided_slice %267 {offsets = [0, 1, 0], sizes = [2, 1, 128], strides = [1, 1, 1]} : vector<2x8x128xf32> to vector<2x1x128xf32>
    %301 = vector.shape_cast %300 : vector<2x1x128xf32> to vector<2x128xf32>
    %cst_183 = arith.constant dense<0.000000e+00> : vector<2x128xf32>
    %302 = tpu.matmul %299, %268, %cst_183 {dimension_numbers = #tpu.dot_dimension_numbers<[1], [0], [0], [1], [0, 0, 1, 1], [], []>} : vector<2x32xf32>, vector<32x128xf32>, vector<2x128xf32> -> vector<2x128xf32>
    %303 = arith.addf %301, %302 : vector<2x128xf32>
    %304 = vector.extract_strided_slice %303 {offsets = [0, 0], sizes = [2, 32], strides = [1, 1]} : vector<2x128xf32> to vector<2x32xf32>
    %305 = arith.negf %304 : vector<2x32xf32>
    %306 = math.exp %305 : vector<2x32xf32>
    %cst_184 = arith.constant 1.000000e+00 : f32
    %307 = vector.broadcast %cst_184 : f32 to vector<2x32xf32>
    %308 = arith.addf %307, %306 : vector<2x32xf32>
    %309 = arith.divf %307, %308 : vector<2x32xf32>
    %310 = vector.extract_strided_slice %303 {offsets = [0, 32], sizes = [2, 32], strides = [1, 1]} : vector<2x128xf32> to vector<2x32xf32>
    %311 = arith.negf %310 : vector<2x32xf32>
    %312 = math.exp %311 : vector<2x32xf32>
    %cst_185 = arith.constant 1.000000e+00 : f32
    %313 = vector.broadcast %cst_185 : f32 to vector<2x32xf32>
    %314 = arith.addf %313, %312 : vector<2x32xf32>
    %315 = arith.divf %313, %314 : vector<2x32xf32>
    %316 = vector.extract_strided_slice %303 {offsets = [0, 64], sizes = [2, 32], strides = [1, 1]} : vector<2x128xf32> to vector<2x32xf32>
    %317 = math.tanh %316 : vector<2x32xf32>
    %318 = vector.extract_strided_slice %303 {offsets = [0, 96], sizes = [2, 32], strides = [1, 1]} : vector<2x128xf32> to vector<2x32xf32>
    %319 = arith.negf %318 : vector<2x32xf32>
    %320 = math.exp %319 : vector<2x32xf32>
    %cst_186 = arith.constant 1.000000e+00 : f32
    %321 = vector.broadcast %cst_186 : f32 to vector<2x32xf32>
    %322 = arith.addf %321, %320 : vector<2x32xf32>
    %323 = arith.divf %321, %322 : vector<2x32xf32>
    %324 = arith.mulf %315, %297 : vector<2x32xf32>
    %325 = arith.mulf %309, %317 : vector<2x32xf32>
    %326 = arith.addf %324, %325 : vector<2x32xf32>
    %327 = math.tanh %326 : vector<2x32xf32>
    %328 = arith.mulf %323, %327 : vector<2x32xf32>
    %329 = vector.extract_strided_slice %267 {offsets = [0, 2, 0], sizes = [2, 1, 128], strides = [1, 1, 1]} : vector<2x8x128xf32> to vector<2x1x128xf32>
    %330 = vector.shape_cast %329 : vector<2x1x128xf32> to vector<2x128xf32>
    %cst_187 = arith.constant dense<0.000000e+00> : vector<2x128xf32>
    %331 = tpu.matmul %328, %268, %cst_187 {dimension_numbers = #tpu.dot_dimension_numbers<[1], [0], [0], [1], [0, 0, 1, 1], [], []>} : vector<2x32xf32>, vector<32x128xf32>, vector<2x128xf32> -> vector<2x128xf32>
    %332 = arith.addf %330, %331 : vector<2x128xf32>
    %333 = vector.extract_strided_slice %332 {offsets = [0, 0], sizes = [2, 32], strides = [1, 1]} : vector<2x128xf32> to vector<2x32xf32>
    %334 = arith.negf %333 : vector<2x32xf32>
    %335 = math.exp %334 : vector<2x32xf32>
    %cst_188 = arith.constant 1.000000e+00 : f32
    %336 = vector.broadcast %cst_188 : f32 to vector<2x32xf32>
    %337 = arith.addf %336, %335 : vector<2x32xf32>
    %338 = arith.divf %336, %337 : vector<2x32xf32>
    %339 = vector.extract_strided_slice %332 {offsets = [0, 32], sizes = [2, 32], strides = [1, 1]} : vector<2x128xf32> to vector<2x32xf32>
    %340 = arith.negf %339 : vector<2x32xf32>
    %341 = math.exp %340 : vector<2x32xf32>
    %cst_189 = arith.constant 1.000000e+00 : f32
    %342 = vector.broadcast %cst_189 : f32 to vector<2x32xf32>
    %343 = arith.addf %342, %341 : vector<2x32xf32>
    %344 = arith.divf %342, %343 : vector<2x32xf32>
    %345 = vector.extract_strided_slice %332 {offsets = [0, 64], sizes = [2, 32], strides = [1, 1]} : vector<2x128xf32> to vector<2x32xf32>
    %346 = math.tanh %345 : vector<2x32xf32>
    %347 = vector.extract_strided_slice %332 {offsets = [0, 96], sizes = [2, 32], strides = [1, 1]} : vector<2x128xf32> to vector<2x32xf32>
    %348 = arith.negf %347 : vector<2x32xf32>
    %349 = math.exp %348 : vector<2x32xf32>
    %cst_190 = arith.constant 1.000000e+00 : f32
    %350 = vector.broadcast %cst_190 : f32 to vector<2x32xf32>
    %351 = arith.addf %350, %349 : vector<2x32xf32>
    %352 = arith.divf %350, %351 : vector<2x32xf32>
    %353 = arith.mulf %344, %326 : vector<2x32xf32>
    %354 = arith.mulf %338, %346 : vector<2x32xf32>
    %355 = arith.addf %353, %354 : vector<2x32xf32>
    %356 = math.tanh %355 : vector<2x32xf32>
    %357 = arith.mulf %352, %356 : vector<2x32xf32>
    %358 = vector.extract_strided_slice %267 {offsets = [0, 3, 0], sizes = [2, 1, 128], strides = [1, 1, 1]} : vector<2x8x128xf32> to vector<2x1x128xf32>
    %359 = vector.shape_cast %358 : vector<2x1x128xf32> to vector<2x128xf32>
    %cst_191 = arith.constant dense<0.000000e+00> : vector<2x128xf32>
    %360 = tpu.matmul %357, %268, %cst_191 {dimension_numbers = #tpu.dot_dimension_numbers<[1], [0], [0], [1], [0, 0, 1, 1], [], []>} : vector<2x32xf32>, vector<32x128xf32>, vector<2x128xf32> -> vector<2x128xf32>
    %361 = arith.addf %359, %360 : vector<2x128xf32>
    %362 = vector.extract_strided_slice %361 {offsets = [0, 0], sizes = [2, 32], strides = [1, 1]} : vector<2x128xf32> to vector<2x32xf32>
    %363 = arith.negf %362 : vector<2x32xf32>
    %364 = math.exp %363 : vector<2x32xf32>
    %cst_192 = arith.constant 1.000000e+00 : f32
    %365 = vector.broadcast %cst_192 : f32 to vector<2x32xf32>
    %366 = arith.addf %365, %364 : vector<2x32xf32>
    %367 = arith.divf %365, %366 : vector<2x32xf32>
    %368 = vector.extract_strided_slice %361 {offsets = [0, 32], sizes = [2, 32], strides = [1, 1]} : vector<2x128xf32> to vector<2x32xf32>
    %369 = arith.negf %368 : vector<2x32xf32>
    %370 = math.exp %369 : vector<2x32xf32>
    %cst_193 = arith.constant 1.000000e+00 : f32
    %371 = vector.broadcast %cst_193 : f32 to vector<2x32xf32>
    %372 = arith.addf %371, %370 : vector<2x32xf32>
    %373 = arith.divf %371, %372 : vector<2x32xf32>
    %374 = vector.extract_strided_slice %361 {offsets = [0, 64], sizes = [2, 32], strides = [1, 1]} : vector<2x128xf32> to vector<2x32xf32>
    %375 = math.tanh %374 : vector<2x32xf32>
    %376 = vector.extract_strided_slice %361 {offsets = [0, 96], sizes = [2, 32], strides = [1, 1]} : vector<2x128xf32> to vector<2x32xf32>
    %377 = arith.negf %376 : vector<2x32xf32>
    %378 = math.exp %377 : vector<2x32xf32>
    %cst_194 = arith.constant 1.000000e+00 : f32
    %379 = vector.broadcast %cst_194 : f32 to vector<2x32xf32>
    %380 = arith.addf %379, %378 : vector<2x32xf32>
    %381 = arith.divf %379, %380 : vector<2x32xf32>
    %382 = arith.mulf %373, %355 : vector<2x32xf32>
    %383 = arith.mulf %367, %375 : vector<2x32xf32>
    %384 = arith.addf %382, %383 : vector<2x32xf32>
    %385 = math.tanh %384 : vector<2x32xf32>
    %386 = arith.mulf %381, %385 : vector<2x32xf32>
    %387 = vector.extract_strided_slice %267 {offsets = [0, 4, 0], sizes = [2, 1, 128], strides = [1, 1, 1]} : vector<2x8x128xf32> to vector<2x1x128xf32>
    %388 = vector.shape_cast %387 : vector<2x1x128xf32> to vector<2x128xf32>
    %cst_195 = arith.constant dense<0.000000e+00> : vector<2x128xf32>
    %389 = tpu.matmul %386, %268, %cst_195 {dimension_numbers = #tpu.dot_dimension_numbers<[1], [0], [0], [1], [0, 0, 1, 1], [], []>} : vector<2x32xf32>, vector<32x128xf32>, vector<2x128xf32> -> vector<2x128xf32>
    %390 = arith.addf %388, %389 : vector<2x128xf32>
    %391 = vector.extract_strided_slice %390 {offsets = [0, 0], sizes = [2, 32], strides = [1, 1]} : vector<2x128xf32> to vector<2x32xf32>
    %392 = arith.negf %391 : vector<2x32xf32>
    %393 = math.exp %392 : vector<2x32xf32>
    %cst_196 = arith.constant 1.000000e+00 : f32
    %394 = vector.broadcast %cst_196 : f32 to vector<2x32xf32>
    %395 = arith.addf %394, %393 : vector<2x32xf32>
    %396 = arith.divf %394, %395 : vector<2x32xf32>
    %397 = vector.extract_strided_slice %390 {offsets = [0, 32], sizes = [2, 32], strides = [1, 1]} : vector<2x128xf32> to vector<2x32xf32>
    %398 = arith.negf %397 : vector<2x32xf32>
    %399 = math.exp %398 : vector<2x32xf32>
    %cst_197 = arith.constant 1.000000e+00 : f32
    %400 = vector.broadcast %cst_197 : f32 to vector<2x32xf32>
    %401 = arith.addf %400, %399 : vector<2x32xf32>
    %402 = arith.divf %400, %401 : vector<2x32xf32>
    %403 = vector.extract_strided_slice %390 {offsets = [0, 64], sizes = [2, 32], strides = [1, 1]} : vector<2x128xf32> to vector<2x32xf32>
    %404 = math.tanh %403 : vector<2x32xf32>
    %405 = vector.extract_strided_slice %390 {offsets = [0, 96], sizes = [2, 32], strides = [1, 1]} : vector<2x128xf32> to vector<2x32xf32>
    %406 = arith.negf %405 : vector<2x32xf32>
    %407 = math.exp %406 : vector<2x32xf32>
    %cst_198 = arith.constant 1.000000e+00 : f32
    %408 = vector.broadcast %cst_198 : f32 to vector<2x32xf32>
    %409 = arith.addf %408, %407 : vector<2x32xf32>
    %410 = arith.divf %408, %409 : vector<2x32xf32>
    %411 = arith.mulf %402, %384 : vector<2x32xf32>
    %412 = arith.mulf %396, %404 : vector<2x32xf32>
    %413 = arith.addf %411, %412 : vector<2x32xf32>
    %414 = math.tanh %413 : vector<2x32xf32>
    %415 = arith.mulf %410, %414 : vector<2x32xf32>
    %416 = vector.extract_strided_slice %267 {offsets = [0, 5, 0], sizes = [2, 1, 128], strides = [1, 1, 1]} : vector<2x8x128xf32> to vector<2x1x128xf32>
    %417 = vector.shape_cast %416 : vector<2x1x128xf32> to vector<2x128xf32>
    %cst_199 = arith.constant dense<0.000000e+00> : vector<2x128xf32>
    %418 = tpu.matmul %415, %268, %cst_199 {dimension_numbers = #tpu.dot_dimension_numbers<[1], [0], [0], [1], [0, 0, 1, 1], [], []>} : vector<2x32xf32>, vector<32x128xf32>, vector<2x128xf32> -> vector<2x128xf32>
    %419 = arith.addf %417, %418 : vector<2x128xf32>
    %420 = vector.extract_strided_slice %419 {offsets = [0, 0], sizes = [2, 32], strides = [1, 1]} : vector<2x128xf32> to vector<2x32xf32>
    %421 = arith.negf %420 : vector<2x32xf32>
    %422 = math.exp %421 : vector<2x32xf32>
    %cst_200 = arith.constant 1.000000e+00 : f32
    %423 = vector.broadcast %cst_200 : f32 to vector<2x32xf32>
    %424 = arith.addf %423, %422 : vector<2x32xf32>
    %425 = arith.divf %423, %424 : vector<2x32xf32>
    %426 = vector.extract_strided_slice %419 {offsets = [0, 32], sizes = [2, 32], strides = [1, 1]} : vector<2x128xf32> to vector<2x32xf32>
    %427 = arith.negf %426 : vector<2x32xf32>
    %428 = math.exp %427 : vector<2x32xf32>
    %cst_201 = arith.constant 1.000000e+00 : f32
    %429 = vector.broadcast %cst_201 : f32 to vector<2x32xf32>
    %430 = arith.addf %429, %428 : vector<2x32xf32>
    %431 = arith.divf %429, %430 : vector<2x32xf32>
    %432 = vector.extract_strided_slice %419 {offsets = [0, 64], sizes = [2, 32], strides = [1, 1]} : vector<2x128xf32> to vector<2x32xf32>
    %433 = math.tanh %432 : vector<2x32xf32>
    %434 = vector.extract_strided_slice %419 {offsets = [0, 96], sizes = [2, 32], strides = [1, 1]} : vector<2x128xf32> to vector<2x32xf32>
    %435 = arith.negf %434 : vector<2x32xf32>
    %436 = math.exp %435 : vector<2x32xf32>
    %cst_202 = arith.constant 1.000000e+00 : f32
    %437 = vector.broadcast %cst_202 : f32 to vector<2x32xf32>
    %438 = arith.addf %437, %436 : vector<2x32xf32>
    %439 = arith.divf %437, %438 : vector<2x32xf32>
    %440 = arith.mulf %431, %413 : vector<2x32xf32>
    %441 = arith.mulf %425, %433 : vector<2x32xf32>
    %442 = arith.addf %440, %441 : vector<2x32xf32>
    %443 = math.tanh %442 : vector<2x32xf32>
    %444 = arith.mulf %439, %443 : vector<2x32xf32>
    %445 = vector.extract_strided_slice %267 {offsets = [0, 6, 0], sizes = [2, 1, 128], strides = [1, 1, 1]} : vector<2x8x128xf32> to vector<2x1x128xf32>
    %446 = vector.shape_cast %445 : vector<2x1x128xf32> to vector<2x128xf32>
    %cst_203 = arith.constant dense<0.000000e+00> : vector<2x128xf32>
    %447 = tpu.matmul %444, %268, %cst_203 {dimension_numbers = #tpu.dot_dimension_numbers<[1], [0], [0], [1], [0, 0, 1, 1], [], []>} : vector<2x32xf32>, vector<32x128xf32>, vector<2x128xf32> -> vector<2x128xf32>
    %448 = arith.addf %446, %447 : vector<2x128xf32>
    %449 = vector.extract_strided_slice %448 {offsets = [0, 0], sizes = [2, 32], strides = [1, 1]} : vector<2x128xf32> to vector<2x32xf32>
    %450 = arith.negf %449 : vector<2x32xf32>
    %451 = math.exp %450 : vector<2x32xf32>
    %cst_204 = arith.constant 1.000000e+00 : f32
    %452 = vector.broadcast %cst_204 : f32 to vector<2x32xf32>
    %453 = arith.addf %452, %451 : vector<2x32xf32>
    %454 = arith.divf %452, %453 : vector<2x32xf32>
    %455 = vector.extract_strided_slice %448 {offsets = [0, 32], sizes = [2, 32], strides = [1, 1]} : vector<2x128xf32> to vector<2x32xf32>
    %456 = arith.negf %455 : vector<2x32xf32>
    %457 = math.exp %456 : vector<2x32xf32>
    %cst_205 = arith.constant 1.000000e+00 : f32
    %458 = vector.broadcast %cst_205 : f32 to vector<2x32xf32>
    %459 = arith.addf %458, %457 : vector<2x32xf32>
    %460 = arith.divf %458, %459 : vector<2x32xf32>
    %461 = vector.extract_strided_slice %448 {offsets = [0, 64], sizes = [2, 32], strides = [1, 1]} : vector<2x128xf32> to vector<2x32xf32>
    %462 = math.tanh %461 : vector<2x32xf32>
    %463 = vector.extract_strided_slice %448 {offsets = [0, 96], sizes = [2, 32], strides = [1, 1]} : vector<2x128xf32> to vector<2x32xf32>
    %464 = arith.negf %463 : vector<2x32xf32>
    %465 = math.exp %464 : vector<2x32xf32>
    %cst_206 = arith.constant 1.000000e+00 : f32
    %466 = vector.broadcast %cst_206 : f32 to vector<2x32xf32>
    %467 = arith.addf %466, %465 : vector<2x32xf32>
    %468 = arith.divf %466, %467 : vector<2x32xf32>
    %469 = arith.mulf %460, %442 : vector<2x32xf32>
    %470 = arith.mulf %454, %462 : vector<2x32xf32>
    %471 = arith.addf %469, %470 : vector<2x32xf32>
    %472 = math.tanh %471 : vector<2x32xf32>
    %473 = arith.mulf %468, %472 : vector<2x32xf32>
    %474 = vector.extract_strided_slice %267 {offsets = [0, 7, 0], sizes = [2, 1, 128], strides = [1, 1, 1]} : vector<2x8x128xf32> to vector<2x1x128xf32>
    %475 = vector.shape_cast %474 : vector<2x1x128xf32> to vector<2x128xf32>
    %cst_207 = arith.constant dense<0.000000e+00> : vector<2x128xf32>
    %476 = tpu.matmul %473, %268, %cst_207 {dimension_numbers = #tpu.dot_dimension_numbers<[1], [0], [0], [1], [0, 0, 1, 1], [], []>} : vector<2x32xf32>, vector<32x128xf32>, vector<2x128xf32> -> vector<2x128xf32>
    %477 = arith.addf %475, %476 : vector<2x128xf32>
    %478 = vector.extract_strided_slice %477 {offsets = [0, 0], sizes = [2, 32], strides = [1, 1]} : vector<2x128xf32> to vector<2x32xf32>
    %479 = arith.negf %478 : vector<2x32xf32>
    %480 = math.exp %479 : vector<2x32xf32>
    %cst_208 = arith.constant 1.000000e+00 : f32
    %481 = vector.broadcast %cst_208 : f32 to vector<2x32xf32>
    %482 = arith.addf %481, %480 : vector<2x32xf32>
    %483 = arith.divf %481, %482 : vector<2x32xf32>
    %484 = vector.extract_strided_slice %477 {offsets = [0, 32], sizes = [2, 32], strides = [1, 1]} : vector<2x128xf32> to vector<2x32xf32>
    %485 = arith.negf %484 : vector<2x32xf32>
    %486 = math.exp %485 : vector<2x32xf32>
    %cst_209 = arith.constant 1.000000e+00 : f32
    %487 = vector.broadcast %cst_209 : f32 to vector<2x32xf32>
    %488 = arith.addf %487, %486 : vector<2x32xf32>
    %489 = arith.divf %487, %488 : vector<2x32xf32>
    %490 = vector.extract_strided_slice %477 {offsets = [0, 64], sizes = [2, 32], strides = [1, 1]} : vector<2x128xf32> to vector<2x32xf32>
    %491 = math.tanh %490 : vector<2x32xf32>
    %492 = vector.extract_strided_slice %477 {offsets = [0, 96], sizes = [2, 32], strides = [1, 1]} : vector<2x128xf32> to vector<2x32xf32>
    %493 = arith.negf %492 : vector<2x32xf32>
    %494 = math.exp %493 : vector<2x32xf32>
    %cst_210 = arith.constant 1.000000e+00 : f32
    %495 = vector.broadcast %cst_210 : f32 to vector<2x32xf32>
    %496 = arith.addf %495, %494 : vector<2x32xf32>
    %497 = arith.divf %495, %496 : vector<2x32xf32>
    %498 = arith.mulf %489, %471 : vector<2x32xf32>
    %499 = arith.mulf %483, %491 : vector<2x32xf32>
    %500 = arith.addf %498, %499 : vector<2x32xf32>
    %501 = math.tanh %500 : vector<2x32xf32>
    %502 = arith.mulf %497, %501 : vector<2x32xf32>
    %c0_211 = arith.constant 0 : index
    %c0_212 = arith.constant 0 : index
    %503 = vector.load %arg13[%c0_211, %c0_212] : memref<32x6xf32, #tpu.memory_space<vmem>>, vector<32x6xf32>
    %cst_213 = arith.constant dense<0.000000e+00> : vector<2x6xf32>
    %504 = tpu.matmul %502, %503, %cst_213 {dimension_numbers = #tpu.dot_dimension_numbers<[1], [0], [0], [1], [0, 0, 1, 1], [], []>} : vector<2x32xf32>, vector<32x6xf32>, vector<2x6xf32> -> vector<2x6xf32>
    %c0_214 = arith.constant 0 : index
    %c0_215 = arith.constant 0 : index
    %505 = vector.load %arg14[%c0_214, %c0_215] : memref<1x6xf32, #tpu.memory_space<vmem>>, vector<1x6xf32>
    %506 = vector.broadcast %505 : vector<1x6xf32> to vector<2x6xf32>
    %507 = arith.addf %504, %506 : vector<2x6xf32>
    %c0_216 = arith.constant 0 : index
    %c0_217 = arith.constant 0 : index
    %508 = vector.load %arg15[%c0_216, %c0_217] : memref<2x6xf32, #tpu.memory_space<vmem>>, vector<2x6xf32>
    tpu.vector_store %arg15[%c0_216, %c0_217], %507 {strides = array<i32>} : memref<2x6xf32, #tpu.memory_space<vmem>>, vector<2x6xf32>,
    return
  }
  func.func @transform_0(%arg0: i32) -> (i32, i32, i32) {
    %c0_i32 = arith.constant 0 : i32
    %c0_i32_0 = arith.constant 0 : i32
    %c0_i32_1 = arith.constant 0 : i32
    %c0_i32_2 = arith.constant 0 : i32
    return %c0_i32, %c0_i32_0, %c0_i32_1 : i32, i32, i32
  }
  func.func @transform_1(%arg0: i32) -> (i32, i32, i32) {
    %c0_i32 = arith.constant 0 : i32
    %c0_i32_0 = arith.constant 0 : i32
    %c0_i32_1 = arith.constant 0 : i32
    %c0_i32_2 = arith.constant 0 : i32
    return %c0_i32, %c0_i32_0, %c0_i32_1 : i32, i32, i32
  }
  func.func @transform_2(%arg0: i32) -> (i32, i32, i32) {
    %c0_i32 = arith.constant 0 : i32
    %c0_i32_0 = arith.constant 0 : i32
    %c0_i32_1 = arith.constant 0 : i32
    %c0_i32_2 = arith.constant 0 : i32
    return %c0_i32, %c0_i32_0, %c0_i32_1 : i32, i32, i32
  }
  func.func @transform_3(%arg0: i32) -> (i32, i32, i32) {
    %c0_i32 = arith.constant 0 : i32
    %c0_i32_0 = arith.constant 0 : i32
    %c0_i32_1 = arith.constant 0 : i32
    %c0_i32_2 = arith.constant 0 : i32
    return %c0_i32, %c0_i32_0, %c0_i32_1 : i32, i32, i32
  }
  func.func @transform_4(%arg0: i32) -> (i32, i32, i32) {
    %c0_i32 = arith.constant 0 : i32
    %c0_i32_0 = arith.constant 0 : i32
    %c0_i32_1 = arith.constant 0 : i32
    %c0_i32_2 = arith.constant 0 : i32
    return %c0_i32, %c0_i32_0, %c0_i32_1 : i32, i32, i32
  }
  func.func @transform_5(%arg0: i32) -> (i32, i32) {
    %c0_i32 = arith.constant 0 : i32
    %c0_i32_0 = arith.constant 0 : i32
    %c0_i32_1 = arith.constant 0 : i32
    return %c0_i32, %c0_i32_0 : i32, i32
  }
  func.func @transform_6(%arg0: i32) -> (i32, i32) {
    %c0_i32 = arith.constant 0 : i32
    %c0_i32_0 = arith.constant 0 : i32
    %c0_i32_1 = arith.constant 0 : i32
    return %c0_i32, %c0_i32_0 : i32, i32
  }
  func.func @transform_7(%arg0: i32) -> (i32, i32) {
    %c0_i32 = arith.constant 0 : i32
    %c0_i32_0 = arith.constant 0 : i32
    %c0_i32_1 = arith.constant 0 : i32
    return %c0_i32, %c0_i32_0 : i32, i32
  }
  func.func @transform_8(%arg0: i32) -> (i32, i32) {
    %c0_i32 = arith.constant 0 : i32
    %c0_i32_0 = arith.constant 0 : i32
    %c0_i32_1 = arith.constant 0 : i32
    return %c0_i32, %c0_i32_0 : i32, i32
  }
  func.func @transform_9(%arg0: i32) -> (i32, i32, i32) {
    %c0_i32 = arith.constant 0 : i32
    %c0_i32_0 = arith.constant 0 : i32
    %c0_i32_1 = arith.constant 0 : i32
    %c0_i32_2 = arith.constant 0 : i32
    return %c0_i32, %c0_i32_0, %c0_i32_1 : i32, i32, i32
  }
  func.func @transform_10(%arg0: i32) -> (i32, i32) {
    %c0_i32 = arith.constant 0 : i32
    %c0_i32_0 = arith.constant 0 : i32
    %c0_i32_1 = arith.constant 0 : i32
    return %c0_i32, %c0_i32_0 : i32, i32
  }
  func.func @transform_11(%arg0: i32) -> (i32, i32) {
    %c0_i32 = arith.constant 0 : i32
    %c0_i32_0 = arith.constant 0 : i32
    %c0_i32_1 = arith.constant 0 : i32
    return %c0_i32, %c0_i32_0 : i32, i32
  }
  func.func @transform_12(%arg0: i32) -> (i32, i32) {
    %c0_i32 = arith.constant 0 : i32
    %c0_i32_0 = arith.constant 0 : i32
    %c0_i32_1 = arith.constant 0 : i32
    return %c0_i32, %c0_i32_0 : i32, i32
  }
  func.func @transform_13(%arg0: i32) -> (i32, i32) {
    %c0_i32 = arith.constant 0 : i32
    %c0_i32_0 = arith.constant 0 : i32
    %c0_i32_1 = arith.constant 0 : i32
    return %c0_i32, %c0_i32_0 : i32, i32
  }
  func.func @transform_14(%arg0: i32) -> (i32, i32) {
    %c0_i32 = arith.constant 0 : i32
    %c0_i32_0 = arith.constant 0 : i32
    %c0_i32_1 = arith.constant 0 : i32
    return %c0_i32, %c0_i32_0 : i32, i32
  }
}

</mosaic_0001>

<bundles_post_ra>
// kernel: forward.1
= control target key start
LH: loop header
LB: loop body
LE: loop exit
PB: predicated region body
PF: predicated region fallthrough
CT: control target
= control target key end

     0   :  { %vm88_vm0 = vcmask 195584   ;;  %s10041_s0 = inlined_call_operand.vmem [shape: f32[2,160,24], index: 0, kind: input, shape index: {}]   ;;  %s10042_s1 = inlined_call_operand.vmem [shape: f32[5,24,80], index: 1, kind: input, shape index: {}]   ;;  %s10043_s2 = inlined_call_operand.vmem [shape: f32[3,80,128], index: 2, kind: input, shape index: {}]   ;;  %s10044_s3 = inlined_call_operand.vmem [shape: f32[3,128,192], index: 3, kind: input, shape index: {}]   ;;  %s10045_s4 = inlined_call_operand.vmem [shape: f32[3,192,256], index: 4, kind: input, shape index: {}]   ;;  %s10046_s5 = inlined_call_operand.vmem [shape: f32[1,80], index: 5, kind: input, shape index: {}]   ;;  %s10047_s6 = inlined_call_operand.vmem [shape: f32[1,128], index: 6, kind: input, shape index: {}]   ;;  %s10048_s7 = inlined_call_operand.vmem [shape: f32[1,192], index: 7, kind: input, shape index: {}]   ;;  %s10049_s8 = inlined_call_operand.vmem [shape: f32[1,256], index: 8, kind: input, shape index: {}]   ;;  %s10050_s9 = inlined_call_operand.vmem [shape: f32[2,256,128], index: 9, kind: input, shape index: {}]   ;;  %s10051_s10 = inlined_call_operand.vmem [shape: f32[1,128], index: 10, kind: input, shape index: {}]   ;;  %s10052_s11 = inlined_call_operand.vmem [shape: f32[32,128], index: 11, kind: input, shape index: {}]   ;;  %s10053_s12 = inlined_call_operand.vmem [shape: f32[32,6], index: 12, kind: input, shape index: {}]   ;;  %s10054_s13 = inlined_call_operand.vmem [shape: f32[1,6], index: 13, kind: input, shape index: {}]   ;;  %s10055_s14 = inlined_call_operand.hbm [shape: f32[2,6], index: 14, kind: output, shape index: {}]  }
   0x1   :  { %v5367_v0 = vld [vmem:[%s10042_s1 + $0x28] sm:$0xff]  ;;  %v66_v1 = vld [vmem:[%s10042_s1 + $0x10] sm:$0xff]  ;;  %v5402_v2 = vld [vmem:[%s10042_s1 + $0x40] sm:$0xff] }
   0x2   :  { %150 = vmatpush.msra.mxu0 %v5367_v0  ;;  %263 = vmatpush.msra.mxu1 %v66_v1  ;;  %v5366_v3 = vld [vmem:[%s10042_s1 + $0x20] sm:$0xff]  ;;  %v65_v4 = vld [vmem:[%s10042_s1 + $0x8] sm:$0xff]  ;;  %v5401_v5 = vld [vmem:[%s10042_s1 + $0x38] sm:$0xff] }
   0x3   :  { %396 = vmatpush.msra.mxu2 %v5402_v2  ;;  %v5437_v6 = vld [vmem:[%s10042_s1 + $0x58] sm:$0xff]  ;;  %v64_v8 = vld [vmem:[%s10042_s1] sm:$0xff]  ;;  %v5400_v9 = vld [vmem:[%s10042_s1 + $0x30] sm:$0xff] }
   0x4   :  { %v5365_v7 = vld [vmem:[%s10042_s1 + $0x18] sm:$0xff]  ;;  %151 = vmatpush.msra.mxu0 %v5366_v3  ;;  %264 = vmatpush.msra.mxu1 %v65_v4  ;;  %v5436_v10 = vld [vmem:[%s10042_s1 + $0x50] sm:$0xff]  ;;  %v5349_v11 = vld [vmem:[%s10041_s0 + $0xa0] sm:$0xff] }
   0x5   :  { %397 = vmatpush.msra.mxu2 %v5401_v5  ;;  %545 = vmatpush.msra.mxu3 %v5437_v6  ;;  %v48_v12 = vld [vmem:[%s10041_s0] sm:$0xff]  ;;  %v315_v13 = vld [vmem:[%s10041_s0 + $0x10] sm:$0xff]  ;;  %v5435_v15 = vld [vmem:[%s10042_s1 + $0x48] sm:$0xff] }
   0x6   :  { %152 = vmatpush.msra.mxu0 %v5365_v7  ;;  %265 = vmatpush.msra.mxu1 %v64_v8  ;;  %v5456_v14 = vld [vmem:[%s10042_s1 + $0x70] sm:$0xff] }
   0x7   :  { %398 = vmatpush.msra.mxu2 %v5400_v9  ;;  %546 = vmatpush.msra.mxu3 %v5436_v10  ;;  %v5419_v16 = vld [vmem:[%s10041_s0 + $0xb0] sm:$0xff] }
   0x8   :  { %5368 = vmatmul.msk.f32.vlgmr.msra.gmra.mxu0 %vm88_vm0, %v5349_v11  ;;  %5384 = vmatmul.msk.f32.vlgmr.msra.gmra.mxu1 %vm88_vm0, %v48_v12 }
   0x9   :  { %5403 = vmatmul.msk.f32.vlgmr.msra.gmra.mxu2 %vm88_vm0, %v315_v13  ;;  %694 = vmatpush.msrb.mxu0 %v5456_v14 }
   0xa   :  { %547 = vmatpush.msra.mxu3 %v5435_v15 }
   0xb   :  { %5438 = vmatmul.msk.f32.vlgmr.msra.gmra.mxu3 %vm88_vm0, %v5419_v16 }
   0xc   :  { %19 = vsyncpa [#allocation7], 0  ;;  %v5350_v17 = vld [vmem:[%s10041_s0 + $0xa8] sm:$0xff]  ;;  %v316_v19 = vld [vmem:[%s10041_s0 + $0x18] sm:$0xff]  ;;  %vm1422_vm14 = vcmask 654336  }
   0xd   :  { %v49_v18 = vld [vmem:[%s10041_s0 + $0x8] sm:$0xff]  ;;  %v5420_v20 = vld [vmem:[%s10041_s0 + $0xb8] sm:$0xff]  ;;  %v6297_v22 = vld [vmem:[%s10041_s0 + $0x20] sm:$0xff] }
   0xe   :  { %v5455_v21 = vld [vmem:[%s10042_s1 + $0x68] sm:$0xff]  ;;  %v5421_v23 = vld [vmem:[%s10041_s0 + $0xc0] sm:$0xff]  ;;  %v6323_v26 = vld [vmem:[%s10041_s0 + $0x30] sm:$0xff] }
   0xf   :  { %695 = vmatpush.msrb.mxu0 %v5455_v21  ;;  %v6310_v24 = vld [vmem:[%s10041_s0 + $0x28] sm:$0xff]  ;;  %v5423_v27 = vld [vmem:[%s10041_s0 + $0xd0] sm:$0xff]  ;;  %v6337_v28 = vld [vmem:[%s10041_s0 + $0x38] sm:$0xff] }
  0x10   :  { %5369 = vmatmul.msk.f32.gmra.mxu0 %vm88_vm0, %v5350_v17  ;;  %5385 = vmatmul.msk.f32.gmra.mxu1 %vm88_vm0, %v49_v18  ;;  %v5422_v25 = vld [vmem:[%s10041_s0 + $0xc8] sm:$0xff]  ;;  %v5424_v29 = vld [vmem:[%s10041_s0 + $0xd8] sm:$0xff]  ;;  %v6351_v30 = vld [vmem:[%s10041_s0 + $0x40] sm:$0xff] }
  0x11   :  { %5404 = vmatmul.msk.f32.gmra.mxu2 %vm88_vm0, %v316_v19  ;;  %v5425_v31 = vld [vmem:[%s10041_s0 + $0xe0] sm:$0xff]  ;;  %v6368_v33 = vld [vmem:[%s10041_s0 + $0x48] sm:$0xff]  ;;  %v6382_v35 = vld [vmem:[%s10041_s0 + $0x50] sm:$0xff] }
  0x12   :  { %v5454_v32 = vld [vmem:[%s10042_s1 + $0x60] sm:$0xff]  ;;  %v5426_v34 = vld [vmem:[%s10041_s0 + $0xe8] sm:$0xff]  ;;  %v5427_v36 = vld [vmem:[%s10041_s0 + $0xf0] sm:$0xff] }
  0x13   :  { %5439 = vmatmul.msk.f32.gmra.mxu3 %vm88_vm0, %v5420_v20  ;;  %696 = vmatpush.msrb.mxu0 %v5454_v32  ;;  %v6396_v37 = vld [vmem:[%s10041_s0 + $0x58] sm:$0xff]  ;;  %v6410_v39 = vld [vmem:[%s10041_s0 + $0x60] sm:$0xff]  ;;  %v6424_v41 = vld [vmem:[%s10041_s0 + $0x68] sm:$0xff] }
  0x14   :  { %v5428_v38 = vld [vmem:[%s10041_s0 + $0xf8] sm:$0xff]  ;;  %v5429_v40 = vld [vmem:[%s10041_s0 + $0x100] sm:$0xff]  ;;  %v5430_v42 = vld [vmem:[%s10041_s0 + $0x108] sm:$0xff] }
  0x15   :  { %v6438_v43 = vld [vmem:[%s10041_s0 + $0x70] sm:$0xff]  ;;  %v6452_v45 = vld [vmem:[%s10041_s0 + $0x78] sm:$0xff]  ;;  %v6466_v47 = vld [vmem:[%s10041_s0 + $0x80] sm:$0xff] }
  0x16   :  { %v5431_v44 = vld [vmem:[%s10041_s0 + $0x110] sm:$0xff]  ;;  %v5432_v46 = vld [vmem:[%s10041_s0 + $0x118] sm:$0xff]  ;;  %v5433_v48 = vld [vmem:[%s10041_s0 + $0x120] sm:$0xff] }
  0x17   :  { %v6480_v49 = vld [vmem:[%s10041_s0 + $0x88] sm:$0xff] }
  0x18   :  { %5370 = vmatmul.msk.f32.gmra.mxu0 %vm88_vm0, %v5419_v16  ;;  %5386 = vmatmul.msk.f32.gmra.mxu1 %vm88_vm0, %v315_v13  ;;  %v5434_v50 = vld [vmem:[%s10041_s0 + $0x128] sm:$0xff]  ;;  %v5482_v16 = vld [vmem:[%s10043_s2 + $0x98] sm:$0xff] }
  0x19   :  { %5405 = vmatmul.msk.f32.gmra.mxu2 %vm88_vm0, %v6297_v22  ;;  %v1460_v11 = vld [vmem:[%s10043_s2 + $0x48] sm:$0xff]  ;;  %1516 = vmatpush.msrb.mxu1 %v5482_v16 }
  0x1a   :  { %1575 = vmatpush.msrb.mxu2 %v1460_v11  ;;  %v5516_v12 = vld [vmem:[%s10043_s2 + $0xe8] sm:$0xff] }
  0x1b   :  { %5440 = vmatmul.msk.f32.gmra.mxu3 %vm88_vm0, %v5421_v23 }
  0x1c   :  { %1687 = vmatpush.msrb.mxu3 %v5516_v12 }
  0x20   :  { %5371 = vmatmul.msk.f32.gmra.mxu0 %vm88_vm0, %v5420_v20  ;;  %5387 = vmatmul.msk.f32.gmra.mxu1 %vm88_vm0, %v316_v19  ;;  %v1459_v20 = vld [vmem:[%s10043_s2 + $0x40] sm:$0xff] }
  0x21   :  { %5406 = vmatmul.msk.f32.gmra.mxu2 %vm88_vm0, %v6310_v24 }
  0x22   :  { %1576 = vmatpush.msrb.mxu2 %v1459_v20 }
  0x23   :  { %5441 = vmatmul.msk.f32.gmra.mxu3 %vm88_vm0, %v5422_v25 }
  0x28   :  { %5372 = vmatmul.msk.f32.gmra.mxu0 %vm88_vm0, %v5421_v23  ;;  %5388 = vmatmul.msk.f32.gmra.mxu1 %vm88_vm0, %v6297_v22  ;;  %v5481_v23 = vld [vmem:[%s10043_s2 + $0x90] sm:$0xff] }
  0x29   :  { %5407 = vmatmul.msk.f32.gmra.mxu2 %vm88_vm0, %v6323_v26  ;;  %1517 = vmatpush.msrb.mxu1 %v5481_v23 }
  0x2b   :  { %5442 = vmatmul.msk.f32.gmra.mxu3 %vm88_vm0, %v5423_v27 }
  0x30   :  { %5373 = vmatmul.msk.f32.gmra.mxu0 %vm88_vm0, %v5422_v25  ;;  %5389 = vmatmul.msk.f32.gmra.mxu1 %vm88_vm0, %v6310_v24 }
  0x31   :  { %5408 = vmatmul.msk.f32.gmra.mxu2 %vm88_vm0, %v6337_v28 }
  0x33   :  { %5443 = vmatmul.msk.f32.gmra.mxu3 %vm88_vm0, %v5424_v29 }
  0x38   :  { %5374 = vmatmul.msk.f32.gmra.mxu0 %vm88_vm0, %v5423_v27  ;;  %5390 = vmatmul.msk.f32.gmra.mxu1 %vm88_vm0, %v6323_v26 }
  0x39   :  { %5409 = vmatmul.msk.f32.gmra.mxu2 %vm88_vm0, %v6351_v30 }
  0x3b   :  { %5444 = vmatmul.msk.f32.gmra.mxu3 %vm88_vm0, %v5425_v31 }
  0x40   :  { %5375 = vmatmul.msk.f32.gmra.mxu0 %vm88_vm0, %v5424_v29  ;;  %5391 = vmatmul.msk.f32.gmra.mxu1 %vm88_vm0, %v6337_v28  ;;  %v5514_v29 = vld [vmem:[%s10043_s2 + $0xd8] sm:$0xff] }
  0x41   :  { %5410 = vmatmul.msk.f32.gmra.mxu2 %vm88_vm0, %v6368_v33 }
  0x43   :  { %5445 = vmatmul.msk.f32.gmra.mxu3 %vm88_vm0, %v5426_v34 }
  0x48   :  { %5376 = vmatmul.msk.f32.gmra.mxu0 %vm88_vm0, %v5425_v31  ;;  %5392 = vmatmul.msk.f32.gmra.mxu1 %vm88_vm0, %v6351_v30 }
  0x49   :  { %5411 = vmatmul.msk.f32.gmra.mxu2 %vm88_vm0, %v6382_v35 }
  0x4b   :  { %5446 = vmatmul.msk.f32.gmra.mxu3 %vm88_vm0, %v5427_v36 }
  0x50   :  { %5377 = vmatmul.msk.f32.gmra.mxu0 %vm88_vm0, %v5426_v34  ;;  %5393 = vmatmul.msk.f32.gmra.mxu1 %vm88_vm0, %v6368_v33 }
  0x51   :  { %5412 = vmatmul.msk.f32.gmra.mxu2 %vm88_vm0, %v6396_v37 }
  0x53   :  { %5447 = vmatmul.msk.f32.gmra.mxu3 %vm88_vm0, %v5428_v38 }
  0x58   :  { %5378 = vmatmul.msk.f32.gmra.mxu0 %vm88_vm0, %v5427_v36  ;;  %5394 = vmatmul.msk.f32.gmra.mxu1 %vm88_vm0, %v6382_v35 }
  0x59   :  { %5413 = vmatmul.msk.f32.gmra.mxu2 %vm88_vm0, %v6410_v39 }
  0x5b   :  { %5448 = vmatmul.msk.f32.gmra.mxu3 %vm88_vm0, %v5429_v40 }
  0x60   :  { %5379 = vmatmul.msk.f32.gmra.mxu0 %vm88_vm0, %v5428_v38  ;;  %5395 = vmatmul.msk.f32.gmra.mxu1 %vm88_vm0, %v6396_v37 }
  0x61   :  { %5414 = vmatmul.msk.f32.gmra.mxu2 %vm88_vm0, %v6424_v41 }
  0x63   :  { %5449 = vmatmul.msk.f32.gmra.mxu3 %vm88_vm0, %v5430_v42 }
  0x68   :  { %5380 = vmatmul.msk.f32.gmra.mxu0 %vm88_vm0, %v5429_v40  ;;  %5396 = vmatmul.msk.f32.gmra.mxu1 %vm88_vm0, %v6410_v39 }
  0x69   :  { %5415 = vmatmul.msk.f32.gmra.mxu2 %vm88_vm0, %v6438_v43 }
  0x6b   :  { %5450 = vmatmul.msk.f32.gmra.mxu3 %vm88_vm0, %v5431_v44 }
  0x70   :  { %5381 = vmatmul.msk.f32.gmra.mxu0 %vm88_vm0, %v5430_v42  ;;  %5397 = vmatmul.msk.f32.gmra.mxu1 %vm88_vm0, %v6424_v41 }
  0x71   :  { %5416 = vmatmul.msk.f32.gmra.mxu2 %vm88_vm0, %v6452_v45 }
  0x73   :  { %5451 = vmatmul.msk.f32.gmra.mxu3 %vm88_vm0, %v5432_v46 }
  0x78   :  { %5382 = vmatmul.msk.f32.gmra.mxu0 %vm88_vm0, %v5431_v44  ;;  %5398 = vmatmul.msk.f32.gmra.mxu1 %vm88_vm0, %v6438_v43 }
  0x79   :  { %5417 = vmatmul.msk.f32.gmra.mxu2 %vm88_vm0, %v6466_v47 }
  0x7b   :  { %5452 = vmatmul.msk.f32.gmra.mxu3 %vm88_vm0, %v5433_v48 }
  0x80   :  { %5383 = vmatmul.msk.f32.gmra.mxu0 %vm88_vm0, %v5432_v46  ;;  %5399 = vmatmul.msk.f32.gmra.mxu1 %vm88_vm0, %v6452_v45 }
  0x81   :  { %5418 = vmatmul.msk.f32.gmra.mxu2 %vm88_vm0, %v6480_v49 }
  0x83   :  { %5453 = vmatmul.msk.f32.gmra.mxu3 %vm88_vm0, %v5434_v50 }
  0x85   :  { %v6491_v51 = vpop.f32.mrf.mxu0  ;;  %v6497_v53 = vpop.f32.mrf.mxu1 }
  0x86   :  { %v268_v44 = vadd.f32 %v6497_v53, %v6491_v51 }
  0x88   :  { %5457 = vmatmul.msk.f32.vlgmr.msrb.gmra.mxu0 %vm88_vm0, %v6297_v22  ;;  %v5515_v22 = vld [vmem:[%s10043_s2 + $0xe0] sm:$0xff] }
  0x89   :  { %1688 = vmatpush.msrb.mxu3 %v5515_v22 }
  0x8b   :  { %1689 = vmatpush.msrb.mxu3 %v5514_v29 }
  0x8c   :  { %v6509_v57 = vpop.f32.mrf.mxu2 }
  0x8d   :  { %v6495_v52 = vpop.f32.mrf.mxu0  ;;  %v6505_v55 = vpop.f32.mrf.mxu1  ;;  %v448_v46 = vadd.f32 %v6509_v57, %v268_v44 }
  0x8e   :  { %v6513_v58 = vpop.f32.mrf.mxu3  ;;  %v271_v11 = vadd.f32 %v6505_v55, %v6495_v52 }
  0x8f   :  { %v597_v48 = vadd.f32 %v6513_v58, %v448_v46 }
  0x90   :  { %5458 = vmatmul.msk.f32.gmra.mxu0 %vm88_vm0, %v6310_v24 }
  0x94   :  { %v6519_v61 = vpop.f32.mrf.mxu2 }
  0x95   :  { %v6501_v54 = vpop.f32.mrf.mxu0  ;;  %v6515_v59 = vpop.f32.mrf.mxu1  ;;  %v449_v57 = vadd.f32 %v6519_v61, %v271_v11 }
  0x96   :  { %v6523_v62 = vpop.f32.mrf.mxu3  ;;  %v274_v52 = vadd.f32 %v6515_v59, %v6501_v54 }
  0x97   :  { %v598_v20 = vadd.f32 %v6523_v62, %v449_v57 }
  0x98   :  { %5459 = vmatmul.msk.f32.gmra.mxu0 %vm88_vm0, %v6323_v26 }
  0x9c   :  { %v6531_v1 = vpop.f32.mrf.mxu2 }
  0x9d   :  { %v6507_v56 = vpop.f32.mrf.mxu0  ;;  %v6527_v0 = vpop.f32.mrf.mxu1  ;;  %v450_v29 = vadd.f32 %v6531_v1, %v274_v52 }
  0x9e   :  { %v6535_v3 = vpop.f32.mrf.mxu3  ;;  %v277_v46 = vadd.f32 %v6527_v0, %v6507_v56 }
  0x9f   :  { %v599_v59 = vadd.f32 %v6535_v3, %v450_v29 }
  0xa0   :  { %5460 = vmatmul.msk.f32.gmra.mxu0 %vm88_vm0, %v6337_v28  ;;  %v1458_v28 = vld [vmem:[%s10043_s2 + $0x38] sm:$0xff] }
  0xa1   :  { %1577 = vmatpush.msrb.mxu2 %v1458_v28 }
  0xa4   :  { %v6541_v5 = vpop.f32.mrf.mxu2 }
  0xa5   :  { %v6517_v60 = vpop.f32.mrf.mxu0  ;;  %v6537_v4 = vpop.f32.mrf.mxu1  ;;  %v451_v11 = vadd.f32 %v6541_v5, %v277_v46 }
  0xa6   :  { %v6545_v7 = vpop.f32.mrf.mxu3  ;;  %v280_v1 = vadd.f32 %v6537_v4, %v6517_v60 }
  0xa8   :  { %5461 = vmatmul.msk.f32.gmra.mxu0 %vm88_vm0, %v6351_v30 }
  0xac   :  { %v6553_v10 = vpop.f32.mrf.mxu2 }
  0xad   :  { %v6525_v63 = vpop.f32.mrf.mxu0  ;;  %v6549_v8 = vpop.f32.mrf.mxu1  ;;  %v452_v3 = vadd.f32 %v6553_v10, %v280_v1  ;;  %v1456_v1 = vld [vmem:[%s10043_s2 + $0x28] sm:$0xff] }
  0xae   :  { %v6563_v13 = vpop.f32.mrf.mxu3 }
  0xb0   :  { %5462 = vmatmul.msk.f32.gmra.mxu0 %vm88_vm0, %v6368_v33 }
  0xb4   :  { %v6572_v17 = vpop.f32.mrf.mxu2 }
  0xb5   :  { %v6533_v2 = vpop.f32.mrf.mxu0  ;;  %v6565_v14 = vpop.f32.mrf.mxu1 }
  0xb6   :  { %v6576_v18 = vpop.f32.mrf.mxu3 }
  0xb8   :  { %5463 = vmatmul.msk.f32.gmra.mxu0 %vm88_vm0, %v6382_v35 }
  0xbc   :  { %v6593_v24 = vpop.f32.mrf.mxu2 }
  0xbd   :  { %v6543_v6 = vpop.f32.mrf.mxu0  ;;  %v6583_v21 = vpop.f32.mrf.mxu1 }
  0xbe   :  { %v6597_v26 = vpop.f32.mrf.mxu3 }
  0xc0   :  { %5464 = vmatmul.msk.f32.gmra.mxu0 %vm88_vm0, %v6396_v37 }
  0xc4   :  { %v421_v30 = vpop.f32.mrf.mxu2 }
  0xc5   :  { %v6551_v9 = vpop.f32.mrf.mxu0  ;;  %v6599_v27 = vpop.f32.mrf.mxu1 }
  0xc6   :  { %v6611_v32 = vpop.f32.mrf.mxu3 }
  0xc8   :  { %5465 = vmatmul.msk.f32.gmra.mxu0 %vm88_vm0, %v6410_v39  ;;  %v627_v39 = vld [vmem:[%s10041_s0 + $0x90] sm:$0xff] }
  0xcc   :  { %v6619_v35 = vpop.f32.mrf.mxu2 }
  0xcd   :  { %v6567_v15 = vpop.f32.mrf.mxu0  ;;  %v6615_v33 = vpop.f32.mrf.mxu1 }
  0xce   :  { %v6623_v36 = vpop.f32.mrf.mxu3 }
  0xd0   :  { %5466 = vmatmul.msk.f32.gmra.mxu0 %vm88_vm0, %v6424_v41 }
  0xd4   :  { %v6632_v40 = vpop.f32.mrf.mxu2 }
  0xd5   :  { %v6578_v19 = vpop.f32.mrf.mxu0  ;;  %v6625_v37 = vpop.f32.mrf.mxu1 }
  0xd6   :  { %v6635_v41 = vpop.f32.mrf.mxu3 }
  0xd8   :  { %5467 = vmatmul.msk.f32.gmra.mxu0 %vm88_vm0, %v6438_v43  ;;  %v628_v43 = vld [vmem:[%s10041_s0 + $0x98] sm:$0xff] }
  0xdd   :  { %v6595_v25 = vpop.f32.mrf.mxu0 }
  0xde   :  { %v6658_v51 = vpop.f32.mrf.mxu3 }
  0xe0   :  { %5468 = vmatmul.msk.f32.gmra.mxu0 %vm88_vm0, %v6452_v45  ;;  %v6644_v45 = vpop.f32.mrf.mxu1 }
  0xe5   :  { %v6609_v31 = vpop.f32.mrf.mxu0 }
  0xe8   :  { %5469 = vmatmul.msk.f32.gmra.mxu0 %vm88_vm0, %v6466_v47  ;;  %v6648_v47 = vpop.f32.mrf.mxu2  ;;  %v303_v12 = vpop.f32.mrf.mxu1 }
  0xe9   :  { %v304_v46 = vadd.f32 %v303_v12, %v6609_v31  ;;  %v5480_v31 = vld [vmem:[%s10043_s2 + $0x88] sm:$0xff] }
  0xea   :  { %1518 = vmatpush.msrb.mxu1 %v5480_v31 }
  0xed   :  { %v6617_v34 = vpop.f32.mrf.mxu0 }
  0xf0   :  { %5470 = vmatmul.msk.f32.gmra.mxu0 %vm88_vm0, %v6480_v49  ;;  %v6654_v49 = vld [vmem:[%s10046_s5] ss:$0 sm:$0xff]  ;;  %v433_v22 = vpop.f32.mrf.mxu2  ;;  %v6682_v62 = vpop.f32.mrf.mxu1 }
  0xf5   :  { %v6627_v38 = vpop.f32.mrf.mxu0 }
  0xf8   :  { %5471 = vmatmul.msk.f32.gmra.mxu0 %vm88_vm0, %v627_v39  ;;  %v6675_v39 = vpop.f32.mrf.mxu3  ;;  %v436_v4 = vpop.f32.mrf.mxu2 }
  0xfd   :  { %v6637_v42 = vpop.f32.mrf.mxu0 }
 0x100   :  { %5472 = vmatmul.msk.f32.gmra.mxu0 %vm88_vm0, %v628_v43 }
 0x105   :  { %v698_v50 = vpop.f32.mrf.mxu0 }
 0x106   :  { %v746_v53 = vadd.f32 %v698_v50, %v597_v48  ;;  %v283_v48 = vadd.f32 %v6549_v8, %v6525_v63  ;;  %v286_v50 = vadd.f32 %v6565_v14, %v6533_v2 }
 0x108   :  { %v6662_v16 = vadd.f32 %v6654_v49, %v746_v53  ;;  %v289_v53 = vadd.f32 %v6583_v21, %v6543_v6  ;;  %v453_v57 = vadd.f32 %v6572_v17, %v283_v48  ;;  %v454_v60 = vadd.f32 %v6593_v24, %v286_v50 }
 0x109   :  { %v600_v6 = vadd.f32 %v6545_v7, %v451_v11  ;;  %v292_v21 = vadd.f32 %v6599_v27, %v6551_v9  ;;  %v6717_v17 = vadd.f32 %v6563_v13, %v452_v3  ;;  %v295_v13 = vadd.f32 %v6615_v33, %v6567_v15  ;;  %v439_v11 = vpop.f32.mrf.mxu2 }
 0x10a   :  { %v6665_v58 = vmul.f32 0.70710677, %v6662_v16  ;;  %v455_v8 = vadd.f32 %v421_v30, %v289_v53  ;;  %v6720_v24 = vadd.f32 %v6576_v18, %v453_v57  ;;  %v6723_v30 = vadd.f32 %v6597_v26, %v454_v60  ;;  %v309_v26 = vpop.f32.mrf.mxu1 }
 0x10b   :  { %v456_v9 = vadd.f32 %v6619_v35, %v292_v21  ;;  %v298_v18 = vadd.f32 %v6625_v37, %v6578_v19  ;;  %v301_v35 = vadd.f32 %v6644_v45, %v6595_v25  ;;  %v457_v19 = vadd.f32 %v6632_v40, %v295_v13 }
 0x10c   :  { %v6669_v23 = vand.u32 2147483647, %v6665_v58  ;;  %v6729_v7 = vadd.f32 %v6611_v32, %v455_v8  ;;  %v460_v50 = vadd.f32 %v436_v4, %v304_v46  ;;  %vm1342_vm13 = vcmp.ge.f32.partialorder %v6665_v58, 0.0  ;;  %v5476_v58 = vld [vmem:[%s10043_s2 + $0x68] sm:$0xff] }
 0x10d   :  { %v701_v28 = vpop.f32.mrf.mxu0  ;;  %v458_v37 = vadd.f32 %v6648_v47, %v298_v18  ;;  %v459_v48 = vadd.f32 %v433_v22, %v301_v35  ;;  %v307_v22 = vadd.f32 %v6682_v62, %v6617_v34  ;;  %v6768_v3 = vadd.f32 %v6623_v36, %v456_v9 }
 0x10e   :  { %v830_v55 = vmul.f32 0.3275911, %v6669_v23  ;;  %v747_v61 = vadd.f32 %v701_v28, %v598_v20  ;;  %v585_v28 = vpop.f32.mrf.mxu3  ;;  %v1246_v47 = vsub.f32 0.0, %v6669_v23  ;;  %v6775_v4 = vadd.f32 %v6635_v41, %v457_v19 }
 0x10f   :  { %v6778_v34 = vadd.f32 %v6658_v51, %v458_v37  ;;  %v461_v62 = vadd.f32 %v439_v11, %v307_v22  ;;  %v6782_v8 = vadd.f32 %v6675_v39, %v459_v48  ;;  %v6788_v21 = vadd.f32 %v585_v28, %v460_v50  ;;  %v1455_v39 = vld [vmem:[%s10043_s2 + $0x20] sm:$0xff] }
 0x110   :  { %v6677_v43 = vadd.f32 1.0, %v830_v55  ;;  %v6680_v44 = vadd.f32 %v6654_v49, %v747_v61  ;;  %v1457_v61 = vld [vmem:[%s10043_s2 + $0x30] sm:$0xff]  ;;  %v6791_v41 = vadd.f32 %v309_v26, %v6627_v38 }
 0x111   :  { %1578 = vmatpush.msrb.mxu2 %v1457_v61 }
 0x112   :  { %5777 = vrcp.f32 %v6677_v43  ;;  %v6688_v54 = vmul.f32 0.70710677, %v6680_v44  ;;  %v873_v55 = vand.u32 2147483648, %v6677_v43  ;;  %v871_v15 = vand.u32 2147483647, %v6677_v43 }
 0x113   :  { %vm867_vm2 = vweird.f32 %v6677_v43  ;;  %1579 = vmatpush.msrb.mxu2 %v1456_v1 }
 0x114   :  { %v6701_v56 = vand.u32 2147483647, %v6688_v54  ;;  %v874_v40 = vor.u32 1.1754944e-38, %v873_v55  ;;  %vm872_vm4 = vcmp.eq.f32.partialorder %v871_v15, 8.507059e+37 }
 0x115   :  { %v704_v0 = vpop.f32.mrf.mxu0  ;;  %1580 = vmatpush.msrb.mxu2 %v1455_v39 }
 0x116   :  { %v748_v63 = vadd.f32 %v704_v0, %v599_v59  ;;  %v831_v2 = vmul.f32 0.3275911, %v6701_v56  ;;  %v588_v36 = vpop.f32.mrf.mxu3  ;;  %v1247_v26 = vsub.f32 0.0, %v6701_v56 }
 0x117   :  { %v6801_v28 = vadd.f32 %v588_v36, %v461_v62 }
 0x118   :  { %v5778_v14 = vpop.eup %5777  ;;  %v6708_v5 = vadd.f32 %v6654_v49, %v748_v63  ;;  %v6714_v20 = vadd.f32 1.0, %v831_v2  ;;  %v1262_v2 = vmul.f32 %v1246_v47, %v6669_v23  ;;  %v1263_v50 = vmul.f32 %v1247_v26, %v6701_v56 }
 0x119   :  { %v863_v10 = vmul.f32 %v5778_v14, %v6677_v43  ;;  %vm868_vm1 = vweird.f32 %v5778_v14 }
 0x11a   :  { %v6726_v52 = vmul.f32 0.70710677, %v6708_v5  ;;  %5779 = vrcp.f32 %v6714_v20  ;;  %vm869_vm3 = vmor %vm867_vm2, %vm868_vm1  ;;  %v886_v23 = vand.u32 2147483647, %v6714_v20  ;;  %v1278_v35 = vmul.f32 1.442695, %v1262_v2 }
 0x11b   :  { %v864_v27 = vsub.f32 1.0, %v863_v10  ;;  %v888_v10 = vand.u32 2147483648, %v6714_v20  ;;  %vm882_vm6 = vweird.f32 %v6714_v20  ;;  %v1280_v36 = vmul.f32 1.442695, %v1263_v50 }
 0x11c   :  { %v6742_v32 = vand.u32 2147483647, %v6726_v52  ;;  %vm887_vm8 = vcmp.eq.f32.partialorder %v886_v23, 8.507059e+37 }
 0x11d   :  { %v865_v29 = vmul.f32 %v5778_v14, %v864_v27  ;;  %v707_v33 = vpop.f32.mrf.mxu0  ;;  %v312_v27 = vpop.f32.mrf.mxu1  ;;  %v889_v46 = vor.u32 1.1754944e-38, %v888_v10 }
 0x11e   :  { %v832_v59 = vmul.f32 0.3275911, %v6742_v32  ;;  %v749_v45 = vadd.f32 %v707_v33, %v600_v6  ;;  %v1454_v33 = vld [vmem:[%s10043_s2 + $0x18] sm:$0xff]  ;;  %v6812_v19 = vadd.f32 %v312_v27, %v6637_v42  ;;  %v1248_v39 = vsub.f32 0.0, %v6742_v32  ;;  %v1453_v27 = vld [vmem:[%s10043_s2 + $0x10] sm:$0xff] }
 0x11f   :  { %v866_v25 = vadd.f32 %v5778_v14, %v865_v29  ;;  %1581 = vmatpush.msrb.mxu2 %v1454_v33 }
 0x120   :  { %v6760_v12 = vadd.f32 1.0, %v832_v59  ;;  %v5780_v53 = vpop.eup %5779  ;;  %v6765_v0 = vadd.f32 %v6654_v49, %v749_v45 }
 0x121   :  { %v870_v43 = vsel %vm869_vm3, %v5778_v14, %v866_v25  ;;  %v878_v60 = vmul.f32 %v5780_v53, %v6714_v20  ;;  %vm883_vm5 = vweird.f32 %v5780_v53  ;;  %v5479_v20 = vld [vmem:[%s10043_s2 + $0x80] sm:$0xff]  ;;  %1582 = vmatpush.msrb.mxu2 %v1453_v27  ;;  %vm1343_vm3 = vcmp.ge.f32.partialorder %v6688_v54, 0.0 }
 0x122   :  { %v6770_v57 = vsel %vm872_vm4, %v874_v40, %v870_v43  ;;  %5781 = vrcp.f32 %v6760_v12  ;;  %v6786_v6 = vmul.f32 0.70710677, %v6765_v0  ;;  %vm884_vm7 = vmor %vm882_vm6, %vm883_vm5  ;;  %1519 = vmatpush.msrb.mxu1 %v5479_v20  ;;  %v6832_v40 = vmul.f32 0.5, %v6662_v16 }
 0x123   :  { %v1102_v63 = vmul.f32 1.0614054, %v6770_v57  ;;  %v879_v14 = vsub.f32 1.0, %v878_v60  ;;  %v903_v31 = vand.u32 2147483648, %v6760_v12  ;;  %v901_v43 = vand.u32 2147483647, %v6760_v12 }
 0x124   :  { %v6799_v18 = vand.u32 2147483647, %v6786_v6  ;;  %vm897_vm10 = vweird.f32 %v6760_v12  ;;  %vm1344_vm5 = vcmp.ge.f32.partialorder %v6726_v52, 0.0  ;;  %v5473_v52 = vld [vmem:[%s10043_s2 + $0x50] sm:$0xff] }
 0x125   :  { %v1118_v51 = vadd.f32 -1.4531521, %v1102_v63  ;;  %v710_v9 = vpop.f32.mrf.mxu0  ;;  %v880_v13 = vmul.f32 %v5780_v53, %v879_v14  ;;  %v5478_v14 = vld [vmem:[%s10043_s2 + $0x78] sm:$0xff]  ;;  %vm902_vm12 = vcmp.eq.f32.partialorder %v901_v43, 8.507059e+37 }
 0x126   :  { %v750_v55 = vadd.f32 %v710_v9, %v6717_v17  ;;  %v833_v15 = vmul.f32 0.3275911, %v6799_v18  ;;  %v5513_v17 = vld [vmem:[%s10043_s2 + $0xd0] sm:$0xff]  ;;  %v904_v9 = vor.u32 1.1754944e-38, %v903_v31  ;;  %1520 = vmatpush.msrb.mxu1 %v5478_v14 }
 0x127   :  { %v1134_v38 = vmul.f32 %v1118_v51, %v6770_v57  ;;  %v881_v29 = vadd.f32 %v5780_v53, %v880_v13  ;;  %1690 = vmatpush.msrb.mxu3 %v5513_v17  ;;  %v1452_v17 = vld [vmem:[%s10043_s2 + $0x8] sm:$0xff] }
 0x128   :  { %v5782_v61 = vpop.eup %5781  ;;  %v6822_v42 = vadd.f32 1.0, %v833_v15  ;;  %v6825_v48 = vadd.f32 %v6654_v49, %v750_v55  ;;  %v6869_v55 = vmul.f32 0.5, %v6680_v44  ;;  %1583 = vmatpush.msrb.mxu2 %v1452_v17 }
 0x129   :  { %v1150_v37 = vadd.f32 1.4214138, %v1134_v38  ;;  %v893_v59 = vmul.f32 %v5782_v61, %v6760_v12  ;;  %v885_v1 = vsel %vm884_vm7, %v5780_v53, %v881_v29  ;;  %vm898_vm9 = vweird.f32 %v5782_v61 }
 0x12a   :  { %v6828_v45 = vsel %vm887_vm8, %v889_v46, %v885_v1  ;;  %5783 = vrcp.f32 %v6822_v42  ;;  %v6839_v56 = vmul.f32 0.70710677, %v6825_v48  ;;  %vm6848_vm11 = vmor %vm897_vm10, %vm898_vm9  ;;  %vm912_vm0 = vweird.f32 %v6822_v42 }
 0x12b   :  { %v1166_v25 = vmul.f32 %v1150_v37, %v6770_v57  ;;  %v894_v11 = vsub.f32 1.0, %v893_v59  ;;  %v1103_v47 = vmul.f32 1.0614054, %v6828_v45  ;;  %5785 = vpow2.f32 %v1278_v35 }
 0x12c   :  { %v6857_v12 = vand.u32 2147483647, %v6839_v56  ;;  %5787 = vpow2.f32 %v1280_v36  ;;  %v1264_v59 = vmul.f32 %v1248_v39, %v6742_v32  ;;  %v1451_v32 = vld [vmem:[%s10043_s2] sm:$0xff]  ;;  %v1249_v36 = vsub.f32 0.0, %v6799_v18 }
 0x12d   :  { %v1182_v53 = vadd.f32 -0.28449672, %v1166_v25  ;;  %v895_v22 = vmul.f32 %v5782_v61, %v894_v11  ;;  %v713_v60 = vpop.f32.mrf.mxu0  ;;  %v1119_v62 = vadd.f32 -1.4531521, %v1103_v47  ;;  %1584 = vmatpush.msrb.mxu2 %v1451_v32 }
 0x12e   :  { %v751_v16 = vadd.f32 %v713_v60, %v6720_v24  ;;  %v5512_v24 = vld [vmem:[%s10043_s2 + $0xc8] sm:$0xff]  ;;  %v834_v15 = vmul.f32 0.3275911, %v6857_v12 }
 0x12f   :  { %v1198_v63 = vmul.f32 %v1182_v53, %v6770_v57  ;;  %v896_v2 = vadd.f32 %v5782_v61, %v895_v22  ;;  %v1135_v51 = vmul.f32 %v1119_v62, %v6828_v45  ;;  %1691 = vmatpush.msrb.mxu3 %v5512_v24  ;;  %v916_v53 = vand.u32 2147483647, %v6822_v42 }
 0x130   :  { %v6865_v38 = vadd.f32 %v6654_v49, %v751_v16  ;;  %v5784_v26 = vpop.eup %5783  ;;  %v6885_v1 = vadd.f32 1.0, %v834_v15  ;;  %v918_v22 = vand.u32 2147483648, %v6822_v42  ;;  %v1250_v15 = vsub.f32 0.0, %v6857_v12 }
 0x131   :  { %v1214_v13 = vadd.f32 0.2548296, %v1198_v63  ;;  %v900_v23 = vsel %vm6848_vm11, %v5782_v61, %v896_v2  ;;  %v1151_v35 = vadd.f32 1.4214138, %v1135_v51  ;;  %v6876_v61 = vmul.f32 0.5, %v6708_v5  ;;  %v5786_v44 = vpop.eup %5785  ;;  %v5477_v5 = vld [vmem:[%s10043_s2 + $0x70] sm:$0xff] }
 0x132   :  { %v6871_v29 = vsel %vm902_vm12, %v904_v9, %v900_v23  ;;  %v908_v46 = vmul.f32 %v5784_v26, %v6822_v42  ;;  %1521 = vmatpush.msrb.mxu1 %v5477_v5  ;;  %v6891_v11 = vmul.f32 0.70710677, %v6865_v38  ;;  %5789 = vrcp.f32 %v6885_v1  ;;  %v5788_v9 = vpop.eup %5787 }
 0x133   :  { %v1230_v33 = vmul.f32 %v1214_v13, %v6770_v57  ;;  %v1104_v37 = vmul.f32 1.0614054, %v6871_v29  ;;  %v1167_v20 = vmul.f32 %v1151_v35, %v6828_v45  ;;  %vm913_vm15 = vweird.f32 %v5784_v26 }
 0x134   :  { %v909_v50 = vsub.f32 1.0, %v908_v46  ;;  %v1282_v63 = vmul.f32 1.442695, %v1264_v59  ;;  %v6903_v2 = vand.u32 2147483647, %v6891_v11  ;;  %vm914_vm1 = vmor %vm912_vm0, %vm913_vm15  ;;  %vm917_vm2 = vcmp.eq.f32.partialorder %v916_v53, 8.507059e+37  ;;  %1522 = vmatpush.msrb.mxu1 %v5476_v58 }
 0x135   :  { %v1310_v57 = vmul.f32 %v5786_v44, %v1230_v33  ;;  %v1120_v25 = vadd.f32 -1.4531521, %v1104_v37  ;;  %v716_v47 = vpop.f32.mrf.mxu0  ;;  %v1183_v31 = vadd.f32 -0.28449672, %v1167_v20  ;;  %v919_v24 = vor.u32 1.1754944e-38, %v918_v22 }
 0x136   :  { %v910_v62 = vmul.f32 %v5784_v26, %v909_v50  ;;  %v835_v27 = vmul.f32 0.3275911, %v6903_v2  ;;  %5791 = vpow2.f32 %v1282_v63  ;;  %v933_v22 = vand.u32 2147483648, %v6885_v1 }
 0x137   :  { %v1326_v43 = vsub.f32 1.0, %v1310_v57  ;;  %v1136_v60 = vmul.f32 %v1120_v25, %v6871_v29  ;;  %v1199_v16 = vmul.f32 %v1183_v31, %v6828_v45  ;;  %v931_v31 = vand.u32 2147483647, %v6885_v1 }
 0x138   :  { %v911_v10 = vadd.f32 %v5784_v26, %v910_v62  ;;  %v5790_v33 = vpop.eup %5789  ;;  %v6915_v17 = vadd.f32 1.0, %v835_v27  ;;  %vm927_vm6 = vweird.f32 %v6885_v1  ;;  %v5511_v27 = vld [vmem:[%s10043_s2 + $0xc0] sm:$0xff]  ;;  %vm1346_vm15 = vcmp.ge.f32.partialorder %v6839_v56, 0.0 }
 0x139   :  { %v1358_v14 = vsub.f32 0.0, %v1326_v43  ;;  %v1152_v51 = vadd.f32 1.4214138, %v1136_v60  ;;  %v1215_v39 = vadd.f32 0.2548296, %v1199_v16  ;;  %vm928_vm4 = vweird.f32 %v5790_v33  ;;  %v5475_v16 = vld [vmem:[%s10043_s2 + $0x60] sm:$0xff]  ;;  %1692 = vmatpush.msrb.mxu3 %v5511_v27 }
 0x13a   :  { %v915_v35 = vsel %vm914_vm1, %v5784_v26, %v911_v10  ;;  %v923_v26 = vmul.f32 %v5790_v33, %v6885_v1  ;;  %5793 = vrcp.f32 %v6915_v17  ;;  %1523 = vmatpush.msrb.mxu1 %v5475_v16  ;;  %vm932_vm7 = vcmp.eq.f32.partialorder %v931_v31, 8.507059e+37  ;;  %vm929_vm8 = vmor %vm927_vm6, %vm928_vm4 }
 0x13b   :  { %v1374_v13 = vsel %vm1342_vm13, %v1326_v43, %v1358_v14  ;;  %v1168_v23 = vmul.f32 %v1152_v51, %v6871_v29  ;;  %v1231_v42 = vmul.f32 %v1215_v39, %v6828_v45  ;;  %v6913_v46 = vsel %vm917_vm2, %v919_v24, %v915_v35 }
 0x13c   :  { %v1390_v37 = vadd.f32 1.0, %v1374_v13  ;;  %v1105_v20 = vmul.f32 1.0614054, %v6913_v46  ;;  %v1265_v45 = vmul.f32 %v1249_v36, %v6799_v18  ;;  %v924_v32 = vsub.f32 1.0, %v923_v26 }
 0x13d   :  { %v1184_v44 = vadd.f32 -0.28449672, %v1168_v23  ;;  %v719_v59 = vpop.f32.mrf.mxu0  ;;  %v1311_v57 = vmul.f32 %v5788_v9, %v1231_v42  ;;  %v1266_v43 = vmul.f32 %v1250_v15, %v6857_v12  ;;  %v6940_v12 = vpop.f32.mrf.mxu2  ;;  %v934_v1 = vor.u32 1.1754944e-38, %v933_v22 }
 0x13e   :  { %v1406_v5 = vmul.f32 %v1390_v37, %v6832_v40  ;;  %v1121_v50 = vadd.f32 -1.4531521, %v1105_v20  ;;  %v752_v40 = vadd.f32 %v716_v47, %v6723_v30  ;;  %v925_v62 = vmul.f32 %v5790_v33, %v924_v32  ;;  %v5792_v30 = vpop.eup %5791  ;;  %v5474_v20 = vld [vmem:[%s10043_s2 + $0x58] sm:$0xff] }
 0x13f   :  { %v1200_v25 = vmul.f32 %v1184_v44, %v6871_v29  ;;  %v1327_v53 = vsub.f32 1.0, %v1311_v57  ;;  %v1284_v36 = vmul.f32 1.442695, %v1265_v45  ;;  %v6948_v24 = vmul.f32 1.442695, %v1266_v43  ;;  %1524 = vmatpush.msrb.mxu1 %v5474_v20  ;;  %v5509_v20 = vld [vmem:[%s10043_s2 + $0xb0] sm:$0xff] }
 0x140   :  { %1423 = vst.msk [vmem:[#allocation2] sm:$0xff] %vm1422_vm14, %v1406_v5  ;;  %v1137_v18 = vmul.f32 %v1121_v50, %v6913_v46  ;;  %v6938_v14 = vadd.f32 %v6654_v49, %v752_v40  ;;  %v926_v10 = vadd.f32 %v5790_v33, %v925_v62  ;;  %v6943_v9 = vpop.eup %5793  ;;  %v753_v44 = vadd.f32 %v719_v59, %v6729_v7 }
 0x141   :  { %v1216_v60 = vadd.f32 0.2548296, %v1200_v25  ;;  %v1359_v63 = vsub.f32 0.0, %v1327_v53  ;;  %v938_v42 = vmul.f32 %v6943_v9, %v6915_v17  ;;  %5795 = vpow2.f32 %v1284_v36  ;;  %v5510_v36 = vld [vmem:[%s10043_s2 + $0xb8] sm:$0xff]  ;;  %1525 = vmatpush.msrb.mxu1 %v5473_v52 }
 0x142   :  { %v1153_v51 = vadd.f32 1.4214138, %v1137_v18  ;;  %v6954_v13 = vmul.f32 0.70710677, %v6938_v14  ;;  %v930_v15 = vsel %vm929_vm8, %v5790_v33, %v926_v10  ;;  %v946_v50 = vand.u32 2147483647, %v6915_v17  ;;  %1693 = vmatpush.msrb.mxu3 %v5510_v36 }
 0x143   :  { %v1232_v47 = vmul.f32 %v1216_v60, %v6871_v29  ;;  %v1375_v39 = vsel %vm1343_vm3, %v1327_v53, %v1359_v63  ;;  %v6957_v37 = vsel %vm932_vm7, %v934_v1, %v930_v15  ;;  %v939_v25 = vsub.f32 1.0, %v938_v42 }
 0x144   :  { %v1391_v29 = vadd.f32 1.0, %v1375_v39  ;;  %v1169_v35 = vmul.f32 %v1153_v51, %v6913_v46  ;;  %v6962_v58 = vand.u32 2147483647, %v6954_v13  ;;  %v1106_v57 = vmul.f32 1.0614054, %v6957_v37  ;;  %1694 = vmatpush.msrb.mxu3 %v5509_v20 }
 0x145   :  { %v1312_v23 = vmul.f32 %v5792_v30, %v1232_v47  ;;  %v722_v54 = vpop.f32.mrf.mxu0  ;;  %v948_v31 = vand.u32 2147483648, %v6915_v17  ;;  %v940_v53 = vmul.f32 %v6943_v9, %v939_v25  ;;  %vm943_vm9 = vweird.f32 %v6943_v9  ;;  %v445_v30 = vpop.f32.mrf.mxu2 }
 0x146   :  { %v1407_v26 = vmul.f32 %v1391_v29, %v6869_v55  ;;  %v1185_v33 = vadd.f32 -0.28449672, %v1169_v35  ;;  %v836_v32 = vmul.f32 0.3275911, %v6962_v58  ;;  %v1122_v55 = vadd.f32 -1.4531521, %v1106_v57 }
 0x147   :  { %v1328_v5 = vsub.f32 1.0, %v1312_v23  ;;  %v1439_v45 = vld [vmem:[#allocation2] sm:$0xff]  ;;  %v6981_v43 = vadd.f32 %v6654_v49, %v753_v44  ;;  %v1251_v62 = vsub.f32 0.0, %v6903_v2  ;;  %v941_v63 = vadd.f32 %v6943_v9, %v940_v53  ;;  %v5796_v39 = vpop.eup %5795 }
 0x148   :  { %5495 = vmatmul.msk.f32.vlgmr.msrb.gmra.mxu2 %vm1422_vm14, %v1439_v45  ;;  %1424 = vst.msk [vmem:[#allocation2 + $0x8] sm:$0xff] %vm1422_vm14, %v1407_v26  ;;  %v1201_v59 = vmul.f32 %v1185_v33, %v6913_v46  ;;  %v6978_v22 = vadd.f32 1.0, %v836_v32  ;;  %v1138_v18 = vmul.f32 %v1122_v55, %v6957_v37  ;;  %vm942_vm10 = vweird.f32 %v6915_v17 }
 0x149   :  { %v1360_v7 = vsub.f32 0.0, %v1328_v5  ;;  %vm944_vm11 = vmor %vm942_vm10, %vm943_vm9  ;;  %v949_v10 = vor.u32 1.1754944e-38, %v948_v31  ;;  %v754_v17 = vadd.f32 %v722_v54, %v6768_v3  ;;  %vm947_vm12 = vcmp.eq.f32.partialorder %v946_v50, 8.507059e+37 }
 0x14a   :  { %v1217_v60 = vadd.f32 0.2548296, %v1201_v59  ;;  %5797 = vrcp.f32 %v6978_v22  ;;  %v1154_v51 = vadd.f32 1.4214138, %v1138_v18  ;;  %v945_v27 = vsel %vm944_vm11, %v6943_v9, %v941_v63 }
 0x14b   :  { %v1376_v40 = vsel %vm1344_vm5, %v1328_v5, %v1360_v7  ;;  %v7003_v29 = vmul.f32 0.70710677, %v6981_v43  ;;  %v7010_v15 = vsel %vm947_vm12, %v949_v10, %v945_v27  ;;  %v7013_v54 = vadd.f32 %v445_v30, %v6812_v19 }
 0x14c   :  { %v1392_v16 = vadd.f32 1.0, %v1376_v40  ;;  %v1233_v47 = vmul.f32 %v1217_v60, %v6913_v46  ;;  %v7007_v46 = vadd.f32 %v6940_v12, %v6791_v41  ;;  %v1170_v35 = vmul.f32 %v1154_v51, %v6957_v37  ;;  %v5508_v60 = vld [vmem:[%s10043_s2 + $0xa8] sm:$0xff] }
 0x14d   :  { %v725_v3 = vpop.f32.mrf.mxu0  ;;  %v1267_v9 = vmul.f32 %v1251_v62, %v6903_v2  ;;  %v7019_v42 = vand.u32 2147483647, %v7003_v29  ;;  %v785_v41 = vmul.f32 0.5, %v6765_v0  ;;  %v7026_v19 = vadd.f32 %v6654_v49, %v754_v17  ;;  %1695 = vmatpush.msrb.mxu3 %v5508_v60 }
 0x14e   :  { %v1408_v1 = vmul.f32 %v1392_v16, %v6876_v61  ;;  %v1313_v23 = vmul.f32 %v5796_v39, %v1233_v47  ;;  %v1107_v61 = vmul.f32 1.0614054, %v7010_v15  ;;  %v1186_v44 = vadd.f32 -0.28449672, %v1170_v35 }
 0x14f   :  { %v1440_v26 = vld [vmem:[#allocation2 + $0x8] sm:$0xff]  ;;  %vm1345_vm13 = vcmp.ge.f32.partialorder %v6786_v6, 0.0  ;;  %5799 = vpow2.f32 %v6948_v24  ;;  %v837_v33 = vmul.f32 0.3275911, %v7019_v42  ;;  %v7033_v57 = vmul.f32 0.5, %v6825_v48 }
 0x150   :  { %1425 = vst.msk [vmem:[#allocation2 + $0x10] sm:$0xff] %vm1422_vm14, %v1408_v1  ;;  %v1329_v12 = vsub.f32 1.0, %v1313_v23  ;;  %v5798_v5 = vpop.eup %5797  ;;  %v1123_v2 = vadd.f32 -1.4531521, %v1107_v61  ;;  %5496 = vmatmul.msk.f32.gmra.mxu2 %vm1422_vm14, %v1440_v26  ;;  %v1202_v45 = vmul.f32 %v1186_v44, %v6957_v37  ;;  %v1288_v32 = vmul.f32 1.442695, %v1267_v9 }
 0x151   :  { %v953_v25 = vmul.f32 %v5798_v5, %v6978_v22  ;;  %v1252_v6 = vsub.f32 0.0, %v6962_v58  ;;  %v7039_v24 = vadd.f32 1.0, %v837_v33  ;;  %v7042_v31 = vmul.f32 0.70710677, %v7026_v19  ;;  %v5507_v44 = vld [vmem:[%s10043_s2 + $0xa0] sm:$0xff] }
 0x152   :  { %v1361_v0 = vsub.f32 0.0, %v1329_v12  ;;  %v1139_v50 = vmul.f32 %v1123_v2, %v7010_v15  ;;  %v1218_v59 = vadd.f32 0.2548296, %v1202_v45  ;;  %v963_v40 = vand.u32 2147483648, %v6978_v22  ;;  %1696 = vmatpush.msrb.mxu3 %v5507_v44 }
 0x153   :  { %v954_v55 = vsub.f32 1.0, %v953_v25  ;;  %5801 = vrcp.f32 %v7039_v24  ;;  %vm958_vm0 = vweird.f32 %v5798_v5  ;;  %v961_v16 = vand.u32 2147483647, %v6978_v22 }
 0x154   :  { %v1377_v7 = vsel %vm1345_vm13, %v1329_v12, %v1361_v0  ;;  %v1155_v48 = vadd.f32 1.4214138, %v1139_v50  ;;  %v1234_v18 = vmul.f32 %v1218_v59, %v6957_v37  ;;  %v1268_v47 = vmul.f32 %v1252_v6, %v6962_v58 }
 0x155   :  { %v1393_v53 = vadd.f32 1.0, %v1377_v7  ;;  %v955_v62 = vmul.f32 %v5798_v5, %v954_v55  ;;  %v5800_v36 = vpop.eup %5799  ;;  %v7055_v51 = vand.u32 2147483647, %v7042_v31  ;;  %v7059_v37 = vmul.f32 0.5, %v6865_v38  ;;  %v728_v39 = vpop.f32.mrf.mxu0 }
 0x156   :  { %v1171_v30 = vmul.f32 %v1155_v48, %v7010_v15  ;;  %v1314_v10 = vmul.f32 %v5800_v36, %v1234_v18  ;;  %vm957_vm1 = vweird.f32 %v6978_v22  ;;  %v964_v27 = vor.u32 1.1754944e-38, %v963_v40 }
 0x157   :  { %v1441_v63 = vld [vmem:[#allocation2 + $0x10] sm:$0xff]  ;;  %v1409_v52 = vmul.f32 %v1393_v53, %v785_v41  ;;  %v956_v17 = vadd.f32 %v5798_v5, %v955_v62  ;;  %vm959_vm2 = vmor %vm957_vm1, %vm958_vm0  ;;  %v838_v58 = vmul.f32 0.3275911, %v7055_v51  ;;  %v755_v23 = vadd.f32 %v725_v3, %v6775_v4 }
 0x158   :  { %5483 = vmatmul.msk.f32.vlgmr.msrb.gmra.mxu1 %vm1422_vm14, %v1441_v63  ;;  %v1187_v1 = vadd.f32 -0.28449672, %v1171_v30  ;;  %5497 = vmatmul.msk.f32.gmra.mxu2 %vm1422_vm14, %v1441_v63  ;;  %v1330_v35 = vsub.f32 1.0, %v1314_v10  ;;  %5803 = vpow2.f32 %v1288_v32  ;;  %vm962_vm3 = vcmp.eq.f32.partialorder %v961_v16, 8.507059e+37 }
 0x159   :  { %1426 = vst.msk [vmem:[#allocation2 + $0x18] sm:$0xff] %vm1422_vm14, %v1409_v52  ;;  %v960_v38 = vsel %vm959_vm2, %v5798_v5, %v956_v17  ;;  %v5802_v61 = vpop.eup %5801  ;;  %v1290_v41 = vmul.f32 1.442695, %v1268_v47  ;;  %v7070_v12 = vadd.f32 1.0, %v838_v58  ;;  %v1253_v26 = vsub.f32 0.0, %v7019_v42 }
 0x15a   :  { %v1203_v22 = vmul.f32 %v1187_v1, %v7010_v15  ;;  %v7068_v9 = vsel %vm962_vm3, %v964_v27, %v960_v38  ;;  %v1362_v20 = vsub.f32 0.0, %v1330_v35  ;;  %v968_v3 = vmul.f32 %v5802_v61, %v7039_v24 }
 0x15b   :  { %v1108_v4 = vmul.f32 1.0614054, %v7068_v9  ;;  %v976_v2 = vand.u32 2147483647, %v7039_v24  ;;  %5805 = vrcp.f32 %v7070_v12  ;;  %v7081_v33 = vadd.f32 %v6654_v49, %v755_v23 }
 0x15c   :  { %v1219_v5 = vadd.f32 0.2548296, %v1203_v22  ;;  %v1378_v0 = vsel %vm1346_vm15, %v1330_v35, %v1362_v20  ;;  %v969_v25 = vsub.f32 1.0, %v968_v3  ;;  %v978_v50 = vand.u32 2147483648, %v7039_v24 }
 0x15d   :  { %v1124_v45 = vadd.f32 -1.4531521, %v1108_v4  ;;  %v1394_v32 = vadd.f32 1.0, %v1378_v0  ;;  %vm1347_vm4 = vcmp.ge.f32.partialorder %v6891_v11, 0.0  ;;  %5807 = vpow2.f32 %v1290_v41  ;;  %v731_v16 = vpop.f32.mrf.mxu0 }
 0x15e   :  { %v1235_v6 = vmul.f32 %v1219_v5, %v7010_v15  ;;  %v5804_v7 = vpop.eup %5803  ;;  %v970_v55 = vmul.f32 %v5802_v61, %v969_v25  ;;  %vm973_vm5 = vweird.f32 %v5802_v61  ;;  %v1269_v53 = vmul.f32 %v1253_v26, %v7019_v42 }
 0x15f   :  { %v1140_v59 = vmul.f32 %v1124_v45, %v7068_v9  ;;  %v1410_v56 = vmul.f32 %v1394_v32, %v7033_v57  ;;  %vm972_vm6 = vweird.f32 %v7039_v24  ;;  %v7093_v60 = vmul.f32 0.70710677, %v7081_v33 }
 0x160   :  { %v1442_v48 = vld [vmem:[#allocation2 + $0x18] sm:$0xff]  ;;  %v1315_v40 = vmul.f32 %v5804_v7, %v1235_v6  ;;  %v971_v18 = vadd.f32 %v5802_v61, %v970_v55  ;;  %vm7097_vm7 = vcmp.eq.f32.partialorder %v976_v2, 8.507059e+37  ;;  %v979_v42 = vor.u32 1.1754944e-38, %v978_v50  ;;  %vm974_vm8 = vmor %vm972_vm6, %vm973_vm5 }
 0x161   :  { %5484 = vmatmul.msk.f32.gmra.mxu1 %vm1422_vm14, %v1442_v48  ;;  %5498 = vmatmul.msk.f32.gmra.mxu2 %vm1422_vm14, %v1442_v48  ;;  %v1156_v15 = vadd.f32 1.4214138, %v1140_v59  ;;  %v5806_v63 = vpop.eup %5805  ;;  %1427 = vst.msk [vmem:[#allocation2 + $0x20] sm:$0xff] %vm1422_vm14, %v1410_v56  ;;  %v1254_v24 = vsub.f32 0.0, %v7055_v51  ;;  %v7105_v36 = vand.u32 2147483647, %v7093_v60  ;;  %v756_v52 = vadd.f32 %v728_v39, %v6778_v34 }
 0x162   :  { %v1331_v57 = vsub.f32 1.0, %v1315_v40  ;;  %v975_v47 = vsel %vm974_vm8, %v5802_v61, %v971_v18  ;;  %v983_v10 = vmul.f32 %v5806_v63, %v7070_v12  ;;  %v991_v17 = vand.u32 2147483647, %v7070_v12 }
 0x163   :  { %v1172_v30 = vmul.f32 %v1156_v15, %v7068_v9  ;;  %v5808_v1 = vpop.eup %5807  ;;  %v7113_v58 = vsel %vm7097_vm7, %v979_v42, %v975_v47  ;;  %v839_v23 = vmul.f32 0.3275911, %v7105_v36  ;;  %v757_v35 = vadd.f32 %v731_v16, %v6782_v8 }
 0x164   :  { %v1363_v27 = vsub.f32 0.0, %v1331_v57  ;;  %v1109_v34 = vmul.f32 1.0614054, %v7113_v58  ;;  %v984_v39 = vsub.f32 1.0, %v983_v10  ;;  %v993_v61 = vand.u32 2147483648, %v7070_v12 }
 0x165   :  { %v1188_v38 = vadd.f32 -0.28449672, %v1172_v30  ;;  %vm988_vm9 = vweird.f32 %v5806_v63  ;;  %v7121_v41 = vadd.f32 1.0, %v839_v23  ;;  %v7124_v44 = vadd.f32 %v6654_v49, %v756_v52 }
 0x166   :  { %v1379_v22 = vsel %vm1347_vm4, %v1331_v57, %v1363_v27  ;;  %v1125_v3 = vadd.f32 -1.4531521, %v1109_v34  ;;  %v985_v8 = vmul.f32 %v5806_v63, %v984_v39  ;;  %v7128_v26 = vmul.f32 0.5, %v6938_v14  ;;  %v734_v57 = vpop.f32.mrf.mxu0 }
 0x167   :  { %v1395_v20 = vadd.f32 1.0, %v1379_v22  ;;  %v1204_v4 = vmul.f32 %v1188_v38, %v7068_v9  ;;  %vm987_vm10 = vweird.f32 %v7070_v12  ;;  %5809 = vrcp.f32 %v7121_v41 }
 0x168   :  { %v7133_v11 = vadd.f32 %v6654_v49, %v757_v35  ;;  %v1141_v0 = vmul.f32 %v1125_v3, %v7113_v58  ;;  %v986_v45 = vadd.f32 %v5806_v63, %v985_v8  ;;  %v1443_v25 = vld [vmem:[#allocation2 + $0x20] sm:$0xff]  ;;  %vm1348_vm11 = vcmp.ge.f32.partialorder %v6954_v13, 0.0  ;;  %vm989_vm12 = vmor %vm987_vm10, %vm988_vm9 }
 0x169   :  { %v1411_v5 = vmul.f32 %v1395_v20, %v7059_v37  ;;  %v1220_v2 = vadd.f32 0.2548296, %v1204_v4  ;;  %v1292_v50 = vmul.f32 1.442695, %v1269_v53  ;;  %vm992_vm13 = vcmp.eq.f32.partialorder %v991_v17, 8.507059e+37  ;;  %5485 = vmatmul.msk.f32.gmra.mxu1 %vm1422_vm14, %v1443_v25  ;;  %5499 = vmatmul.msk.f32.gmra.mxu2 %vm1422_vm14, %v1443_v25 }
 0x16a   :  { %v994_v14 = vor.u32 1.1754944e-38, %v993_v61  ;;  %v1270_v12 = vmul.f32 %v1254_v24, %v7055_v51  ;;  %v1157_v37 = vadd.f32 1.4214138, %v1141_v0  ;;  %v990_v32 = vsel %vm989_vm12, %v5806_v63, %v986_v45  ;;  %5517 = vmatmul.msk.f32.vlgmr.msrb.gmra.mxu3 %vm1422_vm14, %v1443_v25 }
 0x16b   :  { %1428 = vst.msk [vmem:[#allocation2 + $0x28] sm:$0xff] %vm1422_vm14, %v1411_v5  ;;  %v1236_v49 = vmul.f32 %v1220_v2, %v7068_v9  ;;  %v7145_v6 = vmul.f32 0.70710677, %v7124_v44  ;;  %v7149_v7 = vmul.f32 0.5, %v6981_v43  ;;  %v1255_v51 = vsub.f32 0.0, %v7105_v36 }
 0x16c   :  { %v7151_v59 = vsel %vm992_vm13, %v994_v14, %v990_v32  ;;  %v7155_v55 = vmul.f32 0.70710677, %v7133_v11  ;;  %v1173_v9 = vmul.f32 %v1157_v37, %v7113_v58  ;;  %5811 = vpow2.f32 %v1292_v50 }
 0x16d   :  { %v1316_v53 = vmul.f32 %v5808_v1, %v1236_v49  ;;  %v1110_v48 = vmul.f32 1.0614054, %v7151_v59  ;;  %v824_v56 = vand.u32 2147483647, %v7145_v6  ;;  %v5810_v40 = vpop.eup %5809  ;;  %v7161_v15 = vmul.f32 0.5, %v7026_v19 }
 0x16e   :  { %v1294_v43 = vmul.f32 1.442695, %v1270_v12  ;;  %v7164_v18 = vand.u32 2147483647, %v7155_v55  ;;  %v1189_v42 = vadd.f32 -0.28449672, %v1173_v9  ;;  %v998_v63 = vmul.f32 %v5810_v40, %v7121_v41 }
 0x16f   :  { %v1332_v62 = vsub.f32 1.0, %v1316_v53  ;;  %v1126_v16 = vadd.f32 -1.4531521, %v1110_v48  ;;  %v1008_v24 = vand.u32 2147483648, %v7121_v41  ;;  %v1271_v52 = vmul.f32 %v1255_v51, %v7105_v36  ;;  %v7205_v9 = vld [vmem:[%s10046_s5] ss:$0 sm:$0xff] }
 0x170   :  { %v840_v30 = vmul.f32 0.3275911, %v824_v56  ;;  %v841_v47 = vmul.f32 0.3275911, %v7164_v18  ;;  %v1205_v19 = vmul.f32 %v1189_v42, %v7113_v58  ;;  %v999_v1 = vsub.f32 1.0, %v998_v63 }
 0x171   :  { %v1364_v10 = vsub.f32 0.0, %v1332_v62  ;;  %v1142_v17 = vmul.f32 %v1126_v16, %v7151_v59  ;;  %vm1003_vm15 = vweird.f32 %v5810_v40  ;;  %v1006_v27 = vand.u32 2147483647, %v7121_v41 }
 0x172   :  { %v7173_v23 = vadd.f32 1.0, %v840_v30  ;;  %v7175_v35 = vadd.f32 1.0, %v841_v47  ;;  %v1444_v38 = vld [vmem:[#allocation2 + $0x28] sm:$0xff]  ;;  %v1221_v34 = vadd.f32 0.2548296, %v1205_v19  ;;  %v1000_v61 = vmul.f32 %v5810_v40, %v999_v1  ;;  %v5812_v22 = vpop.eup %5811 }
 0x173   :  { %v1380_v36 = vsel %vm1348_vm11, %v1332_v62, %v1364_v10  ;;  %v1158_v39 = vadd.f32 1.4214138, %v1142_v17  ;;  %5486 = vmatmul.msk.f32.gmra.mxu1 %vm1422_vm14, %v1444_v38  ;;  %5500 = vmatmul.msk.f32.gmra.mxu2 %vm1422_vm14, %v1444_v38  ;;  %vm1349_vm0 = vcmp.ge.f32.partialorder %v7003_v29, 0.0  ;;  %vm1002_vm1 = vweird.f32 %v7121_v41 }
 0x174   :  { %v1396_v20 = vadd.f32 1.0, %v1380_v36  ;;  %v1009_v4 = vor.u32 1.1754944e-38, %v1008_v24  ;;  %5813 = vrcp.f32 %v7173_v23  ;;  %5518 = vmatmul.msk.f32.gmra.mxu3 %vm1422_vm14, %v1444_v38  ;;  %v1237_v13 = vmul.f32 %v1221_v34, %v7113_v58  ;;  %vm1004_vm2 = vmor %vm1002_vm1, %vm1003_vm15  ;;  %v591_v24 = vpop.f32.mrf.mxu3 }
 0x175   :  { %v1174_v3 = vmul.f32 %v1158_v39, %v7151_v59  ;;  %v1001_v8 = vadd.f32 %v5810_v40, %v1000_v61  ;;  %v1296_v5 = vmul.f32 1.442695, %v1271_v52  ;;  %v1256_v0 = vsub.f32 0.0, %v824_v56 }
 0x176   :  { %v1412_v2 = vmul.f32 %v1396_v20, %v7128_v26  ;;  %5815 = vrcp.f32 %v7175_v35  ;;  %v758_v41 = vadd.f32 %v734_v57, %v6788_v21  ;;  %v1317_v45 = vmul.f32 %v5812_v22, %v1237_v13  ;;  %v737_v21 = vpop.f32.mrf.mxu0 }
 0x177   :  { %v1190_v25 = vadd.f32 -0.28449672, %v1174_v3  ;;  %v1005_v50 = vsel %vm1004_vm2, %v5810_v40, %v1001_v8  ;;  %vm1007_vm3 = vcmp.eq.f32.partialorder %v1006_v27, 8.507059e+37  ;;  %5817 = vpow2.f32 %v1294_v43 }
 0x178   :  { %1429 = vst.msk [vmem:[#allocation2 + $0x30] sm:$0xff] %vm1422_vm14, %v1412_v2  ;;  %v7192_v58 = vsel %vm1007_vm3, %v1009_v4, %v1005_v50  ;;  %v1021_v14 = vand.u32 2147483647, %v7173_v23  ;;  %v1023_v26 = vand.u32 2147483648, %v7173_v23  ;;  %v1333_v12 = vsub.f32 1.0, %v1317_v45 }
 0x179   :  { %v1206_v49 = vmul.f32 %v1190_v25, %v7151_v59  ;;  %v1111_v37 = vmul.f32 1.0614054, %v7192_v58  ;;  %5819 = vpow2.f32 %v1296_v5  ;;  %vm1017_vm4 = vweird.f32 %v7173_v23 }
 0x17a   :  { %v5814_v32 = vpop.eup %5813  ;;  %v7199_v51 = vmul.f32 %v1256_v0, %v824_v56  ;;  %v1257_v53 = vsub.f32 0.0, %v7164_v18  ;;  %v7208_v48 = vadd.f32 %v7205_v9, %v758_v41  ;;  %v1365_v40 = vsub.f32 0.0, %v1333_v12 }
 0x17b   :  { %v1222_v43 = vadd.f32 0.2548296, %v1206_v49  ;;  %v1127_v62 = vadd.f32 -1.4531521, %v1111_v37  ;;  %v1013_v42 = vmul.f32 %v5814_v32, %v7173_v23  ;;  %vm1350_vm5 = vcmp.ge.f32.partialorder %v7042_v31, 0.0 }
 0x17c   :  { %v5816_v16 = vpop.eup %5815  ;;  %vm7212_vm6 = vcmp.eq.f32.partialorder %v1021_v14, 8.507059e+37  ;;  %v1024_v63 = vor.u32 1.1754944e-38, %v1023_v26  ;;  %vm1032_vm7 = vweird.f32 %v7175_v35  ;;  %v759_v57 = vadd.f32 %v737_v21, %v6801_v28  ;;  %v594_v31 = vpop.f32.mrf.mxu3 }
 0x17d   :  { %v1381_v52 = vsel %vm1349_vm0, %v1333_v12, %v1365_v40  ;;  %v1238_v30 = vmul.f32 %v1222_v43, %v7151_v59  ;;  %v1143_v47 = vmul.f32 %v1127_v62, %v7192_v58  ;;  %v1014_v10 = vsub.f32 1.0, %v1013_v42  ;;  %v5818_v19 = vpop.eup %5817 }
 0x17e   :  { %v1397_v17 = vadd.f32 1.0, %v1381_v52  ;;  %vm1018_vm8 = vweird.f32 %v5814_v32  ;;  %v1028_v1 = vmul.f32 %v5816_v16, %v7175_v35  ;;  %v1036_v27 = vand.u32 2147483647, %v7175_v35  ;;  %v740_v12 = vpop.f32.mrf.mxu0 }
 0x17f   :  { %v5820_v38 = vpop.eup %5819  ;;  %v1318_v36 = vmul.f32 %v5818_v19, %v1238_v30  ;;  %v1159_v34 = vadd.f32 1.4214138, %v1143_v47  ;;  %v1015_v28 = vmul.f32 %v5814_v32, %v1014_v10  ;;  %v7225_v39 = vmul.f32 0.70710677, %v7208_v48  ;;  %v1445_v29 = vld [vmem:[#allocation2 + $0x30] sm:$0xff]  ;;  %vm1019_vm9 = vmor %vm1017_vm4, %vm1018_vm8 }
 0x180   :  { %v1413_v59 = vmul.f32 %v1397_v17, %v7149_v7  ;;  %v1029_v61 = vsub.f32 1.0, %v1028_v1  ;;  %v1038_v22 = vand.u32 2147483648, %v7175_v35  ;;  %v7230_v20 = vadd.f32 %v7205_v9, %v759_v57  ;;  %5487 = vmatmul.msk.f32.gmra.mxu1 %vm1422_vm14, %v1445_v29  ;;  %5501 = vmatmul.msk.f32.gmra.mxu2 %vm1422_vm14, %v1445_v29 }
 0x181   :  { %v1334_v4 = vsub.f32 1.0, %v1318_v36  ;;  %v1175_v13 = vmul.f32 %v1159_v34, %v7192_v58  ;;  %v1016_v3 = vadd.f32 %v5814_v32, %v1015_v28  ;;  %v7236_v8 = vand.u32 2147483647, %v7225_v39  ;;  %5519 = vmatmul.msk.f32.gmra.mxu3 %vm1422_vm14, %v1445_v29 }
 0x182   :  { %1430 = vst.msk [vmem:[#allocation2 + $0x38] sm:$0xff] %vm1422_vm14, %v1413_v59  ;;  %v1030_v7 = vmul.f32 %v5816_v16, %v1029_v61  ;;  %vm1033_vm10 = vweird.f32 %v5816_v16  ;;  %vm7243_vm11 = vcmp.eq.f32.partialorder %v1036_v27, 8.507059e+37  ;;  %v7248_v2 = vmul.f32 0.70710677, %v7230_v20 }
 0x183   :  { %v1366_v0 = vsub.f32 0.0, %v1334_v4  ;;  %v1191_v41 = vadd.f32 -0.28449672, %v1175_v13  ;;  %v1020_v45 = vsel %vm1019_vm9, %v5814_v32, %v1016_v3  ;;  %v842_v25 = vmul.f32 0.3275911, %v7236_v8  ;;  %vm1034_vm12 = vmor %vm1032_vm7, %vm1033_vm10 }
 0x184   :  { %v7253_v50 = vsel %vm7212_vm6, %v1024_v63, %v1020_v45  ;;  %v1031_v23 = vadd.f32 %v5816_v16, %v1030_v7  ;;  %v1039_v14 = vor.u32 1.1754944e-38, %v1038_v22  ;;  %v7256_v26 = vand.u32 2147483647, %v7248_v2 }
 0x185   :  { %v1382_v49 = vsel %vm1350_vm5, %v1334_v4, %v1366_v0  ;;  %v1207_v37 = vmul.f32 %v1191_v41, %v7192_v58  ;;  %v1112_v21 = vmul.f32 1.0614054, %v7253_v50  ;;  %v7265_v32 = vadd.f32 1.0, %v842_v25 }
 0x186   :  { %v1398_v40 = vadd.f32 1.0, %v1382_v49  ;;  %v1035_v43 = vsel %vm1034_vm12, %v5816_v16, %v1031_v23  ;;  %v1273_v62 = vmul.f32 %v1257_v53, %v7164_v18  ;;  %v843_v42 = vmul.f32 0.3275911, %v7256_v26  ;;  %v743_v59 = vpop.f32.mrf.mxu0 }
 0x187   :  { %v1223_v56 = vadd.f32 0.2548296, %v1207_v37  ;;  %v1128_v63 = vadd.f32 -1.4531521, %v1112_v21  ;;  %v7273_v57 = vsel %vm7243_vm11, %v1039_v14, %v1035_v43  ;;  %5821 = vrcp.f32 %v7265_v32 }
 0x188   :  { %v1414_v35 = vmul.f32 %v1398_v40, %v7161_v15  ;;  %v1113_v52 = vmul.f32 1.0614054, %v7273_v57  ;;  %v611_v16 = vadd.f32 %v591_v24, %v7007_v46  ;;  %v1298_v53 = vmul.f32 1.442695, %v7199_v51 }
 0x189   :  { %v1239_v30 = vmul.f32 %v1223_v56, %v7192_v58  ;;  %v1144_v18 = vmul.f32 %v1128_v63, %v7253_v50  ;;  %v1446_v47 = vld [vmem:[#allocation2 + $0x38] sm:$0xff]  ;;  %v612_v10 = vadd.f32 %v594_v31, %v7013_v54  ;;  %v1300_v17 = vmul.f32 1.442695, %v1273_v62 }
 0x18a   :  { %1431 = vst.msk [vmem:[#allocation2 + $0x40] sm:$0xff] %vm1422_vm14, %v1414_v35  ;;  %v1129_v19 = vadd.f32 -1.4531521, %v1113_v52  ;;  %v7284_v1 = vadd.f32 1.0, %v843_v42  ;;  %5488 = vmatmul.msk.f32.gmra.mxu1 %vm1422_vm14, %v1446_v47  ;;  %5502 = vmatmul.msk.f32.gmra.mxu2 %vm1422_vm14, %v1446_v47  ;;  %v791_v46 = vmul.f32 0.5, %v7081_v33  ;;  %v1258_v24 = vsub.f32 0.0, %v7236_v8 }
 0x18b   :  { %v1319_v15 = vmul.f32 %v5820_v38, %v1239_v30  ;;  %v1160_v58 = vadd.f32 1.4214138, %v1144_v18  ;;  %5520 = vmatmul.msk.f32.gmra.mxu3 %vm1422_vm14, %v1446_v47  ;;  %v1051_v51 = vand.u32 2147483647, %v7265_v32  ;;  %v760_v27 = vadd.f32 %v740_v12, %v611_v16 }
 0x18c   :  { %v1145_v54 = vmul.f32 %v1129_v19, %v7273_v57  ;;  %5823 = vrcp.f32 %v7284_v1  ;;  %v1053_v33 = vand.u32 2147483648, %v7265_v32  ;;  %vm1351_vm13 = vcmp.ge.f32.partialorder %v7093_v60, 0.0 }
 0x18d   :  { %v5822_v36 = vpop.eup %5821  ;;  %v1335_v34 = vsub.f32 1.0, %v1319_v15  ;;  %v1176_v28 = vmul.f32 %v1160_v58, %v7253_v50  ;;  %5825 = vpow2.f32 %v1298_v53  ;;  %vm1047_vm15 = vweird.f32 %v7265_v32 }
 0x18e   :  { %v1161_v38 = vadd.f32 1.4214138, %v1145_v54  ;;  %5827 = vpow2.f32 %v1300_v17  ;;  %v1043_v29 = vmul.f32 %v5822_v36, %v7265_v32  ;;  %v7300_v4 = vmul.f32 %v1258_v24, %v7236_v8 }
 0x18f   :  { %v1367_v61 = vsub.f32 0.0, %v1335_v34  ;;  %v1192_v22 = vadd.f32 -0.28449672, %v1176_v28  ;;  %vm7303_vm0 = vcmp.eq.f32.partialorder %v1051_v51, 8.507059e+37  ;;  %v7308_v60 = vadd.f32 %v7205_v9, %v760_v27 }
 0x190   :  { %v1177_v13 = vmul.f32 %v1161_v38, %v7273_v57  ;;  %v1044_v3 = vsub.f32 1.0, %v1043_v29  ;;  %v1054_v41 = vor.u32 1.1754944e-38, %v1053_v33  ;;  %v761_v45 = vadd.f32 %v743_v59, %v612_v10 }
 0x191   :  { %v1383_v5 = vsel %vm1351_vm13, %v1335_v34, %v1367_v61  ;;  %v1208_v0 = vmul.f32 %v1192_v22, %v7253_v50  ;;  %v1447_v25 = vld [vmem:[#allocation2 + $0x40] sm:$0xff]  ;;  %vm1048_vm1 = vweird.f32 %v5822_v36  ;;  %v1066_v40 = vand.u32 2147483647, %v7284_v1 }
 0x192   :  { %v5824_v23 = vpop.eup %5823  ;;  %v1399_v14 = vadd.f32 1.0, %v1383_v5  ;;  %v1193_v8 = vadd.f32 -0.28449672, %v1177_v13  ;;  %v1045_v12 = vmul.f32 %v5822_v36, %v1044_v3  ;;  %5489 = vmatmul.msk.f32.gmra.mxu1 %vm1422_vm14, %v1447_v25  ;;  %5503 = vmatmul.msk.f32.gmra.mxu2 %vm1422_vm14, %v1447_v25  ;;  %v7316_v43 = vmul.f32 0.70710677, %v7308_v60  ;;  %vm1049_vm2 = vmor %vm1047_vm15, %vm1048_vm1 }
 0x193   :  { %v5826_v49 = vpop.eup %5825  ;;  %v1224_v37 = vadd.f32 0.2548296, %v1208_v0  ;;  %v1058_v21 = vmul.f32 %v5824_v23, %v7284_v1  ;;  %5521 = vmatmul.msk.f32.gmra.mxu3 %vm1422_vm14, %v1447_v25  ;;  %v7321_v63 = vadd.f32 %v7205_v9, %v761_v45  ;;  %v1068_v16 = vand.u32 2147483648, %v7284_v1 }
 0x194   :  { %v5828_v62 = vpop.eup %5827  ;;  %v1415_v42 = vmul.f32 %v1399_v14, %v791_v46  ;;  %v1209_v31 = vmul.f32 %v1193_v8, %v7273_v57  ;;  %v1046_v56 = vadd.f32 %v5822_v36, %v1045_v12  ;;  %v7329_v30 = vand.u32 2147483647, %v7316_v43 }
 0x195   :  { %v1240_v35 = vmul.f32 %v1224_v37, %v7253_v50  ;;  %v1059_v52 = vsub.f32 1.0, %v1058_v21  ;;  %vm1063_vm3 = vweird.f32 %v5824_v23  ;;  %v7333_v9 = vmul.f32 0.70710677, %v7321_v63 }
 0x196   :  { %1432 = vst.msk [vmem:[#allocation2 + $0x48] sm:$0xff] %vm1422_vm14, %v1415_v42  ;;  %v1225_v18 = vadd.f32 0.2548296, %v1209_v31  ;;  %v1050_v53 = vsel %vm1049_vm2, %v5822_v36, %v1046_v56  ;;  %v844_v10 = vmul.f32 0.3275911, %v7329_v30  ;;  %v1259_v46 = vsub.f32 0.0, %v7256_v26 }
 0x197   :  { %v1320_v47 = vmul.f32 %v5826_v49, %v1240_v35  ;;  %v7337_v50 = vsel %vm7303_vm0, %v1054_v41, %v1050_v53  ;;  %v1060_v32 = vmul.f32 %v5824_v23, %v1059_v52  ;;  %v7344_v15 = vand.u32 2147483647, %v7333_v9 }
 0x198   :  { %v1241_v19 = vmul.f32 %v1225_v18, %v7273_v57  ;;  %v1114_v17 = vmul.f32 1.0614054, %v7337_v50  ;;  %vm1062_vm4 = vweird.f32 %v7284_v1  ;;  %v7347_v54 = vadd.f32 1.0, %v844_v10 }
 0x199   :  { %v1336_v58 = vsub.f32 1.0, %v1320_v47  ;;  %v1061_v24 = vadd.f32 %v5824_v23, %v1060_v32  ;;  %vm1064_vm5 = vmor %vm1062_vm4, %vm1063_vm3  ;;  %vm1067_vm6 = vcmp.eq.f32.partialorder %v1066_v40, 8.507059e+37  ;;  %v1069_v36 = vor.u32 1.1754944e-38, %v1068_v16 }
 0x19a   :  { %v1321_v51 = vmul.f32 %v5828_v62, %v1241_v19  ;;  %v1130_v27 = vadd.f32 -1.4531521, %v1114_v17  ;;  %5829 = vrcp.f32 %v7347_v54  ;;  %v845_v28 = vmul.f32 0.3275911, %v7344_v15 }
 0x19b   :  { %v1368_v57 = vsub.f32 0.0, %v1336_v58  ;;  %v1065_v34 = vsel %vm1064_vm5, %v5824_v23, %v1061_v24  ;;  %vm1352_vm7 = vcmp.ge.f32.partialorder %v7145_v6, 0.0  ;;  %v792_v29 = vmul.f32 0.5, %v7124_v44 }
 0x19c   :  { %v1337_v33 = vsub.f32 1.0, %v1321_v51  ;;  %v1146_v38 = vmul.f32 %v1130_v27, %v7337_v50  ;;  %v7354_v1 = vsel %vm1067_vm6, %v1069_v36, %v1065_v34  ;;  %vm1353_vm8 = vcmp.ge.f32.partialorder %v7155_v55, 0.0 }
 0x19d   :  { %v1384_v59 = vsel %vm1352_vm7, %v1336_v58, %v1368_v57  ;;  %v1115_v61 = vmul.f32 1.0614054, %v7354_v1  ;;  %v1448_v22 = vld [vmem:[#allocation2 + $0x48] sm:$0xff]  ;;  %v1302_v6 = vmul.f32 1.442695, %v7300_v4  ;;  %v1275_v0 = vmul.f32 %v1259_v46, %v7256_v26 }
 0x19e   :  { %v1400_v13 = vadd.f32 1.0, %v1384_v59  ;;  %v1369_v3 = vsub.f32 0.0, %v1337_v33  ;;  %v1162_v7 = vadd.f32 1.4214138, %v1146_v38  ;;  %5490 = vmatmul.msk.f32.gmra.mxu1 %vm1422_vm14, %v1448_v22  ;;  %5504 = vmatmul.msk.f32.gmra.mxu2 %vm1422_vm14, %v1448_v22  ;;  %v7363_v41 = vadd.f32 1.0, %v845_v28 }
 0x19f   :  { %v1131_v5 = vadd.f32 -1.4531521, %v1115_v61  ;;  %5522 = vmatmul.msk.f32.gmra.mxu3 %vm1422_vm14, %v1448_v22  ;;  %v793_v23 = vmul.f32 0.5, %v7133_v11  ;;  %v1304_v37 = vmul.f32 1.442695, %v1275_v0  ;;  %v1083_v62 = vand.u32 2147483648, %v7347_v54 }
 0x1a0   :  { %v1416_v44 = vmul.f32 %v1400_v13, %v792_v29  ;;  %v1385_v45 = vsel %vm1353_vm8, %v1337_v33, %v1369_v3  ;;  %v1178_v25 = vmul.f32 %v1162_v7, %v7337_v50  ;;  %v5830_v55 = vpop.eup %5829  ;;  %5831 = vrcp.f32 %v7363_v41 }
 0x1a1   :  { %v1401_v14 = vadd.f32 1.0, %v1385_v45  ;;  %v1147_v8 = vmul.f32 %v1131_v5, %v7354_v1  ;;  %v1073_v26 = vmul.f32 %v5830_v55, %v7347_v54  ;;  %5833 = vpow2.f32 %v1302_v6 }
 0x1a2   :  { %1433 = vst.msk [vmem:[#allocation2 + $0x50] sm:$0xff] %vm1422_vm14, %v1416_v44  ;;  %v1194_v4 = vadd.f32 -0.28449672, %v1178_v25  ;;  %vm1078_vm9 = vweird.f32 %v5830_v55  ;;  %v1081_v56 = vand.u32 2147483647, %v7347_v54  ;;  %5835 = vpow2.f32 %v1304_v37 }
 0x1a3   :  { %v1417_v12 = vmul.f32 %v1401_v14, %v793_v23  ;;  %v1163_v49 = vadd.f32 1.4214138, %v1147_v8  ;;  %v1074_v40 = vsub.f32 1.0, %v1073_v26  ;;  %vm1077_vm10 = vweird.f32 %v7347_v54 }
 0x1a4   :  { %v1210_v21 = vmul.f32 %v1194_v4, %v7337_v50  ;;  %vm1079_vm11 = vmor %vm1077_vm10, %vm1078_vm9  ;;  %v1084_v10 = vor.u32 1.1754944e-38, %v1083_v62  ;;  %v1260_v19 = vsub.f32 0.0, %v7329_v30  ;;  %vm1082_vm12 = vcmp.eq.f32.partialorder %v1081_v56, 8.507059e+37  ;;  %v5558_v56 = vld [vmem:[%s10044_s3 + $0x1e8] sm:$0xff] }
 0x1a5   :  { %1434 = vst.msk [vmem:[#allocation2 + $0x58] sm:$0xff] %vm1422_vm14, %v1417_v12  ;;  %v1179_v11 = vmul.f32 %v1163_v49, %v7354_v1  ;;  %v1075_v31 = vmul.f32 %v5830_v55, %v1074_v40  ;;  %v1096_v51 = vand.u32 2147483647, %v7363_v41  ;;  %v1098_v27 = vand.u32 2147483648, %v7363_v41 }
 0x1a6   :  { %v1226_v42 = vadd.f32 0.2548296, %v1210_v21  ;;  %v5832_v35 = vpop.eup %5831  ;;  %v794_v33 = vmul.f32 0.5, %v7208_v48  ;;  %vm1092_vm15 = vweird.f32 %v7363_v41  ;;  %vm1354_vm0 = vcmp.ge.f32.partialorder %v7225_v39, 0.0 }
 0x1a7   :  { %v1195_v52 = vadd.f32 -0.28449672, %v1179_v11  ;;  %v1076_v18 = vadd.f32 %v5830_v55, %v1075_v31  ;;  %v1088_v53 = vmul.f32 %v5832_v35, %v7363_v41  ;;  %v5834_v47 = vpop.eup %5833  ;;  %vm1093_vm13 = vweird.f32 %v5832_v35  ;;  %v5557_v31 = vld [vmem:[%s10044_s3 + $0x1e0] sm:$0xff] }
 0x1a8   :  { %v1242_v16 = vmul.f32 %v1226_v42, %v7337_v50  ;;  %v5836_v28 = vpop.eup %5835  ;;  %v1276_v13 = vmul.f32 %v1260_v19, %v7329_v30  ;;  %vm1094_vm1 = vmor %vm1092_vm15, %vm1093_vm13  ;;  %v1099_v3 = vor.u32 1.1754944e-38, %v1098_v27  ;;  %vm1097_vm2 = vcmp.eq.f32.partialorder %v1096_v51, 8.507059e+37  ;;  %v5560_v42 = vld [vmem:[%s10044_s3 + $0x1f8] sm:$0xff] }
 0x1a9   :  { %v1211_v32 = vmul.f32 %v1195_v52, %v7354_v1  ;;  %v1449_v17 = vld [vmem:[#allocation2 + $0x50] sm:$0xff]  ;;  %v1080_v58 = vsel %vm1079_vm11, %v5830_v55, %v1076_v18  ;;  %v1089_v24 = vsub.f32 1.0, %v1088_v53  ;;  %v1261_v45 = vsub.f32 0.0, %v7344_v15  ;;  %2370 = vmatpush.msra.mxu2 %v5560_v42  ;;  %v2291_v42 = vld [vmem:[%s10044_s3 + $0xe8] sm:$0xff] }
 0x1aa   :  { %v1322_v46 = vmul.f32 %v5834_v47, %v1242_v16  ;;  %5491 = vmatmul.msk.f32.gmra.mxu1 %vm1422_vm14, %v1449_v17  ;;  %5505 = vmatmul.msk.f32.gmra.mxu2 %vm1422_vm14, %v1449_v17  ;;  %v1085_v54 = vsel %vm1082_vm12, %v1084_v10, %v1080_v58  ;;  %v1306_v41 = vmul.f32 1.442695, %v1276_v13  ;;  %vm1355_vm3 = vcmp.ge.f32.partialorder %v7248_v2, 0.0  ;;  %v5559_v2 = vld [vmem:[%s10044_s3 + $0x1f0] sm:$0xff]  ;;  %v5556_v10 = vld [vmem:[%s10044_s3 + $0x1d8] sm:$0xff] }
 0x1ab   :  { %v1227_v50 = vadd.f32 0.2548296, %v1211_v32  ;;  %5523 = vmatmul.msk.f32.gmra.mxu3 %vm1422_vm14, %v1449_v17  ;;  %v1116_v57 = vmul.f32 1.0614054, %v1085_v54  ;;  %v1090_v34 = vmul.f32 %v5832_v35, %v1089_v24  ;;  %v1277_v4 = vmul.f32 %v1261_v45, %v7344_v15  ;;  %2329 = vmatpush.msra.mxu1 %v5559_v2  ;;  %v5555_v32 = vld [vmem:[%s10044_s3 + $0x1d0] sm:$0xff] }
 0x1ac   :  { %v1338_v36 = vsub.f32 1.0, %v1322_v46  ;;  %v1450_v7 = vld [vmem:[#allocation2 + $0x58] sm:$0xff]  ;;  %v795_v26 = vmul.f32 0.5, %v7230_v20  ;;  %5837 = vpow2.f32 %v1306_v41  ;;  %2371 = vmatpush.msra.mxu2 %v5558_v56  ;;  %vm1356_vm4 = vcmp.ge.f32.partialorder %v7316_v43, 0.0  ;;  %v5554_v43 = vld [vmem:[%s10044_s3 + $0x1c8] sm:$0xff] }
 0x1ad   :  { %v1243_v38 = vmul.f32 %v1227_v50, %v7354_v1  ;;  %v1132_v59 = vadd.f32 -1.4531521, %v1116_v57  ;;  %v1091_v61 = vadd.f32 %v5832_v35, %v1090_v34  ;;  %v1308_v62 = vmul.f32 1.442695, %v1277_v4  ;;  %2330 = vmatpush.msra.mxu1 %v5557_v31 }
 0x1ae   :  { %v1370_v29 = vsub.f32 0.0, %v1338_v36  ;;  %2372 = vmatpush.msra.mxu2 %v5556_v10  ;;  %v796_v27 = vmul.f32 0.5, %v7308_v60  ;;  %vm1357_vm5 = vcmp.ge.f32.partialorder %v7333_v9, 0.0  ;;  %v7440_v9 = vld [vmem:[%s10047_s6] ss:$0 sm:$0xff] }
 0x1af   :  { %v1323_v22 = vmul.f32 %v5836_v28, %v1243_v38  ;;  %v1148_v5 = vmul.f32 %v1132_v59, %v1085_v54  ;;  %v1095_v0 = vsel %vm1094_vm1, %v5832_v35, %v1091_v61  ;;  %5839 = vpow2.f32 %v1308_v62  ;;  %2331 = vmatpush.msra.mxu1 %v5555_v32 }
 0x1b0   :  { %v1386_v6 = vsel %vm1354_vm0, %v1338_v36, %v1370_v29  ;;  %v1100_v1 = vsel %vm1097_vm2, %v1099_v3, %v1095_v0  ;;  %2373 = vmatpush.msra.mxu2 %v5554_v43  ;;  %v797_v38 = vmul.f32 0.5, %v7321_v63 }
 0x1b1   :  { %v1402_v48 = vadd.f32 1.0, %v1386_v6  ;;  %v1339_v44 = vsub.f32 1.0, %v1323_v22  ;;  %v1164_v25 = vadd.f32 1.4214138, %v1148_v5  ;;  %v1117_v55 = vmul.f32 1.0614054, %v1100_v1 }
 0x1b2   :  { %5492 = vmatmul.msk.f32.gmra.mxu1 %vm1422_vm14, %v1450_v7  ;;  %5506 = vmatmul.msk.f32.gmra.mxu2 %vm1422_vm14, %v1450_v7  ;;  %v5838_v18 = vpop.eup %5837 }
 0x1b3   :  { %v1418_v39 = vmul.f32 %v1402_v48, %v794_v33  ;;  %v1371_v30 = vsub.f32 0.0, %v1339_v44  ;;  %5524 = vmatmul.msk.f32.gmra.mxu3 %vm1422_vm14, %v1450_v7  ;;  %v1180_v23 = vmul.f32 %v1164_v25, %v1085_v54  ;;  %v1133_v14 = vadd.f32 -1.4531521, %v1117_v55  ;;  %v5553_v33 = vld [vmem:[%s10044_s3 + $0x1c0] sm:$0xff] }
 0x1b4   :  { %2332 = vmatpush.msra.mxu1 %v5553_v33  ;;  %v2285_v33 = vld [vmem:[%s10044_s3 + $0xb8] sm:$0xff] }
 0x1b5   :  { %1435 = vst.msk [vmem:[#allocation2 + $0x60] sm:$0xff] %vm1422_vm14, %v1418_v39  ;;  %v1387_v8 = vsel %vm1355_vm3, %v1339_v44, %v1371_v30  ;;  %v1196_v49 = vadd.f32 -0.28449672, %v1180_v23  ;;  %v1149_v37 = vmul.f32 %v1133_v14, %v1100_v1  ;;  %v5840_v50 = vpop.eup %5839 }
 0x1b6   :  { %v1403_v12 = vadd.f32 1.0, %v1387_v8 }
 0x1b7   :  { %v1212_v40 = vmul.f32 %v1196_v49, %v1085_v54  ;;  %v1165_v11 = vadd.f32 1.4214138, %v1149_v37 }
 0x1b8   :  { %v1419_v21 = vmul.f32 %v1403_v12, %v795_v26 }
 0x1b9   :  { %v1228_v15 = vadd.f32 0.2548296, %v1212_v40  ;;  %v1181_v20 = vmul.f32 %v1165_v11, %v1100_v1  ;;  %v2292_v40 = vld [vmem:[%s10044_s3 + $0xf0] sm:$0xff] }
 0x1ba   :  { %1436 = vst.msk [vmem:[#allocation2 + $0x68] sm:$0xff] %vm1422_vm14, %v1419_v21  ;;  %v2293_v21 = vld [vmem:[%s10044_s3 + $0xf8] sm:$0xff]  ;;  %2411 = vmatpush.msra.mxu3 %v2292_v40  ;;  %v2276_v40 = vld [vmem:[%s10044_s3 + $0x70] sm:$0xff] }
 0x1bb   :  { %v1244_v35 = vmul.f32 %v1228_v15, %v1085_v54  ;;  %v1197_v52 = vadd.f32 -0.28449672, %v1181_v20  ;;  %2452 = vmatpush.msra.mxu0 %v2293_v21  ;;  %v2290_v15 = vld [vmem:[%s10044_s3 + $0xe0] sm:$0xff] }
 0x1bc   :  { %v1461_v16 = vld [vmem:[#allocation2 + $0x60] sm:$0xff]  ;;  %2412 = vmatpush.msra.mxu3 %v2290_v15 }
 0x1bd   :  { %5493 = vmatmul.msk.f32.gmra.mxu1 %vm1422_vm14, %v1461_v16  ;;  %5525 = vmatmul.msk.f32.gmra.mxu3 %vm1422_vm14, %v1461_v16  ;;  %v1324_v53 = vmul.f32 %v5838_v18, %v1244_v35  ;;  %v1213_v47 = vmul.f32 %v1197_v52, %v1100_v1  ;;  %v2289_v52 = vld [vmem:[%s10044_s3 + $0xd8] sm:$0xff]  ;;  %v2288_v16 = vld [vmem:[%s10044_s3 + $0xd0] sm:$0xff] }
 0x1be   :  { %2453 = vmatpush.msra.mxu0 %v2291_v42  ;;  %v5551_v18 = vld [vmem:[%s10044_s3 + $0x1b0] sm:$0xff]  ;;  %2413 = vmatpush.msra.mxu3 %v2288_v16 }
 0x1bf   :  { %v1340_v19 = vsub.f32 1.0, %v1324_v53  ;;  %v1229_v17 = vadd.f32 0.2548296, %v1213_v47  ;;  %v5552_v53 = vld [vmem:[%s10044_s3 + $0x1b8] sm:$0xff]  ;;  %v5549_v47 = vld [vmem:[%s10044_s3 + $0x1a0] sm:$0xff]  ;;  %2333 = vmatpush.msra.mxu1 %v5551_v18 }
 0x1c0   :  { %2454 = vmatpush.msra.mxu0 %v2289_v52  ;;  %2374 = vmatpush.msra.mxu2 %v5552_v53 }
 0x1c1   :  { %v1372_v46 = vsub.f32 0.0, %v1340_v19  ;;  %v1245_v58 = vmul.f32 %v1229_v17, %v1100_v1  ;;  %v1462_v24 = vld [vmem:[#allocation2 + $0x68] sm:$0xff]  ;;  %2334 = vmatpush.msra.mxu1 %v5549_v47  ;;  %v2272_v47 = vld [vmem:[%s10044_s3 + $0x50] sm:$0xff] }
 0x1c3   :  { %v1388_v54 = vsel %vm1356_vm4, %v1340_v19, %v1372_v46  ;;  %v1325_v51 = vmul.f32 %v5840_v50, %v1245_v58  ;;  %v5550_v46 = vld [vmem:[%s10044_s3 + $0x1a8] sm:$0xff]  ;;  %v5547_v58 = vld [vmem:[%s10044_s3 + $0x190] sm:$0xff]  ;;  %v5548_v50 = vld [vmem:[%s10044_s3 + $0x198] sm:$0xff] }
 0x1c4   :  { %v1404_v36 = vadd.f32 1.0, %v1388_v54  ;;  %2375 = vmatpush.msra.mxu2 %v5550_v46  ;;  %2335 = vmatpush.msra.mxu1 %v5547_v58  ;;  %v2273_v46 = vld [vmem:[%s10044_s3 + $0x58] sm:$0xff] }
 0x1c5   :  { %5494 = vmatmul.msk.f32.gmra.mxu1 %vm1422_vm14, %v1462_v24  ;;  %5526 = vmatmul.msk.f32.gmra.mxu3 %vm1422_vm14, %v1462_v24  ;;  %v1341_v57 = vsub.f32 1.0, %v1325_v51  ;;  %v2286_v51 = vld [vmem:[%s10044_s3 + $0xc0] sm:$0xff] }
 0x1c6   :  { %v1420_v34 = vmul.f32 %v1404_v36, %v796_v27  ;;  %v2287_v27 = vld [vmem:[%s10044_s3 + $0xc8] sm:$0xff]  ;;  %2414 = vmatpush.msra.mxu3 %v2286_v51  ;;  %2376 = vmatpush.msra.mxu2 %v5548_v50 }
 0x1c7   :  { %v1373_v28 = vsub.f32 0.0, %v1341_v57  ;;  %2455 = vmatpush.msra.mxu0 %v2287_v27  ;;  %v2270_v27 = vld [vmem:[%s10044_s3 + $0x40] sm:$0xff] }
 0x1c8   :  { %1437 = vst.msk [vmem:[#allocation2 + $0x70] sm:$0xff] %vm1422_vm14, %v1420_v34 }
 0x1c9   :  { %v1389_v60 = vsel %vm1357_vm5, %v1341_v57, %v1373_v28  ;;  %v2284_v28 = vld [vmem:[%s10044_s3 + $0xb0] sm:$0xff]  ;;  %2456 = vmatpush.msra.mxu0 %v2285_v33 }
 0x1ca   :  { %v1405_v29 = vadd.f32 1.0, %v1389_v60  ;;  %2415 = vmatpush.msra.mxu3 %v2284_v28 }
 0x1cb   :  { %v1586_v3 = vpop.f32.mrf.mxu2 }
 0x1cc   :  { %v1421_v59 = vmul.f32 %v1405_v29, %v797_v38 }
 0x1ce   :  { %1438 = vst.msk [vmem:[#allocation2 + $0x78] sm:$0xff] %vm1422_vm14, %v1421_v59 }
 0x1cf   :  { %v1632_v61 = vld [vmem:[#allocation2 + $0x70] sm:$0xff] }
 0x1d0   :  { %5527 = vmatmul.msk.f32.gmra.mxu3 %vm1422_vm14, %v1632_v61  ;;  %v2282_v61 = vld [vmem:[%s10044_s3 + $0xa0] sm:$0xff] }
 0x1d1   :  { %2416 = vmatpush.msra.mxu3 %v2282_v61  ;;  %v2269_v61 = vld [vmem:[%s10044_s3 + $0x38] sm:$0xff] }
 0x1d3   :  { %v1589_v44 = vpop.f32.mrf.mxu2 }
 0x1d5   :  { %v1633_v22 = vld [vmem:[#allocation2 + $0x78] sm:$0xff]  ;;  %v1527_v13 = vpop.f32.mrf.mxu1 }
 0x1d6   :  { %v1587_v7 = vadd.f32 %v1586_v3, %v1527_v13 }
 0x1d8   :  { %5528 = vmatmul.msk.f32.gmra.mxu3 %vm1422_vm14, %v1633_v22  ;;  %v2283_v22 = vld [vmem:[%s10044_s3 + $0xa8] sm:$0xff] }
 0x1d9   :  { %2457 = vmatpush.msra.mxu0 %v2283_v22 }
 0x1db   :  { %v1592_v4 = vpop.f32.mrf.mxu2 }
 0x1de   :  { %v1530_v0 = vpop.f32.mrf.mxu1 }
 0x1df   :  { %v1590_v45 = vadd.f32 %v1589_v44, %v1530_v0  ;;  %v2280_v0 = vld [vmem:[%s10044_s3 + $0x90] sm:$0xff]  ;;  %v2281_v44 = vld [vmem:[%s10044_s3 + $0x98] sm:$0xff] }
 0x1e0   :  { %2417 = vmatpush.msra.mxu3 %v2280_v0  ;;  %2458 = vmatpush.msra.mxu0 %v2281_v44  ;;  %v2266_v0 = vld [vmem:[%s10044_s3 + $0x20] sm:$0xff]  ;;  %v2267_v44 = vld [vmem:[%s10044_s3 + $0x28] sm:$0xff] }
 0x1e4   :  { %v1595_v57 = vpop.f32.mrf.mxu2 }
 0x1e6   :  { %v1533_v14 = vpop.f32.mrf.mxu1 }
 0x1e7   :  { %v1593_v11 = vadd.f32 %v1592_v4, %v1533_v14  ;;  %v2278_v14 = vld [vmem:[%s10044_s3 + $0x80] sm:$0xff]  ;;  %v2279_v4 = vld [vmem:[%s10044_s3 + $0x88] sm:$0xff] }
 0x1e8   :  { %2418 = vmatpush.msra.mxu3 %v2278_v14  ;;  %2459 = vmatpush.msra.mxu0 %v2279_v4 }
 0x1ea   :  { %2419 = vmatpush.msra.mxu3 %v2276_v40 }
 0x1ec   :  { %v1598_v42 = vpop.f32.mrf.mxu2 }
 0x1ed   :  { %v1698_v6 = vpop.f32.mrf.mxu3 }
 0x1ee   :  { %v1734_v63 = vadd.f32 %v1698_v6, %v1587_v7 }
 0x1f0   :  { %v7443_v5 = vadd.f32 %v7440_v9, %v1734_v63  ;;  %v1536_v17 = vpop.f32.mrf.mxu1 }
 0x1f1   :  { %v1596_v13 = vadd.f32 %v1595_v57, %v1536_v17 }
 0x1f2   :  { %v7446_v48 = vmul.f32 0.70710677, %v7443_v5 }
 0x1f4   :  { %v7449_v1 = vand.u32 2147483647, %v7446_v48  ;;  %vm2182_vm2 = vcmp.ge.f32.partialorder %v7446_v48, 0.0  ;;  %v5542_v48 = vld [vmem:[%s10044_s3 + $0x168] sm:$0xff] }
 0x1f6   :  { %v1798_v25 = vmul.f32 0.3275911, %v7449_v1  ;;  %v2110_v60 = vsub.f32 0.0, %v7449_v1 }
 0x1f7   :  { %v1701_v55 = vpop.f32.mrf.mxu3 }
 0x1f8   :  { %v1735_v39 = vadd.f32 %v1701_v55, %v1590_v45  ;;  %v1810_v30 = vadd.f32 1.0, %v1798_v25  ;;  %v2122_v45 = vmul.f32 %v2110_v60, %v7449_v1 }
 0x1fa   :  { %v7453_v41 = vadd.f32 %v7440_v9, %v1735_v39  ;;  %5841 = vrcp.f32 %v1810_v30  ;;  %v1833_v20 = vand.u32 2147483648, %v1810_v30  ;;  %v1831_v35 = vand.u32 2147483647, %v1810_v30 }
 0x1fb   :  { %vm1827_vm6 = vweird.f32 %v1810_v30 }
 0x1fc   :  { %v7456_v23 = vmul.f32 0.70710677, %v7453_v41  ;;  %v1834_v24 = vor.u32 1.1754944e-38, %v1833_v20  ;;  %vm1832_vm8 = vcmp.eq.f32.partialorder %v1831_v35, 8.507059e+37 }
 0x1fe   :  { %v7459_v8 = vand.u32 2147483647, %v7456_v23 }
 0x200   :  { %v1799_v26 = vmul.f32 0.3275911, %v7459_v8  ;;  %v5842_v12 = vpop.eup %5841  ;;  %v2111_v57 = vsub.f32 0.0, %v7459_v8 }
 0x201   :  { %v1823_v49 = vmul.f32 %v5842_v12, %v1810_v30  ;;  %vm1828_vm14 = vweird.f32 %v5842_v12 }
 0x202   :  { %v7462_v37 = vadd.f32 1.0, %v1799_v26  ;;  %vm7496_vm7 = vmor %vm1827_vm6, %vm1828_vm14  ;;  %v2123_v40 = vmul.f32 %v2111_v57, %v7459_v8  ;;  %v5541_v57 = vld [vmem:[%s10044_s3 + $0x160] sm:$0xff] }
 0x203   :  { %v1824_v62 = vsub.f32 1.0, %v1823_v49  ;;  %v1539_v49 = vpop.f32.mrf.mxu1 }
 0x204   :  { %5843 = vrcp.f32 %v7462_v37  ;;  %v1704_v2 = vpop.f32.mrf.mxu3  ;;  %v1848_v26 = vand.u32 2147483648, %v7462_v37  ;;  %v1846_v1 = vand.u32 2147483647, %v7462_v37  ;;  %vm1842_vm10 = vweird.f32 %v7462_v37 }
 0x205   :  { %v1736_v31 = vadd.f32 %v1704_v2, %v1593_v11  ;;  %v1825_v56 = vmul.f32 %v5842_v12, %v1824_v62  ;;  %v2277_v11 = vld [vmem:[%s10044_s3 + $0x78] sm:$0xff]  ;;  %v2134_v2 = vmul.f32 1.442695, %v2122_v45  ;;  %v1599_v52 = vadd.f32 %v1598_v42, %v1539_v49  ;;  %v1601_v49 = vpop.f32.mrf.mxu2 }
 0x206   :  { %v1849_v35 = vor.u32 1.1754944e-38, %v1848_v26  ;;  %2460 = vmatpush.msra.mxu0 %v2277_v11  ;;  %vm1847_vm12 = vcmp.eq.f32.partialorder %v1846_v1, 8.507059e+37  ;;  %v5544_v26 = vld [vmem:[%s10044_s3 + $0x178] sm:$0xff] }
 0x207   :  { %v7493_v32 = vadd.f32 %v7440_v9, %v1736_v31  ;;  %v1826_v10 = vadd.f32 %v5842_v12, %v1825_v56  ;;  %v2274_v31 = vld [vmem:[%s10044_s3 + $0x60] sm:$0xff]  ;;  %v2275_v56 = vld [vmem:[%s10044_s3 + $0x68] sm:$0xff] }
 0x208   :  { %2420 = vmatpush.msra.mxu3 %v2274_v31  ;;  %2461 = vmatpush.msra.mxu0 %v2275_v56  ;;  %v2262_v56 = vld [vmem:[%s10044_s3] sm:$0xff] }
 0x209   :  { %v7510_v54 = vmul.f32 0.70710677, %v7493_v32  ;;  %v1830_v34 = vsel %vm7496_vm7, %v5842_v12, %v1826_v10 }
 0x20a   :  { %v7518_v36 = vpop.eup %5843  ;;  %v7528_v43 = vsel %vm1832_vm8, %v1834_v24, %v1830_v34  ;;  %2421 = vmatpush.msra.mxu3 %v2272_v47  ;;  %2462 = vmatpush.msra.mxu0 %v2273_v46 }
 0x20b   :  { %v1838_v38 = vmul.f32 %v7518_v36, %v7462_v37  ;;  %v7534_v29 = vand.u32 2147483647, %v7510_v54  ;;  %v2002_v59 = vmul.f32 1.0614054, %v7528_v43  ;;  %vm1843_vm9 = vweird.f32 %v7518_v36 }
 0x20c   :  { %vm1844_vm11 = vmor %vm1842_vm10, %vm1843_vm9  ;;  %2422 = vmatpush.msra.mxu3 %v2270_v27  ;;  %v2136_v27 = vmul.f32 1.442695, %v2123_v40  ;;  %v5535_v40 = vld [vmem:[%s10044_s3 + $0x130] sm:$0xff]  ;;  %vm2183_vm10 = vcmp.ge.f32.partialorder %v7456_v23, 0.0 }
 0x20d   :  { %v1839_v3 = vsub.f32 1.0, %v1838_v38  ;;  %v1800_v7 = vmul.f32 0.3275911, %v7534_v29  ;;  %v2014_v6 = vadd.f32 -1.4531521, %v2002_v59  ;;  %v2268_v59 = vld [vmem:[%s10044_s3 + $0x30] sm:$0xff] }
 0x20e   :  { %v1707_v63 = vpop.f32.mrf.mxu3  ;;  %2423 = vmatpush.msra.mxu3 %v2268_v59  ;;  %v5539_v59 = vld [vmem:[%s10044_s3 + $0x150] sm:$0xff] }
 0x20f   :  { %v1840_v25 = vmul.f32 %v7518_v36, %v1839_v3  ;;  %v7552_v55 = vadd.f32 1.0, %v1800_v7  ;;  %v1737_v39 = vadd.f32 %v1707_v63, %v1596_v13  ;;  %v2026_v30 = vmul.f32 %v2014_v6, %v7528_v43 }
 0x210   :  { %2424 = vmatpush.msra.mxu3 %v2266_v0 }
 0x211   :  { %5845 = vrcp.f32 %v7552_v55  ;;  %v2038_v12 = vadd.f32 1.4214138, %v2026_v30  ;;  %v7566_v21 = vadd.f32 %v7440_v9, %v1737_v39  ;;  %v1841_v62 = vadd.f32 %v7518_v36, %v1840_v25  ;;  %v1542_v25 = vpop.f32.mrf.mxu1  ;;  %v5546_v39 = vld [vmem:[%s10044_s3 + $0x188] sm:$0xff]  ;;  %v5543_v30 = vld [vmem:[%s10044_s3 + $0x170] sm:$0xff] }
 0x212   :  { %5847 = vpow2.f32 %v2134_v2  ;;  %v1861_v22 = vand.u32 2147483647, %v7552_v55  ;;  %v1863_v13 = vand.u32 2147483648, %v7552_v55  ;;  %vm1857_vm15 = vweird.f32 %v7552_v55  ;;  %2377 = vmatpush.msra.mxu2 %v5546_v39  ;;  %v2265_v2 = vld [vmem:[%s10044_s3 + $0x18] sm:$0xff] }
 0x213   :  { %v2050_v15 = vmul.f32 %v2038_v12, %v7528_v43  ;;  %v7578_v20 = vmul.f32 0.70710677, %v7566_v21  ;;  %v1845_v37 = vsel %vm1844_vm11, %v7518_v36, %v1841_v62  ;;  %v2271_v36 = vld [vmem:[%s10044_s3 + $0x48] sm:$0xff]  ;;  %v2264_v12 = vld [vmem:[%s10044_s3 + $0x10] sm:$0xff]  ;;  %v2112_v62 = vsub.f32 0.0, %v7534_v29 }
 0x214   :  { %v7595_v10 = vsel %vm1847_vm12, %v1849_v35, %v1845_v37  ;;  %2463 = vmatpush.msra.mxu0 %v2271_v36  ;;  %v1864_v11 = vor.u32 1.1754944e-38, %v1863_v13  ;;  %vm1862_vm1 = vcmp.eq.f32.partialorder %v1861_v22, 8.507059e+37  ;;  %2378 = vmatpush.msra.mxu2 %v5544_v26  ;;  %v2263_v35 = vld [vmem:[%s10044_s3 + $0x8] sm:$0xff]  ;;  %v1602_v37 = vadd.f32 %v1601_v49, %v1542_v25  ;;  %v5537_v25 = vld [vmem:[%s10044_s3 + $0x140] sm:$0xff] }
 0x215   :  { %v2062_v16 = vadd.f32 -0.28449672, %v2050_v15  ;;  %v7590_v18 = vand.u32 2147483647, %v7578_v20  ;;  %v2003_v58 = vmul.f32 1.0614054, %v7595_v10  ;;  %2425 = vmatpush.msra.mxu3 %v2264_v12 }
 0x216   :  { %v1710_v53 = vpop.f32.mrf.mxu3  ;;  %2464 = vmatpush.msra.mxu0 %v2269_v61  ;;  %2379 = vmatpush.msra.mxu2 %v5542_v48  ;;  %v5540_v61 = vld [vmem:[%s10044_s3 + $0x158] sm:$0xff]  ;;  %vm2184_vm11 = vcmp.ge.f32.partialorder %v7510_v54, 0.0 }
 0x217   :  { %v7597_v19 = vpop.eup %5845  ;;  %v1738_v17 = vadd.f32 %v1710_v53, %v1599_v52  ;;  %v2074_v24 = vmul.f32 %v2062_v16, %v7528_v43  ;;  %v1801_v51 = vmul.f32 0.3275911, %v7590_v18  ;;  %v2015_v28 = vadd.f32 -1.4531521, %v2003_v58  ;;  %2426 = vmatpush.msra.mxu3 %v2262_v56  ;;  %v5533_v56 = vld [vmem:[%s10044_s3 + $0x120] sm:$0xff] }
 0x218   :  { %v1853_v50 = vmul.f32 %v7597_v19, %v7552_v55  ;;  %vm1858_vm13 = vweird.f32 %v7597_v19  ;;  %v5848_v45 = vpop.eup %5847  ;;  %2465 = vmatpush.msra.mxu0 %v2267_v44  ;;  %v2124_v58 = vmul.f32 %v2112_v62, %v7534_v29  ;;  %v1762_v29 = vmul.f32 0.5, %v7443_v5  ;;  %2380 = vmatpush.msra.mxu2 %v5540_v61  ;;  %v5536_v55 = vld [vmem:[%s10044_s3 + $0x138] sm:$0xff] }
 0x219   :  { %v7615_v34 = vadd.f32 %v7440_v9, %v1738_v17  ;;  %v2086_v33 = vadd.f32 0.2548296, %v2074_v24  ;;  %v7617_v38 = vadd.f32 1.0, %v1801_v51  ;;  %v2027_v7 = vmul.f32 %v2015_v28, %v7595_v10  ;;  %vm7664_vm0 = vmor %vm1857_vm15, %vm1858_vm13 }
 0x21a   :  { %v1854_v60 = vsub.f32 1.0, %v1853_v50  ;;  %2466 = vmatpush.msra.mxu0 %v2265_v2  ;;  %v2138_v5 = vmul.f32 1.442695, %v2124_v58 }
 0x21b   :  { %v7628_v3 = vmul.f32 0.70710677, %v7615_v34  ;;  %v2098_v6 = vmul.f32 %v2086_v33, %v7528_v43  ;;  %5849 = vrcp.f32 %v7617_v38  ;;  %v5545_v43 = vld [vmem:[%s10044_s3 + $0x180] sm:$0xff]  ;;  %v2039_v42 = vadd.f32 1.4214138, %v2027_v7 }
 0x21c   :  { %v1855_v63 = vmul.f32 %v7597_v19, %v1854_v60  ;;  %2336 = vmatpush.msra.mxu1 %v5545_v43  ;;  %2467 = vmatpush.msra.mxu0 %v2263_v35  ;;  %v1878_v44 = vand.u32 2147483648, %v7617_v38  ;;  %v1604_v43 = vpop.f32.mrf.mxu2  ;;  %vm1872_vm4 = vweird.f32 %v7617_v38  ;;  %v1876_v39 = vand.u32 2147483647, %v7617_v38 }
 0x21d   :  { %v2158_v14 = vmul.f32 %v5848_v45, %v2098_v6  ;;  %v7656_v1 = vand.u32 2147483647, %v7628_v3  ;;  %v2051_v46 = vmul.f32 %v2039_v42, %v7595_v10 }
 0x21e   :  { %v1856_v4 = vadd.f32 %v7597_v19, %v1855_v63  ;;  %2337 = vmatpush.msra.mxu1 %v5543_v30  ;;  %v1545_v63 = vpop.f32.mrf.mxu1  ;;  %v5538_v30 = vld [vmem:[%s10044_s3 + $0x148] sm:$0xff]  ;;  %vm1877_vm14 = vcmp.eq.f32.partialorder %v1876_v39, 8.507059e+37 }
 0x21f   :  { %v2170_v15 = vsub.f32 1.0, %v2158_v14  ;;  %v1802_v31 = vmul.f32 0.3275911, %v7656_v1  ;;  %v2063_v13 = vadd.f32 -0.28449672, %v2051_v46  ;;  %2381 = vmatpush.msra.mxu2 %v5538_v30 }
 0x220   :  { %v1860_v8 = vsel %vm7664_vm0, %v7597_v19, %v1856_v4  ;;  %2338 = vmatpush.msra.mxu1 %v5541_v57 }
 0x221   :  { %v7682_v52 = vsel %vm1862_vm1, %v1864_v11, %v1860_v8  ;;  %v7684_v16 = vpop.eup %5849  ;;  %v2194_v53 = vsub.f32 0.0, %v2170_v15  ;;  %v7687_v19 = vadd.f32 1.0, %v1802_v31  ;;  %v2075_v14 = vmul.f32 %v2063_v13, %v7595_v10  ;;  %2382 = vmatpush.msra.mxu2 %v5536_v55 }
 0x222   :  { %v2004_v47 = vmul.f32 1.0614054, %v7682_v52  ;;  %v1713_v17 = vpop.f32.mrf.mxu3  ;;  %v1868_v24 = vmul.f32 %v7684_v16, %v7617_v38  ;;  %vm1873_vm3 = vweird.f32 %v7684_v16  ;;  %2339 = vmatpush.msra.mxu1 %v5539_v59  ;;  %v1605_v11 = vadd.f32 %v1604_v43, %v1545_v63 }
 0x223   :  { %v1739_v50 = vadd.f32 %v1713_v17, %v1602_v37  ;;  %v2206_v51 = vsel %vm2182_vm2, %v2170_v15, %v2194_v53  ;;  %5851 = vrcp.f32 %v7687_v19  ;;  %vm7733_vm5 = vmor %vm1872_vm4, %vm1873_vm3  ;;  %v2087_v2 = vadd.f32 0.2548296, %v2075_v14  ;;  %v5534_v53 = vld [vmem:[%s10044_s3 + $0x128] sm:$0xff] }
 0x224   :  { %v2016_v36 = vadd.f32 -1.4531521, %v2004_v47  ;;  %v2218_v28 = vadd.f32 1.0, %v2206_v51  ;;  %v1869_v33 = vsub.f32 1.0, %v1868_v24  ;;  %5853 = vpow2.f32 %v2136_v27  ;;  %2340 = vmatpush.msra.mxu1 %v5537_v25  ;;  %2383 = vmatpush.msra.mxu2 %v5534_v53  ;;  %v5532_v51 = vld [vmem:[%s10044_s3 + $0x118] sm:$0xff] }
 0x225   :  { %v7710_v22 = vadd.f32 %v7440_v9, %v1739_v50  ;;  %5855 = vpow2.f32 %v2138_v5  ;;  %v1879_v8 = vor.u32 1.1754944e-38, %v1878_v44  ;;  %v1891_v37 = vand.u32 2147483647, %v7687_v19  ;;  %v5531_v50 = vld [vmem:[%s10044_s3 + $0x110] sm:$0xff] }
 0x226   :  { %v2028_v60 = vmul.f32 %v2016_v36, %v7682_v52  ;;  %v2230_v7 = vmul.f32 %v2218_v28, %v1762_v29  ;;  %v1870_v6 = vmul.f32 %v7684_v16, %v1869_v33  ;;  %2341 = vmatpush.msra.mxu1 %v5535_v40  ;;  %v1893_v46 = vand.u32 2147483648, %v7687_v19  ;;  %2384 = vmatpush.msra.mxu2 %v5532_v51  ;;  %v5529_v29 = vld [vmem:[%s10044_s3 + $0x100] sm:$0xff]  ;;  %v5530_v28 = vld [vmem:[%s10044_s3 + $0x108] sm:$0xff] }
 0x227   :  { %v7716_v45 = vmul.f32 0.70710677, %v7710_v22  ;;  %vm1887_vm7 = vweird.f32 %v7687_v19  ;;  %v1763_v63 = vmul.f32 0.5, %v7453_v41  ;;  %vm1892_vm9 = vcmp.eq.f32.partialorder %v1891_v37, 8.507059e+37 }
 0x228   :  { %v2040_v0 = vadd.f32 1.4214138, %v2028_v60  ;;  %2427 = vmatmul.f32.vlgmr.msra.gmra.mxu3 %v2230_v7  ;;  %v1871_v4 = vadd.f32 %v7684_v16, %v1870_v6  ;;  %2468 = vmatmul.f32.vlgmr.msra.gmra.mxu0 %v2230_v7  ;;  %v1548_v60 = vpop.f32.mrf.mxu1  ;;  %v1894_v5 = vor.u32 1.1754944e-38, %v1893_v46  ;;  %v1764_v41 = vmul.f32 0.5, %v7493_v32 }
 0x229   :  { %v7728_v26 = vpop.eup %5851  ;;  %v7738_v38 = vand.u32 2147483647, %v7716_v45  ;;  %2342 = vmatpush.msra.mxu1 %v5533_v56  ;;  %2385 = vmatpush.msra.mxu2 %v5530_v28 }
 0x22a   :  { %v2052_v12 = vmul.f32 %v2040_v0, %v7682_v52  ;;  %v1883_v62 = vmul.f32 %v7728_v26, %v7687_v19  ;;  %v1875_v42 = vsel %vm7733_vm5, %v7684_v16, %v1871_v4  ;;  %v2099_v16 = vmul.f32 %v2087_v2, %v7595_v10  ;;  %v5854_v47 = vpop.eup %5853  ;;  %v1607_v0 = vpop.f32.mrf.mxu2 }
 0x22b   :  { %v1803_v31 = vmul.f32 0.3275911, %v7738_v38  ;;  %v7770_v27 = vsel %vm1877_vm14, %v1879_v8, %v1875_v42  ;;  %vm1888_vm6 = vweird.f32 %v7728_v26  ;;  %2343 = vmatpush.msra.mxu1 %v5531_v50  ;;  %v5856_v13 = vpop.eup %5855  ;;  %v1608_v30 = vadd.f32 %v1607_v0, %v1548_v60 }
 0x22c   :  { %v2064_v15 = vadd.f32 -0.28449672, %v2052_v12  ;;  %v1884_v35 = vsub.f32 1.0, %v1883_v62  ;;  %v2159_v57 = vmul.f32 %v5854_v47, %v2099_v16  ;;  %v2005_v61 = vmul.f32 1.0614054, %v7770_v27  ;;  %vm1889_vm8 = vmor %vm1887_vm7, %vm1888_vm6 }
 0x22d   :  { %v7762_v58 = vadd.f32 1.0, %v1803_v31  ;;  %2344 = vmatpush.msra.mxu1 %v5529_v29 }
 0x22e   :  { %v2076_v17 = vmul.f32 %v2064_v15, %v7682_v52  ;;  %v1716_v24 = vpop.f32.mrf.mxu3  ;;  %v1885_v10 = vmul.f32 %v7728_v26, %v1884_v35  ;;  %v2171_v6 = vsub.f32 1.0, %v2159_v57  ;;  %v2017_v14 = vadd.f32 -1.4531521, %v2005_v61 }
 0x22f   :  { %v1740_v36 = vadd.f32 %v1716_v24, %v1605_v11  ;;  %5857 = vrcp.f32 %v7762_v58  ;;  %v1906_v2 = vand.u32 2147483647, %v7762_v58  ;;  %v1908_v31 = vand.u32 2147483648, %v7762_v58 }
 0x230   :  { %v2088_v48 = vadd.f32 0.2548296, %v2076_v17  ;;  %v1886_v33 = vadd.f32 %v7728_v26, %v1885_v10  ;;  %v2195_v39 = vsub.f32 0.0, %v2171_v6  ;;  %v2029_v56 = vmul.f32 %v2017_v14, %v7770_v27  ;;  %v1551_v46 = vpop.f32.mrf.mxu1 }
 0x231   :  { %v7784_v59 = vadd.f32 %v7440_v9, %v1740_v36  ;;  %v2114_v24 = vsub.f32 0.0, %v7656_v1  ;;  %vm1902_vm13 = vweird.f32 %v7762_v58  ;;  %v2113_v57 = vsub.f32 0.0, %v7590_v18 }
 0x232   :  { %v2100_v7 = vmul.f32 %v2088_v48, %v7682_v52  ;;  %v1890_v19 = vsel %vm1889_vm8, %v7728_v26, %v1886_v33  ;;  %v2207_v40 = vsel %vm2183_vm10, %v2171_v6, %v2195_v39  ;;  %v1610_v51 = vpop.f32.mrf.mxu2  ;;  %v1909_v48 = vor.u32 1.1754944e-38, %v1908_v31 }
 0x233   :  { %v7792_v25 = vsel %vm1892_vm9, %v1894_v5, %v1890_v19  ;;  %v7795_v43 = vmul.f32 0.70710677, %v7784_v59  ;;  %v2219_v15 = vadd.f32 1.0, %v2207_v40  ;;  %v2041_v28 = vadd.f32 1.4214138, %v2029_v56 }
 0x234   :  { %v2160_v44 = vmul.f32 %v5856_v13, %v2100_v7  ;;  %v2006_v52 = vmul.f32 1.0614054, %v7792_v25  ;;  %vm1907_vm0 = vcmp.eq.f32.partialorder %v1906_v2, 8.507059e+37  ;;  %v1611_v60 = vadd.f32 %v1610_v51, %v1551_v46 }
 0x235   :  { %v5858_v4 = vpop.eup %5857  ;;  %v7801_v26 = vand.u32 2147483647, %v7795_v43  ;;  %v2231_v53 = vmul.f32 %v2219_v15, %v1763_v63  ;;  %v2126_v5 = vmul.f32 %v2114_v24, %v7656_v1  ;;  %v2125_v19 = vmul.f32 %v2113_v57, %v7590_v18 }
 0x236   :  { %v2172_v12 = vsub.f32 1.0, %v2160_v44  ;;  %v1719_v49 = vpop.f32.mrf.mxu3  ;;  %v2018_v55 = vadd.f32 -1.4531521, %v2006_v52  ;;  %v1898_v11 = vmul.f32 %v5858_v4, %v7762_v58  ;;  %vm1903_vm12 = vweird.f32 %v5858_v4 }
 0x237   :  { %v1741_v62 = vadd.f32 %v1719_v49, %v1608_v30  ;;  %v1804_v42 = vmul.f32 0.3275911, %v7801_v26  ;;  %2430 = vmatmul.f32.gmra.mxu3 %v2231_v53  ;;  %2471 = vmatmul.f32.gmra.mxu0 %v2231_v53  ;;  %vm1904_vm15 = vmor %vm1902_vm13, %vm1903_vm12  ;;  %v2053_v39 = vmul.f32 %v2041_v28, %v7770_v27  ;;  %v2142_v1 = vmul.f32 1.442695, %v2126_v5 }
 0x238   :  { %v2196_v23 = vsub.f32 0.0, %v2172_v12  ;;  %v2030_v32 = vmul.f32 %v2018_v55, %v7792_v25  ;;  %v1899_v8 = vsub.f32 1.0, %v1898_v11  ;;  %v1554_v49 = vpop.f32.mrf.mxu1  ;;  %v2140_v40 = vmul.f32 1.442695, %v2125_v19 }
 0x239   :  { %v7810_v37 = vadd.f32 1.0, %v1804_v42  ;;  %v7813_v54 = vadd.f32 %v7440_v9, %v1741_v62  ;;  %v2065_v11 = vadd.f32 -0.28449672, %v2053_v39  ;;  %vm2186_vm8 = vcmp.ge.f32.partialorder %v7628_v3, 0.0 }
 0x23a   :  { %v2208_v35 = vsel %vm2184_vm11, %v2172_v12, %v2196_v23  ;;  %v2042_v47 = vadd.f32 1.4214138, %v2030_v32  ;;  %v1900_v17 = vmul.f32 %v5858_v4, %v1899_v8  ;;  %v1613_v62 = vpop.f32.mrf.mxu2  ;;  %v2115_v32 = vsub.f32 0.0, %v7738_v38 }
 0x23b   :  { %v2220_v16 = vadd.f32 1.0, %v2208_v35  ;;  %5859 = vrcp.f32 %v7810_v37  ;;  %v7821_v29 = vmul.f32 0.70710677, %v7813_v54  ;;  %v1923_v55 = vand.u32 2147483648, %v7810_v37 }
 0x23c   :  { %v2054_v10 = vmul.f32 %v2042_v47, %v7792_v25  ;;  %v1901_v36 = vadd.f32 %v5858_v4, %v1900_v17  ;;  %v1921_v42 = vand.u32 2147483647, %v7810_v37  ;;  %v1614_v8 = vadd.f32 %v1613_v62, %v1554_v49  ;;  %v5589_v62 = vld [vmem:[%s10044_s3 + $0x2e0] sm:$0xff] }
 0x23d   :  { %v2232_v50 = vmul.f32 %v2220_v16, %v1764_v41  ;;  %v7826_v7 = vand.u32 2147483647, %v7821_v29  ;;  %vm1917_vm2 = vweird.f32 %v7810_v37  ;;  %v1924_v16 = vor.u32 1.1754944e-38, %v1923_v55 }
 0x23e   :  { %v1905_v33 = vsel %vm1904_vm15, %v5858_v4, %v1901_v36  ;;  %v2066_v61 = vadd.f32 -0.28449672, %v2054_v10  ;;  %v2077_v46 = vmul.f32 %v2065_v11, %v7770_v27  ;;  %vm1922_vm4 = vcmp.eq.f32.partialorder %v1921_v42, 8.507059e+37 }
 0x23f   :  { %2345 = vmatmul.f32.vlgmr.msra.gmra.mxu1 %v2232_v50  ;;  %2386 = vmatmul.f32.vlgmr.msra.gmra.mxu2 %v2232_v50  ;;  %v7823_v13 = vsel %vm1907_vm0, %v1909_v48, %v1905_v33  ;;  %v1805_v44 = vmul.f32 0.3275911, %v7826_v7  ;;  %v2127_v36 = vmul.f32 %v2115_v32, %v7738_v38  ;;  %v5588_v32 = vld [vmem:[%s10044_s3 + $0x2d8] sm:$0xff]  ;;  %vm2185_vm9 = vcmp.ge.f32.partialorder %v7578_v20, 0.0 }
 0x240   :  { %v1722_v58 = vpop.f32.mrf.mxu3  ;;  %v2007_v6 = vmul.f32 1.0614054, %v7823_v13  ;;  %v2078_v14 = vmul.f32 %v2066_v61, %v7792_v25  ;;  %2433 = vmatmul.f32.gmra.mxu3 %v2232_v50  ;;  %2474 = vmatmul.f32.gmra.mxu0 %v2232_v50  ;;  %v2089_v61 = vadd.f32 0.2548296, %v2077_v46  ;;  %v1557_v39 = vpop.f32.mrf.mxu1  ;;  %vm2187_vm10 = vcmp.ge.f32.partialorder %v7716_v45, 0.0  ;;  %v5576_v20 = vld [vmem:[%s10044_s3 + $0x278] sm:$0xff] }
 0x241   :  { %v1742_v63 = vadd.f32 %v1722_v58, %v1611_v60  ;;  %v5860_v0 = vpop.eup %5859  ;;  %v7835_v4 = vadd.f32 1.0, %v1805_v44 }
 0x242   :  { %v2019_v52 = vadd.f32 -1.4531521, %v2007_v6  ;;  %v1913_v30 = vmul.f32 %v5860_v0, %v7810_v37  ;;  %vm1918_vm1 = vweird.f32 %v5860_v0  ;;  %v2090_v15 = vadd.f32 0.2548296, %v2078_v14 }
 0x243   :  { %v7838_v41 = vadd.f32 %v7440_v9, %v1742_v63  ;;  %5861 = vrcp.f32 %v7835_v4  ;;  %vm1919_vm3 = vmor %vm1917_vm2, %vm1918_vm1  ;;  %v2144_v63 = vmul.f32 1.442695, %v2127_v36  ;;  %vm1932_vm14 = vweird.f32 %v7835_v4 }
 0x244   :  { %v2031_v12 = vmul.f32 %v2019_v52, %v7823_v13  ;;  %v1914_v18 = vsub.f32 1.0, %v1913_v30  ;;  %5863 = vpow2.f32 %v2142_v1  ;;  %v2102_v10 = vmul.f32 %v2090_v15, %v7792_v25  ;;  %v5591_v1 = vld [vmem:[%s10044_s3 + $0x2f0] sm:$0xff] }
 0x245   :  { %v7846_v31 = vmul.f32 0.70710677, %v7838_v41  ;;  %5865 = vpow2.f32 %v2140_v40  ;;  %v2116_v52 = vsub.f32 0.0, %v7801_v26  ;;  %v2117_v30 = vsub.f32 0.0, %v7826_v7  ;;  %v1616_v40 = vpop.f32.mrf.mxu2  ;;  %2534 = vmatpush.msrb.mxu1 %v5591_v1 }
 0x246   :  { %v2043_v23 = vadd.f32 1.4214138, %v2031_v12  ;;  %v1915_v2 = vmul.f32 %v5860_v0, %v1914_v18  ;;  %v5592_v12 = vld [vmem:[%s10044_s3 + $0x2f8] sm:$0xff]  ;;  %v2101_v18 = vmul.f32 %v2089_v61, %v7770_v27 }
 0x247   :  { %v7851_v47 = vand.u32 2147483647, %v7846_v31  ;;  %2575 = vmatpush.msrb.mxu2 %v5592_v12  ;;  %2535 = vmatpush.msrb.mxu1 %v5589_v62  ;;  %v1766_v62 = vmul.f32 0.5, %v7615_v34 }
 0x248   :  { %v1725_v56 = vpop.f32.mrf.mxu3  ;;  %v2055_v35 = vmul.f32 %v2043_v23, %v7823_v13  ;;  %v1916_v53 = vadd.f32 %v5860_v0, %v1915_v2  ;;  %v5590_v23 = vld [vmem:[%s10044_s3 + $0x2e8] sm:$0xff] }
 0x249   :  { %v1743_v17 = vadd.f32 %v1725_v56, %v1614_v8  ;;  %v5862_v51 = vpop.eup %5861  ;;  %v1806_v37 = vmul.f32 0.3275911, %v7851_v47  ;;  %2576 = vmatpush.msrb.mxu2 %v5590_v23 }
 0x24a   :  { %v2067_v24 = vadd.f32 -0.28449672, %v2055_v35  ;;  %v1920_v50 = vsel %vm1919_vm3, %v5860_v0, %v1916_v53  ;;  %v1928_v28 = vmul.f32 %v5862_v51, %v7835_v4  ;;  %v5864_v58 = vpop.eup %5863  ;;  %v1938_v0 = vand.u32 2147483648, %v7835_v4 }
 0x24b   :  { %v7856_v57 = vsel %vm1922_vm4, %v1924_v16, %v1920_v50  ;;  %v7861_v33 = vadd.f32 1.0, %v1806_v37  ;;  %v7864_v60 = vadd.f32 %v7440_v9, %v1743_v17  ;;  %v7867_v6 = vmul.f32 %v5864_v58, %v2102_v10  ;;  %v5866_v2 = vpop.eup %5865  ;;  %v5586_v50 = vld [vmem:[%s10044_s3 + $0x2c8] sm:$0xff]  ;;  %2577 = vmatpush.msrb.mxu2 %v5588_v32  ;;  %v5583_v58 = vld [vmem:[%s10044_s3 + $0x2b0] sm:$0xff] }
 0x24c   :  { %v2008_v48 = vmul.f32 1.0614054, %v7856_v57  ;;  %v2079_v25 = vmul.f32 %v2067_v24, %v7823_v13  ;;  %v1929_v38 = vsub.f32 1.0, %v1928_v28  ;;  %vm1933_vm5 = vweird.f32 %v5862_v51  ;;  %v5585_v24 = vld [vmem:[%s10044_s3 + $0x2c0] sm:$0xff] }
 0x24d   :  { %5867 = vrcp.f32 %v7861_v33  ;;  %v1936_v9 = vand.u32 2147483647, %v7835_v4  ;;  %v7876_v14 = vmul.f32 0.70710677, %v7864_v60  ;;  %v2174_v42 = vsub.f32 1.0, %v7867_v6  ;;  %vm1934_vm6 = vmor %vm1932_vm14, %vm1933_vm5  ;;  %v5587_v4 = vld [vmem:[%s10044_s3 + $0x2d0] sm:$0xff]  ;;  %2578 = vmatpush.msrb.mxu2 %v5586_v50 }
 0x24e   :  { %v2020_v5 = vadd.f32 -1.4531521, %v2008_v48  ;;  %v1930_v44 = vmul.f32 %v5862_v51, %v1929_v38  ;;  %v2091_v49 = vadd.f32 0.2548296, %v2079_v25  ;;  %5869 = vpow2.f32 %v2144_v63  ;;  %2536 = vmatpush.msrb.mxu1 %v5587_v4 }
 0x24f   :  { %v1939_v27 = vor.u32 1.1754944e-38, %v1938_v0  ;;  %v7895_v15 = vand.u32 2147483647, %v7876_v14  ;;  %vm1937_vm7 = vcmp.eq.f32.partialorder %v1936_v9, 8.507059e+37  ;;  %v2161_v35 = vmul.f32 %v5866_v2, %v2101_v18  ;;  %v5581_v0 = vld [vmem:[%s10044_s3 + $0x2a0] sm:$0xff] }
 0x250   :  { %v2032_v19 = vmul.f32 %v2020_v5, %v7856_v57  ;;  %v1931_v11 = vadd.f32 %v5862_v51, %v1930_v44  ;;  %v2128_v16 = vmul.f32 %v2116_v52, %v7801_v26  ;;  %v2198_v26 = vsub.f32 0.0, %v2174_v42  ;;  %2537 = vmatpush.msrb.mxu1 %v5585_v24  ;;  %v5577_v2 = vld [vmem:[%s10044_s3 + $0x280] sm:$0xff]  ;;  %v5575_v24 = vld [vmem:[%s10044_s3 + $0x270] sm:$0xff] }
 0x251   :  { %v1807_v46 = vmul.f32 0.3275911, %v7895_v15  ;;  %v2129_v48 = vmul.f32 %v2117_v30, %v7826_v7  ;;  %v2173_v38 = vsub.f32 1.0, %v2161_v35  ;;  %v1617_v63 = vadd.f32 %v1616_v40, %v1557_v39  ;;  %v1560_v30 = vpop.f32.mrf.mxu1  ;;  %v1619_v40 = vpop.f32.mrf.mxu2  ;;  %v6114_v35 = vld [vmem:[%s10047_s6] ss:$0 sm:$0xff] }
 0x252   :  { %v2044_v55 = vadd.f32 1.4214138, %v2032_v19  ;;  %v1935_v56 = vsel %vm1934_vm6, %v5862_v51, %v1931_v11  ;;  %v2103_v51 = vmul.f32 %v2091_v49, %v7823_v13  ;;  %v5584_v13 = vld [vmem:[%s10044_s3 + $0x2b8] sm:$0xff]  ;;  %v2146_v6 = vmul.f32 1.442695, %v2128_v16  ;;  %v5582_v19 = vld [vmem:[%s10044_s3 + $0x2a8] sm:$0xff]  ;;  %2538 = vmatpush.msrb.mxu1 %v5583_v58 }
 0x253   :  { %v7904_v53 = vpop.eup %5867  ;;  %v7907_v17 = vsel %vm1937_vm7, %v1939_v27, %v1935_v56  ;;  %v1728_v37 = vpop.f32.mrf.mxu3  ;;  %v7921_v61 = vadd.f32 1.0, %v1807_v46  ;;  %v1765_v44 = vmul.f32 0.5, %v7566_v21  ;;  %2579 = vmatpush.msrb.mxu2 %v5584_v13  ;;  %v2210_v39 = vsel %vm2186_vm8, %v2174_v42, %v2198_v26  ;;  %v5579_v49 = vld [vmem:[%s10044_s3 + $0x290] sm:$0xff]  ;;  %v5580_v21 = vld [vmem:[%s10044_s3 + $0x298] sm:$0xff]  ;;  %v5578_v42 = vld [vmem:[%s10044_s3 + $0x288] sm:$0xff] }
 0x254   :  { %v2056_v8 = vmul.f32 %v2044_v55, %v7856_v57  ;;  %v2009_v36 = vmul.f32 1.0614054, %v7907_v17  ;;  %v1943_v28 = vmul.f32 %v7904_v53, %v7861_v33  ;;  %v5870_v7 = vpop.eup %5869  ;;  %v2148_v1 = vmul.f32 1.442695, %v2129_v48  ;;  %2539 = vmatpush.msrb.mxu1 %v5581_v0 }
 0x255   :  { %5871 = vrcp.f32 %v7921_v61  ;;  %v7939_v9 = vmul.f32 %v5870_v7, %v2103_v51  ;;  %v1744_v18 = vadd.f32 %v1728_v37, %v1617_v63  ;;  %v2197_v11 = vsub.f32 0.0, %v2173_v38  ;;  %2580 = vmatpush.msrb.mxu2 %v5582_v19 }
 0x256   :  { %v2068_v10 = vadd.f32 -0.28449672, %v2056_v8  ;;  %v2021_v5 = vadd.f32 -1.4531521, %v2009_v36  ;;  %v1944_v12 = vsub.f32 1.0, %v1943_v28  ;;  %5873 = vpow2.f32 %v2146_v6  ;;  %2540 = vmatpush.msrb.mxu1 %v5579_v49 }
 0x257   :  { %v1620_v23 = vadd.f32 %v1619_v40, %v1560_v30  ;;  %v2222_v27 = vadd.f32 1.0, %v2210_v39  ;;  %v2175_v4 = vsub.f32 1.0, %v7939_v9  ;;  %v2209_v34 = vsel %vm2185_vm9, %v2173_v38, %v2197_v11  ;;  %2581 = vmatpush.msrb.mxu2 %v5580_v21  ;;  %v5574_v38 = vld [vmem:[%s10044_s3 + $0x268] sm:$0xff]  ;;  %v5571_v30 = vld [vmem:[%s10044_s3 + $0x250] sm:$0xff]  ;;  %v5572_v39 = vld [vmem:[%s10044_s3 + $0x258] sm:$0xff] }
 0x258   :  { %v2080_v25 = vmul.f32 %v2068_v10, %v7856_v57  ;;  %v2033_v52 = vmul.f32 %v2021_v5, %v7907_v17  ;;  %5875 = vpow2.f32 %v2148_v1  ;;  %v1945_v56 = vmul.f32 %v7904_v53, %v1944_v12  ;;  %2541 = vmatpush.msrb.mxu1 %v5577_v2  ;;  %v5573_v5 = vld [vmem:[%s10044_s3 + $0x260] sm:$0xff]  ;;  %v5570_v40 = vld [vmem:[%s10044_s3 + $0x248] sm:$0xff] }
 0x259   :  { %v7967_v16 = vadd.f32 %v6114_v35, %v1744_v18  ;;  %v2221_v46 = vadd.f32 1.0, %v2209_v34  ;;  %v1953_v10 = vand.u32 2147483648, %v7861_v33  ;;  %2582 = vmatpush.msrb.mxu2 %v5578_v42  ;;  %vm1948_vm11 = vweird.f32 %v7904_v53 }
 0x25a   :  { %v2092_v3 = vadd.f32 0.2548296, %v2080_v25  ;;  %v2045_v55 = vadd.f32 1.4214138, %v2033_v52  ;;  %v1951_v26 = vand.u32 2147483647, %v7861_v33  ;;  %v7982_v58 = vmul.f32 %v2222_v27, %v1766_v62  ;;  %2542 = vmatpush.msrb.mxu1 %v5575_v24 }
 0x25b   :  { %v7961_v8 = vpop.eup %5871  ;;  %v1731_v37 = vpop.f32.mrf.mxu3  ;;  %v2118_v48 = vsub.f32 0.0, %v7851_v47  ;;  %v2233_v28 = vmul.f32 %v2221_v46, %v1765_v44  ;;  %v2199_v13 = vsub.f32 0.0, %v2175_v4  ;;  %2583 = vmatpush.msrb.mxu2 %v5576_v20  ;;  %vm1947_vm12 = vweird.f32 %v7861_v33 }
 0x25c   :  { %v2057_v32 = vmul.f32 %v2045_v55, %v7907_v17  ;;  %v2104_v50 = vmul.f32 %v2092_v3, %v7856_v57  ;;  %v1958_v36 = vmul.f32 %v7961_v8, %v7921_v61  ;;  %v5874_v7 = vpop.eup %5873  ;;  %v7993_v6 = vmul.f32 0.70710677, %v7967_v16  ;;  %vm8000_vm13 = vmor %vm1947_vm12, %vm1948_vm11  ;;  %2543 = vmatpush.msrb.mxu1 %v5573_v5  ;;  %v5569_v3 = vld [vmem:[%s10044_s3 + $0x240] sm:$0xff] }
 0x25d   :  { %2348 = vmatmul.f32.gmra.mxu1 %v2233_v28  ;;  %2389 = vmatmul.f32.gmra.mxu2 %v2233_v28  ;;  %v1745_v63 = vadd.f32 %v1731_v37, %v1620_v23  ;;  %v1946_v0 = vadd.f32 %v7904_v53, %v1945_v56  ;;  %v1954_v52 = vor.u32 1.1754944e-38, %v1953_v10  ;;  %vm1963_vm15 = vweird.f32 %v7961_v8  ;;  %v5566_v10 = vld [vmem:[%s10044_s3 + $0x228] sm:$0xff] }
 0x25e   :  { %v2069_v51 = vadd.f32 -0.28449672, %v2057_v32  ;;  %v1959_v25 = vsub.f32 1.0, %v1958_v36  ;;  %v7996_v19 = vmul.f32 %v5874_v7, %v2104_v50  ;;  %2436 = vmatmul.f32.gmra.mxu3 %v2233_v28  ;;  %2477 = vmatmul.f32.gmra.mxu0 %v2233_v28  ;;  %v5876_v1 = vpop.eup %5875  ;;  %v1968_v12 = vand.u32 2147483648, %v7921_v61 }
 0x25f   :  { %2584 = vmatpush.msrb.mxu2 %v5574_v38  ;;  %v1950_v18 = vsel %vm8000_vm13, %v7904_v53, %v1946_v0  ;;  %vm1952_vm0 = vcmp.eq.f32.partialorder %v1951_v26, 8.507059e+37  ;;  %v2211_v49 = vsel %vm2187_vm10, %v2175_v4, %v2199_v13  ;;  %vm1962_vm1 = vweird.f32 %v7921_v61  ;;  %2544 = vmatpush.msrb.mxu1 %v5571_v30 }
 0x260   :  { %v2081_v57 = vmul.f32 %v2069_v51, %v7907_v17  ;;  %v1960_v33 = vmul.f32 %v7961_v8, %v1959_v25  ;;  %v1966_v21 = vand.u32 2147483647, %v7921_v61  ;;  %v8026_v55 = vsel %vm1952_vm0, %v1954_v52, %v1950_v18  ;;  %vm8039_vm2 = vmor %vm1962_vm1, %vm1963_vm15  ;;  %v5565_v51 = vld [vmem:[%s10044_s3 + $0x220] sm:$0xff]  ;;  %v5563_v52 = vld [vmem:[%s10044_s3 + $0x210] sm:$0xff] }
 0x261   :  { %v8029_v53 = vand.u32 2147483647, %v7993_v6  ;;  %v8031_v11 = vadd.f32 %v6114_v35, %v1745_v63  ;;  %2585 = vmatpush.msrb.mxu2 %v5572_v39  ;;  %v2010_v45 = vmul.f32 1.0614054, %v8026_v55  ;;  %v2176_v62 = vsub.f32 1.0, %v7996_v19  ;;  %2545 = vmatpush.msrb.mxu1 %v5569_v3 }
 0x262   :  { %v2093_v44 = vadd.f32 0.2548296, %v2081_v57  ;;  %v1961_v61 = vadd.f32 %v7961_v8, %v1960_v33  ;;  %v1969_v42 = vor.u32 1.1754944e-38, %v1968_v12  ;;  %v2223_v32 = vadd.f32 1.0, %v2211_v49  ;;  %v5564_v33 = vld [vmem:[%s10044_s3 + $0x218] sm:$0xff]  ;;  %v5562_v12 = vld [vmem:[%s10044_s3 + $0x208] sm:$0xff] }
 0x263   :  { %2586 = vmatpush.msrb.mxu2 %v5570_v40  ;;  %v2022_v27 = vadd.f32 -1.4531521, %v2010_v45  ;;  %v2130_v34 = vmul.f32 %v2118_v48, %v7851_v47  ;;  %v2119_v56 = vsub.f32 0.0, %v7895_v15  ;;  %vm1967_vm3 = vcmp.eq.f32.partialorder %v1966_v21, 8.507059e+37  ;;  %v5568_v47 = vld [vmem:[%s10044_s3 + $0x238] sm:$0xff] }
 0x264   :  { %v2105_v23 = vmul.f32 %v2093_v44, %v7907_v17  ;;  %v1965_v4 = vsel %vm8039_vm2, %v7961_v8, %v1961_v61  ;;  %v1808_v17 = vmul.f32 0.3275911, %v8029_v53  ;;  %v8050_v35 = vmul.f32 0.70710677, %v8031_v11  ;;  %v5567_v8 = vld [vmem:[%s10044_s3 + $0x230] sm:$0xff] }
 0x265   :  { %2351 = vmatmul.f32.gmra.mxu1 %v7982_v58  ;;  %2392 = vmatmul.f32.gmra.mxu2 %v7982_v58  ;;  %v2034_v46 = vmul.f32 %v2022_v27, %v8026_v55  ;;  %v8061_v24 = vsel %vm1967_vm3, %v1969_v42, %v1965_v4  ;;  %v2200_v20 = vsub.f32 0.0, %v2176_v62  ;;  %v1767_v37 = vmul.f32 0.5, %v7710_v22 }
 0x266   :  { %v2165_v50 = vmul.f32 %v5876_v1, %v2105_v23  ;;  %2439 = vmatmul.f32.gmra.mxu3 %v7982_v58  ;;  %2480 = vmatmul.f32.gmra.mxu0 %v7982_v58  ;;  %v2011_v36 = vmul.f32 1.0614054, %v8061_v24  ;;  %vm2188_vm4 = vcmp.ge.f32.partialorder %v7795_v43, 0.0  ;;  %v2150_v48 = vmul.f32 1.442695, %v2130_v34  ;;  %v5561_v1 = vld [vmem:[%s10044_s3 + $0x200] sm:$0xff] }
 0x267   :  { %v2046_v26 = vadd.f32 1.4214138, %v2034_v46  ;;  %2546 = vmatpush.msrb.mxu1 %v5567_v8  ;;  %2587 = vmatpush.msrb.mxu2 %v5568_v47  ;;  %v2131_v28 = vmul.f32 %v2119_v56, %v7895_v15  ;;  %v8075_v57 = vmul.f32 %v2223_v32, %v1767_v37  ;;  %v8077_v25 = vadd.f32 1.0, %v1808_v17 }
 0x268   :  { %v2023_v13 = vadd.f32 -1.4531521, %v2011_v36  ;;  %v8080_v5 = vand.u32 2147483647, %v8050_v35  ;;  %v2212_v22 = vsel %vm2188_vm4, %v2176_v62, %v2200_v20  ;;  %v2177_v7 = vsub.f32 1.0, %v2165_v50 }
 0x269   :  { %v2058_v38 = vmul.f32 %v2046_v26, %v8026_v55  ;;  %2547 = vmatpush.msrb.mxu1 %v5565_v51  ;;  %2588 = vmatpush.msrb.mxu2 %v5566_v10  ;;  %5877 = vpow2.f32 %v2150_v48  ;;  %v2152_v0 = vmul.f32 1.442695, %v2131_v28  ;;  %v2224_v19 = vadd.f32 1.0, %v2212_v22 }
 0x26a   :  { %v2035_v63 = vmul.f32 %v2023_v13, %v8061_v24  ;;  %5879 = vrcp.f32 %v8077_v25  ;;  %v1809_v44 = vmul.f32 0.3275911, %v8080_v5  ;;  %v2201_v30 = vsub.f32 0.0, %v2177_v7 }
 0x26b   :  { %v2070_v43 = vadd.f32 -0.28449672, %v2058_v38  ;;  %v1768_v18 = vmul.f32 0.5, %v7784_v59  ;;  %2548 = vmatpush.msrb.mxu1 %v5563_v52  ;;  %2589 = vmatpush.msrb.mxu2 %v5564_v33  ;;  %vm2189_vm5 = vcmp.ge.f32.partialorder %v7821_v29, 0.0  ;;  %5881 = vpow2.f32 %v2152_v0 }
 0x26c   :  { %v2047_v15 = vadd.f32 1.4214138, %v2035_v63  ;;  %v8108_v40 = vadd.f32 1.0, %v1809_v44  ;;  %v2213_v62 = vsel %vm2189_vm5, %v2177_v7, %v2201_v30  ;;  %v1769_v34 = vmul.f32 0.5, %v7813_v54 }
 0x26d   :  { %2354 = vmatmul.f32.gmra.mxu1 %v8075_v57  ;;  %2395 = vmatmul.f32.gmra.mxu2 %v8075_v57  ;;  %v2082_v9 = vmul.f32 %v2070_v43, %v8026_v55  ;;  %v8106_v3 = vmul.f32 %v2224_v19, %v1768_v18  ;;  %v2225_v27 = vadd.f32 1.0, %v2213_v62  ;;  %vm2190_vm14 = vcmp.ge.f32.partialorder %v7846_v31, 0.0 }
 0x26e   :  { %2442 = vmatmul.f32.gmra.mxu3 %v8075_v57  ;;  %2483 = vmatmul.f32.gmra.mxu0 %v8075_v57  ;;  %v2059_v39 = vmul.f32 %v2047_v15, %v8061_v24  ;;  %5883 = vrcp.f32 %v8108_v40  ;;  %v1770_v36 = vmul.f32 0.5, %v7838_v41  ;;  %vm2191_vm6 = vcmp.ge.f32.partialorder %v7876_v14, 0.0 }
 0x26f   :  { %v2094_v49 = vadd.f32 0.2548296, %v2082_v9  ;;  %2549 = vmatpush.msrb.mxu1 %v5561_v1  ;;  %2590 = vmatpush.msrb.mxu2 %v5562_v12  ;;  %v5878_v61 = vpop.eup %5877  ;;  %v8120_v46 = vmul.f32 %v2225_v27, %v1769_v34  ;;  %v1983_v28 = vand.u32 2147483648, %v8077_v25  ;;  %vm1977_vm8 = vweird.f32 %v8077_v25 }
 0x270   :  { %v2071_v21 = vadd.f32 -0.28449672, %v2059_v39  ;;  %v5880_v59 = vpop.eup %5879  ;;  %v1981_v13 = vand.u32 2147483647, %v8077_v25  ;;  %v1771_v22 = vmul.f32 0.5, %v7864_v60  ;;  %v1998_v15 = vand.u32 2147483648, %v8108_v40 }
 0x271   :  { %v2106_v45 = vmul.f32 %v2094_v49, %v8026_v55  ;;  %v1973_v4 = vmul.f32 %v5880_v59, %v8077_v25  ;;  %v5882_v32 = vpop.eup %5881  ;;  %vm1978_vm7 = vweird.f32 %v5880_v59  ;;  %v1984_v7 = vor.u32 1.1754944e-38, %v1983_v28 }
 0x272   :  { %v2083_v23 = vmul.f32 %v2071_v21, %v8061_v24  ;;  %vm1979_vm9 = vmor %vm1977_vm8, %vm1978_vm7  ;;  %vm1982_vm10 = vcmp.eq.f32.partialorder %v1981_v13, 8.507059e+37  ;;  %vm1992_vm12 = vweird.f32 %v8108_v40  ;;  %v1996_v25 = vand.u32 2147483647, %v8108_v40 }
 0x273   :  { %v2166_v2 = vmul.f32 %v5878_v61, %v2106_v45  ;;  %v1974_v8 = vsub.f32 1.0, %v1973_v4  ;;  %v1999_v9 = vor.u32 1.1754944e-38, %v1998_v15  ;;  %v2120_v49 = vsub.f32 0.0, %v8029_v53 }
 0x274   :  { %v2095_v42 = vadd.f32 0.2548296, %v2083_v23  ;;  %v5884_v50 = vpop.eup %5883  ;;  %vm1997_vm15 = vcmp.eq.f32.partialorder %v1996_v25, 8.507059e+37  ;;  %vm2192_vm0 = vcmp.ge.f32.partialorder %v7993_v6, 0.0  ;;  %vm2193_vm1 = vcmp.ge.f32.partialorder %v8050_v35, 0.0 }
 0x275   :  { %2357 = vmatmul.f32.gmra.mxu1 %v8106_v3  ;;  %2398 = vmatmul.f32.gmra.mxu2 %v8106_v3  ;;  %v2178_v29 = vsub.f32 1.0, %v2166_v2  ;;  %v1975_v10 = vmul.f32 %v5880_v59, %v1974_v8  ;;  %vm1993_vm11 = vweird.f32 %v5884_v50  ;;  %v2132_v45 = vmul.f32 %v2120_v49, %v8029_v53 }
 0x276   :  { %2445 = vmatmul.f32.gmra.mxu3 %v8106_v3  ;;  %2486 = vmatmul.f32.gmra.mxu0 %v8106_v3  ;;  %v2107_v55 = vmul.f32 %v2095_v42, %v8061_v24  ;;  %v1988_v24 = vmul.f32 %v5884_v50, %v8108_v40  ;;  %vm1994_vm13 = vmor %vm1992_vm12, %vm1993_vm11 }
 0x277   :  { %v2202_v56 = vsub.f32 0.0, %v2178_v29  ;;  %v1976_v48 = vadd.f32 %v5880_v59, %v1975_v10  ;;  %v2154_v23 = vmul.f32 1.442695, %v2132_v45 }
 0x278   :  { %v2167_v17 = vmul.f32 %v5882_v32, %v2107_v55  ;;  %v1989_v37 = vsub.f32 1.0, %v1988_v24  ;;  %v1773_v24 = vmul.f32 0.5, %v8031_v11 }
 0x279   :  { %v2214_v47 = vsel %vm2190_vm14, %v2178_v29, %v2202_v56  ;;  %v1980_v14 = vsel %vm1979_vm9, %v5880_v59, %v1976_v48  ;;  %v2121_v59 = vsub.f32 0.0, %v8080_v5  ;;  %5885 = vpow2.f32 %v2154_v23 }
 0x27a   :  { %v2179_v20 = vsub.f32 1.0, %v2167_v17  ;;  %v2226_v51 = vadd.f32 1.0, %v2214_v47  ;;  %v1990_v41 = vmul.f32 %v5884_v50, %v1989_v37  ;;  %v1985_v43 = vsel %vm1982_vm10, %v1984_v7, %v1980_v14 }
 0x27b   :  { %v2012_v19 = vmul.f32 1.0614054, %v1985_v43  ;;  %v2133_v42 = vmul.f32 %v2121_v59, %v8080_v5 }
 0x27c   :  { %v2203_v54 = vsub.f32 0.0, %v2179_v20  ;;  %v8130_v31 = vmul.f32 %v2226_v51, %v1770_v36  ;;  %v1991_v0 = vadd.f32 %v5884_v50, %v1990_v41 }
 0x27d   :  { %2360 = vmatmul.f32.gmra.mxu1 %v8120_v46  ;;  %2401 = vmatmul.f32.gmra.mxu2 %v8120_v46  ;;  %v2024_v52 = vadd.f32 -1.4531521, %v2012_v19  ;;  %v2156_v29 = vmul.f32 1.442695, %v2133_v42 }
 0x27e   :  { %2448 = vmatmul.f32.gmra.mxu3 %v8120_v46  ;;  %2489 = vmatmul.f32.gmra.mxu0 %v8120_v46  ;;  %v2215_v26 = vsel %vm2191_vm6, %v2179_v20, %v2203_v54  ;;  %v1995_v44 = vsel %vm1994_vm13, %v5884_v50, %v1991_v0  ;;  %v1772_v20 = vmul.f32 0.5, %v7967_v16 }
 0x27f   :  { %v2227_v38 = vadd.f32 1.0, %v2215_v26  ;;  %v2000_v60 = vsel %vm1997_vm15, %v1999_v9, %v1995_v44  ;;  %v2036_v33 = vmul.f32 %v2024_v52, %v1985_v43  ;;  %v5886_v53 = vpop.eup %5885  ;;  %5887 = vpow2.f32 %v2156_v29  ;;  %v2632_v9 = vld [vmem:[%s10048_s7] sm:$0x3]  ;;  %s6142_s7 = smov 64  }
 0x280   :  { %v2013_v30 = vmul.f32 1.0614054, %v2000_v60 }
 0x281   :  { %v2239_v63 = vmul.f32 %v2227_v38, %v1771_v22  ;;  %v2048_v39 = vadd.f32 1.4214138, %v2036_v33  ;;  %v8168_v33 = vperm.slane %v2632_v9, 0 }
 0x282   :  { %v2025_v1 = vadd.f32 -1.4531521, %v2013_v30 }
 0x283   :  { %v2060_v12 = vmul.f32 %v2048_v39, %v1985_v43 }
 0x284   :  { %v2037_v18 = vmul.f32 %v2025_v1, %v2000_v60 }
 0x285   :  { %2363 = vmatmul.f32.gmra.mxu1 %v8130_v31  ;;  %2404 = vmatmul.f32.gmra.mxu2 %v8130_v31  ;;  %v2072_v21 = vadd.f32 -0.28449672, %v2060_v12 }
 0x286   :  { %v2049_v40 = vadd.f32 1.4214138, %v2037_v18 }
 0x287   :  { %v2084_v61 = vmul.f32 %v2072_v21, %v1985_v43 }
 0x288   :  { %v2061_v62 = vmul.f32 %v2049_v40, %v2000_v60  ;;  %v8173_v40 = vperm.slane %v2632_v9, 1 }
 0x28a   :  { %v2073_v2 = vadd.f32 -0.28449672, %v2061_v62 }
 0x28d   :  { %2366 = vmatmul.f32.gmra.mxu1 %v2239_v63  ;;  %2407 = vmatmul.f32.gmra.mxu2 %v2239_v63 }
 0x295   :  { %2550 = vmatmul.f32.vlgmr.msrb.gmra.mxu1 %v7982_v58  ;;  %2591 = vmatmul.f32.vlgmr.msrb.gmra.mxu2 %v7982_v58  ;;  %v2096_v58 = vadd.f32 0.2548296, %v2084_v61 }
 0x297   :  { %v2108_v27 = vmul.f32 %v2096_v58, %v1985_v43 }
 0x299   :  { %v2168_v4 = vmul.f32 %v5886_v53, %v2108_v27 }
 0x29b   :  { %v2180_v32 = vsub.f32 1.0, %v2168_v4 }
 0x29d   :  { %2553 = vmatmul.f32.gmra.mxu1 %v8075_v57  ;;  %2594 = vmatmul.f32.gmra.mxu2 %v8075_v57  ;;  %v2085_v57 = vmul.f32 %v2073_v2, %v2000_v60  ;;  %v2204_v56 = vsub.f32 0.0, %v2180_v32 }
 0x29f   :  { %v2097_v55 = vadd.f32 0.2548296, %v2085_v57  ;;  %v2216_v17 = vsel %vm2192_vm0, %v2180_v32, %v2204_v56 }
 0x2a1   :  { %v2109_v34 = vmul.f32 %v2097_v55, %v2000_v60 }
 0x2a5   :  { %2556 = vmatmul.f32.gmra.mxu1 %v8106_v3  ;;  %2597 = vmatmul.f32.gmra.mxu2 %v8106_v3  ;;  %v5888_v3 = vpop.eup %5887  ;;  %v2469_v13 = vpop.f32.mrf.mxu0 }
 0x2a6   :  { %v2169_v5 = vmul.f32 %v5888_v3, %v2109_v34 }
 0x2a8   :  { %v2181_v8 = vsub.f32 1.0, %v2169_v5 }
 0x2aa   :  { %v2205_v47 = vsub.f32 0.0, %v2181_v8 }
 0x2ab   :  { %v2428_v28 = vpop.f32.mrf.mxu3 }
 0x2ac   :  { %v2217_v51 = vsel %vm2193_vm1, %v2181_v8, %v2205_v47 }
 0x2ad   :  { %2559 = vmatmul.f32.gmra.mxu1 %v8120_v46  ;;  %2600 = vmatmul.f32.gmra.mxu2 %v8120_v46  ;;  %v2228_v46 = vadd.f32 1.0, %v2216_v17  ;;  %v2229_v10 = vadd.f32 1.0, %v2217_v51 }
 0x2af   :  { %v2240_v50 = vmul.f32 %v2228_v46, %v1772_v20  ;;  %v2241_v54 = vmul.f32 %v2229_v10, %v1773_v24 }
 0x2b4   :  { %v2472_v14 = vpop.f32.mrf.mxu0 }
 0x2b5   :  { %2562 = vmatmul.f32.gmra.mxu1 %v8130_v31  ;;  %2603 = vmatmul.f32.gmra.mxu2 %v8130_v31 }
 0x2ba   :  { %v2431_v41 = vpop.f32.mrf.mxu3 }
 0x2bc   :  { %v2346_v6 = vpop.f32.mrf.mxu1 }
 0x2bd   :  { %2565 = vmatmul.f32.gmra.mxu1 %v2239_v63  ;;  %2606 = vmatmul.f32.gmra.mxu2 %v2239_v63  ;;  %v2475_v11 = vpop.f32.mrf.mxu0  ;;  %v2429_v60 = vadd.f32 %v2428_v28, %v2346_v6 }
 0x2c2   :  { %v2387_v36 = vpop.f32.mrf.mxu2 }
 0x2c3   :  { %v2434_v63 = vpop.f32.mrf.mxu3  ;;  %v2470_v49 = vadd.f32 %v2469_v13, %v2387_v36 }
 0x2c5   :  { %2568 = vmatmul.f32.gmra.mxu1 %v2240_v50  ;;  %2609 = vmatmul.f32.gmra.mxu2 %v2240_v50 }
 0x2cd   :  { %2571 = vmatmul.f32.gmra.mxu1 %v2241_v54  ;;  %2612 = vmatmul.f32.gmra.mxu2 %v2241_v54 }
 0x2da   :  { %v2349_v31 = vpop.f32.mrf.mxu1 }
 0x2db   :  { %v2478_v25 = vpop.f32.mrf.mxu0  ;;  %v2432_v61 = vadd.f32 %v2431_v41, %v2349_v31 }
 0x2e0   :  { %v2390_v37 = vpop.f32.mrf.mxu2 }
 0x2e1   :  { %v2437_v15 = vpop.f32.mrf.mxu3  ;;  %v2473_v55 = vadd.f32 %v2472_v14, %v2390_v37 }
 0x2e2   :  { %v2352_v26 = vpop.f32.mrf.mxu1 }
 0x2e3   :  { %v2481_v12 = vpop.f32.mrf.mxu0  ;;  %v2435_v17 = vadd.f32 %v2434_v63, %v2352_v26 }
 0x2e8   :  { %v2393_v48 = vpop.f32.mrf.mxu2 }
 0x2e9   :  { %v2440_v30 = vpop.f32.mrf.mxu3  ;;  %v8186_v46 = vadd.f32 %v2475_v11, %v2393_v48 }
 0x2ea   :  { %v2355_v16 = vpop.f32.mrf.mxu1 }
 0x2eb   :  { %v2484_v53 = vpop.f32.mrf.mxu0  ;;  %v8188_v47 = vadd.f32 %v2437_v15, %v2355_v16 }
 0x2f0   :  { %v2396_v35 = vpop.f32.mrf.mxu2 }
 0x2f1   :  { %v2443_v27 = vpop.f32.mrf.mxu3  ;;  %v8194_v51 = vadd.f32 %v2478_v25, %v2396_v35 }
 0x2f2   :  { %v2358_v38 = vpop.f32.mrf.mxu1 }
 0x2f3   :  { %v8196_v10 = vadd.f32 %v2440_v30, %v2358_v38  ;;  %v2487_v63 = vpop.f32.mrf.mxu0 }
 0x2f8   :  { %v2399_v22 = vpop.f32.mrf.mxu2 }
 0x2f9   :  { %v8200_v31 = vadd.f32 %v2481_v12, %v2399_v22  ;;  %v2446_v28 = vpop.f32.mrf.mxu3 }
 0x2fa   :  { %v2361_v7 = vpop.f32.mrf.mxu1 }
 0x2fb   :  { %v8205_v16 = vadd.f32 %v2443_v27, %v2361_v7 }
 0x300   :  { %v2402_v43 = vpop.f32.mrf.mxu2 }
 0x301   :  { %v8207_v13 = vadd.f32 %v2484_v53, %v2402_v43 }
 0x302   :  { %v2364_v0 = vpop.f32.mrf.mxu1 }
 0x303   :  { %v8210_v38 = vadd.f32 %v2446_v28, %v2364_v0 }
 0x308   :  { %v8159_v19 = vpop.f32.mrf.mxu2 }
 0x309   :  { %v8216_v7 = vadd.f32 %v2487_v63, %v8159_v19  ;;  %v3349_v63 = vld [vmem:[%s10045_s4 + $0xf0] sm:$0xff] }
 0x30a   :  { %v8161_v44 = vpop.f32.mrf.mxu1  ;;  %3554 = vmatpush.msra.mxu1 %v3349_v63 }
 0x310   :  { %v8166_v52 = vpop.f32.mrf.mxu2 }
 0x312   :  { %v2551_v39 = vpop.f32.mrf.mxu1 }
 0x313   :  { %v2616_v1 = vadd.f32 %v2551_v39, %v2429_v60 }
 0x315   :  { %v2638_v18 = vadd.f32 %v8168_v33, %v2616_v1 }
 0x317   :  { %v8171_v21 = vmul.f32 0.70710677, %v2638_v18  ;;  %v8218_v43 = vmul.f32 0.5, %v2638_v18 }
 0x318   :  { %v2592_v45 = vpop.f32.mrf.mxu2 }
 0x319   :  { %v2686_v62 = vand.u32 2147483647, %v8171_v21  ;;  %v2617_v23 = vadd.f32 %v2592_v45, %v2470_v49 }
 0x31a   :  { %v2554_v59 = vpop.f32.mrf.mxu1 }
 0x31b   :  { %v2702_v58 = vmul.f32 0.3275911, %v2686_v62  ;;  %v2639_v2 = vadd.f32 %v8173_v40, %v2617_v23  ;;  %v2618_v42 = vadd.f32 %v2554_v59, %v2432_v61  ;;  %v3118_v32 = vsub.f32 0.0, %v2686_v62 }
 0x31d   :  { %v2718_v57 = vadd.f32 1.0, %v2702_v58  ;;  %v8177_v29 = vmul.f32 0.70710677, %v2639_v2  ;;  %v8180_v4 = vadd.f32 %v8168_v33, %v2618_v42  ;;  %v3134_v24 = vmul.f32 %v3118_v32, %v2686_v62 }
 0x31e   :  { %v8222_v1 = vmul.f32 0.5, %v2639_v2 }
 0x31f   :  { %5889 = vrcp.f32 %v2718_v57  ;;  %v2687_v34 = vand.u32 2147483647, %v8177_v29  ;;  %v8184_v56 = vmul.f32 0.70710677, %v8180_v4  ;;  %v2743_v41 = vand.u32 2147483647, %v2718_v57 }
 0x320   :  { %v2595_v3 = vpop.f32.mrf.mxu2  ;;  %v2745_v15 = vand.u32 2147483648, %v2718_v57  ;;  %v3150_v25 = vmul.f32 1.442695, %v3134_v24  ;;  %vm2739_vm3 = vweird.f32 %v2718_v57 }
 0x321   :  { %v2619_v5 = vadd.f32 %v2595_v3, %v2473_v55  ;;  %v2703_v8 = vmul.f32 0.3275911, %v2687_v34  ;;  %v2688_v20 = vand.u32 2147483647, %v8184_v56  ;;  %v3119_v37 = vsub.f32 0.0, %v2687_v34 }
 0x322   :  { %v2557_v6 = vpop.f32.mrf.mxu1  ;;  %vm2744_vm4 = vcmp.eq.f32.partialorder %v2743_v41, 8.507059e+37  ;;  %v2746_v18 = vor.u32 1.1754944e-38, %v2745_v15 }
 0x323   :  { %v8192_v50 = vadd.f32 %v8173_v40, %v2619_v5  ;;  %v8198_v54 = vadd.f32 1.0, %v2703_v8  ;;  %v2704_v26 = vmul.f32 0.3275911, %v2688_v20  ;;  %v2620_v22 = vadd.f32 %v2557_v6, %v2435_v17  ;;  %v5623_v6 = vld [vmem:[%s10045_s4 + $0x270] sm:$0xff] }
 0x324   :  { %v3135_v60 = vmul.f32 %v3119_v37, %v2687_v34  ;;  %v3120_v30 = vsub.f32 0.0, %v2688_v20  ;;  %3432 = vmatpush.msrb.mxu3 %v5623_v6 }
 0x325   :  { %v5890_v36 = vpop.eup %5889  ;;  %v8203_v48 = vmul.f32 0.70710677, %v8192_v50  ;;  %5891 = vrcp.f32 %v8198_v54  ;;  %v8212_v14 = vadd.f32 1.0, %v2704_v26  ;;  %v2758_v0 = vand.u32 2147483647, %v8198_v54 }
 0x326   :  { %v2735_v35 = vmul.f32 %v5890_v36, %v2718_v57  ;;  %vm2740_vm2 = vweird.f32 %v5890_v36  ;;  %v8225_v49 = vadd.f32 %v8168_v33, %v2620_v22  ;;  %vm2754_vm14 = vweird.f32 %v8198_v54 }
 0x327   :  { %v2689_v9 = vand.u32 2147483647, %v8203_v48  ;;  %5893 = vrcp.f32 %v8212_v14  ;;  %vm2741_vm5 = vmor %vm2739_vm3, %vm2740_vm2  ;;  %v2760_v62 = vand.u32 2147483648, %v8198_v54  ;;  %vm8232_vm6 = vcmp.eq.f32.partialorder %v2758_v0, 8.507059e+37 }
 0x328   :  { %v2736_v11 = vsub.f32 1.0, %v2735_v35  ;;  %5895 = vpow2.f32 %v3150_v25  ;;  %v2598_v59 = vpop.f32.mrf.mxu2  ;;  %v3152_v42 = vmul.f32 1.442695, %v3135_v60  ;;  %v3136_v27 = vmul.f32 %v3120_v30, %v2688_v20 }
 0x329   :  { %v2705_v12 = vmul.f32 0.3275911, %v2689_v9  ;;  %v8240_v55 = vmul.f32 0.70710677, %v8225_v49  ;;  %v2773_v3 = vand.u32 2147483647, %v8212_v14  ;;  %v2621_v17 = vadd.f32 %v2598_v59, %v8186_v46 }
 0x32a   :  { %v2737_v39 = vmul.f32 %v5890_v36, %v2736_v11  ;;  %v3121_v5 = vsub.f32 0.0, %v2689_v9  ;;  %v2761_v24 = vor.u32 1.1754944e-38, %v2760_v62  ;;  %vm2769_vm8 = vweird.f32 %v8212_v14 }
 0x32b   :  { %v5892_v45 = vpop.eup %5891  ;;  %v8230_v23 = vadd.f32 1.0, %v2705_v12  ;;  %v2775_v26 = vand.u32 2147483648, %v8212_v14  ;;  %v3154_v35 = vmul.f32 1.442695, %v3136_v27  ;;  %v8254_v41 = vand.u32 2147483647, %v8240_v55 }
 0x32c   :  { %v2738_v19 = vadd.f32 %v5890_v36, %v2737_v39  ;;  %v2750_v61 = vmul.f32 %v5892_v45, %v8198_v54  ;;  %vm2755_vm7 = vweird.f32 %v5892_v45  ;;  %vm8260_vm10 = vcmp.eq.f32.partialorder %v2773_v3, 8.507059e+37 }
 0x32d   :  { %5897 = vrcp.f32 %v8230_v23  ;;  %v5894_v32 = vpop.eup %5893  ;;  %vm2756_vm9 = vmor %vm2754_vm14, %vm2755_vm7  ;;  %v3137_v11 = vmul.f32 %v3121_v5, %v2689_v9  ;;  %v8265_v15 = vadd.f32 %v8173_v40, %v2621_v17  ;;  %v2706_v39 = vmul.f32 0.3275911, %v8254_v41 }
 0x32e   :  { %v2742_v58 = vsel %vm2741_vm5, %v5890_v36, %v2738_v19  ;;  %v2751_v53 = vsub.f32 1.0, %v2750_v61  ;;  %v2765_v20 = vmul.f32 %v5894_v32, %v8212_v14  ;;  %v8249_v36 = vpop.eup %5895  ;;  %5899 = vpow2.f32 %v3152_v42 }
 0x32f   :  { %v8236_v57 = vsel %vm2744_vm4, %v2746_v18, %v2742_v58  ;;  %vm2770_vm11 = vweird.f32 %v5894_v32  ;;  %v2776_v54 = vor.u32 1.1754944e-38, %v2775_v26  ;;  %v2788_v61 = vand.u32 2147483647, %v8230_v23 }
 0x330   :  { %v2974_v34 = vmul.f32 1.0614054, %v8236_v57  ;;  %v2752_v8 = vmul.f32 %v5892_v45, %v2751_v53  ;;  %v2766_v46 = vsub.f32 1.0, %v2765_v20  ;;  %v8275_v62 = vadd.f32 1.0, %v2706_v39  ;;  %vm2771_vm12 = vmor %vm2769_vm8, %vm2770_vm11 }
 0x331   :  { %v2790_v2 = vand.u32 2147483648, %v8230_v23  ;;  %v8284_v42 = vmul.f32 0.70710677, %v8265_v15  ;;  %vm2784_vm15 = vweird.f32 %v8230_v23  ;;  %vm8294_vm0 = vcmp.eq.f32.partialorder %v2788_v61, 8.507059e+37 }
 0x332   :  { %v2990_v37 = vadd.f32 -1.4531521, %v2974_v34  ;;  %v2753_v28 = vadd.f32 %v5892_v45, %v2752_v8  ;;  %v2767_v30 = vmul.f32 %v5894_v32, %v2766_v46  ;;  %v3156_v34 = vmul.f32 1.442695, %v3137_v11 }
 0x333   :  { %v5898_v25 = vpop.eup %5897  ;;  %5901 = vrcp.f32 %v8275_v62  ;;  %v8303_v26 = vand.u32 2147483647, %v8284_v42  ;;  %vm3214_vm2 = vcmp.ge.f32.partialorder %v8171_v21, 0.0  ;;  %v2803_v61 = vand.u32 2147483647, %v8275_v62 }
 0x334   :  { %v3006_v22 = vmul.f32 %v2990_v37, %v8236_v57  ;;  %v2757_v60 = vsel %vm2756_vm9, %v5892_v45, %v2753_v28  ;;  %v2780_v19 = vmul.f32 %v5898_v25, %v8230_v23  ;;  %v2768_v9 = vadd.f32 %v5894_v32, %v2767_v30  ;;  %v8277_v45 = vpop.eup %5899  ;;  %v2560_v28 = vpop.f32.mrf.mxu1 }
 0x335   :  { %v8270_v12 = vsel %vm8232_vm6, %v2761_v24, %v2757_v60  ;;  %vm2785_vm13 = vweird.f32 %v5898_v25  ;;  %v2791_v37 = vor.u32 1.1754944e-38, %v2790_v2  ;;  %5903 = vpow2.f32 %v3154_v35 }
 0x336   :  { %v3022_v0 = vadd.f32 1.4214138, %v3006_v22  ;;  %v2975_v18 = vmul.f32 1.0614054, %v8270_v12  ;;  %v2781_v58 = vsub.f32 1.0, %v2780_v19  ;;  %v2772_v53 = vsel %vm2771_vm12, %v5894_v32, %v2768_v9  ;;  %v5621_v32 = vld [vmem:[%s10045_s4 + $0x260] sm:$0xff]  ;;  %vm2786_vm1 = vmor %vm2784_vm15, %vm2785_vm13 }
 0x337   :  { %v8289_v5 = vsel %vm8260_vm10, %v2776_v54, %v2772_v53  ;;  %3433 = vmatpush.msrb.mxu3 %v5621_v32  ;;  %v3122_v23 = vsub.f32 0.0, %v8254_v41  ;;  %5905 = vpow2.f32 %v3156_v34  ;;  %v2707_v30 = vmul.f32 0.3275911, %v8303_v26 }
 0x338   :  { %v3038_v59 = vmul.f32 %v3022_v0, %v8236_v57  ;;  %v2991_v27 = vadd.f32 -1.4531521, %v2975_v18  ;;  %v2782_v17 = vmul.f32 %v5898_v25, %v2781_v58  ;;  %v2976_v8 = vmul.f32 1.0614054, %v8289_v5 }
 0x339   :  { %v5902_v39 = vpop.eup %5901  ;;  %v2622_v19 = vadd.f32 %v2560_v28, %v8188_v47  ;;  %v3138_v2 = vmul.f32 %v3122_v23, %v8254_v41  ;;  %v2805_v47 = vand.u32 2147483648, %v8275_v62  ;;  %v3347_v41 = vld [vmem:[%s10045_s4 + $0xe0] sm:$0xff]  ;;  %vm2799_vm4 = vweird.f32 %v8275_v62 }
 0x33a   :  { %v3054_v3 = vadd.f32 -0.28449672, %v3038_v59  ;;  %v3007_v14 = vmul.f32 %v2991_v27, %v8270_v12  ;;  %v2783_v6 = vadd.f32 %v5898_v25, %v2782_v17  ;;  %v2992_v22 = vadd.f32 -1.4531521, %v2976_v8  ;;  %v2601_v17 = vpop.f32.mrf.mxu2  ;;  %3555 = vmatpush.msra.mxu1 %v3347_v41  ;;  %v5617_v41 = vld [vmem:[%s10045_s4 + $0x240] sm:$0xff] }
 0x33b   :  { %v2795_v9 = vmul.f32 %v5902_v39, %v8275_v62  ;;  %v8324_v27 = vadd.f32 1.0, %v2707_v30  ;;  %vm2800_vm3 = vweird.f32 %v5902_v39  ;;  %vm3215_vm5 = vcmp.ge.f32.partialorder %v8177_v29, 0.0  ;;  %v5619_v62 = vld [vmem:[%s10045_s4 + $0x250] sm:$0xff] }
 0x33c   :  { %v3070_v20 = vmul.f32 %v3054_v3, %v8236_v57  ;;  %v3023_v46 = vadd.f32 1.4214138, %v3007_v14  ;;  %v2787_v60 = vsel %vm2786_vm1, %v5898_v25, %v2783_v6  ;;  %v3008_v35 = vmul.f32 %v2992_v22, %v8289_v5  ;;  %vm2801_vm14 = vmor %vm2799_vm4, %vm2800_vm3  ;;  %3434 = vmatpush.msrb.mxu3 %v5619_v62 }
 0x33d   :  { %v8316_v54 = vsel %vm8294_vm0, %v2791_v37, %v2787_v60  ;;  %v2796_v3 = vsub.f32 1.0, %v2795_v9  ;;  %5907 = vrcp.f32 %v8324_v27  ;;  %v8338_v6 = vadd.f32 %v8168_v33, %v2622_v19 }
 0x33e   :  { %v3086_v11 = vadd.f32 0.2548296, %v3070_v20  ;;  %v3039_v0 = vmul.f32 %v3023_v46, %v8270_v12  ;;  %v2977_v25 = vmul.f32 1.0614054, %v8316_v54  ;;  %v3024_v58 = vadd.f32 1.4214138, %v3008_v35  ;;  %3435 = vmatpush.msrb.mxu3 %v5617_v41 }
 0x33f   :  { %v2797_v20 = vmul.f32 %v5902_v39, %v2796_v3  ;;  %v2623_v46 = vadd.f32 %v2601_v17, %v8194_v51  ;;  %vm2804_vm6 = vcmp.eq.f32.partialorder %v2803_v61, 8.507059e+37  ;;  %vm3295_vm7 = vcmask 523264  }
 0x340   :  { %v3102_v18 = vmul.f32 %v3086_v11, %v8236_v57  ;;  %v3055_v59 = vadd.f32 -0.28449672, %v3039_v0  ;;  %v2993_v34 = vadd.f32 -1.4531521, %v2977_v25  ;;  %v5904_v57 = vpop.eup %5903  ;;  %v3040_v8 = vmul.f32 %v3024_v58, %v8289_v5 }
 0x341   :  { %v8334_v24 = vpop.eup %5905  ;;  %v2798_v63 = vadd.f32 %v5902_v39, %v2797_v20  ;;  %v8343_v11 = vmul.f32 1.442695, %v3138_v2  ;;  %v2806_v0 = vor.u32 1.1754944e-38, %v2805_v47  ;;  %vm3216_vm8 = vcmp.ge.f32.partialorder %v8184_v56, 0.0 }
 0x342   :  { %v3182_v53 = vmul.f32 %v8249_v36, %v3102_v18  ;;  %v3071_v14 = vmul.f32 %v3055_v59, %v8270_v12  ;;  %v3009_v32 = vmul.f32 %v2993_v34, %v8316_v54  ;;  %v3056_v28 = vadd.f32 -0.28449672, %v3040_v8 }
 0x343   :  { %v2802_v19 = vsel %vm2801_vm14, %v5902_v39, %v2798_v63  ;;  %v8355_v18 = vmul.f32 0.70710677, %v8338_v6  ;;  %v3123_v39 = vsub.f32 0.0, %v8303_v26  ;;  %vm2814_vm10 = vweird.f32 %v8324_v27 }
 0x344   :  { %v3198_v36 = vsub.f32 1.0, %v3182_v53  ;;  %v3087_v37 = vadd.f32 0.2548296, %v3071_v14  ;;  %v3025_v23 = vadd.f32 1.4214138, %v3009_v32  ;;  %v3072_v30 = vmul.f32 %v3056_v28, %v8289_v5 }
 0x345   :  { %v8358_v59 = vsel %vm2804_vm6, %v2806_v0, %v2802_v19  ;;  %v8369_v8 = vand.u32 2147483647, %v8355_v18  ;;  %v8381_v63 = vadd.f32 %v8173_v40, %v2623_v46  ;;  %vm3217_vm13 = vcmp.ge.f32.partialorder %v8203_v48, 0.0 }
 0x346   :  { %v3230_v22 = vsub.f32 0.0, %v3198_v36  ;;  %v3103_v60 = vmul.f32 %v3087_v37, %v8270_v12  ;;  %v3041_v35 = vmul.f32 %v3025_v23, %v8316_v54  ;;  %v5908_v12 = vpop.eup %5907  ;;  %v3088_v61 = vadd.f32 0.2548296, %v3072_v30 }
 0x347   :  { %v2978_v21 = vmul.f32 1.0614054, %v8358_v59  ;;  %v2810_v2 = vmul.f32 %v5908_v12, %v8324_v27  ;;  %vm2815_vm9 = vweird.f32 %v5908_v12  ;;  %v2708_v28 = vmul.f32 0.3275911, %v8369_v8 }
 0x348   :  { %v3246_v51 = vsel %vm3214_vm2, %v3198_v36, %v3230_v22  ;;  %v3183_v9 = vmul.f32 %v8277_v45, %v3103_v60  ;;  %v3057_v58 = vadd.f32 -0.28449672, %v3041_v35  ;;  %v3104_v3 = vmul.f32 %v3088_v61, %v8289_v5  ;;  %vm2816_vm11 = vmor %vm2814_vm10, %vm2815_vm9 }
 0x349   :  { %v3262_v25 = vadd.f32 1.0, %v3246_v51  ;;  %v2818_v45 = vand.u32 2147483647, %v8324_v27  ;;  %v2994_v17 = vadd.f32 -1.4531521, %v2978_v21  ;;  %v2811_v14 = vsub.f32 1.0, %v2810_v2 }
 0x34a   :  { %v3199_v34 = vsub.f32 1.0, %v3183_v9  ;;  %v3073_v47 = vmul.f32 %v3057_v58, %v8316_v54  ;;  %v3184_v32 = vmul.f32 %v5904_v57, %v3104_v3  ;;  %v3345_v57 = vld [vmem:[%s10045_s4 + $0xd0] sm:$0xff]  ;;  %v8388_v35 = vadd.f32 1.0, %v2708_v28  ;;  %v2563_v9 = vpop.f32.mrf.mxu1 }
 0x34b   :  { %v3278_v53 = vmul.f32 %v3262_v25, %v8218_v43  ;;  %v2820_v43 = vand.u32 2147483648, %v8324_v27  ;;  %v3010_v20 = vmul.f32 %v2994_v17, %v8358_v59  ;;  %v2812_v37 = vmul.f32 %v5908_v12, %v2811_v14  ;;  %3556 = vmatpush.msra.mxu1 %v3345_v57  ;;  %v3343_v27 = vld [vmem:[%s10045_s4 + $0xc0] sm:$0xff] }
 0x34c   :  { %v3231_v36 = vsub.f32 0.0, %v3199_v34  ;;  %v3089_v5 = vadd.f32 0.2548296, %v3073_v47  ;;  %v3200_v23 = vsub.f32 1.0, %v3184_v32  ;;  %vm2819_vm12 = vcmp.eq.f32.partialorder %v2818_v45, 8.507059e+37 }
 0x34d   :  { %3294 = vst [vmem:[#allocation4] sm:$0xff] %v3278_v53  ;;  %v3026_v0 = vadd.f32 1.4214138, %v3010_v20  ;;  %v2813_v62 = vadd.f32 %v5908_v12, %v2812_v37  ;;  %v2821_v29 = vor.u32 1.1754944e-38, %v2820_v43  ;;  %3557 = vmatpush.msra.mxu1 %v3343_v27  ;;  %5909 = vrcp.f32 %v8388_v35  ;;  %v5613_v27 = vld [vmem:[%s10045_s4 + $0x220] sm:$0xff] }
 0x34e   :  { %v3247_v22 = vsel %vm3215_vm5, %v3199_v34, %v3231_v36  ;;  %v3105_v30 = vmul.f32 %v3089_v5, %v8316_v54  ;;  %v3232_v51 = vsub.f32 0.0, %v3200_v23  ;;  %v8402_v21 = vmul.f32 0.70710677, %v8381_v63  ;;  %v2490_v34 = vpop.f32.mrf.mxu0  ;;  %v5615_v36 = vld [vmem:[%s10045_s4 + $0x230] sm:$0xff] }
 0x34f   :  { %v3263_v60 = vadd.f32 1.0, %v3247_v22  ;;  %v3042_v54 = vmul.f32 %v3026_v0, %v8358_v59  ;;  %v2817_v25 = vsel %vm2816_vm11, %v5908_v12, %v2813_v62  ;;  %v2656_v12 = vmul.f32 0.5, %v8180_v4  ;;  %3436 = vmatpush.msrb.mxu3 %v5615_v36  ;;  %v3335_v36 = vld [vmem:[%s10045_s4 + $0x80] sm:$0xff] }
 0x350   :  { %v3185_v19 = vmul.f32 %v8334_v24, %v3105_v30  ;;  %v3248_v61 = vsel %vm3216_vm8, %v3200_v23, %v3232_v51  ;;  %v8398_v58 = vsel %vm2819_vm12, %v2821_v29, %v2817_v25  ;;  %v2449_v24 = vpop.f32.mrf.mxu3  ;;  %5911 = vpow2.f32 %v8343_v11  ;;  %v2604_v29 = vpop.f32.mrf.mxu2 }
 0x351   :  { %v3279_v46 = vmul.f32 %v3263_v60, %v8222_v1  ;;  %v3341_v1 = vld [vmem:[%s10045_s4 + $0xb0] sm:$0xff]  ;;  %v3264_v2 = vadd.f32 1.0, %v3248_v61  ;;  %v3058_v56 = vadd.f32 -0.28449672, %v3042_v54  ;;  %v8410_v3 = vadd.f32 %v2449_v24, %v8161_v44  ;;  %v3339_v44 = vld [vmem:[%s10045_s4 + $0xa0] sm:$0xff]  ;;  %3437 = vmatpush.msrb.mxu3 %v5613_v27 }
 0x352   :  { %v3201_v53 = vsub.f32 1.0, %v3185_v19  ;;  %3558 = vmatpush.msra.mxu1 %v3341_v1  ;;  %v2979_v45 = vmul.f32 1.0614054, %v8398_v58  ;;  %v2624_v47 = vadd.f32 %v2563_v9, %v8196_v10  ;;  %v8416_v17 = vadd.f32 %v2490_v34, %v8166_v52  ;;  %v5611_v27 = vld [vmem:[%s10045_s4 + $0x210] sm:$0xff] }
 0x353   :  { %3296 = vst.msk [vmem:[#allocation4 + $0x8] sm:$0xff] %vm3295_vm7, %v3279_v46  ;;  %v3280_v14 = vmul.f32 %v3264_v2, %v2656_v12  ;;  %v3074_v4 = vmul.f32 %v3058_v56, %v8358_v59  ;;  %v3139_v52 = vmul.f32 %v3123_v39, %v8303_v26  ;;  %v8430_v10 = vand.u32 2147483647, %v8402_v21  ;;  %v5910_v37 = vpop.eup %5909  ;;  %v5639_v26 = vld [vmem:[%s10045_s4 + $0x2f0] sm:$0xff]  ;;  %3438 = vmatpush.msrb.mxu3 %v5611_v27 }
 0x354   :  { %v3233_v41 = vsub.f32 0.0, %v3201_v53  ;;  %v2995_v11 = vadd.f32 -1.4531521, %v2979_v45  ;;  %3559 = vmatpush.msra.mxu1 %v3339_v44  ;;  %v3124_v5 = vsub.f32 0.0, %v8369_v8  ;;  %v8434_v20 = vadd.f32 %v8168_v33, %v2624_v47  ;;  %3469 = vmatpush.msrb.mxu0 %v5639_v26  ;;  %v3337_v45 = vld [vmem:[%s10045_s4 + $0x90] sm:$0xff] }
 0x355   :  { %3297 = vst [vmem:[#allocation4 + $0x10] sm:$0xff] %v3280_v14  ;;  %v3090_v43 = vadd.f32 0.2548296, %v3074_v4  ;;  %v2657_v48 = vmul.f32 0.5, %v8192_v50  ;;  %v2709_v39 = vmul.f32 0.3275911, %v8430_v10  ;;  %v2825_v60 = vmul.f32 %v5910_v37, %v8388_v35 }
 0x356   :  { %v3249_v32 = vsel %vm3217_vm13, %v3201_v53, %v3233_v41  ;;  %v3011_v22 = vmul.f32 %v2995_v11, %v8398_v58  ;;  %v2658_v23 = vmul.f32 0.5, %v8225_v49  ;;  %vm3218_vm15 = vcmp.ge.f32.partialorder %v8240_v55, 0.0  ;;  %v5912_v30 = vpop.eup %5911  ;;  %3560 = vmatpush.msra.mxu1 %v3337_v45 }
 0x357   :  { %v3265_v28 = vadd.f32 1.0, %v3249_v32  ;;  %v3106_v57 = vmul.f32 %v3090_v43, %v8358_v59  ;;  %v3160_v62 = vmul.f32 1.442695, %v3139_v52  ;;  %v8446_v51 = vadd.f32 1.0, %v2709_v39 }
 0x358   :  { %v3027_v0 = vadd.f32 1.4214138, %v3011_v22  ;;  %v2826_v49 = vsub.f32 1.0, %v2825_v60  ;;  %v3140_v59 = vmul.f32 %v3124_v5, %v8369_v8  ;;  %v8453_v19 = vmul.f32 0.70710677, %v8434_v20  ;;  %3561 = vmatpush.msra.mxu1 %v3335_v36 }
 0x359   :  { %v3281_v50 = vmul.f32 %v3265_v28, %v2657_v48  ;;  %v3186_v46 = vmul.f32 %v5912_v30, %v3106_v57  ;;  %v2833_v25 = vand.u32 2147483647, %v8388_v35  ;;  %v2835_v9 = vand.u32 2147483648, %v8388_v35  ;;  %v3333_v48 = vld [vmem:[%s10045_s4 + $0x70] sm:$0xff] }
 0x35a   :  { %v3043_v54 = vmul.f32 %v3027_v0, %v8398_v58  ;;  %5913 = vrcp.f32 %v8446_v51  ;;  %v2827_v1 = vmul.f32 %v5910_v37, %v2826_v49  ;;  %vm2830_vm0 = vweird.f32 %v5910_v37  ;;  %3562 = vmatpush.msra.mxu1 %v3333_v48  ;;  %v2566_v0 = vpop.f32.mrf.mxu1 }
 0x35b   :  { %3298 = vst.msk [vmem:[#allocation4 + $0x18] sm:$0xff] %vm3295_vm7, %v3281_v50  ;;  %v3202_v61 = vsub.f32 1.0, %v3186_v46  ;;  %v2625_v24 = vadd.f32 %v2604_v29, %v8200_v31  ;;  %v8462_v8 = vmul.f32 0.5, %v8265_v15  ;;  %5915 = vpow2.f32 %v3160_v62  ;;  %v2607_v46 = vpop.f32.mrf.mxu2 }
 0x35c   :  { %v3059_v12 = vadd.f32 -0.28449672, %v3043_v54  ;;  %v8465_v2 = vand.u32 2147483647, %v8453_v19  ;;  %v2828_v56 = vadd.f32 %v5910_v37, %v2827_v1  ;;  %vm2829_vm1 = vweird.f32 %v8388_v35 }
 0x35d   :  { %v3234_v53 = vsub.f32 0.0, %v3202_v61  ;;  %v3162_v34 = vmul.f32 1.442695, %v3140_v59  ;;  %vm2831_vm2 = vmor %vm2829_vm1, %vm2830_vm0  ;;  %v2836_v31 = vor.u32 1.1754944e-38, %v2835_v9  ;;  %v3125_v15 = vsub.f32 0.0, %v8430_v10  ;;  %v5609_v9 = vld [vmem:[%s10045_s4 + $0x200] sm:$0xff] }
 0x35e   :  { %v3075_v47 = vmul.f32 %v3059_v12, %v8398_v58  ;;  %v2710_v14 = vmul.f32 0.3275911, %v8465_v2  ;;  %v2832_v4 = vsel %vm2831_vm2, %v5910_v37, %v2828_v56  ;;  %vm2834_vm3 = vcmp.eq.f32.partialorder %v2833_v25, 8.507059e+37  ;;  %3439 = vmatpush.msrb.mxu3 %v5609_v9 }
 0x35f   :  { %v3250_v41 = vsel %vm3218_vm15, %v3202_v61, %v3234_v53  ;;  %v8477_v35 = vadd.f32 %v8173_v40, %v2625_v24  ;;  %v8482_v32 = vsel %vm2834_vm3, %v2836_v31, %v2832_v4  ;;  %vm3219_vm4 = vcmp.ge.f32.partialorder %v8284_v42, 0.0 }
 0x360   :  { %v5914_v44 = vpop.eup %5913  ;;  %v3266_v11 = vadd.f32 1.0, %v3250_v41  ;;  %v3091_v52 = vadd.f32 0.2548296, %v3075_v47  ;;  %v8484_v43 = vadd.f32 1.0, %v2710_v14  ;;  %v8488_v55 = vmul.f32 0.5, %v8338_v6  ;;  %v5637_v6 = vld [vmem:[%s10045_s4 + $0x2e0] sm:$0xff] }
 0x361   :  { %v2980_v5 = vmul.f32 1.0614054, %v8482_v32  ;;  %v2840_v37 = vmul.f32 %v5914_v44, %v8446_v51  ;;  %v5916_v28 = vpop.eup %5915  ;;  %v3141_v39 = vmul.f32 %v3125_v15, %v8430_v10  ;;  %v2848_v30 = vand.u32 2147483647, %v8446_v51  ;;  %3470 = vmatpush.msrb.mxu0 %v5637_v6 }
 0x362   :  { %v3282_v22 = vmul.f32 %v3266_v11, %v2658_v23  ;;  %v3107_v26 = vmul.f32 %v3091_v52, %v8398_v58  ;;  %5917 = vrcp.f32 %v8484_v43  ;;  %v2850_v50 = vand.u32 2147483648, %v8446_v51 }
 0x363   :  { %v2996_v57 = vadd.f32 -1.4531521, %v2980_v5  ;;  %v2841_v60 = vsub.f32 1.0, %v2840_v37  ;;  %5919 = vpow2.f32 %v3162_v34  ;;  %v3126_v58 = vsub.f32 0.0, %v8465_v2 }
 0x364   :  { %3299 = vst [vmem:[#allocation4 + $0x20] sm:$0xff] %v3282_v22  ;;  %v3187_v23 = vmul.f32 %v5916_v28, %v3107_v26  ;;  %v8505_v10 = vmul.f32 0.70710677, %v8477_v35  ;;  %vm2844_vm5 = vweird.f32 %v8446_v51  ;;  %vm2845_vm14 = vweird.f32 %v5914_v44 }
 0x365   :  { %v3012_v62 = vmul.f32 %v2996_v57, %v8482_v32  ;;  %v2842_v29 = vmul.f32 %v5914_v44, %v2841_v60  ;;  %v3164_v59 = vmul.f32 1.442695, %v3141_v39  ;;  %v2626_v25 = vadd.f32 %v2566_v0, %v8205_v16  ;;  %vm2846_vm8 = vmor %vm2844_vm5, %vm2845_vm14 }
 0x366   :  { %v3203_v49 = vsub.f32 1.0, %v3187_v23  ;;  %v8513_v54 = vand.u32 2147483647, %v8505_v10  ;;  %vm2849_vm6 = vcmp.eq.f32.partialorder %v2848_v30, 8.507059e+37  ;;  %v2851_v24 = vor.u32 1.1754944e-38, %v2850_v50  ;;  %v2569_v30 = vpop.f32.mrf.mxu1 }
 0x367   :  { %v3028_v61 = vadd.f32 1.4214138, %v3012_v62  ;;  %v2843_v1 = vadd.f32 %v5914_v44, %v2842_v29  ;;  %v3142_v56 = vmul.f32 %v3126_v58, %v8465_v2  ;;  %v2627_v16 = vadd.f32 %v2607_v46, %v8207_v13  ;;  %v3331_v13 = vld [vmem:[%s10045_s4 + $0x60] sm:$0xff]  ;;  %v5607_v29 = vld [vmem:[%s10045_s4 + $0x1f0] sm:$0xff] }
 0x368   :  { %v5918_v12 = vpop.eup %5917  ;;  %v3235_v53 = vsub.f32 0.0, %v3203_v49  ;;  %v2711_v34 = vmul.f32 0.3275911, %v8513_v54  ;;  %v2863_v15 = vand.u32 2147483647, %v8484_v43  ;;  %v8535_v2 = vadd.f32 %v8168_v33, %v2626_v25  ;;  %3563 = vmatpush.msra.mxu1 %v3331_v13  ;;  %3440 = vmatpush.msrb.mxu3 %v5607_v29 }
 0x369   :  { %v3044_v45 = vmul.f32 %v3028_v61, %v8482_v32  ;;  %v2847_v47 = vsel %vm2846_vm8, %v5914_v44, %v2843_v1  ;;  %v2855_v31 = vmul.f32 %v5918_v12, %v8484_v43  ;;  %v5920_v14 = vpop.eup %5919  ;;  %vm2860_vm9 = vweird.f32 %v5918_v12 }
 0x36a   :  { %v3251_v41 = vsel %vm3219_vm4, %v3203_v49, %v3235_v53  ;;  %v8530_v51 = vsel %vm2849_vm6, %v2851_v24, %v2847_v47  ;;  %v8532_v4 = vadd.f32 1.0, %v2711_v34  ;;  %v2865_v42 = vand.u32 2147483648, %v8484_v43 }
 0x36b   :  { %v3267_v36 = vadd.f32 1.0, %v3251_v41  ;;  %v3060_v44 = vadd.f32 -0.28449672, %v3044_v45  ;;  %v2981_v11 = vmul.f32 1.0614054, %v8530_v51  ;;  %v2856_v52 = vsub.f32 1.0, %v2855_v31 }
 0x36c   :  { %5921 = vrcp.f32 %v8532_v4  ;;  %v8544_v5 = vadd.f32 %v8173_v40, %v2627_v16  ;;  %v8549_v26 = vmul.f32 0.5, %v8381_v63  ;;  %vm2859_vm10 = vweird.f32 %v8484_v43 }
 0x36d   :  { %v3283_v37 = vmul.f32 %v3267_v36, %v8462_v8  ;;  %v3076_v48 = vmul.f32 %v3060_v44, %v8482_v32  ;;  %v2997_v28 = vadd.f32 -1.4531521, %v2981_v11  ;;  %v2857_v22 = vmul.f32 %v5918_v12, %v2856_v52  ;;  %vm2861_vm12 = vmor %vm2859_vm10, %vm2860_vm9  ;;  %v3327_v36 = vld [vmem:[%s10045_s4 + $0x40] sm:$0xff] }
 0x36e   :  { %5923 = vpow2.f32 %v3164_v59  ;;  %v8552_v39 = vmul.f32 1.442695, %v3142_v56  ;;  %v8557_v8 = vmul.f32 0.70710677, %v8535_v2  ;;  %vm3220_vm11 = vcmp.ge.f32.partialorder %v8355_v18, 0.0  ;;  %v5635_v59 = vld [vmem:[%s10045_s4 + $0x2d0] sm:$0xff] }
 0x36f   :  { %3300 = vst.msk [vmem:[#allocation4 + $0x28] sm:$0xff] %vm3295_vm7, %v3283_v37  ;;  %v3092_v6 = vadd.f32 0.2548296, %v3076_v48  ;;  %v3013_v57 = vmul.f32 %v2997_v28, %v8530_v51  ;;  %v2858_v60 = vadd.f32 %v5918_v12, %v2857_v22  ;;  %vm2864_vm13 = vcmp.eq.f32.partialorder %v2863_v15, 8.507059e+37  ;;  %3471 = vmatpush.msrb.mxu0 %v5635_v59  ;;  %v3325_v37 = vld [vmem:[%s10045_s4 + $0x30] sm:$0xff]  ;;  %v3363_v48 = vld [vmem:[%s10045_s4 + $0x160] sm:$0xff] }
 0x370   :  { %v2866_v63 = vor.u32 1.1754944e-38, %v2865_v42  ;;  %v3127_v43 = vsub.f32 0.0, %v8513_v54  ;;  %v8563_v50 = vmul.f32 0.70710677, %v8544_v5  ;;  %v2696_v62 = vand.u32 2147483647, %v8557_v8 }
 0x371   :  { %v3108_v0 = vmul.f32 %v3092_v6, %v8482_v32  ;;  %v3029_v23 = vadd.f32 1.4214138, %v3013_v57  ;;  %v2862_v58 = vsel %vm2861_vm12, %v5918_v12, %v2858_v60  ;;  %v2878_v49 = vand.u32 2147483647, %v8532_v4  ;;  %v3329_v12 = vld [vmem:[%s10045_s4 + $0x50] sm:$0xff]  ;;  %v5605_v18 = vld [vmem:[%s10045_s4 + $0x1e0] sm:$0xff] }
 0x372   :  { %v5922_v27 = vpop.eup %5921  ;;  %v8570_v46 = vsel %vm2864_vm13, %v2866_v63, %v2862_v58  ;;  %v8577_v25 = vand.u32 2147483647, %v8563_v50  ;;  %v2628_v32 = vadd.f32 %v2569_v30, %v8210_v38  ;;  %v2880_v56 = vand.u32 2147483648, %v8532_v4  ;;  %3564 = vmatpush.msra.mxu1 %v3329_v12  ;;  %3441 = vmatpush.msrb.mxu3 %v5605_v18  ;;  %v5603_v18 = vld [vmem:[%s10045_s4 + $0x1d0] sm:$0xff] }
 0x373   :  { %v3188_v9 = vmul.f32 %v5920_v14, %v3108_v0  ;;  %v3045_v61 = vmul.f32 %v3029_v23, %v8530_v51  ;;  %v2982_v1 = vmul.f32 1.0614054, %v8570_v46  ;;  %v2870_v24 = vmul.f32 %v5922_v27, %v8532_v4 }
 0x374   :  { %v5924_v53 = vpop.eup %5923  ;;  %v3143_v34 = vmul.f32 %v3127_v43, %v8513_v54  ;;  %v2712_v16 = vmul.f32 0.3275911, %v2696_v62  ;;  %v2713_v38 = vmul.f32 0.3275911, %v8577_v25  ;;  %vm2875_vm15 = vweird.f32 %v5922_v27  ;;  %v3365_v54 = vld [vmem:[%s10045_s4 + $0x170] sm:$0xff]  ;;  %3565 = vmatpush.msra.mxu1 %v3327_v36  ;;  %3442 = vmatpush.msrb.mxu3 %v5603_v18 }
 0x375   :  { %v3204_v45 = vsub.f32 1.0, %v3188_v9  ;;  %v3061_v47 = vadd.f32 -0.28449672, %v3045_v61  ;;  %v2998_v31 = vadd.f32 -1.4531521, %v2982_v1  ;;  %v2871_v15 = vsub.f32 1.0, %v2870_v24  ;;  %3591 = vmatpush.msra.mxu2 %v3365_v54 }
 0x376   :  { %v8589_v14 = vadd.f32 1.0, %v2712_v16  ;;  %v3128_v41 = vsub.f32 0.0, %v2696_v62  ;;  %v8591_v13 = vadd.f32 1.0, %v2713_v38  ;;  %vm2874_vm0 = vweird.f32 %v8532_v4  ;;  %3566 = vmatpush.msra.mxu1 %v3325_v37  ;;  %v3357_v36 = vld [vmem:[%s10045_s4 + $0x130] sm:$0xff]  ;;  %v8678_v37 = vld [vmem:[#allocation4] sm:$0xff] }
 0x377   :  { %v3236_v44 = vsub.f32 0.0, %v3204_v45  ;;  %v3077_v11 = vmul.f32 %v3061_v47, %v8530_v51  ;;  %v3014_v52 = vmul.f32 %v2998_v31, %v8570_v46  ;;  %v2872_v42 = vmul.f32 %v5922_v27, %v2871_v15  ;;  %3592 = vmatpush.msra.mxu2 %v3363_v48  ;;  %vm2876_vm3 = vmor %vm2874_vm0, %vm2875_vm15 }
 0x378   :  { %vm8608_vm1 = vcmp.eq.f32.partialorder %v2878_v49, 8.507059e+37  ;;  %v2881_v22 = vor.u32 1.1754944e-38, %v2880_v56  ;;  %5925 = vrcp.f32 %v8589_v14  ;;  %vm3221_vm2 = vcmp.ge.f32.partialorder %v8402_v21, 0.0 }
 0x379   :  { %v3252_v6 = vsel %vm3220_vm11, %v3204_v45, %v3236_v44  ;;  %v3093_v57 = vadd.f32 0.2548296, %v3077_v11  ;;  %v3030_v60 = vadd.f32 1.4214138, %v3014_v52  ;;  %v2873_v30 = vadd.f32 %v5922_v27, %v2872_v42  ;;  %v3359_v45 = vld [vmem:[%s10045_s4 + $0x140] sm:$0xff] }
 0x37a   :  { %v3268_v63 = vadd.f32 1.0, %v3252_v6  ;;  %v3168_v4 = vmul.f32 1.442695, %v3143_v34  ;;  %v3144_v43 = vmul.f32 %v3128_v41, %v2696_v62  ;;  %v8618_v0 = vadd.f32 %v8168_v33, %v2628_v32  ;;  %v3319_v41 = vld [vmem:[%s10045_s4] sm:$0xff] }
 0x37b   :  { %v3109_v23 = vmul.f32 %v3093_v57, %v8530_v51  ;;  %v3046_v58 = vmul.f32 %v3030_v60, %v8570_v46  ;;  %v2877_v29 = vsel %vm2876_vm3, %v5922_v27, %v2873_v30  ;;  %5927 = vrcp.f32 %v8591_v13  ;;  %v3323_v51 = vld [vmem:[%s10045_s4 + $0x20] sm:$0xff]  ;;  %v3361_v27 = vld [vmem:[%s10045_s4 + $0x150] sm:$0xff] }
 0x37c   :  { %v3284_v49 = vmul.f32 %v3268_v63, %v8488_v55  ;;  %v8629_v62 = vsel %vm8608_vm1, %v2881_v22, %v2877_v29  ;;  %v2893_v59 = vand.u32 2147483647, %v8589_v14  ;;  %v2895_v32 = vand.u32 2147483648, %v8589_v14  ;;  %3567 = vmatpush.msra.mxu1 %v3323_v51  ;;  %3593 = vmatpush.msra.mxu2 %v3361_v27  ;;  %v3355_v6 = vld [vmem:[%s10045_s4 + $0x120] sm:$0xff]  ;;  %v5687_v57 = vld [vmem:[%s10045_s4 + $0x3f0] sm:$0xff] }
 0x37d   :  { %v3189_v9 = vmul.f32 %v5924_v53, %v3109_v23  ;;  %v3062_v61 = vadd.f32 -0.28449672, %v3046_v58  ;;  %5929 = vpow2.f32 %v8552_v39  ;;  %v2983_v55 = vmul.f32 1.0614054, %v8629_v62  ;;  %v5633_v39 = vld [vmem:[%s10045_s4 + $0x2c0] sm:$0xff] }
 0x37e   :  { %v8641_v1 = vpop.eup %5925  ;;  %3301 = vst [vmem:[#allocation4 + $0x30] sm:$0xff] %v3284_v49  ;;  %v8644_v24 = vmul.f32 0.5, %v8434_v20  ;;  %5931 = vpow2.f32 %v3168_v4  ;;  %v3129_v12 = vsub.f32 0.0, %v8577_v25  ;;  %v8648_v56 = vmul.f32 0.70710677, %v8618_v0  ;;  %3472 = vmatpush.msrb.mxu0 %v5633_v39  ;;  %v3321_v20 = vld [vmem:[%s10045_s4 + $0x10] sm:$0xff]  ;;  %3594 = vmatpush.msra.mxu2 %v3359_v45  ;;  %v2610_v49 = vpop.f32.mrf.mxu2 }
 0x37f   :  { %v3205_v53 = vsub.f32 1.0, %v3189_v9  ;;  %v3078_v34 = vmul.f32 %v3062_v61, %v8570_v46  ;;  %v2999_v16 = vadd.f32 -1.4531521, %v2983_v55  ;;  %v2885_v38 = vmul.f32 %v8641_v1, %v8589_v14  ;;  %3568 = vmatpush.msra.mxu1 %v3321_v20  ;;  %v5685_v9 = vld [vmem:[%s10045_s4 + $0x3e0] sm:$0xff]  ;;  %v8731_v20 = vld [vmem:[#allocation4 + $0x8] sm:$0xff] }
 0x380   :  { %vm2889_vm4 = vweird.f32 %v8589_v14  ;;  %vm8663_vm5 = vcmp.eq.f32.partialorder %v2893_v59, 8.507059e+37  ;;  %v2896_v31 = vor.u32 1.1754944e-38, %v2895_v32  ;;  %v8667_v15 = vmul.f32 1.442695, %v3144_v43  ;;  %3595 = vmatpush.msra.mxu2 %v3357_v36 }
 0x381   :  { %v8675_v54 = vpop.eup %5927  ;;  %v3237_v44 = vsub.f32 0.0, %v3205_v53  ;;  %v3094_v11 = vadd.f32 0.2548296, %v3078_v34  ;;  %v3015_v52 = vmul.f32 %v2999_v16, %v8629_v62  ;;  %v2886_v42 = vsub.f32 1.0, %v2885_v38  ;;  %3569 = vmatpush.msra.mxu1 %v3319_v41 }
 0x382   :  { %vm2890_vm14 = vweird.f32 %v8641_v1  ;;  %v2900_v48 = vmul.f32 %v8675_v54, %v8591_v13  ;;  %v2908_v28 = vand.u32 2147483647, %v8591_v13  ;;  %v8685_v22 = vand.u32 2147483647, %v8648_v56  ;;  %3570 = vmatmul.f32.vlgmr.msra.gmra.mxu1 %v8678_v37  ;;  %3596 = vmatpush.msra.mxu2 %v3355_v6 }
 0x383   :  { %v5930_v60 = vpop.eup %5929  ;;  %v3253_v30 = vsel %vm3221_vm2, %v3205_v53, %v3237_v44  ;;  %v3110_v63 = vmul.f32 %v3094_v11, %v8570_v46  ;;  %v3031_v4 = vadd.f32 1.4214138, %v3015_v52  ;;  %v2887_v43 = vmul.f32 %v8641_v1, %v2886_v42  ;;  %v3353_v46 = vld [vmem:[%s10045_s4 + $0x110] sm:$0xff]  ;;  %3739 = vmatpush.msrb.mxu1 %v5687_v57  ;;  %vm2891_vm8 = vmor %vm2889_vm4, %vm2890_vm14  ;;  %v3351_v53 = vld [vmem:[%s10045_s4 + $0x100] sm:$0xff] }
 0x384   :  { %v8701_v23 = vpop.eup %5931  ;;  %v3269_v58 = vadd.f32 1.0, %v3253_v30  ;;  %v2901_v29 = vsub.f32 1.0, %v2900_v48  ;;  %vm2904_vm6 = vweird.f32 %v8591_v13  ;;  %v2714_v21 = vmul.f32 0.3275911, %v8685_v22  ;;  %3597 = vmatpush.msra.mxu2 %v3353_v46  ;;  %v8759_v11 = vld [vmem:[#allocation4 + $0x10] sm:$0xff] }
 0x385   :  { %v3190_v59 = vmul.f32 %v5930_v60, %v3110_v63  ;;  %v3047_v32 = vmul.f32 %v3031_v4, %v8629_v62  ;;  %v2888_v51 = vadd.f32 %v8641_v1, %v2887_v43  ;;  %v2910_v27 = vand.u32 2147483648, %v8591_v13  ;;  %3740 = vmatpush.msrb.mxu1 %v5685_v9  ;;  %v5599_v13 = vld [vmem:[%s10045_s4 + $0x1b0] sm:$0xff]  ;;  %v5597_v4 = vld [vmem:[%s10045_s4 + $0x1a0] sm:$0xff] }
 0x386   :  { %v3285_v61 = vmul.f32 %v3269_v58, %v8549_v26  ;;  %v2902_v55 = vmul.f32 %v8675_v54, %v2901_v29  ;;  %vm2905_vm9 = vweird.f32 %v8675_v54  ;;  %v8721_v39 = vadd.f32 1.0, %v2714_v21  ;;  %v5683_v26 = vld [vmem:[%s10045_s4 + $0x3d0] sm:$0xff]  ;;  %3598 = vmatpush.msra.mxu2 %v3351_v53  ;;  %v5677_v29 = vld [vmem:[%s10045_s4 + $0x3a0] sm:$0xff] }
 0x387   :  { %v3206_v34 = vsub.f32 1.0, %v3190_v59  ;;  %v3063_v16 = vadd.f32 -0.28449672, %v3047_v32  ;;  %v2892_v14 = vsel %vm2891_vm8, %v8641_v1, %v2888_v51  ;;  %v2629_v38 = vadd.f32 %v2610_v49, %v8216_v7  ;;  %v5601_v7 = vld [vmem:[%s10045_s4 + $0x1c0] sm:$0xff]  ;;  %vm8755_vm10 = vmor %vm2904_vm6, %vm2905_vm9  ;;  %3741 = vmatpush.msrb.mxu1 %v5683_v26  ;;  %5649 = vmatmul.msk.f32.vlgmr.msra.gmra.mxu2 %vm3295_vm7, %v8731_v20  ;;  %v5679_v48 = vld [vmem:[%s10045_s4 + $0x3b0] sm:$0xff] }
 0x388   :  { %3302 = vst.msk [vmem:[#allocation4 + $0x38] sm:$0xff] %vm3295_vm7, %v3285_v61  ;;  %v8736_v45 = vsel %vm8663_vm5, %v2896_v31, %v2892_v14  ;;  %v2903_v41 = vadd.f32 %v8675_v54, %v2902_v55  ;;  %v3145_v36 = vmul.f32 %v3129_v12, %v8577_v25  ;;  %5933 = vrcp.f32 %v8721_v39  ;;  %v5681_v1 = vld [vmem:[%s10045_s4 + $0x3c0] sm:$0xff]  ;;  %3443 = vmatpush.msrb.mxu3 %v5601_v7  ;;  %v5595_v59 = vld [vmem:[%s10045_s4 + $0x190] sm:$0xff] }
 0x389   :  { %v3238_v47 = vsub.f32 0.0, %v3206_v34  ;;  %v3079_v31 = vmul.f32 %v3063_v16, %v8629_v62  ;;  %v2984_v44 = vmul.f32 1.0614054, %v8736_v45  ;;  %v2911_v12 = vor.u32 1.1754944e-38, %v2910_v27  ;;  %3742 = vmatpush.msrb.mxu1 %v5681_v1  ;;  %v5675_v32 = vld [vmem:[%s10045_s4 + $0x390] sm:$0xff] }
 0x38a   :  { %vm3222_vm11 = vcmp.ge.f32.partialorder %v8453_v19, 0.0  ;;  %v2907_v52 = vsel %vm8755_vm10, %v8675_v54, %v2903_v41  ;;  %vm2909_vm12 = vcmp.eq.f32.partialorder %v2908_v28, 8.507059e+37  ;;  %v8766_v42 = vadd.f32 %v8173_v40, %v2629_v38  ;;  %v2572_v54 = vpop.f32.mrf.mxu1  ;;  %3444 = vmatpush.msrb.mxu3 %v5599_v13  ;;  %3573 = vmatmul.f32.gmra.mxu1 %v8759_v11  ;;  %v2613_v41 = vpop.f32.mrf.mxu2 }
 0x38b   :  { %v3254_v19 = vsel %vm3222_vm11, %v3206_v34, %v3238_v47  ;;  %v3095_v6 = vadd.f32 0.2548296, %v3079_v31  ;;  %v3000_v57 = vadd.f32 -1.4531521, %v2984_v44  ;;  %v8776_v60 = vsel %vm2909_vm12, %v2911_v12, %v2907_v52  ;;  %3743 = vmatpush.msrb.mxu1 %v5679_v48  ;;  %v5673_v34 = vld [vmem:[%s10045_s4 + $0x380] sm:$0xff] }
 0x38c   :  { %v3270_v28 = vadd.f32 1.0, %v3254_v19  ;;  %v8779_v30 = vmul.f32 0.5, %v8477_v35  ;;  %vm3223_vm13 = vcmp.ge.f32.partialorder %v8505_v10, 0.0  ;;  %v2985_v63 = vmul.f32 1.0614054, %v8776_v60  ;;  %v5631_v35 = vld [vmem:[%s10045_s4 + $0x2b0] sm:$0xff]  ;;  %3445 = vmatpush.msrb.mxu3 %v5597_v4 }
 0x38d   :  { %v3111_v43 = vmul.f32 %v3095_v6, %v8629_v62  ;;  %v3016_v18 = vmul.f32 %v3000_v57, %v8736_v45  ;;  %5935 = vpow2.f32 %v8667_v15  ;;  %v8790_v58 = vmul.f32 1.442695, %v3145_v36  ;;  %3473 = vmatpush.msrb.mxu0 %v5631_v35  ;;  %3744 = vmatpush.msrb.mxu1 %v5677_v29  ;;  %v8835_v36 = vld [vmem:[#allocation4 + $0x20] sm:$0xff]  ;;  %v5627_v57 = vld [vmem:[%s10045_s4 + $0x290] sm:$0xff]  ;;  %v5622_v10 = vld [vmem:[%s10045_s4 + $0x268] sm:$0xff] }
 0x38e   :  { %v8798_v21 = vpop.eup %5933  ;;  %v8801_v62 = vmul.f32 %v3270_v28, %v8644_v24  ;;  %v3001_v49 = vadd.f32 -1.4531521, %v2985_v63  ;;  %v8804_v15 = vmul.f32 0.70710677, %v8766_v42  ;;  %v2630_v46 = vadd.f32 %v2572_v54, %v8410_v3  ;;  %3446 = vmatpush.msrb.mxu3 %v5595_v59  ;;  %v8817_v3 = vld [vmem:[#allocation4 + $0x18] sm:$0xff]  ;;  %v5629_v52 = vld [vmem:[%s10045_s4 + $0x2a0] sm:$0xff] }
 0x38f   :  { %v3191_v51 = vmul.f32 %v8701_v23, %v3111_v43  ;;  %v3032_v27 = vadd.f32 1.4214138, %v3016_v18  ;;  %v2915_v24 = vmul.f32 %v8798_v21, %v8721_v39  ;;  %v3130_v9 = vsub.f32 0.0, %v8685_v22  ;;  %v5593_v23 = vld [vmem:[%s10045_s4 + $0x180] sm:$0xff]  ;;  %3745 = vmatpush.msrb.mxu1 %v5675_v32  ;;  %5650 = vmatmul.msk.f32.gmra.mxu2 %vm3295_vm7, %v8817_v3  ;;  %v5624_v54 = vld [vmem:[%s10045_s4 + $0x278] sm:$0xff]  ;;  %v5671_v28 = vld [vmem:[%s10045_s4 + $0x370] sm:$0xff] }
 0x390   :  { %v3017_v61 = vmul.f32 %v3001_v49, %v8776_v60  ;;  %v2925_v55 = vand.u32 2147483648, %v8721_v39  ;;  %v8822_v53 = vand.u32 2147483647, %v8804_v15  ;;  %v8825_v26 = vadd.f32 %v8168_v33, %v2630_v46  ;;  %3447 = vmatpush.msrb.mxu3 %v5593_v23  ;;  %3474 = vmatpush.msrb.mxu0 %v5629_v52  ;;  %v5669_v35 = vld [vmem:[%s10045_s4 + $0x360] sm:$0xff]  ;;  %v5620_v46 = vld [vmem:[%s10045_s4 + $0x258] sm:$0xff]  ;;  %v5667_v59 = vld [vmem:[%s10045_s4 + $0x350] sm:$0xff] }
 0x391   :  { %v3207_v16 = vsub.f32 1.0, %v3191_v51  ;;  %v3048_v14 = vmul.f32 %v3032_v27, %v8736_v45  ;;  %v2916_v38 = vsub.f32 1.0, %v2915_v24  ;;  %vm2919_vm15 = vweird.f32 %v8721_v39  ;;  %3448 = vmatmul.f32.vlgmr.msrb.gmra.mxu3 %v8835_v36  ;;  %3746 = vmatpush.msrb.mxu1 %v5673_v34  ;;  %v8899_v27 = vld [vmem:[#allocation4 + $0x28] sm:$0xff] }
 0x392   :  { %v3033_v33 = vadd.f32 1.4214138, %v3017_v61  ;;  %vm2920_vm0 = vweird.f32 %v8798_v21  ;;  %v2923_v7 = vand.u32 2147483647, %v8721_v39  ;;  %v2715_v1 = vmul.f32 0.3275911, %v8822_v53  ;;  %3576 = vmatmul.f32.gmra.mxu1 %v8835_v36  ;;  %3490 = vmatpush.msra.mxu3 %v5624_v54 }
 0x393   :  { %v5936_v47 = vpop.eup %5935  ;;  %v3239_v31 = vsub.f32 0.0, %v3207_v16  ;;  %v3064_v44 = vadd.f32 -0.28449672, %v3048_v14  ;;  %v2917_v25 = vmul.f32 %v8798_v21, %v2916_v38  ;;  %v8845_v12 = vmul.f32 0.70710677, %v8825_v26  ;;  %vm8872_vm1 = vmor %vm2919_vm15, %vm2920_vm0  ;;  %3747 = vmatpush.msrb.mxu1 %v5671_v28  ;;  %3475 = vmatpush.msrb.mxu0 %v5627_v57  ;;  %v5625_v39 = vld [vmem:[%s10045_s4 + $0x280] sm:$0xff] }
 0x394   :  { %v3049_v13 = vmul.f32 %v3033_v33, %v8776_v60  ;;  %v2926_v48 = vor.u32 1.1754944e-38, %v2925_v55  ;;  %v8851_v19 = vadd.f32 1.0, %v2715_v1  ;;  %v2631_v6 = vadd.f32 %v2613_v41, %v8416_v17  ;;  %3491 = vmatpush.msra.mxu3 %v5622_v10  ;;  %v5616_v1 = vld [vmem:[%s10045_s4 + $0x238] sm:$0xff]  ;;  %v5614_v52 = vld [vmem:[%s10045_s4 + $0x228] sm:$0xff]  ;;  %v5699_v57 = vld [vmem:[%s10045_s4 + $0x450] sm:$0xff] }
 0x395   :  { %v3255_v63 = vsel %vm3223_vm13, %v3207_v16, %v3239_v31  ;;  %v3080_v17 = vmul.f32 %v3064_v44, %v8736_v45  ;;  %v2918_v4 = vadd.f32 %v8798_v21, %v2917_v25  ;;  %v8877_v18 = vand.u32 2147483647, %v8845_v12  ;;  %3748 = vmatpush.msrb.mxu1 %v5669_v35  ;;  %3476 = vmatpush.msrb.mxu0 %v5625_v39  ;;  %v8919_v16 = vld [vmem:[#allocation4 + $0x30] sm:$0xff]  ;;  %v5701_v25 = vld [vmem:[%s10045_s4 + $0x460] sm:$0xff] }
 0x396   :  { %v3271_v29 = vadd.f32 1.0, %v3255_v63  ;;  %v3065_v49 = vadd.f32 -0.28449672, %v3049_v13  ;;  %5937 = vrcp.f32 %v8851_v19  ;;  %vm2924_vm2 = vcmp.eq.f32.partialorder %v2923_v7, 8.507059e+37  ;;  %3492 = vmatpush.msra.mxu3 %v5620_v46  ;;  %5641 = vmatmul.msk.f32.vlgmr.msrb.gmra.mxu0 %vm3295_vm7, %v8899_v27  ;;  %v5659_v35 = vld [vmem:[%s10045_s4 + $0x310] sm:$0xff] }
 0x397   :  { %v3096_v32 = vadd.f32 0.2548296, %v3080_v17  ;;  %5939 = vpow2.f32 %v8790_v58  ;;  %v2922_v51 = vsel %vm8872_vm1, %v8798_v21, %v2918_v4  ;;  %v8906_v23 = vadd.f32 %v8173_v40, %v2631_v6  ;;  %v5618_v58 = vld [vmem:[%s10045_s4 + $0x248] sm:$0xff]  ;;  %v5665_v21 = vld [vmem:[%s10045_s4 + $0x340] sm:$0xff]  ;;  %3749 = vmatpush.msrb.mxu1 %v5667_v59  ;;  %v5703_v40 = vld [vmem:[%s10045_s4 + $0x470] sm:$0xff]  ;;  %5651 = vmatmul.msk.f32.gmra.mxu2 %vm3295_vm7, %v8899_v27 }
 0x398   :  { %v3287_v24 = vmul.f32 %v3271_v29, %v8779_v30  ;;  %v3081_v61 = vmul.f32 %v3065_v49, %v8776_v60  ;;  %v8903_v55 = vsel %vm2924_vm2, %v2926_v48, %v2922_v51  ;;  %v3146_v38 = vmul.f32 %v3130_v9, %v8685_v22  ;;  %3493 = vmatpush.msra.mxu3 %v5618_v58  ;;  %v5663_v22 = vld [vmem:[%s10045_s4 + $0x330] sm:$0xff]  ;;  %v5661_v6 = vld [vmem:[%s10045_s4 + $0x320] sm:$0xff]  ;;  %v5612_v17 = vld [vmem:[%s10045_s4 + $0x218] sm:$0xff] }
 0x399   :  { %v3112_v34 = vmul.f32 %v3096_v32, %v8736_v45  ;;  %v2986_v30 = vmul.f32 1.0614054, %v8903_v55  ;;  %v2716_v41 = vmul.f32 0.3275911, %v8877_v18  ;;  %v8931_v45 = vmul.f32 0.5, %v8535_v2  ;;  %3750 = vmatpush.msrb.mxu1 %v5665_v21  ;;  %3776 = vmatpush.msrb.mxu2 %v5703_v40  ;;  %v5697_v29 = vld [vmem:[%s10045_s4 + $0x440] sm:$0xff] }
 0x39a   :  { %3304 = vst.msk [vmem:[#allocation4 + $0x48] sm:$0xff] %vm3295_vm7, %v3287_v24  ;;  %v3097_v14 = vadd.f32 0.2548296, %v3081_v61  ;;  %v8942_v31 = vmul.f32 0.5, %v8544_v5  ;;  %3451 = vmatmul.f32.gmra.mxu3 %v8919_v16  ;;  %vm3224_vm3 = vcmp.ge.f32.partialorder %v8557_v8, 0.0  ;;  %3579 = vmatmul.f32.gmra.mxu1 %v8919_v16  ;;  %vm3225_vm4 = vcmp.ge.f32.partialorder %v8563_v50, 0.0 }
 0x39b   :  { %v3192_v33 = vmul.f32 %v5936_v47, %v3112_v34  ;;  %v3002_v7 = vadd.f32 -1.4531521, %v2986_v30  ;;  %v8945_v44 = vadd.f32 1.0, %v2716_v41  ;;  %v8948_v47 = vmul.f32 0.70710677, %v8906_v23  ;;  %3494 = vmatpush.msra.mxu3 %v5616_v1  ;;  %3751 = vmatpush.msrb.mxu1 %v5663_v22  ;;  %v8989_v24 = vld [vmem:[#allocation4 + $0x38] sm:$0xff] }
 0x39c   :  { %v8939_v9 = vpop.eup %5937  ;;  %v3113_v2 = vmul.f32 %v3097_v14, %v8776_v60  ;;  %v3174_v28 = vmul.f32 1.442695, %v3146_v38  ;;  %v2938_v63 = vand.u32 2147483647, %v8851_v19  ;;  %3777 = vmatpush.msrb.mxu2 %v5701_v25  ;;  %v2940_v39 = vand.u32 2147483648, %v8851_v19  ;;  %v5610_v61 = vld [vmem:[%s10045_s4 + $0x208] sm:$0xff] }
 0x39d   :  { %v5940_v5 = vpop.eup %5939  ;;  %v3208_v13 = vsub.f32 1.0, %v3192_v33  ;;  %v3018_v60 = vmul.f32 %v3002_v7, %v8903_v55  ;;  %v2930_v48 = vmul.f32 %v8939_v9, %v8851_v19  ;;  %5941 = vrcp.f32 %v8945_v44  ;;  %3495 = vmatpush.msra.mxu3 %v5614_v52  ;;  %3752 = vmatpush.msrb.mxu1 %v5661_v6  ;;  %v5657_v58 = vld [vmem:[%s10045_s4 + $0x300] sm:$0xff]  ;;  %v5695_v30 = vld [vmem:[%s10045_s4 + $0x430] sm:$0xff]  ;;  %v5608_v41 = vld [vmem:[%s10045_s4 + $0x1f8] sm:$0xff] }
 0x39e   :  { %v3193_v54 = vmul.f32 %v5940_v5, %v3113_v2  ;;  %v8982_v46 = vand.u32 2147483647, %v8948_v47  ;;  %3778 = vmatpush.msrb.mxu2 %v5699_v57  ;;  %vm2935_vm5 = vweird.f32 %v8939_v9  ;;  %5943 = vpow2.f32 %v3174_v28  ;;  %5642 = vmatmul.msk.f32.gmra.mxu0 %vm3295_vm7, %v8989_v24  ;;  %v5693_v2 = vld [vmem:[%s10045_s4 + $0x420] sm:$0xff]  ;;  %v5606_v5 = vld [vmem:[%s10045_s4 + $0x1e8] sm:$0xff]  ;;  %v5604_v28 = vld [vmem:[%s10045_s4 + $0x1d8] sm:$0xff] }
 0x39f   :  { %v3240_v4 = vsub.f32 0.0, %v3208_v13  ;;  %v3034_v43 = vadd.f32 1.4214138, %v3018_v60  ;;  %v2931_v10 = vsub.f32 1.0, %v2930_v48  ;;  %3496 = vmatpush.msra.mxu3 %v5612_v17  ;;  %3753 = vmatpush.msrb.mxu1 %v5659_v35  ;;  %vm2934_vm14 = vweird.f32 %v8851_v19 }
 0x3a0   :  { %v3209_v49 = vsub.f32 1.0, %v3193_v54  ;;  %v2717_v34 = vmul.f32 0.3275911, %v8982_v46  ;;  %3779 = vmatpush.msrb.mxu2 %v5697_v29  ;;  %vm9003_vm6 = vcmp.eq.f32.partialorder %v2938_v63, 8.507059e+37  ;;  %vm2936_vm8 = vmor %vm2934_vm14, %vm2935_vm5  ;;  %v2941_v1 = vor.u32 1.1754944e-38, %v2940_v39  ;;  %v5602_v39 = vld [vmem:[%s10045_s4 + $0x1c8] sm:$0xff] }
 0x3a1   :  { %v3256_v59 = vsel %vm3224_vm3, %v3208_v13, %v3240_v4  ;;  %v3050_v32 = vmul.f32 %v3034_v43, %v8903_v55  ;;  %v2932_v51 = vmul.f32 %v8939_v9, %v2931_v10  ;;  %3497 = vmatpush.msra.mxu3 %v5610_v61  ;;  %5652 = vmatmul.msk.f32.gmra.mxu2 %vm3295_vm7, %v8989_v24  ;;  %v3131_v60 = vsub.f32 0.0, %v8822_v53  ;;  %v5640_v43 = vld [vmem:[%s10045_s4 + $0x2f8] sm:$0xff] }
 0x3a2   :  { %v3272_v21 = vadd.f32 1.0, %v3256_v59  ;;  %v3241_v8 = vsub.f32 0.0, %v3209_v49  ;;  %v9021_v22 = vadd.f32 1.0, %v2717_v34  ;;  %3754 = vmatpush.msrb.mxu1 %v5657_v58  ;;  %3780 = vmatpush.msrb.mxu2 %v5695_v30  ;;  %v2953_v17 = vand.u32 2147483647, %v8945_v44 }
 0x3a3   :  { %v3066_v40 = vadd.f32 -0.28449672, %v3050_v32  ;;  %v2933_v14 = vadd.f32 %v8939_v9, %v2932_v51  ;;  %v9012_v33 = vpop.eup %5941  ;;  %3454 = vmatmul.f32.gmra.mxu3 %v8801_v62  ;;  %3755 = vmatmul.f32.vlgmr.msrb.gmra.mxu1 %v8801_v62  ;;  %v2955_v4 = vand.u32 2147483648, %v8945_v44  ;;  %v3147_v59 = vmul.f32 %v3131_v60, %v8822_v53  ;;  %v5638_v32 = vld [vmem:[%s10045_s4 + $0x2e8] sm:$0xff]  ;;  %v5596_v60 = vld [vmem:[%s10045_s4 + $0x198] sm:$0xff] }
 0x3a4   :  { %v9015_v7 = vmul.f32 %v3272_v21, %v8931_v45  ;;  %v3257_v19 = vsel %vm3225_vm4, %v3209_v49, %v3241_v8  ;;  %v2945_v52 = vmul.f32 %v9012_v33, %v8945_v44  ;;  %5945 = vrcp.f32 %v9021_v22  ;;  %3498 = vmatpush.msra.mxu3 %v5608_v41  ;;  %3781 = vmatpush.msrb.mxu2 %v5693_v2  ;;  %v5944_v63 = vpop.eup %5943  ;;  %v9063_v49 = vld [vmem:[#allocation4 + $0x48] sm:$0xff]  ;;  %v5636_v21 = vld [vmem:[%s10045_s4 + $0x2d8] sm:$0xff] }
 0x3a5   :  { %v3273_v25 = vadd.f32 1.0, %v3257_v19  ;;  %v3082_v45 = vmul.f32 %v3066_v40, %v8903_v55  ;;  %v2937_v50 = vsel %vm2936_vm8, %v8939_v9, %v2933_v14  ;;  %v5691_v9 = vld [vmem:[%s10045_s4 + $0x410] sm:$0xff]  ;;  %vm2950_vm9 = vweird.f32 %v9012_v33  ;;  %3527 = vmatpush.msra.mxu0 %v5640_v43  ;;  %v5634_v19 = vld [vmem:[%s10045_s4 + $0x2c8] sm:$0xff] }
 0x3a6   :  { %v9038_v13 = vsel %vm9003_vm6, %v2941_v1, %v2937_v50  ;;  %v2946_v54 = vsub.f32 1.0, %v2945_v52  ;;  %3499 = vmatpush.msra.mxu3 %v5606_v5  ;;  %3782 = vmatpush.msrb.mxu2 %v5691_v9  ;;  %vm2949_vm10 = vweird.f32 %v8945_v44  ;;  %vm2954_vm12 = vcmp.eq.f32.partialorder %v2953_v17, 8.507059e+37  ;;  %v5600_v44 = vld [vmem:[%s10045_s4 + $0x1b8] sm:$0xff]  ;;  %v5630_v17 = vld [vmem:[%s10045_s4 + $0x2a8] sm:$0xff] }
 0x3a7   :  { %v3289_v48 = vmul.f32 %v3273_v25, %v8942_v31  ;;  %v3098_v6 = vadd.f32 0.2548296, %v3082_v45  ;;  %v2987_v57 = vmul.f32 1.0614054, %v9038_v13  ;;  %v5689_v31 = vld [vmem:[%s10045_s4 + $0x400] sm:$0xff]  ;;  %3528 = vmatpush.msra.mxu0 %v5638_v32  ;;  %vm2951_vm11 = vmor %vm2949_vm10, %vm2950_vm9  ;;  %v2956_v53 = vor.u32 1.1754944e-38, %v2955_v4 }
 0x3a8   :  { %v2947_v29 = vmul.f32 %v9012_v33, %v2946_v54  ;;  %3500 = vmatpush.msra.mxu3 %v5604_v28  ;;  %3783 = vmatpush.msrb.mxu2 %v5689_v31  ;;  %v3176_v14 = vmul.f32 1.442695, %v3147_v59  ;;  %v3132_v41 = vsub.f32 0.0, %v8877_v18  ;;  %vm3226_vm13 = vcmp.ge.f32.partialorder %v8648_v56, 0.0  ;;  %v5632_v5 = vld [vmem:[%s10045_s4 + $0x2b8] sm:$0xff]  ;;  %v5594_v4 = vld [vmem:[%s10045_s4 + $0x188] sm:$0xff] }
 0x3a9   :  { %3306 = vst.msk [vmem:[#allocation4 + $0x58] sm:$0xff] %vm3295_vm7, %v3289_v48  ;;  %v3114_v10 = vmul.f32 %v3098_v6, %v8903_v55  ;;  %v3003_v35 = vadd.f32 -1.4531521, %v2987_v57  ;;  %5643 = vmatmul.msk.f32.gmra.mxu0 %vm3295_vm7, %v9063_v49  ;;  %5705 = vmatmul.msk.f32.vlgmr.msrb.gmra.mxu2 %vm3295_vm7, %v9063_v49  ;;  %v2968_v50 = vand.u32 2147483647, %v9021_v22  ;;  %v2970_v52 = vand.u32 2147483648, %v9021_v22 }
 0x3aa   :  { %v2948_v61 = vadd.f32 %v9012_v33, %v2947_v29  ;;  %v9075_v58 = vpop.eup %5945  ;;  %3501 = vmatpush.msra.mxu3 %v5602_v39  ;;  %3529 = vmatpush.msra.mxu0 %v5636_v21  ;;  %v2666_v54 = vmul.f32 0.5, %v8618_v0  ;;  %5947 = vpow2.f32 %v3176_v14  ;;  %vm2964_vm0 = vweird.f32 %v9021_v22  ;;  %v3350_v29 = vld [vmem:[%s10045_s4 + $0xf8] sm:$0xff]  ;;  %v5626_v32 = vld [vmem:[%s10045_s4 + $0x288] sm:$0xff] }
 0x3ab   :  { %v3194_v55 = vmul.f32 %v5944_v63, %v3114_v10  ;;  %v3019_v51 = vmul.f32 %v3003_v35, %v9038_v13  ;;  %v2960_v40 = vmul.f32 %v9075_v58, %v9021_v22  ;;  %3457 = vmatmul.f32.gmra.mxu3 %v9015_v7  ;;  %3758 = vmatmul.f32.gmra.mxu1 %v9015_v7  ;;  %vm2965_vm15 = vweird.f32 %v9075_v58  ;;  %v5628_v35 = vld [vmem:[%s10045_s4 + $0x298] sm:$0xff] }
 0x3ac   :  { %v2952_v30 = vsel %vm2951_vm11, %v9012_v33, %v2948_v61  ;;  %v5598_v33 = vld [vmem:[%s10045_s4 + $0x1a8] sm:$0xff]  ;;  %3530 = vmatpush.msra.mxu0 %v5634_v19  ;;  %3502 = vmatpush.msra.mxu3 %v5600_v44  ;;  %v3148_v63 = vmul.f32 %v3132_v41, %v8877_v18  ;;  %vm2966_vm1 = vmor %vm2964_vm0, %vm2965_vm15  ;;  %v2971_v18 = vor.u32 1.1754944e-38, %v2970_v52  ;;  %vm2969_vm2 = vcmp.eq.f32.partialorder %v2968_v50, 8.507059e+37 }
 0x3ad   :  { %v3210_v8 = vsub.f32 1.0, %v3194_v55  ;;  %v3035_v34 = vadd.f32 1.4214138, %v3019_v51  ;;  %v9092_v38 = vsel %vm2954_vm12, %v2956_v53, %v2952_v30  ;;  %v2961_v45 = vsub.f32 1.0, %v2960_v40  ;;  %v3366_v53 = vld [vmem:[%s10045_s4 + $0x178] sm:$0xff]  ;;  %v3364_v40 = vld [vmem:[%s10045_s4 + $0x168] sm:$0xff] }
 0x3ae   :  { %v2988_v25 = vmul.f32 1.0614054, %v9092_v38  ;;  %3531 = vmatpush.msra.mxu0 %v5632_v5  ;;  %3503 = vmatpush.msra.mxu3 %v5598_v33  ;;  %v3178_v55 = vmul.f32 1.442695, %v3148_v63  ;;  %v3133_v61 = vsub.f32 0.0, %v8982_v46  ;;  %v3346_v30 = vld [vmem:[%s10045_s4 + $0xd8] sm:$0xff] }
 0x3af   :  { %v3242_v1 = vsub.f32 0.0, %v3210_v8  ;;  %v3051_v2 = vmul.f32 %v3035_v34, %v9038_v13  ;;  %v2962_v57 = vmul.f32 %v9075_v58, %v2961_v45  ;;  %v3344_v33 = vld [vmem:[%s10045_s4 + $0xc8] sm:$0xff]  ;;  %vm3227_vm3 = vcmp.ge.f32.partialorder %v8804_v15, 0.0 }
 0x3b0   :  { %v3004_v6 = vadd.f32 -1.4531521, %v2988_v25  ;;  %v9116_v56 = vld [vmem:[#allocation4 + $0x58] sm:$0xff]  ;;  %3532 = vmatpush.msra.mxu0 %v5630_v17  ;;  %3504 = vmatpush.msra.mxu3 %v5596_v60  ;;  %v5948_v34 = vpop.eup %5947  ;;  %5949 = vpow2.f32 %v3178_v55  ;;  %v3149_v19 = vmul.f32 %v3133_v61, %v8982_v46  ;;  %v3360_v50 = vld [vmem:[%s10045_s4 + $0x148] sm:$0xff]  ;;  %v2667_v15 = vmul.f32 0.5, %v8766_v42 }
 0x3b1   :  { %v3258_v9 = vsel %vm3226_vm13, %v3210_v8, %v3242_v1  ;;  %v3067_v48 = vadd.f32 -0.28449672, %v3051_v2  ;;  %v2963_v10 = vadd.f32 %v9075_v58, %v2962_v57  ;;  %5644 = vmatmul.msk.f32.gmra.mxu0 %vm3295_vm7, %v9116_v56  ;;  %5706 = vmatmul.msk.f32.gmra.mxu2 %vm3295_vm7, %v9116_v56  ;;  %v3362_v1 = vld [vmem:[%s10045_s4 + $0x158] sm:$0xff]  ;;  %vm3228_vm4 = vcmp.ge.f32.partialorder %v8845_v12, 0.0  ;;  %v3332_v61 = vld [vmem:[%s10045_s4 + $0x68] sm:$0xff] }
 0x3b2   :  { %v3274_v28 = vadd.f32 1.0, %v3258_v9  ;;  %v3020_v31 = vmul.f32 %v3004_v6, %v9092_v38  ;;  %3505 = vmatpush.msra.mxu3 %v5594_v4  ;;  %3533 = vmatpush.msra.mxu0 %v5628_v35  ;;  %v3342_v46 = vld [vmem:[%s10045_s4 + $0xb8] sm:$0xff]  ;;  %v3180_v9 = vmul.f32 1.442695, %v3149_v19  ;;  %vm3229_vm5 = vcmp.ge.f32.partialorder %v8948_v47, 0.0 }
 0x3b3   :  { %v3083_v43 = vmul.f32 %v3067_v48, %v9038_v13  ;;  %v2967_v59 = vsel %vm2966_vm1, %v9075_v58, %v2963_v10  ;;  %3506 = vmatmul.f32.vlgmr.msra.gmra.mxu3 %v8835_v36  ;;  %v3348_v58 = vld [vmem:[%s10045_s4 + $0xe8] sm:$0xff]  ;;  %v3358_v6 = vld [vmem:[%s10045_s4 + $0x138] sm:$0xff] }
 0x3b4   :  { %v9130_v0 = vmul.f32 %v3274_v28, %v2666_v54  ;;  %v3036_v39 = vadd.f32 1.4214138, %v3020_v31  ;;  %v9146_v51 = vsel %vm2969_vm2, %v2971_v18, %v2967_v59  ;;  %3612 = vmatpush.msrb.mxu3 %v3350_v29  ;;  %3534 = vmatpush.msra.mxu0 %v5626_v32  ;;  %v3340_v48 = vld [vmem:[%s10045_s4 + $0xa8] sm:$0xff]  ;;  %v3338_v4 = vld [vmem:[%s10045_s4 + $0x98] sm:$0xff]  ;;  %5951 = vpow2.f32 %v3180_v9 }
 0x3b5   :  { %v3099_v22 = vadd.f32 0.2548296, %v3083_v43  ;;  %v2989_v8 = vmul.f32 1.0614054, %v9146_v51  ;;  %v3356_v43 = vld [vmem:[%s10045_s4 + $0x128] sm:$0xff]  ;;  %v3354_v42 = vld [vmem:[%s10045_s4 + $0x118] sm:$0xff] }
 0x3b6   :  { %v3052_v44 = vmul.f32 %v3036_v39, %v9092_v38  ;;  %3761 = vmatmul.f32.gmra.mxu1 %v9130_v0  ;;  %3613 = vmatpush.msrb.mxu3 %v3348_v58  ;;  %v5950_v63 = vpop.eup %5949  ;;  %v3336_v18 = vld [vmem:[%s10045_s4 + $0x88] sm:$0xff]  ;;  %v5704_v55 = vld [vmem:[%s10045_s4 + $0x478] sm:$0xff] }
 0x3b7   :  { %v3115_v21 = vmul.f32 %v3099_v22, %v9038_v13  ;;  %v3005_v13 = vadd.f32 -1.4531521, %v2989_v8  ;;  %3649 = vmatpush.msrb.mxu0 %v3366_v53  ;;  %v3334_v22 = vld [vmem:[%s10045_s4 + $0x78] sm:$0xff]  ;;  %v3352_v39 = vld [vmem:[%s10045_s4 + $0x108] sm:$0xff]  ;;  %v2668_v8 = vmul.f32 0.5, %v8825_v26 }
 0x3b8   :  { %v3068_v41 = vadd.f32 -0.28449672, %v3052_v44  ;;  %3614 = vmatpush.msrb.mxu3 %v3346_v30  ;;  %v3330_v12 = vld [vmem:[%s10045_s4 + $0x58] sm:$0xff]  ;;  %v5686_v9 = vld [vmem:[%s10045_s4 + $0x3e8] sm:$0xff] }
 0x3b9   :  { %v3195_v14 = vmul.f32 %v5948_v34, %v3115_v21  ;;  %v3021_v45 = vmul.f32 %v3005_v13, %v9146_v51  ;;  %3650 = vmatpush.msrb.mxu0 %v3364_v40  ;;  %v5702_v21 = vld [vmem:[%s10045_s4 + $0x468] sm:$0xff]  ;;  %v5700_v26 = vld [vmem:[%s10045_s4 + $0x458] sm:$0xff] }
 0x3ba   :  { %v3084_v25 = vmul.f32 %v3068_v41, %v9092_v38  ;;  %5645 = vmatmul.msk.f32.vlgmr.msra.gmra.mxu0 %vm3295_vm7, %v8899_v27  ;;  %3615 = vmatpush.msrb.mxu3 %v3344_v33  ;;  %v5952_v44 = vpop.eup %5951  ;;  %v3326_v13 = vld [vmem:[%s10045_s4 + $0x38] sm:$0xff]  ;;  %v5698_v33 = vld [vmem:[%s10045_s4 + $0x448] sm:$0xff] }
 0x3bb   :  { %v3211_v2 = vsub.f32 1.0, %v3195_v14  ;;  %v3037_v60 = vadd.f32 1.4214138, %v3021_v45  ;;  %3651 = vmatpush.msrb.mxu0 %v3362_v1  ;;  %3509 = vmatmul.f32.gmra.mxu3 %v8919_v16  ;;  %v3324_v1 = vld [vmem:[%s10045_s4 + $0x28] sm:$0xff]  ;;  %v2669_v45 = vmul.f32 0.5, %v8906_v23  ;;  %v3322_v47 = vld [vmem:[%s10045_s4 + $0x18] sm:$0xff] }
 0x3bc   :  { %v3100_v5 = vadd.f32 0.2548296, %v3084_v25  ;;  %3616 = vmatpush.msrb.mxu3 %v3342_v46  ;;  %v5696_v25 = vld [vmem:[%s10045_s4 + $0x438] sm:$0xff] }
 0x3bd   :  { %v3243_v52 = vsub.f32 0.0, %v3211_v2  ;;  %v3053_v28 = vmul.f32 %v3037_v60, %v9146_v51  ;;  %3652 = vmatpush.msrb.mxu0 %v3360_v50  ;;  %v5694_v50 = vld [vmem:[%s10045_s4 + $0x428] sm:$0xff]  ;;  %v5688_v23 = vld [vmem:[%s10045_s4 + $0x3f8] sm:$0xff] }
 0x3be   :  { %v3116_v54 = vmul.f32 %v3100_v5, %v9092_v38  ;;  %3617 = vmatpush.msrb.mxu3 %v3340_v48  ;;  %v3320_v5 = vld [vmem:[%s10045_s4 + $0x8] sm:$0xff]  ;;  %v5692_v60 = vld [vmem:[%s10045_s4 + $0x418] sm:$0xff] }
 0x3bf   :  { %v3259_v57 = vsel %vm3227_vm3, %v3211_v2, %v3243_v52  ;;  %v3069_v10 = vadd.f32 -0.28449672, %v3053_v28  ;;  %3653 = vmatpush.msrb.mxu0 %v3358_v6  ;;  %v5690_v48 = vld [vmem:[%s10045_s4 + $0x408] sm:$0xff]  ;;  %v5684_v6 = vld [vmem:[%s10045_s4 + $0x3d8] sm:$0xff] }
 0x3c0   :  { %v3275_v17 = vadd.f32 1.0, %v3259_v57  ;;  %v3196_v31 = vmul.f32 %v5950_v63, %v3116_v54  ;;  %3618 = vmatpush.msrb.mxu3 %v3338_v4  ;;  %v5680_v54 = vld [vmem:[%s10045_s4 + $0x3b8] sm:$0xff]  ;;  %v5678_v28 = vld [vmem:[%s10045_s4 + $0x3a8] sm:$0xff] }
 0x3c1   :  { %v3085_v29 = vmul.f32 %v3069_v10, %v9146_v51  ;;  %3654 = vmatpush.msrb.mxu0 %v3356_v43  ;;  %v5676_v63 = vld [vmem:[%s10045_s4 + $0x398] sm:$0xff]  ;;  %v5666_v4 = vld [vmem:[%s10045_s4 + $0x348] sm:$0xff] }
 0x3c2   :  { %v3291_v38 = vmul.f32 %v3275_v17, %v2667_v15  ;;  %v3212_v35 = vsub.f32 1.0, %v3196_v31  ;;  %5646 = vmatmul.msk.f32.gmra.mxu0 %vm3295_vm7, %v8989_v24  ;;  %3619 = vmatpush.msrb.mxu3 %v3336_v18  ;;  %v5674_v15 = vld [vmem:[%s10045_s4 + $0x388] sm:$0xff]  ;;  %v5668_v17 = vld [vmem:[%s10045_s4 + $0x358] sm:$0xff] }
 0x3c3   :  { %v3101_v32 = vadd.f32 0.2548296, %v3085_v29  ;;  %3655 = vmatpush.msrb.mxu0 %v3354_v42  ;;  %3512 = vmatmul.f32.gmra.mxu3 %v8801_v62  ;;  %v5660_v43 = vld [vmem:[%s10045_s4 + $0x318] sm:$0xff]  ;;  %v5658_v31 = vld [vmem:[%s10045_s4 + $0x308] sm:$0xff] }
 0x3c4   :  { %3308 = vst.msk [vmem:[#allocation4 + $0x68] sm:$0xff] %vm3295_vm7, %v3291_v38  ;;  %v3244_v59 = vsub.f32 0.0, %v3212_v35  ;;  %3620 = vmatpush.msrb.mxu3 %v3334_v22 }
 0x3c5   :  { %v3117_v53 = vmul.f32 %v3101_v32, %v9146_v51  ;;  %3656 = vmatpush.msrb.mxu0 %v3352_v39  ;;  %v3328_v51 = vld [vmem:[%s10045_s4 + $0x48] sm:$0xff]  ;;  %v9363_v32 = vld [vmem:[%s10049_s8] sm:$0x3]  ;;  %s5340_s8 = sshll.u32 %s10055_s14, 4  ;;  %s5341_s8 = int_to_ptr.hbm [resolvable:$true] %s5340_s8 }
 0x3c6   :  { %v3260_v58 = vsel %vm3228_vm4, %v3212_v35, %v3244_v59  ;;  %3621 = vmatpush.msrb.mxu3 %v3332_v61 }
 0x3c7   :  { %v3276_v34 = vadd.f32 1.0, %v3260_v58  ;;  %3834 = vmatpush.msra.mxu0 %v5704_v55  ;;  %v3197_v30 = vmul.f32 %v5952_v44, %v3117_v53  ;;  %v9366_v53 = vperm.slane %v9363_v32, 0 }
 0x3c8   :  { %3622 = vmatpush.msrb.mxu3 %v3330_v12 }
 0x3c9   :  { %v9234_v40 = vmul.f32 %v3276_v34, %v2668_v8  ;;  %3835 = vmatpush.msra.mxu0 %v5702_v21  ;;  %v3213_v14 = vsub.f32 1.0, %v3197_v30 }
 0x3ca   :  { %5647 = vmatmul.msk.f32.gmra.mxu0 %vm3295_vm7, %v9063_v49  ;;  %3623 = vmatpush.msrb.mxu3 %v3328_v51 }
 0x3cb   :  { %v9239_v41 = vld [vmem:[#allocation4 + $0x68] sm:$0xff]  ;;  %3764 = vmatmul.f32.gmra.mxu1 %v9234_v40  ;;  %v3245_v19 = vsub.f32 0.0, %v3213_v14  ;;  %3515 = vmatmul.f32.gmra.mxu3 %v9015_v7 }
 0x3cc   :  { %5707 = vmatmul.msk.f32.gmra.mxu2 %vm3295_vm7, %v9239_v41  ;;  %3836 = vmatpush.msra.mxu0 %v5700_v26 }
 0x3cd   :  { %v3261_v2 = vsel %vm3229_vm5, %v3213_v14, %v3245_v19  ;;  %3624 = vmatpush.msrb.mxu3 %v3326_v13 }
 0x3ce   :  { %v3277_v46 = vadd.f32 1.0, %v3261_v2  ;;  %3837 = vmatpush.msra.mxu0 %v5698_v33 }
 0x3cf   :  { %3625 = vmatpush.msrb.mxu3 %v3324_v1 }
 0x3d0   :  { %v3293_v52 = vmul.f32 %v3277_v46, %v2669_v45  ;;  %3838 = vmatpush.msra.mxu0 %v5696_v25 }
 0x3d1   :  { %3626 = vmatpush.msrb.mxu3 %v3322_v47 }
 0x3d2   :  { %3310 = vst.msk [vmem:[#allocation4 + $0x78] sm:$0xff] %vm3295_vm7, %v3293_v52  ;;  %3839 = vmatpush.msra.mxu0 %v5694_v50 }
 0x3d3   :  { %5648 = vmatmul.msk.f32.gmra.mxu0 %vm3295_vm7, %v9116_v56  ;;  %3627 = vmatpush.msrb.mxu3 %v3320_v5 }
 0x3d4   :  { %3628 = vmatmul.f32.vlgmr.msrb.gmra.mxu3 %v8678_v37  ;;  %3840 = vmatpush.msra.mxu0 %v5692_v60  ;;  %v5682_v37 = vld [vmem:[%s10045_s4 + $0x3c8] sm:$0xff] }
 0x3d5   :  { %3797 = vmatpush.msra.mxu3 %v5688_v23 }
 0x3d6   :  { %3841 = vmatpush.msra.mxu0 %v5690_v48 }
 0x3d7   :  { %3798 = vmatpush.msra.mxu3 %v5686_v9 }
 0x3d9   :  { %v3677_v57 = vld [vmem:[#allocation4 + $0x78] sm:$0xff]  ;;  %3799 = vmatpush.msra.mxu3 %v5684_v6 }
 0x3da   :  { %5708 = vmatmul.msk.f32.gmra.mxu2 %vm3295_vm7, %v3677_v57 }
 0x3db   :  { %5653 = vmatmul.msk.f32.vlgmr.msrb.gmra.mxu0 %vm3295_vm7, %v8731_v20  ;;  %3800 = vmatpush.msra.mxu3 %v5682_v37  ;;  %v5672_v20 = vld [vmem:[%s10045_s4 + $0x378] sm:$0xff] }
 0x3dc   :  { %3631 = vmatmul.f32.gmra.mxu3 %v8759_v11  ;;  %v5670_v11 = vld [vmem:[%s10045_s4 + $0x368] sm:$0xff]  ;;  %v4224_v37 = vld [vmem:[%s10050_s9 + $0x78] sm:$0xff] }
 0x3dd   :  { %3801 = vmatpush.msra.mxu3 %v5680_v54 }
 0x3df   :  { %3802 = vmatpush.msra.mxu3 %v5678_v28 }
 0x3e1   :  { %3803 = vmatpush.msra.mxu3 %v5676_v63 }
 0x3e3   :  { %5654 = vmatmul.msk.f32.gmra.mxu0 %vm3295_vm7, %v8817_v3  ;;  %3804 = vmatpush.msra.mxu3 %v5674_v15  ;;  %v5664_v3 = vld [vmem:[%s10045_s4 + $0x338] sm:$0xff] }
 0x3e4   :  { %3634 = vmatmul.f32.gmra.mxu3 %v8835_v36  ;;  %v5662_v36 = vld [vmem:[%s10045_s4 + $0x328] sm:$0xff] }
 0x3e5   :  { %3805 = vmatpush.msra.mxu3 %v5672_v20  ;;  %v4223_v20 = vld [vmem:[%s10050_s9 + $0x70] sm:$0xff] }
 0x3e7   :  { %3806 = vmatpush.msra.mxu3 %v5670_v11 }
 0x3e9   :  { %3807 = vmatpush.msra.mxu3 %v5668_v17 }
 0x3eb   :  { %5655 = vmatmul.msk.f32.gmra.mxu0 %vm3295_vm7, %v8899_v27  ;;  %3808 = vmatpush.msra.mxu3 %v5666_v4  ;;  %v4222_v4 = vld [vmem:[%s10050_s9 + $0x68] sm:$0xff] }
 0x3ec   :  { %3637 = vmatmul.f32.gmra.mxu3 %v8919_v16 }
 0x3ed   :  { %3809 = vmatpush.msra.mxu3 %v5664_v3 }
 0x3ef   :  { %3810 = vmatpush.msra.mxu3 %v5662_v36 }
 0x3f1   :  { %3811 = vmatpush.msra.mxu3 %v5660_v43 }
 0x3f3   :  { %5656 = vmatmul.msk.f32.gmra.mxu0 %vm3295_vm7, %v8989_v24  ;;  %3812 = vmatpush.msra.mxu3 %v5658_v31  ;;  %v4221_v31 = vld [vmem:[%s10050_s9 + $0x60] sm:$0xff] }
 0x3f4   :  { %3813 = vmatmul.f32.vlgmr.msra.gmra.mxu3 %v8801_v62 }
 0x3f5   :  { %4324 = vmatpush.msrb.mxu3 %v4224_v37 }
 0x3f7   :  { %4325 = vmatpush.msrb.mxu3 %v4223_v20  ;;  %v5727_v20 = vld [vmem:[%s10050_s9 + $0x170] sm:$0xff] }
 0x3f9   :  { %4326 = vmatpush.msrb.mxu3 %v4222_v4 }
 0x3fb   :  { %5709 = vmatmul.msk.f32.vlgmr.msra.gmra.mxu0 %vm3295_vm7, %v9063_v49  ;;  %4327 = vmatpush.msrb.mxu3 %v4221_v31  ;;  %v5726_v31 = vld [vmem:[%s10050_s9 + $0x168] sm:$0xff] }
 0x3fc   :  { %3816 = vmatmul.f32.gmra.mxu3 %v9015_v7 }
 0x3ff   :  { %v3571_v27 = vpop.f32.mrf.mxu1 }
 0x403   :  { %5710 = vmatmul.msk.f32.gmra.mxu0 %vm3295_vm7, %v9116_v56 }
 0x404   :  { %3819 = vmatmul.f32.gmra.mxu3 %v9130_v0 }
 0x407   :  { %v3574_v24 = vpop.f32.mrf.mxu1 }
 0x40a   :  { %v3600_v16 = vpop.f32.mrf.mxu2 }
 0x40b   :  { %5711 = vmatmul.msk.f32.gmra.mxu0 %vm3295_vm7, %v9239_v41 }
 0x40c   :  { %3822 = vmatmul.f32.gmra.mxu3 %v9234_v40 }
 0x40f   :  { %v3577_v38 = vpop.f32.mrf.mxu1 }
 0x412   :  { %v3603_v62 = vpop.f32.mrf.mxu2 }
 0x413   :  { %5712 = vmatmul.msk.f32.gmra.mxu0 %vm3295_vm7, %v3677_v57  ;;  %v3478_v49 = vpop.f32.mrf.mxu0 }
 0x414   :  { %v3449_v10 = vpop.f32.mrf.mxu3 }
 0x415   :  { %v3479_v29 = vadd.f32 %v3478_v49, %v3449_v10 }
 0x417   :  { %v9356_v42 = vpop.f32.mrf.mxu1  ;;  %v3572_v39 = vadd.f32 %v3571_v27, %v3479_v29 }
 0x419   :  { %v3601_v61 = vadd.f32 %v3600_v16, %v3572_v39 }
 0x41a   :  { %v9354_v7 = vpop.f32.mrf.mxu2 }
 0x41b   :  { %v3481_v56 = vpop.f32.mrf.mxu0 }
 0x41d   :  { %v3452_v18 = vpop.f32.mrf.mxu3 }
 0x41e   :  { %v3482_v8 = vadd.f32 %v3481_v56, %v3452_v18  ;;  %v4220_v56 = vld [vmem:[%s10050_s9 + $0x58] sm:$0xff] }
 0x41f   :  { %4328 = vmatpush.msrb.mxu3 %v4220_v56 }
 0x420   :  { %v3756_v59 = vpop.f32.mrf.mxu1  ;;  %v3575_v30 = vadd.f32 %v3574_v24, %v3482_v8 }
 0x422   :  { %v3604_v13 = vadd.f32 %v3603_v62, %v3575_v30 }
 0x424   :  { %v9358_v0 = vpop.f32.mrf.mxu2 }
 0x426   :  { %v3455_v35 = vpop.f32.mrf.mxu3  ;;  %v3484_v22 = vpop.f32.mrf.mxu0 }
 0x427   :  { %v3485_v48 = vadd.f32 %v3484_v22, %v3455_v35 }
 0x428   :  { %v3759_v51 = vpop.f32.mrf.mxu1 }
 0x429   :  { %v3578_v11 = vadd.f32 %v3577_v38, %v3485_v48  ;;  %v5728_v48 = vld [vmem:[%s10050_s9 + $0x178] sm:$0xff] }
 0x42a   :  { %4278 = vmatpush.msra.mxu1 %v5728_v48 }
 0x42b   :  { %v3607_v38 = vadd.f32 %v9354_v7, %v3578_v11  ;;  %v4215_v11 = vld [vmem:[%s10050_s9 + $0x30] sm:$0xff] }
 0x42c   :  { %v3785_v55 = vpop.f32.mrf.mxu2  ;;  %4279 = vmatpush.msra.mxu1 %v5727_v20 }
 0x42d   :  { %v3786_v58 = vadd.f32 %v3785_v55, %v3756_v59  ;;  %v4219_v55 = vld [vmem:[%s10050_s9 + $0x50] sm:$0xff] }
 0x42e   :  { %v9368_v21 = vpop.f32.mrf.mxu3  ;;  %v9370_v44 = vpop.f32.mrf.mxu0  ;;  %4329 = vmatpush.msrb.mxu3 %v4219_v55  ;;  %4280 = vmatpush.msra.mxu1 %v5726_v31  ;;  %v4212_v55 = vld [vmem:[%s10050_s9 + $0x18] sm:$0xff] }
 0x42f   :  { %v3855_v34 = vadd.f32 %v3786_v58, %v3601_v61 }
 0x431   :  { %v9373_v12 = vadd.f32 %v9366_v53, %v3855_v34 }
 0x433   :  { %v9376_v40 = vmul.f32 0.70710677, %v9373_v12  ;;  %v3762_v24 = vpop.f32.mrf.mxu1 }
 0x434   :  { %v3788_v41 = vpop.f32.mrf.mxu2 }
 0x435   :  { %v3893_v14 = vand.u32 2147483647, %v9376_v40  ;;  %v3789_v19 = vadd.f32 %v3788_v41, %v3759_v51  ;;  %v4218_v51 = vld [vmem:[%s10050_s9 + $0x48] sm:$0xff]  ;;  %vm4157_vm13 = vcmp.ge.f32.partialorder %v9376_v40, 0.0 }
 0x436   :  { %v9379_v26 = vpop.f32.mrf.mxu3  ;;  %4330 = vmatpush.msrb.mxu3 %v4218_v51  ;;  %v4211_v51 = vld [vmem:[%s10050_s9 + $0x10] sm:$0xff] }
 0x437   :  { %v9381_v33 = vpop.f32.mrf.mxu0  ;;  %v3901_v1 = vmul.f32 0.3275911, %v3893_v14  ;;  %v3857_v2 = vadd.f32 %v3789_v19, %v3604_v13  ;;  %v4109_v16 = vsub.f32 0.0, %v3893_v14  ;;  %v4217_v19 = vld [vmem:[%s10050_s9 + $0x40] sm:$0xff] }
 0x438   :  { %4331 = vmatpush.msrb.mxu3 %v4217_v19 }
 0x439   :  { %v3909_v25 = vadd.f32 1.0, %v3901_v1  ;;  %v9384_v45 = vadd.f32 %v9366_v53, %v3857_v2  ;;  %v4117_v7 = vmul.f32 %v4109_v16, %v3893_v14  ;;  %v4214_v16 = vld [vmem:[%s10050_s9 + $0x28] sm:$0xff] }
 0x43b   :  { %5953 = vrcp.f32 %v3909_v25  ;;  %v9387_v46 = vmul.f32 0.70710677, %v9384_v45  ;;  %v3928_v57 = vand.u32 2147483648, %v3909_v25  ;;  %v3926_v63 = vand.u32 2147483647, %v3909_v25 }
 0x43c   :  { %vm3922_vm14 = vweird.f32 %v3909_v25  ;;  %v4125_v2 = vmul.f32 1.442695, %v4117_v7 }
 0x43d   :  { %v9392_v50 = vand.u32 2147483647, %v9387_v46  ;;  %v3929_v3 = vor.u32 1.1754944e-38, %v3928_v57  ;;  %vm3927_vm8 = vcmp.eq.f32.partialorder %v3926_v63, 8.507059e+37  ;;  %vm4159_vm3 = vcmp.ge.f32.partialorder %v9387_v46, 0.0 }
 0x43e   :  { %v9389_v47 = vpop.f32.mrf.mxu3  ;;  %v3537_v46 = vadd.f32 %v9381_v33, %v9379_v26 }
 0x43f   :  { %v9394_v52 = vpop.f32.mrf.mxu0  ;;  %v3903_v5 = vmul.f32 0.3275911, %v9392_v50 }
 0x441   :  { %v5954_v23 = vpop.eup %5953  ;;  %v9397_v9 = vadd.f32 1.0, %v3903_v5 }
 0x442   :  { %v3918_v60 = vmul.f32 %v5954_v23, %v3909_v25  ;;  %vm3923_vm7 = vweird.f32 %v5954_v23  ;;  %v3488_v25 = vadd.f32 %v9370_v44, %v9368_v21 }
 0x443   :  { %5955 = vrcp.f32 %v9397_v9  ;;  %vm3924_vm6 = vmor %vm3922_vm14, %vm3923_vm7  ;;  %v3958_v61 = vand.u32 2147483648, %v9397_v9  ;;  %v3956_v8 = vand.u32 2147483647, %v9397_v9  ;;  %vm3952_vm10 = vweird.f32 %v9397_v9 }
 0x444   :  { %v3919_v6 = vsub.f32 1.0, %v3918_v60  ;;  %v4111_v60 = vsub.f32 0.0, %v9392_v50  ;;  %5957 = vpow2.f32 %v4125_v2  ;;  %v5722_v2 = vld [vmem:[%s10050_s9 + $0x148] sm:$0xff] }
 0x445   :  { %v3959_v1 = vor.u32 1.1754944e-38, %v3958_v61  ;;  %vm3957_vm12 = vcmp.eq.f32.partialorder %v3956_v8, 8.507059e+37 }
 0x446   :  { %v9403_v54 = vpop.f32.mrf.mxu3  ;;  %v3920_v28 = vmul.f32 %v5954_v23, %v3919_v6  ;;  %v4216_v6 = vld [vmem:[%s10050_s9 + $0x38] sm:$0xff] }
 0x447   :  { %v9405_v15 = vpop.f32.mrf.mxu0  ;;  %4332 = vmatpush.msrb.mxu3 %v4216_v6  ;;  %v4209_v6 = vld [vmem:[%s10050_s9] sm:$0xff] }
 0x448   :  { %v3921_v17 = vadd.f32 %v5954_v23, %v3920_v28 }
 0x449   :  { %v5956_v36 = vpop.eup %5955  ;;  %4333 = vmatpush.msrb.mxu3 %v4215_v11 }
 0x44a   :  { %v3925_v43 = vsel %vm3924_vm6, %v5954_v23, %v3921_v17  ;;  %v3948_v62 = vmul.f32 %v5956_v36, %v9397_v9  ;;  %vm3953_vm9 = vweird.f32 %v5956_v36  ;;  %v5958_v61 = vpop.eup %5957 }
 0x44b   :  { %v9416_v27 = vsel %vm3927_vm8, %v3929_v3, %v3925_v43  ;;  %vm3954_vm11 = vmor %vm3952_vm10, %vm3953_vm9  ;;  %v3581_v3 = vadd.f32 %v9356_v42, %v3488_v25  ;;  %4334 = vmatpush.msrb.mxu3 %v4214_v16  ;;  %v5725_v42 = vld [vmem:[%s10050_s9 + $0x160] sm:$0xff]  ;;  %v4210_v25 = vld [vmem:[%s10050_s9 + $0x8] sm:$0xff] }
 0x44c   :  { %v4037_v49 = vmul.f32 1.0614054, %v9416_v27  ;;  %v3949_v35 = vsub.f32 1.0, %v3948_v62  ;;  %4281 = vmatpush.msra.mxu1 %v5725_v42  ;;  %v5719_v42 = vld [vmem:[%s10050_s9 + $0x130] sm:$0xff] }
 0x44e   :  { %v9424_v29 = vpop.f32.mrf.mxu3  ;;  %v4045_v22 = vadd.f32 -1.4531521, %v4037_v49  ;;  %v3950_v58 = vmul.f32 %v5956_v36, %v3949_v35  ;;  %v3610_v35 = vadd.f32 %v9358_v0, %v3581_v3  ;;  %v5723_v0 = vld [vmem:[%s10050_s9 + $0x150] sm:$0xff]  ;;  %v5720_v3 = vld [vmem:[%s10050_s9 + $0x138] sm:$0xff] }
 0x44f   :  { %v3791_v10 = vpop.f32.mrf.mxu2 }
 0x450   :  { %v3792_v18 = vadd.f32 %v3791_v10, %v3762_v24  ;;  %v9426_v59 = vpop.f32.mrf.mxu0  ;;  %v4053_v34 = vmul.f32 %v4045_v22, %v9416_v27  ;;  %v3951_v41 = vadd.f32 %v5956_v36, %v3950_v58  ;;  %v3765_v10 = vpop.f32.mrf.mxu1 }
 0x452   :  { %v3859_v39 = vadd.f32 %v3792_v18, %v3607_v38  ;;  %v4061_v13 = vadd.f32 1.4214138, %v4053_v34  ;;  %v3955_v5 = vsel %vm3954_vm11, %v5956_v36, %v3951_v41  ;;  %v4119_v36 = vmul.f32 %v4111_v60, %v9392_v50  ;;  %v4213_v50 = vld [vmem:[%s10050_s9 + $0x20] sm:$0xff] }
 0x453   :  { %v9460_v37 = vsel %vm3957_vm12, %v3959_v1, %v3955_v5  ;;  %4335 = vmatpush.msrb.mxu3 %v4213_v50  ;;  %v5718_v50 = vld [vmem:[%s10050_s9 + $0x128] sm:$0xff] }
 0x454   :  { %v9435_v30 = vadd.f32 %v9366_v53, %v3859_v39  ;;  %v4069_v23 = vmul.f32 %v4061_v13, %v9416_v27  ;;  %v4039_v44 = vmul.f32 1.0614054, %v9460_v37  ;;  %v4129_v56 = vmul.f32 1.442695, %v4119_v36  ;;  %v5724_v39 = vld [vmem:[%s10050_s9 + $0x158] sm:$0xff] }
 0x455   :  { %4282 = vmatpush.msra.mxu1 %v5724_v39  ;;  %4336 = vmatpush.msrb.mxu3 %v4212_v55 }
 0x456   :  { %v9442_v14 = vmul.f32 0.70710677, %v9435_v30  ;;  %v4077_v57 = vadd.f32 -0.28449672, %v4069_v23  ;;  %v4047_v17 = vadd.f32 -1.4531521, %v4039_v44 }
 0x457   :  { %v9462_v21 = vpop.f32.mrf.mxu3  ;;  %4283 = vmatpush.msra.mxu1 %v5723_v0  ;;  %4337 = vmatpush.msrb.mxu3 %v4211_v51  ;;  %v3877_v44 = vmul.f32 0.5, %v9373_v12 }
 0x458   :  { %v9452_v9 = vand.u32 2147483647, %v9442_v14  ;;  %v9466_v63 = vpop.f32.mrf.mxu0  ;;  %v4085_v4 = vmul.f32 %v4077_v57, %v9416_v27  ;;  %v4055_v24 = vmul.f32 %v4047_v17, %v9460_v37  ;;  %vm4161_vm6 = vcmp.ge.f32.partialorder %v9442_v14, 0.0 }
 0x459   :  { %4284 = vmatpush.msra.mxu1 %v5722_v2  ;;  %4338 = vmatpush.msrb.mxu3 %v4210_v25 }
 0x45a   :  { %v3905_v28 = vmul.f32 0.3275911, %v9452_v9  ;;  %v4093_v62 = vadd.f32 0.2548296, %v4085_v4  ;;  %v4063_v38 = vadd.f32 1.4214138, %v4055_v24 }
 0x45b   :  { %4339 = vmatpush.msrb.mxu3 %v4209_v6  ;;  %v4113_v55 = vsub.f32 0.0, %v9452_v9 }
 0x45c   :  { %v9477_v43 = vadd.f32 1.0, %v3905_v28  ;;  %v4101_v18 = vmul.f32 %v4093_v62, %v9416_v27  ;;  %v4071_v58 = vmul.f32 %v4063_v38, %v9460_v37 }
 0x45d   :  { %v3794_v49 = vpop.f32.mrf.mxu2 }
 0x45e   :  { %5959 = vrcp.f32 %v9477_v43  ;;  %v3795_v22 = vadd.f32 %v3794_v49, %v3765_v10  ;;  %v4141_v27 = vmul.f32 %v5958_v61, %v4101_v18  ;;  %v4079_v41 = vadd.f32 -0.28449672, %v4071_v58 }
 0x45f   :  { %v9501_v7 = vpop.f32.mrf.mxu3  ;;  %5961 = vpow2.f32 %v4129_v56  ;;  %v3986_v11 = vand.u32 2147483647, %v9477_v43  ;;  %v3988_v17 = vand.u32 2147483648, %v9477_v43  ;;  %vm3982_vm0 = vweird.f32 %v9477_v43  ;;  %v5717_v56 = vld [vmem:[%s10050_s9 + $0x120] sm:$0xff] }
 0x460   :  { %v3861_v8 = vadd.f32 %v3795_v22, %v3610_v35  ;;  %v9504_v34 = vpop.f32.mrf.mxu0  ;;  %v4149_v19 = vsub.f32 1.0, %v4141_v27  ;;  %v4087_v23 = vmul.f32 %v4079_v41, %v9460_v37  ;;  %v5715_v27 = vld [vmem:[%s10050_s9 + $0x110] sm:$0xff]  ;;  %v4121_v41 = vmul.f32 %v4113_v55, %v9452_v9 }
 0x461   :  { %vm3987_vm2 = vcmp.eq.f32.partialorder %v3986_v11, 8.507059e+37 }
 0x462   :  { %v9513_v1 = vadd.f32 %v9366_v53, %v3861_v8  ;;  %v4165_v60 = vsub.f32 0.0, %v4149_v19  ;;  %v5721_v53 = vld [vmem:[%s10050_s9 + $0x140] sm:$0xff]  ;;  %v4095_v28 = vadd.f32 0.2548296, %v4087_v23  ;;  %v4133_v9 = vmul.f32 1.442695, %v4121_v41 }
 0x463   :  { %4285 = vmatpush.msra.mxu1 %v5721_v53  ;;  %v3543_v41 = vadd.f32 %v9405_v15, %v9403_v54 }
 0x464   :  { %v5960_v13 = vpop.eup %5959  ;;  %v9524_v48 = vmul.f32 0.70710677, %v9513_v1  ;;  %v4173_v20 = vsel %vm4157_vm13, %v4149_v19, %v4165_v60  ;;  %v4103_v31 = vmul.f32 %v4095_v28, %v9460_v37  ;;  %v3989_v37 = vor.u32 1.1754944e-38, %v3988_v17  ;;  %v5714_v60 = vld [vmem:[%s10050_s9 + $0x108] sm:$0xff] }
 0x465   :  { %v3978_v5 = vmul.f32 %v5960_v13, %v9477_v43  ;;  %v4181_v36 = vadd.f32 1.0, %v4173_v20  ;;  %vm3983_vm15 = vweird.f32 %v5960_v13  ;;  %4286 = vmatpush.msra.mxu1 %v5720_v3  ;;  %v5962_v16 = vpop.eup %5961  ;;  %v5716_v43 = vld [vmem:[%s10050_s9 + $0x118] sm:$0xff]  ;;  %v3879_v19 = vmul.f32 0.5, %v9384_v45  ;;  %v5713_v45 = vld [vmem:[%s10050_s9 + $0x100] sm:$0xff] }
 0x466   :  { %v9537_v4 = vand.u32 2147483647, %v9524_v48  ;;  %v4143_v38 = vmul.f32 %v5962_v16, %v4103_v31  ;;  %vm3984_vm1 = vmor %vm3982_vm0, %vm3983_vm15  ;;  %vm4163_vm12 = vcmp.ge.f32.partialorder %v9524_v48, 0.0  ;;  %v4236_v48 = vld [vmem:[%s10050_s9 + $0xd8] sm:$0xff] }
 0x467   :  { %v3979_v57 = vsub.f32 1.0, %v3978_v5  ;;  %v9542_v40 = vpop.f32.mrf.mxu3  ;;  %v4189_v10 = vmul.f32 %v4181_v36, %v3877_v44  ;;  %4287 = vmatpush.msra.mxu1 %v5719_v42  ;;  %v3630_v44 = vadd.f32 %v9462_v21, %v3537_v46  ;;  %v9583_v21 = vperm.slane %v9363_v32, 1 }
 0x468   :  { %v3907_v24 = vmul.f32 0.3275911, %v9537_v4  ;;  %v9546_v62 = vpop.f32.mrf.mxu0  ;;  %v4151_v22 = vsub.f32 1.0, %v4143_v38 }
 0x469   :  { %v3980_v12 = vmul.f32 %v5960_v13, %v3979_v57  ;;  %4340 = vmatmul.f32.vlgmr.msrb.gmra.mxu3 %v4189_v10  ;;  %4288 = vmatpush.msra.mxu1 %v5718_v50  ;;  %v3659_v3 = vadd.f32 %v9466_v63, %v3630_v44 }
 0x46a   :  { %v3915_v18 = vadd.f32 1.0, %v3907_v24  ;;  %v4167_v58 = vsub.f32 0.0, %v4151_v22  ;;  %v3540_v24 = vadd.f32 %v9394_v52, %v9389_v47 }
 0x46b   :  { %v3981_v49 = vadd.f32 %v5960_v13, %v3980_v12  ;;  %4289 = vmatpush.msra.mxu1 %v5717_v56 }
 0x46c   :  { %5963 = vrcp.f32 %v3915_v18  ;;  %v4175_v51 = vsel %vm4159_vm3, %v4151_v22, %v4167_v58  ;;  %v4018_v26 = vand.u32 2147483648, %v3915_v18  ;;  %v4016_v17 = vand.u32 2147483647, %v3915_v18 }
 0x46d   :  { %v3985_v35 = vsel %vm3984_vm1, %v5960_v13, %v3981_v49  ;;  %4290 = vmatpush.msra.mxu1 %v5716_v43  ;;  %v4183_v2 = vadd.f32 1.0, %v4175_v51  ;;  %5965 = vpow2.f32 %v4133_v9  ;;  %vm4012_vm5 = vweird.f32 %v3915_v18 }
 0x46e   :  { %v3990_v39 = vsel %vm3987_vm2, %v3989_v37, %v3985_v35  ;;  %v4019_v42 = vor.u32 1.1754944e-38, %v4018_v26  ;;  %vm4017_vm14 = vcmp.eq.f32.partialorder %v4016_v17, 8.507059e+37  ;;  %v3633_v63 = vadd.f32 %v9501_v7, %v3540_v24 }
 0x46f   :  { %v4041_v61 = vmul.f32 1.0614054, %v3990_v39  ;;  %v9566_v0 = vpop.f32.mrf.mxu3  ;;  %4291 = vmatpush.msra.mxu1 %v5715_v27  ;;  %v4191_v23 = vmul.f32 %v4183_v2, %v3879_v19 }
 0x470   :  { %v9569_v13 = vpop.f32.mrf.mxu0  ;;  %v3662_v58 = vadd.f32 %v9504_v34, %v3633_v63  ;;  %v3636_v34 = vadd.f32 %v9542_v40, %v3543_v41 }
 0x471   :  { %v4049_v8 = vadd.f32 -1.4531521, %v4041_v61  ;;  %4292 = vmatpush.msra.mxu1 %v5714_v60  ;;  %4343 = vmatmul.f32.gmra.mxu3 %v4191_v23 }
 0x472   :  { %v5964_v5 = vpop.eup %5963 }
 0x473   :  { %v4057_v25 = vmul.f32 %v4049_v8, %v3990_v39  ;;  %v4008_v6 = vmul.f32 %v5964_v5, %v3915_v18  ;;  %4293 = vmatpush.msra.mxu1 %v5713_v45  ;;  %vm4013_vm4 = vweird.f32 %v5964_v5  ;;  %v5966_v35 = vpop.eup %5965  ;;  %v4115_v18 = vsub.f32 0.0, %v9537_v4 }
 0x474   :  { %vm4014_vm7 = vmor %vm4012_vm5, %vm4013_vm4  ;;  %v3665_v45 = vadd.f32 %v9546_v62, %v3636_v34 }
 0x475   :  { %v4065_v53 = vadd.f32 1.4214138, %v4057_v25  ;;  %v4009_v28 = vsub.f32 1.0, %v4008_v6  ;;  %v4123_v27 = vmul.f32 %v4115_v18, %v9537_v4  ;;  %v3881_v4 = vmul.f32 0.5, %v9435_v30 }
 0x477   :  { %v4073_v57 = vmul.f32 %v4065_v53, %v3990_v39  ;;  %v3814_v20 = vpop.f32.mrf.mxu3  ;;  %v4010_v11 = vmul.f32 %v5964_v5, %v4009_v28  ;;  %v4137_v53 = vmul.f32 1.442695, %v4123_v27 }
 0x478   :  { %v3843_v36 = vpop.f32.mrf.mxu0 }
 0x479   :  { %v4081_v33 = vadd.f32 -0.28449672, %v4073_v57  ;;  %v3844_v31 = vadd.f32 %v3843_v36, %v3814_v20  ;;  %v4011_v16 = vadd.f32 %v5964_v5, %v4010_v11  ;;  %v3546_v57 = vadd.f32 %v9426_v59, %v9424_v29 }
 0x47b   :  { %v4089_v12 = vmul.f32 %v4081_v33, %v3990_v39  ;;  %v3856_v10 = vadd.f32 %v3844_v31, %v3659_v3  ;;  %v4015_v49 = vsel %vm4014_vm7, %v5964_v5, %v4011_v16  ;;  %v3639_v33 = vadd.f32 %v9566_v0, %v3546_v57 }
 0x47c   :  { %v4020_v38 = vsel %vm4017_vm14, %v4019_v42, %v4015_v49  ;;  %v4240_v42 = vld [vmem:[%s10050_s9 + $0xf8] sm:$0xff] }
 0x47d   :  { %v4097_v50 = vadd.f32 0.2548296, %v4089_v12  ;;  %v9589_v32 = vadd.f32 %v9583_v21, %v3856_v10  ;;  %v4043_v56 = vmul.f32 1.0614054, %v4020_v38  ;;  %v3668_v16 = vadd.f32 %v9569_v13, %v3639_v33  ;;  %4347 = vmatpush.msrb.mxu0 %v4240_v42  ;;  %v4239_v13 = vld [vmem:[%s10050_s9 + $0xf0] sm:$0xff] }
 0x47f   :  { %v4105_v37 = vmul.f32 %v4097_v50, %v3990_v39  ;;  %v9593_v47 = vmul.f32 0.70710677, %v9589_v32  ;;  %v3817_v52 = vpop.f32.mrf.mxu3  ;;  %v4051_v55 = vadd.f32 -1.4531521, %v4043_v56  ;;  %4348 = vmatpush.msrb.mxu0 %v4239_v13 }
 0x480   :  { %v3846_v43 = vpop.f32.mrf.mxu0 }
 0x481   :  { %v4145_v22 = vmul.f32 %v5966_v35, %v4105_v37  ;;  %v9597_v39 = vand.u32 2147483647, %v9593_v47  ;;  %v3847_v7 = vadd.f32 %v3846_v43, %v3817_v52  ;;  %v4059_v8 = vmul.f32 %v4051_v55, %v4020_v38  ;;  %v4238_v52 = vld [vmem:[%s10050_s9 + $0xe8] sm:$0xff] }
 0x482   :  { %4349 = vmatpush.msrb.mxu0 %v4238_v52 }
 0x483   :  { %v4153_v61 = vsub.f32 1.0, %v4145_v22  ;;  %v3902_v19 = vmul.f32 0.3275911, %v9597_v39  ;;  %v3858_v2 = vadd.f32 %v3847_v7, %v3662_v58  ;;  %v4067_v25 = vadd.f32 1.4214138, %v4059_v8 }
 0x484   :  { %v4110_v8 = vsub.f32 0.0, %v9597_v39 }
 0x485   :  { %v4169_v51 = vsub.f32 0.0, %v4153_v61  ;;  %v3910_v46 = vadd.f32 1.0, %v3902_v19  ;;  %v9606_v23 = vadd.f32 %v9583_v21, %v3858_v2  ;;  %v4075_v6 = vmul.f32 %v4067_v25, %v4020_v38 }
 0x486   :  { %v3883_v25 = vmul.f32 0.5, %v9513_v1 }
 0x487   :  { %v4177_v5 = vsel %vm4161_vm6, %v4153_v61, %v4169_v51  ;;  %5967 = vrcp.f32 %v3910_v46  ;;  %v3820_v54 = vpop.f32.mrf.mxu3  ;;  %v9610_v9 = vmul.f32 0.70710677, %v9606_v23  ;;  %v4083_v14 = vadd.f32 -0.28449672, %v4075_v6  ;;  %v4237_v51 = vld [vmem:[%s10050_s9 + $0xe0] sm:$0xff]  ;;  %v4235_v6 = vld [vmem:[%s10050_s9 + $0xd0] sm:$0xff] }
 0x488   :  { %v4185_v60 = vadd.f32 1.0, %v4177_v5  ;;  %v3849_v44 = vpop.f32.mrf.mxu0  ;;  %5969 = vpow2.f32 %v4137_v53  ;;  %v3943_v50 = vand.u32 2147483648, %v3910_v46  ;;  %v3941_v63 = vand.u32 2147483647, %v3910_v46  ;;  %4350 = vmatpush.msrb.mxu0 %v4237_v51 }
 0x489   :  { %v3850_v40 = vadd.f32 %v3849_v44, %v3820_v54  ;;  %v9616_v30 = vand.u32 2147483647, %v9610_v9  ;;  %v4091_v28 = vmul.f32 %v4083_v14, %v4020_v38  ;;  %vm3937_vm9 = vweird.f32 %v3910_v46 }
 0x48a   :  { %v4193_v15 = vmul.f32 %v4185_v60, %v3881_v4  ;;  %v3944_v55 = vor.u32 1.1754944e-38, %v3943_v50  ;;  %vm3942_vm11 = vcmp.eq.f32.partialorder %v3941_v63, 8.507059e+37  ;;  %4351 = vmatpush.msrb.mxu0 %v4236_v48  ;;  %v4118_v60 = vmul.f32 %v4110_v8, %v9597_v39  ;;  %v4234_v39 = vld [vmem:[%s10050_s9 + $0xc8] sm:$0xff]  ;;  %v4231_v63 = vld [vmem:[%s10050_s9 + $0xb0] sm:$0xff] }
 0x48b   :  { %v3860_v26 = vadd.f32 %v3850_v40, %v3665_v45  ;;  %v3904_v20 = vmul.f32 0.3275911, %v9616_v30  ;;  %v4099_v11 = vadd.f32 0.2548296, %v4091_v28  ;;  %vm4158_vm6 = vcmp.ge.f32.partialorder %v9593_v47, 0.0 }
 0x48c   :  { %4294 = vmatmul.f32.vlgmr.msra.gmra.mxu1 %v4193_v15  ;;  %4352 = vmatpush.msrb.mxu0 %v4235_v6 }
 0x48d   :  { %v5968_v17 = vpop.eup %5967  ;;  %v9621_v3 = vadd.f32 %v9583_v21, %v3860_v26  ;;  %v9623_v36 = vadd.f32 1.0, %v3904_v20  ;;  %v4107_v12 = vmul.f32 %v4099_v11, %v4020_v38  ;;  %v4127_v26 = vmul.f32 1.442695, %v4118_v60  ;;  %v4233_v20 = vld [vmem:[%s10050_s9 + $0xc0] sm:$0xff]  ;;  %v5739_v60 = vld [vmem:[%s10050_s9 + $0x1d0] sm:$0xff] }
 0x48e   :  { %v3933_v62 = vmul.f32 %v5968_v17, %v3910_v46  ;;  %v5970_v31 = vpop.eup %5969  ;;  %vm3938_vm8 = vweird.f32 %v5968_v17  ;;  %4353 = vmatpush.msrb.mxu0 %v4234_v39 }
 0x48f   :  { %v9626_v29 = vmul.f32 0.70710677, %v9621_v3  ;;  %v3823_v59 = vpop.f32.mrf.mxu3  ;;  %5971 = vrcp.f32 %v9623_v36  ;;  %v4147_v10 = vmul.f32 %v5970_v31, %v4107_v12  ;;  %vm3939_vm10 = vmor %vm3937_vm9, %vm3938_vm8  ;;  %v3973_v1 = vand.u32 2147483648, %v9623_v36  ;;  %v5744_v31 = vld [vmem:[%s10050_s9 + $0x1f8] sm:$0xff] }
 0x490   :  { %v3934_v24 = vsub.f32 1.0, %v3933_v62  ;;  %v3852_v0 = vpop.f32.mrf.mxu0  ;;  %v3971_v14 = vand.u32 2147483647, %v9623_v36  ;;  %vm3967_vm15 = vweird.f32 %v9623_v36  ;;  %4354 = vmatpush.msrb.mxu0 %v4233_v20  ;;  %4301 = vmatpush.msra.mxu2 %v5744_v31  ;;  %v5737_v20 = vld [vmem:[%s10050_s9 + $0x1c0] sm:$0xff] }
 0x491   :  { %v9634_v49 = vand.u32 2147483647, %v9626_v29  ;;  %v3853_v38 = vadd.f32 %v3852_v0, %v3823_v59  ;;  %v4155_v56 = vsub.f32 1.0, %v4147_v10  ;;  %v3974_v11 = vor.u32 1.1754944e-38, %v3973_v1 }
 0x492   :  { %v3935_v37 = vmul.f32 %v5968_v17, %v3934_v24  ;;  %vm3972_vm1 = vcmp.eq.f32.partialorder %v3971_v14, 8.507059e+37 }
 0x493   :  { %v3906_v35 = vmul.f32 0.3275911, %v9634_v49  ;;  %v3862_v18 = vadd.f32 %v3853_v38, %v3668_v16  ;;  %v4171_v43 = vsub.f32 0.0, %v4155_v56  ;;  %v4232_v16 = vld [vmem:[%s10050_s9 + $0xb8] sm:$0xff] }
 0x494   :  { %v3936_v22 = vadd.f32 %v5968_v17, %v3935_v37  ;;  %4355 = vmatpush.msrb.mxu0 %v4232_v16  ;;  %v5743_v37 = vld [vmem:[%s10050_s9 + $0x1f0] sm:$0xff] }
 0x495   :  { %v9643_v61 = vadd.f32 1.0, %v3906_v35  ;;  %v9646_v58 = vadd.f32 %v9583_v21, %v3862_v18  ;;  %v5972_v7 = vpop.eup %5971  ;;  %v4179_v2 = vsel %vm4163_vm12, %v4155_v56, %v4171_v43  ;;  %4302 = vmatpush.msra.mxu2 %v5743_v37  ;;  %v5742_v56 = vld [vmem:[%s10050_s9 + $0x1e8] sm:$0xff] }
 0x496   :  { %v3940_v27 = vsel %vm3939_vm10, %v5968_v17, %v3936_v22  ;;  %v3963_v19 = vmul.f32 %v5972_v7, %v9623_v36  ;;  %v4187_v5 = vadd.f32 1.0, %v4179_v2  ;;  %vm3968_vm13 = vweird.f32 %v5972_v7  ;;  %4356 = vmatpush.msrb.mxu0 %v4231_v63  ;;  %v4230_v35 = vld [vmem:[%s10050_s9 + $0xa8] sm:$0xff]  ;;  %v5735_v63 = vld [vmem:[%s10050_s9 + $0x1b0] sm:$0xff] }
 0x497   :  { %v9653_v41 = vsel %vm3942_vm11, %v3944_v55, %v3940_v27  ;;  %5973 = vrcp.f32 %v9643_v61  ;;  %v9663_v46 = vmul.f32 0.70710677, %v9646_v58  ;;  %vm3969_vm0 = vmor %vm3967_vm15, %vm3968_vm13  ;;  %v4112_v17 = vsub.f32 0.0, %v9616_v30  ;;  %v4229_v55 = vld [vmem:[%s10050_s9 + $0xa0] sm:$0xff]  ;;  %4303 = vmatpush.msra.mxu2 %v5742_v56 }
 0x498   :  { %v4038_v21 = vmul.f32 1.0614054, %v9653_v41  ;;  %v3964_v34 = vsub.f32 1.0, %v3963_v19  ;;  %v4195_v53 = vmul.f32 %v4187_v5, %v3883_v25  ;;  %v4003_v0 = vand.u32 2147483648, %v9643_v61  ;;  %4357 = vmatpush.msrb.mxu0 %v4230_v35  ;;  %v4228_v19 = vld [vmem:[%s10050_s9 + $0x98] sm:$0xff] }
 0x499   :  { %v9671_v54 = vand.u32 2147483647, %v9663_v46  ;;  %v4001_v38 = vand.u32 2147483647, %v9643_v61  ;;  %v4120_v13 = vmul.f32 %v4112_v17, %v9616_v30  ;;  %vm3997_vm3 = vweird.f32 %v9643_v61  ;;  %v5741_v30 = vld [vmem:[%s10050_s9 + $0x1e0] sm:$0xff] }
 0x49a   :  { %v4046_v4 = vadd.f32 -1.4531521, %v4038_v21  ;;  %v3965_v15 = vmul.f32 %v5972_v7, %v3964_v34  ;;  %4297 = vmatmul.f32.gmra.mxu1 %v4195_v53  ;;  %v4004_v43 = vor.u32 1.1754944e-38, %v4003_v0  ;;  %4304 = vmatpush.msra.mxu2 %v5741_v30  ;;  %v4227_v53 = vld [vmem:[%s10050_s9 + $0x90] sm:$0xff]  ;;  %v5736_v0 = vld [vmem:[%s10050_s9 + $0x1b8] sm:$0xff]  ;;  %v9810_v30 = vld [vmem:[%s10052_s11] sm:$0xff] }
 0x49b   :  { %v3908_v40 = vmul.f32 0.3275911, %v9671_v54  ;;  %vm4002_vm5 = vcmp.eq.f32.partialorder %v4001_v38, 8.507059e+37  ;;  %v4131_v21 = vmul.f32 1.442695, %v4120_v13  ;;  %4358 = vmatpush.msrb.mxu0 %v4229_v55  ;;  %v9787_v38 = vld [vmem:[%s10052_s11 + $0x10] sm:$0xff] }
 0x49c   :  { %v4054_v44 = vmul.f32 %v4046_v4, %v9653_v41  ;;  %v3966_v57 = vadd.f32 %v5972_v7, %v3965_v15  ;;  %v9749_v15 = vld [vmem:[%s10052_s11 + $0x18] sm:$0xff]  ;;  %vm4160_vm10 = vcmp.ge.f32.partialorder %v9610_v9, 0.0  ;;  %v5730_v9 = vld [vmem:[%s10050_s9 + $0x188] sm:$0xff]  ;;  %vm4162_vm11 = vcmp.ge.f32.partialorder %v9626_v29, 0.0 }
 0x49d   :  { %v5974_v45 = vpop.eup %5973  ;;  %v9685_v62 = vadd.f32 1.0, %v3908_v40  ;;  %4359 = vmatpush.msrb.mxu0 %v4228_v19  ;;  %4396 = vmatpush.msrb.mxu1 %v9749_v15  ;;  %vm4164_vm12 = vcmp.ge.f32.partialorder %v9663_v46, 0.0 }
 0x49e   :  { %v4062_v28 = vadd.f32 1.4214138, %v4054_v44  ;;  %v3993_v33 = vmul.f32 %v5974_v45, %v9643_v61  ;;  %v3970_v12 = vsel %vm3969_vm0, %v5972_v7, %v3966_v57  ;;  %vm3998_vm2 = vweird.f32 %v5974_v45  ;;  %v5740_v61 = vld [vmem:[%s10050_s9 + $0x1d8] sm:$0xff]  ;;  %4619 = vmatpush.msra.mxu3 %v9749_v15 }
 0x49f   :  { %v9694_v24 = vsel %vm3972_vm1, %v3974_v11, %v3970_v12  ;;  %5975 = vrcp.f32 %v9685_v62  ;;  %vm3999_vm4 = vmor %vm3997_vm3, %vm3998_vm2  ;;  %v4114_v7 = vsub.f32 0.0, %v9634_v49  ;;  %4305 = vmatpush.msra.mxu2 %v5740_v61  ;;  %4360 = vmatpush.msrb.mxu0 %v4227_v53  ;;  %v4031_v57 = vand.u32 2147483647, %v9685_v62  ;;  %v4225_v11 = vld [vmem:[%s10050_s9 + $0x80] sm:$0xff] }
 0x4a0   :  { %v4070_v59 = vmul.f32 %v4062_v28, %v9653_v41  ;;  %v3994_v36 = vsub.f32 1.0, %v3993_v33  ;;  %v4040_v42 = vmul.f32 1.0614054, %v9694_v24  ;;  %5977 = vpow2.f32 %v4127_v26  ;;  %4397 = vmatpush.msrb.mxu1 %v9787_v38  ;;  %4620 = vmatpush.msra.mxu3 %v9787_v38 }
 0x4a1   :  { %v4122_v1 = vmul.f32 %v4114_v7, %v9634_v49  ;;  %v4226_v49 = vld [vmem:[%s10050_s9 + $0x88] sm:$0xff]  ;;  %5979 = vpow2.f32 %v4131_v21  ;;  %4306 = vmatpush.msra.mxu2 %v5739_v60  ;;  %v4033_v28 = vand.u32 2147483648, %v9685_v62  ;;  %v3878_v12 = vmul.f32 0.5, %v9589_v32  ;;  %v5731_v60 = vld [vmem:[%s10050_s9 + $0x190] sm:$0xff] }
 0x4a2   :  { %v4078_v50 = vadd.f32 -0.28449672, %v4070_v59  ;;  %v3995_v10 = vmul.f32 %v5974_v45, %v3994_v36  ;;  %v4048_v18 = vadd.f32 -1.4531521, %v4040_v42  ;;  %4361 = vmatpush.msrb.mxu0 %v4226_v49  ;;  %vm4027_vm14 = vweird.f32 %v9685_v62 }
 0x4a3   :  { %v4135_v59 = vmul.f32 1.442695, %v4122_v1  ;;  %vm4032_vm9 = vcmp.eq.f32.partialorder %v4031_v57, 8.507059e+37 }
 0x4a4   :  { %v4086_v22 = vmul.f32 %v4078_v50, %v9653_v41  ;;  %v3996_v52 = vadd.f32 %v5974_v45, %v3995_v10  ;;  %v4056_v27 = vmul.f32 %v4048_v18, %v9694_v24  ;;  %4362 = vmatpush.msrb.mxu0 %v4225_v11  ;;  %v4034_v10 = vor.u32 1.1754944e-38, %v4033_v28 }
 0x4a5   :  { %v9730_v2 = vpop.eup %5975  ;;  %v4116_v18 = vsub.f32 0.0, %v9671_v54  ;;  %5981 = vpow2.f32 %v4135_v59 }
 0x4a6   :  { %v4094_v8 = vadd.f32 0.2548296, %v4086_v22  ;;  %v4000_v51 = vsel %vm3999_vm4, %v5974_v45, %v3996_v52  ;;  %v4064_v5 = vadd.f32 1.4214138, %v4056_v27  ;;  %v4023_v4 = vmul.f32 %v9730_v2, %v9685_v62  ;;  %v5978_v6 = vpop.eup %5977  ;;  %v5738_v45 = vld [vmem:[%s10050_s9 + $0x1c8] sm:$0xff] }
 0x4a7   :  { %v9732_v25 = vsel %vm4002_vm5, %v4004_v43, %v4000_v51  ;;  %vm4028_vm7 = vweird.f32 %v9730_v2  ;;  %4307 = vmatpush.msra.mxu2 %v5738_v45  ;;  %v9792_v62 = vld [vmem:[%s10052_s11 + $0x8] sm:$0xff]  ;;  %v5980_v56 = vpop.eup %5979  ;;  %v5733_v51 = vld [vmem:[%s10050_s9 + $0x1a0] sm:$0xff]  ;;  %v4124_v19 = vmul.f32 %v4116_v18, %v9671_v54 }
 0x4a8   :  { %v4102_v48 = vmul.f32 %v4094_v8, %v9653_v41  ;;  %v4042_v34 = vmul.f32 1.0614054, %v9732_v25  ;;  %v4072_v41 = vmul.f32 %v4064_v5, %v9694_v24  ;;  %v4024_v39 = vsub.f32 1.0, %v4023_v4  ;;  %vm9780_vm8 = vmor %vm4027_vm14, %vm4028_vm7  ;;  %v5734_v43 = vld [vmem:[%s10050_s9 + $0x1a8] sm:$0xff]  ;;  %4398 = vmatpush.msrb.mxu1 %v9792_v62  ;;  %4621 = vmatpush.msra.mxu3 %v9792_v62  ;;  %v5732_v5 = vld [vmem:[%s10050_s9 + $0x198] sm:$0xff] }
 0x4a9   :  { %4308 = vmatpush.msra.mxu2 %v5737_v20  ;;  %v4139_v1 = vmul.f32 1.442695, %v4124_v19  ;;  %v3882_v20 = vmul.f32 0.5, %v9621_v3  ;;  %vm4487_vm7 = vcmask 1041409   ;;  %vm4380_vm14 = vcmask 261120  }
 0x4aa   :  { %v4142_v14 = vmul.f32 %v5978_v6, %v4102_v48  ;;  %v4050_v44 = vadd.f32 -1.4531521, %v4042_v34  ;;  %v4080_v40 = vadd.f32 -0.28449672, %v4072_v41  ;;  %v4025_v17 = vmul.f32 %v9730_v2, %v4024_v39  ;;  %4399 = vmatpush.msrb.mxu1 %v9810_v30  ;;  %4622 = vmatpush.msra.mxu3 %v9810_v30 }
 0x4ab   :  { %4309 = vmatpush.msra.mxu2 %v5736_v0  ;;  %v6141_v34 = vmov 0.0   ;;  %v5982_v6 = vpop.eup %5981  ;;  %5983 = vpow2.f32 %v4139_v1 }
 0x4ac   :  { %v4150_v26 = vsub.f32 1.0, %v4142_v14  ;;  %v4058_v33 = vmul.f32 %v4050_v44, %v9732_v25  ;;  %v4088_v36 = vmul.f32 %v4080_v40, %v9694_v24  ;;  %v4026_v42 = vadd.f32 %v9730_v2, %v4025_v17  ;;  %4400 = vmatmul.f32.vlgmr.msrb.gmra.mxu1 %v6141_v34  ;;  %4967 = vmatpush.msrb.mxu3 %v9749_v15  ;;  %v5729_v40 = vld [vmem:[%s10050_s9 + $0x180] sm:$0xff] }
 0x4ad   :  { %4310 = vmatpush.msra.mxu2 %v5735_v63  ;;  %4735 = vmatpush.msra.mxu1 %v9749_v15  ;;  %v3880_v44 = vmul.f32 0.5, %v9606_v23 }
 0x4ae   :  { %v4166_v31 = vsub.f32 0.0, %v4150_v26  ;;  %v4066_v16 = vadd.f32 1.4214138, %v4058_v33  ;;  %v4096_v32 = vadd.f32 0.2548296, %v4088_v36  ;;  %v4030_v13 = vsel %vm9780_vm8, %v9730_v2, %v4026_v42  ;;  %4968 = vmatpush.msrb.mxu3 %v9787_v38 }
 0x4af   :  { %v9805_v52 = vsel %vm4032_vm9, %v4034_v10, %v4030_v13  ;;  %4311 = vmatpush.msra.mxu2 %v5734_v43  ;;  %4736 = vmatpush.msra.mxu1 %v9787_v38 }
 0x4b0   :  { %v4174_v47 = vsel %vm4158_vm6, %v4150_v26, %v4166_v31  ;;  %v4074_v37 = vmul.f32 %v4066_v16, %v9732_v25  ;;  %v4104_v22 = vmul.f32 %v4096_v32, %v9694_v24  ;;  %v4044_v7 = vmul.f32 1.0614054, %v9805_v52  ;;  %4969 = vmatpush.msrb.mxu3 %v9792_v62 }
 0x4b1   :  { %v4182_v35 = vadd.f32 1.0, %v4174_v47  ;;  %4312 = vmatpush.msra.mxu2 %v5733_v51  ;;  %4737 = vmatpush.msra.mxu1 %v9792_v62  ;;  %v3884_v16 = vmul.f32 0.5, %v9646_v58 }
 0x4b2   :  { %v4082_v55 = vadd.f32 -0.28449672, %v4074_v37  ;;  %v4144_v24 = vmul.f32 %v5980_v56, %v4104_v22  ;;  %v4052_v61 = vadd.f32 -1.4531521, %v4044_v7  ;;  %4970 = vmatpush.msrb.mxu3 %v9810_v30 }
 0x4b3   :  { %v4190_v27 = vmul.f32 %v4182_v35, %v3878_v12  ;;  %4313 = vmatpush.msra.mxu2 %v5732_v5  ;;  %4738 = vmatpush.msra.mxu1 %v9810_v30  ;;  %v5984_v12 = vpop.eup %5983 }
 0x4b4   :  { %v4090_v8 = vmul.f32 %v4082_v55, %v9732_v25  ;;  %v4152_v2 = vsub.f32 1.0, %v4144_v24  ;;  %v4060_v48 = vmul.f32 %v4052_v61, %v9805_v52 }
 0x4b5   :  { %4363 = vmatmul.f32.vlgmr.msrb.gmra.mxu0 %v4190_v27  ;;  %4314 = vmatpush.msra.mxu2 %v5731_v60 }
 0x4b6   :  { %v4098_v21 = vadd.f32 0.2548296, %v4090_v8  ;;  %v4168_v4 = vsub.f32 0.0, %v4152_v2  ;;  %v4068_v53 = vadd.f32 1.4214138, %v4060_v48  ;;  %5083 = vmatpush.msrb.mxu1 %v9749_v15 }
 0x4b7   :  { %4315 = vmatpush.msra.mxu2 %v5730_v9 }
 0x4b8   :  { %v4106_v54 = vmul.f32 %v4098_v21, %v9732_v25  ;;  %v4176_v41 = vsel %vm4160_vm10, %v4152_v2, %v4168_v4  ;;  %v4076_v25 = vmul.f32 %v4068_v53, %v9805_v52  ;;  %5084 = vmatpush.msrb.mxu1 %v9787_v38 }
 0x4b9   :  { %v4184_v39 = vadd.f32 1.0, %v4176_v41  ;;  %4316 = vmatpush.msra.mxu2 %v5729_v40 }
 0x4ba   :  { %v4146_v14 = vmul.f32 %v5982_v6, %v4106_v54  ;;  %v4084_v57 = vadd.f32 -0.28449672, %v4076_v25  ;;  %5085 = vmatpush.msrb.mxu1 %v9792_v62 }
 0x4bb   :  { %v4192_v49 = vmul.f32 %v4184_v39, %v3880_v44  ;;  %4505 = vmatpush.msrb.mxu2 %v9749_v15 }
 0x4bc   :  { %v4154_v45 = vsub.f32 1.0, %v4146_v14  ;;  %v4092_v28 = vmul.f32 %v4084_v57, %v9805_v52  ;;  %5086 = vmatpush.msrb.mxu1 %v9810_v30 }
 0x4bd   :  { %4366 = vmatmul.f32.gmra.mxu0 %v4192_v49  ;;  %4506 = vmatpush.msrb.mxu2 %v9787_v38 }
 0x4be   :  { %v4170_v23 = vsub.f32 0.0, %v4154_v45  ;;  %v4100_v33 = vadd.f32 0.2548296, %v4092_v28 }
 0x4bf   :  { %4507 = vmatpush.msrb.mxu2 %v9792_v62 }
 0x4c0   :  { %v4178_v26 = vsel %vm4162_vm11, %v4154_v45, %v4170_v23  ;;  %v4108_v17 = vmul.f32 %v4100_v33, %v9805_v52  ;;  %v5775_v52 = vld [vmem:[%s10051_s10] ss:$0 sm:$0xff]  ;;  %s6143_s10 = smov 32  }
 0x4c1   :  { %v4186_v11 = vadd.f32 1.0, %v4178_v26  ;;  %4508 = vmatpush.msrb.mxu2 %v9810_v30 }
 0x4c2   :  { %v4148_v36 = vmul.f32 %v5984_v12, %v4108_v17 }
 0x4c3   :  { %v4194_v59 = vmul.f32 %v4186_v11, %v3882_v20 }
 0x4c4   :  { %v4156_v29 = vsub.f32 1.0, %v4148_v36 }
 0x4c5   :  { %4317 = vmatmul.f32.vlgmr.msra.gmra.mxu2 %v4194_v59 }
 0x4c6   :  { %4851 = vmatpush.msra.mxu2 %v9749_v15  ;;  %v4172_v3 = vsub.f32 0.0, %v4156_v29 }
 0x4c8   :  { %4852 = vmatpush.msra.mxu2 %v9787_v38  ;;  %v4180_v31 = vsel %vm4164_vm12, %v4156_v29, %v4172_v3 }
 0x4c9   :  { %v4188_v0 = vadd.f32 1.0, %v4180_v31 }
 0x4ca   :  { %4853 = vmatpush.msra.mxu2 %v9792_v62 }
 0x4cb   :  { %v4196_v42 = vmul.f32 %v4188_v0, %v3884_v16 }
 0x4cc   :  { %4854 = vmatpush.msra.mxu2 %v9810_v30 }
 0x4cd   :  { %4320 = vmatmul.f32.gmra.mxu2 %v4196_v42 }
 0x4ec   :  { %v4341_v10 = vpop.f32.mrf.mxu3 }
 0x4f4   :  { %v4344_v56 = vpop.f32.mrf.mxu3 }
 0x509   :  { %v4295_v32 = vpop.f32.mrf.mxu1 }
 0x517   :  { %v4298_v37 = vpop.f32.mrf.mxu1 }
 0x529   :  { %v4401_v58 = vpop.f32.mrf.mxu1 }
 0x52a   :  { %v4405_v43 = vrot.slane %v4401_v58, 1 }
 0x532   :  { %v4364_v47 = vpop.f32.mrf.mxu0 }
 0x53a   :  { %v4367_v22 = vpop.f32.mrf.mxu0 }
 0x548   :  { %v4318_v50 = vpop.f32.mrf.mxu2 }
 0x549   :  { %v4319_v63 = vadd.f32 %v4318_v50, %v4295_v32 }
 0x54b   :  { %v4342_v35 = vadd.f32 %v4341_v10, %v4319_v63 }
 0x54d   :  { %v4365_v7 = vadd.f32 %v4364_v47, %v4342_v35 }
 0x54f   :  { %v9874_v8 = vadd.f32 %v5775_v52, %v4365_v7 }
 0x550   :  { %v4321_v13 = vpop.f32.mrf.mxu2 }
 0x551   :  { %v4322_v46 = vadd.f32 %v4321_v13, %v4298_v37  ;;  %v4408_v51 = vadd.f32 %v4401_v58, %v9874_v8 }
 0x553   :  { %v4345_v18 = vadd.f32 %v4344_v56, %v4322_v46  ;;  %v5745_v21 = vmul.f32 -1.442695, %v4408_v51 }
 0x555   :  { %v4368_v55 = vadd.f32 %v4367_v22, %v4345_v18 }
 0x557   :  { %v9871_v27 = vadd.f32 %v5775_v52, %v4368_v55 }
 0x559   :  { %v4409_v24 = vadd.f32 %v4405_v43, %v9871_v27 }
 0x55b   :  { %5985 = vtanh.f32 %v4409_v24  ;;  %v5746_v2 = vmul.f32 -1.442695, %v4409_v24 }
 0x55c   :  { %5987 = vtanh.f32 %v4408_v51 }
 0x55d   :  { %5989 = vpow2.f32 %v5746_v2 }
 0x55e   :  { %5991 = vpow2.f32 %v5745_v21 }
 0x561   :  { %v5986_v61 = vpop.eup %5985 }
 0x562   :  { %4456 = vrot.lane.b32.xlu0 %v5986_v61, %s6142_s7  ;;  %v5988_v19 = vpop.eup %5987 }
 0x563   :  { %v5990_v5 = vpop.eup %5989 }
 0x564   :  { %v4417_v48 = vadd.f32 1.0, %v5990_v5  ;;  %v5992_v34 = vpop.eup %5991 }
 0x565   :  { %v4416_v4 = vadd.f32 1.0, %v5992_v34 }
 0x566   :  { %5993 = vrcp.f32 %v4417_v48  ;;  %v4444_v39 = vand.u32 2147483648, %v4417_v48  ;;  %vm4438_vm15 = vweird.f32 %v4417_v48  ;;  %v4442_v9 = vand.u32 2147483647, %v4417_v48 }
 0x567   :  { %5995 = vrcp.f32 %v4416_v4  ;;  %v4429_v26 = vand.u32 2147483648, %v4416_v4  ;;  %vm4423_vm3 = vweird.f32 %v4416_v4  ;;  %v4427_v33 = vand.u32 2147483647, %v4416_v4 }
 0x568   :  { %v4445_v49 = vor.u32 1.1754944e-38, %v4444_v39  ;;  %vm4443_vm1 = vcmp.eq.f32.partialorder %v4442_v9, 8.507059e+37 }
 0x569   :  { %v4430_v11 = vor.u32 1.1754944e-38, %v4429_v26  ;;  %vm4428_vm5 = vcmp.eq.f32.partialorder %v4427_v33, 8.507059e+37 }
 0x56a   :  { %4454 = vrot.lane.b32.xlu0 %v5988_v19, %s6142_s7 }
 0x56c   :  { %v5994_v54 = vpop.eup %5993 }
 0x56d   :  { %v4434_v60 = vmul.f32 %v5994_v54, %v4417_v48  ;;  %v5996_v6 = vpop.eup %5995  ;;  %vm4439_vm13 = vweird.f32 %v5994_v54 }
 0x56e   :  { %v4419_v41 = vmul.f32 %v5996_v6, %v4416_v4  ;;  %vm4440_vm0 = vmor %vm4438_vm15, %vm4439_vm13  ;;  %vm4424_vm2 = vweird.f32 %v5996_v6 }
 0x56f   :  { %v4435_v53 = vsub.f32 1.0, %v4434_v60  ;;  %vm4425_vm4 = vmor %vm4423_vm3, %vm4424_vm2 }
 0x570   :  { %v4420_v44 = vsub.f32 1.0, %v4419_v41 }
 0x571   :  { %v4436_v1 = vmul.f32 %v5994_v54, %v4435_v53 }
 0x572   :  { %v4421_v45 = vmul.f32 %v5996_v6, %v4420_v44 }
 0x573   :  { %v4437_v14 = vadd.f32 %v5994_v54, %v4436_v1 }
 0x574   :  { %v4422_v28 = vadd.f32 %v5996_v6, %v4421_v45 }
 0x575   :  { %v4441_v25 = vsel %vm4440_vm0, %v5994_v54, %v4437_v14 }
 0x576   :  { %v4446_v57 = vsel %vm4443_vm1, %v4445_v49, %v4441_v25  ;;  %v4426_v20 = vsel %vm4425_vm4, %v5996_v6, %v4422_v28 }
 0x577   :  { %v4431_v12 = vsel %vm4428_vm5, %v4430_v11, %v4426_v20  ;;  %v4451_v36 = vmul.f32 0.0, %v4446_v57 }
 0x578   :  { %v4450_v31 = vmul.f32 0.0, %v4431_v12 }
 0x5d4   :  { %v4457_v40 = vpop.permute.xlu0 %4456 }
 0x5d5   :  { %v4461_v23 = vmul.f32 %v4457_v40, %v4446_v57 }
 0x5d7   :  { %4466 = vrot.lane.b32.xlu1 %v4461_v23, %s6143_s10 }
 0x5dc   :  { %v4455_v17 = vpop.permute.xlu0 %4454 }
 0x5dd   :  { %v4460_v59 = vmul.f32 %v4455_v17, %v4431_v12 }
 0x5df   :  { %4464 = vrot.lane.b32.xlu1 %v4460_v59, %s6143_s10 }
 0x649   :  { %v4467_v29 = vpop.permute.xlu1 %4466 }
 0x64a   :  { %v9881_v3 = vadd.f32 %v4467_v29, %v4451_v36 }
 0x64c   :  { %5997 = vtanh.f32 %v9881_v3  ;;  %v4562_v40 = vrot.slane %v9881_v3, 7 }
 0x651   :  { %v4465_v16 = vpop.permute.xlu1 %4464 }
 0x652   :  { %v5998_v0 = vpop.eup %5997  ;;  %v9884_v42 = vadd.f32 %v4465_v16, %v4450_v31 }
 0x653   :  { %4478 = vrot.lane.b32.xlu2 %v5998_v0, %s6142_s7 }
 0x654   :  { %5999 = vtanh.f32 %v9884_v42  ;;  %v4561_v33 = vrot.slane %v9884_v42, 7 }
 0x65a   :  { %v6000_v32 = vpop.eup %5999 }
 0x65b   :  { %4476 = vrot.lane.b32.xlu2 %v6000_v32, %s6142_s7 }
 0x6ad   :  { %v4479_v50 = vpop.permute.xlu2 %4478 }
 0x6ae   :  { %v4483_v10 = vmul.f32 %v4479_v50, %v4446_v57 }
 0x6b0   :  { %v4486_v37 = vrot.slane %v4483_v10, 7 }
 0x6b5   :  { %v4477_v47 = vpop.permute.xlu2 %4476 }
 0x6b6   :  { %v4482_v63 = vmul.f32 %v4477_v47, %v4431_v12 }
 0x6b8   :  { %v4488_v13 = vsel %vm4487_vm7, %v4486_v37, %v4482_v63 }
 0x6b9   :  { %4489 = vrot.lane.b32.xlu0 %v4488_v13, %s6143_s10 }
 0x72b   :  { %v4490_v46 = vpop.permute.xlu0 %4489 }
 0x72c   :  { %5747 = vmatmul.msk.f32.vlgmr.msrb.gmra.mxu2 %vm4380_vm14, %v4490_v46 }
 0x72d   :  { %5199 = vmatpush.msrb.mxu2 %v9749_v15 }
 0x72f   :  { %5200 = vmatpush.msrb.mxu2 %v9787_v38 }
 0x731   :  { %5201 = vmatpush.msrb.mxu2 %v9792_v62 }
 0x733   :  { %5202 = vmatpush.msrb.mxu2 %v9810_v30 }
 0x7af   :  { %v4510_v56 = vpop.f32.mrf.mxu2 }
 0x7b0   :  { %v4514_v35 = vrot.slane %v4510_v56, 7  ;;  %v4518_v18 = vadd.f32 %v4510_v56, %v9871_v27 }
 0x7b2   :  { %v4517_v22 = vadd.f32 %v4514_v35, %v9874_v8  ;;  %6001 = vtanh.f32 %v4518_v18  ;;  %v5749_v15 = vmul.f32 -1.442695, %v4518_v18 }
 0x7b4   :  { %6003 = vtanh.f32 %v4517_v22  ;;  %v5748_v43 = vmul.f32 -1.442695, %v4517_v22 }
 0x7b5   :  { %6005 = vpow2.f32 %v5749_v15 }
 0x7b8   :  { %v6002_v58 = vpop.eup %6001 }
 0x7b9   :  { %4571 = vrot.lane.b32.xlu2 %v6002_v58, %s6142_s7 }
 0x7ba   :  { %v6004_v52 = vpop.eup %6003 }
 0x7bb   :  { %4569 = vrot.lane.b32.xlu1 %v6004_v52, %s6142_s7  ;;  %v6006_v38 = vpop.eup %6005 }
 0x7bc   :  { %v4526_v62 = vadd.f32 1.0, %v6006_v38 }
 0x7be   :  { %6007 = vrcp.f32 %v4526_v62  ;;  %v4553_v19 = vand.u32 2147483648, %v4526_v62  ;;  %vm4547_vm8 = vweird.f32 %v4526_v62  ;;  %v4551_v21 = vand.u32 2147483647, %v4526_v62 }
 0x7bf   :  { %6009 = vpow2.f32 %v5748_v43 }
 0x7c0   :  { %v4554_v48 = vor.u32 1.1754944e-38, %v4553_v19  ;;  %vm4552_vm10 = vcmp.eq.f32.partialorder %v4551_v21, 8.507059e+37 }
 0x7c4   :  { %v6008_v30 = vpop.eup %6007 }
 0x7c5   :  { %v4543_v55 = vmul.f32 %v6008_v30, %v4526_v62  ;;  %v6010_v51 = vpop.eup %6009  ;;  %vm4548_vm6 = vweird.f32 %v6008_v30 }
 0x7c6   :  { %v4525_v2 = vadd.f32 1.0, %v6010_v51  ;;  %vm4549_vm9 = vmor %vm4547_vm8, %vm4548_vm6 }
 0x7c7   :  { %v4544_v7 = vsub.f32 1.0, %v4543_v55 }
 0x7c8   :  { %6011 = vrcp.f32 %v4525_v2  ;;  %v4538_v14 = vand.u32 2147483648, %v4525_v2  ;;  %vm4532_vm12 = vweird.f32 %v4525_v2  ;;  %v4536_v44 = vand.u32 2147483647, %v4525_v2 }
 0x7c9   :  { %v4545_v24 = vmul.f32 %v6008_v30, %v4544_v7 }
 0x7ca   :  { %v4539_v9 = vor.u32 1.1754944e-38, %v4538_v14  ;;  %vm4537_vm15 = vcmp.eq.f32.partialorder %v4536_v44, 8.507059e+37 }
 0x7cb   :  { %v4546_v61 = vadd.f32 %v6008_v30, %v4545_v24 }
 0x7cd   :  { %v4550_v5 = vsel %vm4549_vm9, %v6008_v30, %v4546_v61 }
 0x7ce   :  { %v4555_v4 = vsel %vm4552_vm10, %v4554_v48, %v4550_v5  ;;  %v6012_v60 = vpop.eup %6011 }
 0x7cf   :  { %v4528_v53 = vmul.f32 %v6012_v60, %v4525_v2  ;;  %vm4533_vm11 = vweird.f32 %v6012_v60  ;;  %v4566_v57 = vmul.f32 %v4562_v40, %v4555_v4 }
 0x7d0   :  { %vm4534_vm13 = vmor %vm4532_vm12, %vm4533_vm11 }
 0x7d1   :  { %v4529_v6 = vsub.f32 1.0, %v4528_v53 }
 0x7d3   :  { %v4530_v1 = vmul.f32 %v6012_v60, %v4529_v6 }
 0x7d5   :  { %v4531_v41 = vadd.f32 %v6012_v60, %v4530_v1 }
 0x7d7   :  { %v4535_v39 = vsel %vm4534_vm13, %v6012_v60, %v4531_v41 }
 0x7d8   :  { %v4540_v45 = vsel %vm4537_vm15, %v4539_v9, %v4535_v39 }
 0x7d9   :  { %v4565_v20 = vmul.f32 %v4561_v33, %v4540_v45 }
 0x813   :  { %v4572_v34 = vpop.permute.xlu2 %4571 }
 0x814   :  { %v4576_v54 = vmul.f32 %v4572_v34, %v4555_v4 }
 0x816   :  { %4581 = vrot.lane.b32.xlu1 %v4576_v54, %s6143_s10 }
 0x82d   :  { %v4570_v25 = vpop.permute.xlu1 %4569 }
 0x82e   :  { %v4575_v49 = vmul.f32 %v4570_v25, %v4540_v45 }
 0x830   :  { %4579 = vrot.lane.b32.xlu0 %v4575_v49, %s6143_s10 }
 0x888   :  { %v4582_v23 = vpop.permute.xlu1 %4581 }
 0x889   :  { %v9903_v28 = vadd.f32 %v4582_v23, %v4566_v57 }
 0x88b   :  { %6013 = vtanh.f32 %v9903_v28  ;;  %v4677_v14 = vrot.slane %v9903_v28, 7 }
 0x891   :  { %v6014_v26 = vpop.eup %6013 }
 0x892   :  { %4593 = vrot.lane.b32.xlu0 %v6014_v26, %s6142_s7 }
 0x8a2   :  { %v4580_v11 = vpop.permute.xlu0 %4579 }
 0x8a3   :  { %v9908_v17 = vadd.f32 %v4580_v11, %v4565_v20 }
 0x8a5   :  { %6015 = vtanh.f32 %v9908_v17  ;;  %v4676_v41 = vrot.slane %v9908_v17, 7 }
 0x8ab   :  { %v6016_v12 = vpop.eup %6015 }
 0x8ac   :  { %4591 = vrot.lane.b32.xlu2 %v6016_v12, %s6142_s7 }
 0x904   :  { %v4594_v59 = vpop.permute.xlu0 %4593 }
 0x905   :  { %v4598_v3 = vmul.f32 %v4594_v59, %v4555_v4 }
 0x906   :  { %v4592_v36 = vpop.permute.xlu2 %4591 }
 0x907   :  { %v4597_v29 = vmul.f32 %v4592_v36, %v4540_v45 }
 0x909   :  { %v4601_v31 = vrot.slane %v4597_v29, 1 }
 0x90b   :  { %v4602_v16 = vsel %vm4487_vm7, %v4598_v3, %v4601_v31 }
 0x90c   :  { %4603 = vrot.lane.b32.xlu1 %v4602_v16, %s6143_s10 }
 0x97e   :  { %v4604_v0 = vpop.permute.xlu1 %4603 }
 0x97f   :  { %5750 = vmatmul.msk.f32.vlgmr.msra.gmra.mxu3 %vm4380_vm14, %v4604_v0 }
 0xa02   :  { %v4624_v42 = vpop.f32.mrf.mxu3 }
 0xa03   :  { %v4628_v32 = vrot.slane %v4624_v42, 6  ;;  %v4629_v50 = vrot.slane %v4624_v42, 7 }
 0xa05   :  { %v4632_v10 = vadd.f32 %v4628_v32, %v9874_v8  ;;  %v4633_v47 = vadd.f32 %v4629_v50, %v9871_v27 }
 0xa07   :  { %6017 = vtanh.f32 %v4632_v10  ;;  %v5751_v13 = vmul.f32 -1.442695, %v4632_v10  ;;  %v5752_v18 = vmul.f32 -1.442695, %v4633_v47 }
 0xa08   :  { %6019 = vtanh.f32 %v4633_v47 }
 0xa09   :  { %6021 = vpow2.f32 %v5751_v13 }
 0xa0d   :  { %v6018_v37 = vpop.eup %6017 }
 0xa0e   :  { %v6020_v63 = vpop.eup %6019  ;;  %4684 = vrot.lane.b32.xlu2 %v6018_v37, %s6142_s7 }
 0xa0f   :  { %4686 = vrot.lane.b32.xlu0 %v6020_v63, %s6142_s7  ;;  %v6022_v46 = vpop.eup %6021 }
 0xa10   :  { %v4640_v56 = vadd.f32 1.0, %v6022_v46 }
 0xa12   :  { %6023 = vrcp.f32 %v4640_v56  ;;  %v4653_v30 = vand.u32 2147483648, %v4640_v56  ;;  %vm4647_vm1 = vweird.f32 %v4640_v56  ;;  %v4651_v55 = vand.u32 2147483647, %v4640_v56 }
 0xa13   :  { %6025 = vpow2.f32 %v5752_v18 }
 0xa14   :  { %v4654_v7 = vor.u32 1.1754944e-38, %v4653_v30  ;;  %vm4652_vm3 = vcmp.eq.f32.partialorder %v4651_v55, 8.507059e+37 }
 0xa18   :  { %v6024_v35 = vpop.eup %6023 }
 0xa19   :  { %v4643_v22 = vmul.f32 %v6024_v35, %v4640_v56  ;;  %v6026_v15 = vpop.eup %6025  ;;  %vm4648_vm0 = vweird.f32 %v6024_v35 }
 0xa1a   :  { %v4641_v38 = vadd.f32 1.0, %v6026_v15  ;;  %vm4649_vm2 = vmor %vm4647_vm1, %vm4648_vm0 }
 0xa1b   :  { %v4644_v58 = vsub.f32 1.0, %v4643_v22 }
 0xa1c   :  { %6027 = vrcp.f32 %v4641_v38  ;;  %v4668_v34 = vand.u32 2147483648, %v4641_v38  ;;  %vm4662_vm5 = vweird.f32 %v4641_v38  ;;  %v4666_v4 = vand.u32 2147483647, %v4641_v38 }
 0xa1d   :  { %v4645_v52 = vmul.f32 %v6024_v35, %v4644_v58 }
 0xa1e   :  { %v4669_v60 = vor.u32 1.1754944e-38, %v4668_v34  ;;  %vm4667_vm8 = vcmp.eq.f32.partialorder %v4666_v4, 8.507059e+37 }
 0xa1f   :  { %v4646_v62 = vadd.f32 %v6024_v35, %v4645_v52 }
 0xa21   :  { %v4650_v43 = vsel %vm4649_vm2, %v6024_v35, %v4646_v62 }
 0xa22   :  { %v4655_v51 = vsel %vm4652_vm3, %v4654_v7, %v4650_v43  ;;  %v6028_v19 = vpop.eup %6027 }
 0xa23   :  { %v4658_v2 = vmul.f32 %v6028_v19, %v4641_v38  ;;  %vm4663_vm4 = vweird.f32 %v6028_v19  ;;  %v4680_v44 = vmul.f32 %v4676_v41, %v4655_v51 }
 0xa24   :  { %vm4664_vm6 = vmor %vm4662_vm5, %vm4663_vm4 }
 0xa25   :  { %v4659_v21 = vsub.f32 1.0, %v4658_v2 }
 0xa27   :  { %v4660_v5 = vmul.f32 %v6028_v19, %v4659_v21 }
 0xa29   :  { %v4661_v48 = vadd.f32 %v6028_v19, %v4660_v5 }
 0xa2b   :  { %v4665_v54 = vsel %vm4664_vm6, %v6028_v19, %v4661_v48 }
 0xa2c   :  { %v4670_v6 = vsel %vm4667_vm8, %v4669_v60, %v4665_v54 }
 0xa2d   :  { %v4681_v39 = vmul.f32 %v4677_v14, %v4670_v6 }
 0xa68   :  { %v4685_v24 = vpop.permute.xlu2 %4684 }
 0xa69   :  { %v4690_v61 = vmul.f32 %v4685_v24, %v4655_v51 }
 0xa6b   :  { %4694 = vrot.lane.b32.xlu1 %v4690_v61, %s6143_s10 }
 0xa81   :  { %v4687_v53 = vpop.permute.xlu0 %4686 }
 0xa82   :  { %v4691_v1 = vmul.f32 %v4687_v53, %v4670_v6 }
 0xa84   :  { %4696 = vrot.lane.b32.xlu2 %v4691_v1, %s6143_s10 }
 0xadd   :  { %v4695_v9 = vpop.permute.xlu1 %4694 }
 0xade   :  { %v4697_v25 = vpop.permute.xlu2 %4696  ;;  %v9923_v45 = vadd.f32 %v4695_v9, %v4680_v44 }
 0xadf   :  { %v9925_v49 = vadd.f32 %v4697_v25, %v4681_v39 }
 0xae0   :  { %6029 = vtanh.f32 %v9923_v45  ;;  %v4792_v34 = vrot.slane %v9923_v45, 7 }
 0xae1   :  { %6031 = vtanh.f32 %v9925_v49 }
 0xae6   :  { %v6030_v40 = vpop.eup %6029 }
 0xae7   :  { %v6032_v57 = vpop.eup %6031  ;;  %4706 = vrot.lane.b32.xlu0 %v6030_v40, %s6142_s7 }
 0xae8   :  { %4708 = vrot.lane.b32.xlu1 %v6032_v57, %s6142_s7 }
 0xb59   :  { %v4707_v23 = vpop.permute.xlu0 %4706 }
 0xb5a   :  { %v4709_v28 = vpop.permute.xlu1 %4708  ;;  %v4712_v26 = vmul.f32 %v4707_v23, %v4655_v51 }
 0xb5b   :  { %v4713_v33 = vmul.f32 %v4709_v28, %v4670_v6  ;;  %v4793_v6 = vrot.slane %v9925_v49, 7 }
 0xb5c   :  { %v4716_v20 = vrot.slane %v4712_v26, 2 }
 0xb5d   :  { %v4717_v11 = vrot.slane %v4713_v33, 1 }
 0xb5f   :  { %v4718_v17 = vsel %vm4487_vm7, %v4717_v11, %v4716_v20 }
 0xb60   :  { %4719 = vrot.lane.b32.xlu2 %v4718_v17, %s6143_s10 }
 0xbba   :  { %v4720_v12 = vpop.permute.xlu2 %4719 }
 0xbbb   :  { %5753 = vmatmul.msk.f32.vlgmr.msra.gmra.mxu1 %vm4380_vm14, %v4720_v12 }
 0xc38   :  { %v4740_v59 = vpop.f32.mrf.mxu1 }
 0xc39   :  { %v4744_v36 = vrot.slane %v4740_v59, 5  ;;  %v4745_v29 = vrot.slane %v4740_v59, 6 }
 0xc3b   :  { %v4748_v3 = vadd.f32 %v4744_v36, %v9874_v8  ;;  %v4749_v31 = vadd.f32 %v4745_v29, %v9871_v27 }
 0xc3d   :  { %6033 = vtanh.f32 %v4748_v3  ;;  %v5754_v42 = vmul.f32 -1.442695, %v4748_v3  ;;  %v5755_v32 = vmul.f32 -1.442695, %v4749_v31 }
 0xc3e   :  { %6035 = vtanh.f32 %v4749_v31 }
 0xc3f   :  { %6037 = vpow2.f32 %v5754_v42 }
 0xc40   :  { %6039 = vpow2.f32 %v5755_v32 }
 0xc43   :  { %v6034_v16 = vpop.eup %6033 }
 0xc44   :  { %v6036_v0 = vpop.eup %6035  ;;  %4800 = vrot.lane.b32.xlu0 %v6034_v16, %s6142_s7 }
 0xc45   :  { %4802 = vrot.lane.b32.xlu1 %v6036_v0, %s6142_s7  ;;  %v6038_v50 = vpop.eup %6037 }
 0xc46   :  { %v6040_v10 = vpop.eup %6039  ;;  %v4756_v47 = vadd.f32 1.0, %v6038_v50 }
 0xc47   :  { %v4757_v37 = vadd.f32 1.0, %v6040_v10 }
 0xc48   :  { %6041 = vrcp.f32 %v4756_v47  ;;  %v4769_v38 = vand.u32 2147483648, %v4756_v47  ;;  %vm4763_vm11 = vweird.f32 %v4756_v47  ;;  %v4767_v30 = vand.u32 2147483647, %v4756_v47 }
 0xc49   :  { %6043 = vrcp.f32 %v4757_v37  ;;  %v4784_v62 = vand.u32 2147483648, %v4757_v37  ;;  %vm4778_vm12 = vweird.f32 %v4757_v37  ;;  %v4782_v55 = vand.u32 2147483647, %v4757_v37 }
 0xc4a   :  { %v4770_v24 = vor.u32 1.1754944e-38, %v4769_v38  ;;  %vm4768_vm0 = vcmp.eq.f32.partialorder %v4767_v30, 8.507059e+37 }
 0xc4b   :  { %v4785_v51 = vor.u32 1.1754944e-38, %v4784_v62  ;;  %vm4783_vm1 = vcmp.eq.f32.partialorder %v4782_v55, 8.507059e+37 }
 0xc4e   :  { %v6042_v63 = vpop.eup %6041 }
 0xc4f   :  { %v6044_v13 = vpop.eup %6043  ;;  %v4759_v46 = vmul.f32 %v6042_v63, %v4756_v47  ;;  %vm4764_vm9 = vweird.f32 %v6042_v63 }
 0xc50   :  { %v4774_v56 = vmul.f32 %v6044_v13, %v4757_v37  ;;  %vm4779_vm10 = vweird.f32 %v6044_v13  ;;  %vm4765_vm13 = vmor %vm4763_vm11, %vm4764_vm9 }
 0xc51   :  { %v4760_v35 = vsub.f32 1.0, %v4759_v46  ;;  %vm4780_vm15 = vmor %vm4778_vm12, %vm4779_vm10 }
 0xc52   :  { %v4775_v18 = vsub.f32 1.0, %v4774_v56 }
 0xc53   :  { %v4761_v22 = vmul.f32 %v6042_v63, %v4760_v35 }
 0xc54   :  { %v4776_v58 = vmul.f32 %v6044_v13, %v4775_v18 }
 0xc55   :  { %v4762_v52 = vadd.f32 %v6042_v63, %v4761_v22 }
 0xc56   :  { %v4777_v15 = vadd.f32 %v6044_v13, %v4776_v58 }
 0xc57   :  { %v4766_v43 = vsel %vm4765_vm13, %v6042_v63, %v4762_v52 }
 0xc58   :  { %v4781_v7 = vsel %vm4780_vm15, %v6044_v13, %v4777_v15  ;;  %v4771_v19 = vsel %vm4768_vm0, %v4770_v24, %v4766_v43 }
 0xc59   :  { %v4786_v21 = vsel %vm4783_vm1, %v4785_v51, %v4781_v7  ;;  %v4796_v4 = vmul.f32 %v4792_v34, %v4771_v19 }
 0xc5a   :  { %v4797_v1 = vmul.f32 %v4793_v6, %v4786_v21 }
 0xcb6   :  { %v4801_v61 = vpop.permute.xlu0 %4800 }
 0xcb7   :  { %v4803_v2 = vpop.permute.xlu1 %4802  ;;  %v4806_v5 = vmul.f32 %v4801_v61, %v4771_v19 }
 0xcb8   :  { %v4807_v48 = vmul.f32 %v4803_v2, %v4786_v21 }
 0xcb9   :  { %4810 = vrot.lane.b32.xlu2 %v4806_v5, %s6143_s10 }
 0xcba   :  { %4812 = vrot.lane.b32.xlu0 %v4807_v48, %s6143_s10 }
 0xd13   :  { %v4811_v54 = vpop.permute.xlu2 %4810 }
 0xd14   :  { %v9941_v60 = vadd.f32 %v4811_v54, %v4796_v4 }
 0xd16   :  { %6045 = vtanh.f32 %v9941_v60  ;;  %v4908_v5 = vrot.slane %v9941_v60, 7 }
 0xd1c   :  { %v6046_v53 = vpop.eup %6045 }
 0xd1d   :  { %4822 = vrot.lane.b32.xlu1 %v6046_v53, %s6142_s7 }
 0xd2c   :  { %v4813_v41 = vpop.permute.xlu0 %4812 }
 0xd2d   :  { %v9946_v14 = vadd.f32 %v4813_v41, %v4797_v1 }
 0xd2f   :  { %6047 = vtanh.f32 %v9946_v14  ;;  %v4909_v51 = vrot.slane %v9946_v14, 7 }
 0xd35   :  { %v6048_v44 = vpop.eup %6047 }
 0xd36   :  { %4824 = vrot.lane.b32.xlu2 %v6048_v44, %s6142_s7 }
 0xd8f   :  { %v4823_v39 = vpop.permute.xlu1 %4822 }
 0xd90   :  { %v4825_v9 = vpop.permute.xlu2 %4824  ;;  %v4828_v25 = vmul.f32 %v4823_v39, %v4771_v19 }
 0xd91   :  { %v4829_v45 = vmul.f32 %v4825_v9, %v4786_v21 }
 0xd92   :  { %v4832_v40 = vrot.slane %v4828_v25, 3 }
 0xd93   :  { %v4833_v57 = vrot.slane %v4829_v45, 2 }
 0xd95   :  { %v4834_v23 = vsel %vm4487_vm7, %v4833_v57, %v4832_v40 }
 0xd96   :  { %4835 = vrot.lane.b32.xlu0 %v4834_v23, %s6143_s10 }
 0xe08   :  { %v4836_v49 = vpop.permute.xlu0 %4835 }
 0xe09   :  { %5756 = vmatmul.msk.f32.vlgmr.msra.gmra.mxu2 %vm4380_vm14, %v4836_v49 }
 0xe8c   :  { %v4856_v28 = vpop.f32.mrf.mxu2 }
 0xe8d   :  { %v4860_v26 = vrot.slane %v4856_v28, 4  ;;  %v4861_v33 = vrot.slane %v4856_v28, 5 }
 0xe8f   :  { %v4864_v20 = vadd.f32 %v4860_v26, %v9874_v8  ;;  %v4865_v11 = vadd.f32 %v4861_v33, %v9871_v27 }
 0xe91   :  { %6049 = vtanh.f32 %v4864_v20  ;;  %v5758_v59 = vmul.f32 -1.442695, %v4865_v11  ;;  %v5757_v31 = vmul.f32 -1.442695, %v4864_v20 }
 0xe92   :  { %6051 = vtanh.f32 %v4865_v11 }
 0xe93   :  { %6053 = vpow2.f32 %v5758_v59 }
 0xe97   :  { %v6050_v17 = vpop.eup %6049 }
 0xe98   :  { %v6052_v12 = vpop.eup %6051  ;;  %4916 = vrot.lane.b32.xlu1 %v6050_v17, %s6142_s7 }
 0xe99   :  { %4918 = vrot.lane.b32.xlu2 %v6052_v12, %s6142_s7  ;;  %v6054_v36 = vpop.eup %6053 }
 0xe9a   :  { %v4873_v29 = vadd.f32 1.0, %v6054_v36 }
 0xe9c   :  { %6055 = vrcp.f32 %v4873_v29  ;;  %v4900_v47 = vand.u32 2147483648, %v4873_v29  ;;  %vm4894_vm3 = vweird.f32 %v4873_v29  ;;  %v4898_v37 = vand.u32 2147483647, %v4873_v29 }
 0xe9d   :  { %6057 = vpow2.f32 %v5757_v31 }
 0xe9e   :  { %v4901_v13 = vor.u32 1.1754944e-38, %v4900_v47  ;;  %vm4899_vm5 = vcmp.eq.f32.partialorder %v4898_v37, 8.507059e+37 }
 0xea2   :  { %v6056_v3 = vpop.eup %6055 }
 0xea3   :  { %v4890_v16 = vmul.f32 %v6056_v3, %v4873_v29  ;;  %v6058_v42 = vpop.eup %6057  ;;  %vm4895_vm2 = vweird.f32 %v6056_v3 }
 0xea4   :  { %v4872_v50 = vadd.f32 1.0, %v6058_v42  ;;  %vm4896_vm4 = vmor %vm4894_vm3, %vm4895_vm2 }
 0xea5   :  { %v4891_v0 = vsub.f32 1.0, %v4890_v16 }
 0xea6   :  { %6059 = vrcp.f32 %v4872_v50  ;;  %v4885_v38 = vand.u32 2147483648, %v4872_v50  ;;  %vm4879_vm8 = vweird.f32 %v4872_v50  ;;  %v4883_v62 = vand.u32 2147483647, %v4872_v50 }
 0xea7   :  { %v4892_v32 = vmul.f32 %v6056_v3, %v4891_v0 }
 0xea8   :  { %v4886_v55 = vor.u32 1.1754944e-38, %v4885_v38  ;;  %vm4884_vm10 = vcmp.eq.f32.partialorder %v4883_v62, 8.507059e+37 }
 0xea9   :  { %v4893_v10 = vadd.f32 %v6056_v3, %v4892_v32 }
 0xeab   :  { %v4897_v63 = vsel %vm4896_vm4, %v6056_v3, %v4893_v10 }
 0xeac   :  { %v4902_v56 = vsel %vm4899_vm5, %v4901_v13, %v4897_v63  ;;  %v6060_v35 = vpop.eup %6059 }
 0xead   :  { %v4875_v22 = vmul.f32 %v6060_v35, %v4872_v50  ;;  %vm4880_vm6 = vweird.f32 %v6060_v35  ;;  %v4913_v61 = vmul.f32 %v4909_v51, %v4902_v56 }
 0xeae   :  { %vm4881_vm9 = vmor %vm4879_vm8, %vm4880_vm6 }
 0xeaf   :  { %v4876_v58 = vsub.f32 1.0, %v4875_v22 }
 0xeb1   :  { %v4877_v52 = vmul.f32 %v6060_v35, %v4876_v58 }
 0xeb3   :  { %v4878_v15 = vadd.f32 %v6060_v35, %v4877_v52 }
 0xeb5   :  { %v4882_v30 = vsel %vm4881_vm9, %v6060_v35, %v4878_v15 }
 0xeb6   :  { %v4887_v7 = vsel %vm4884_vm10, %v4886_v55, %v4882_v30 }
 0xeb7   :  { %v4912_v48 = vmul.f32 %v4908_v5, %v4887_v7 }
 0xef3   :  { %v4919_v46 = vpop.permute.xlu2 %4918 }
 0xef4   :  { %v4923_v18 = vmul.f32 %v4919_v46, %v4902_v56 }
 0xef6   :  { %4928 = vrot.lane.b32.xlu1 %v4923_v18, %s6143_s10 }
 0xf0a   :  { %v4917_v43 = vpop.permute.xlu1 %4916 }
 0xf0b   :  { %v4922_v24 = vmul.f32 %v4917_v43, %v4887_v7 }
 0xf0d   :  { %4926 = vrot.lane.b32.xlu0 %v4922_v24, %s6143_s10 }
 0xf68   :  { %v4929_v19 = vpop.permute.xlu1 %4928 }
 0xf69   :  { %v9960_v2 = vadd.f32 %v4929_v19, %v4913_v61 }
 0xf6b   :  { %6061 = vtanh.f32 %v9960_v2  ;;  %v5025_v62 = vrot.slane %v9960_v2, 7 }
 0xf71   :  { %v6062_v21 = vpop.eup %6061 }
 0xf72   :  { %4940 = vrot.lane.b32.xlu0 %v6062_v21, %s6142_s7 }
 0xf7f   :  { %v4927_v34 = vpop.permute.xlu0 %4926 }
 0xf80   :  { %v9965_v4 = vadd.f32 %v4927_v34, %v4912_v48 }
 0xf82   :  { %6063 = vtanh.f32 %v9965_v4  ;;  %v5024_v38 = vrot.slane %v9965_v4, 7 }
 0xf88   :  { %v6064_v54 = vpop.eup %6063 }
 0xf89   :  { %4938 = vrot.lane.b32.xlu2 %v6064_v54, %s6142_s7 }
 0xfe3   :  { %v4939_v53 = vpop.permute.xlu2 %4938 }
 0xfe4   :  { %v4941_v6 = vpop.permute.xlu0 %4940  ;;  %v4944_v1 = vmul.f32 %v4939_v53, %v4887_v7 }
 0xfe5   :  { %v4945_v41 = vmul.f32 %v4941_v6, %v4902_v56 }
 0xfe6   :  { %v4948_v14 = vrot.slane %v4944_v1, 4 }
 0xfe7   :  { %v4949_v44 = vrot.slane %v4945_v41, 3 }
 0xfe9   :  { %v4950_v39 = vsel %vm4487_vm7, %v4949_v44, %v4948_v14 }
 0xfea   :  { %4951 = vrot.lane.b32.xlu1 %v4950_v39, %s6143_s10 }
0x105c   :  { %v4952_v60 = vpop.permute.xlu1 %4951 }
0x105d   :  { %5759 = vmatmul.msk.f32.vlgmr.msrb.gmra.mxu3 %vm4380_vm14, %v4952_v60 }
0x10e0   :  { %v4972_v9 = vpop.f32.mrf.mxu3 }
0x10e1   :  { %v4976_v25 = vrot.slane %v4972_v9, 3  ;;  %v4977_v45 = vrot.slane %v4972_v9, 4 }
0x10e3   :  { %v4980_v40 = vadd.f32 %v4976_v25, %v9874_v8  ;;  %v4981_v57 = vadd.f32 %v4977_v45, %v9871_v27 }
0x10e5   :  { %6065 = vtanh.f32 %v4980_v40  ;;  %v5760_v28 = vmul.f32 -1.442695, %v4980_v40  ;;  %v5761_v11 = vmul.f32 -1.442695, %v4981_v57 }
0x10e6   :  { %6067 = vtanh.f32 %v4981_v57 }
0x10e7   :  { %6069 = vpow2.f32 %v5760_v28 }
0x10eb   :  { %v6066_v23 = vpop.eup %6065 }
0x10ec   :  { %v6068_v49 = vpop.eup %6067  ;;  %5032 = vrot.lane.b32.xlu2 %v6066_v23, %s6142_s7 }
0x10ed   :  { %5034 = vrot.lane.b32.xlu0 %v6068_v49, %s6142_s7  ;;  %v6070_v26 = vpop.eup %6069 }
0x10ee   :  { %v4988_v33 = vadd.f32 1.0, %v6070_v26 }
0x10f0   :  { %6071 = vrcp.f32 %v4988_v33  ;;  %v5001_v31 = vand.u32 2147483648, %v4988_v33  ;;  %vm4995_vm12 = vweird.f32 %v4988_v33  ;;  %v4999_v16 = vand.u32 2147483647, %v4988_v33 }
0x10f1   :  { %6073 = vpow2.f32 %v5761_v11 }
0x10f2   :  { %v5002_v42 = vor.u32 1.1754944e-38, %v5001_v31  ;;  %vm5000_vm15 = vcmp.eq.f32.partialorder %v4999_v16, 8.507059e+37 }
0x10f6   :  { %v6072_v20 = vpop.eup %6071 }
0x10f7   :  { %v4991_v17 = vmul.f32 %v6072_v20, %v4988_v33  ;;  %v6074_v36 = vpop.eup %6073  ;;  %vm4996_vm11 = vweird.f32 %v6072_v20 }
0x10f8   :  { %v4989_v29 = vadd.f32 1.0, %v6074_v36  ;;  %vm4997_vm13 = vmor %vm4995_vm12, %vm4996_vm11 }
0x10f9   :  { %v4992_v12 = vsub.f32 1.0, %v4991_v17 }
0x10fa   :  { %6075 = vrcp.f32 %v4989_v29  ;;  %v5016_v56 = vand.u32 2147483648, %v4989_v29  ;;  %vm5010_vm1 = vweird.f32 %v4989_v29  ;;  %v5014_v35 = vand.u32 2147483647, %v4989_v29 }
0x10fb   :  { %v4993_v59 = vmul.f32 %v6072_v20, %v4992_v12 }
0x10fc   :  { %v5017_v22 = vor.u32 1.1754944e-38, %v5016_v56  ;;  %vm5015_vm3 = vcmp.eq.f32.partialorder %v5014_v35, 8.507059e+37 }
0x10fd   :  { %v4994_v3 = vadd.f32 %v6072_v20, %v4993_v59 }
0x10ff   :  { %v4998_v0 = vsel %vm4997_vm13, %v6072_v20, %v4994_v3 }
0x1100   :  { %v5003_v50 = vsel %vm5000_vm15, %v5002_v42, %v4998_v0  ;;  %v6076_v47 = vpop.eup %6075 }
0x1101   :  { %v5006_v37 = vmul.f32 %v6076_v47, %v4989_v29  ;;  %vm5011_vm0 = vweird.f32 %v6076_v47  ;;  %v5028_v30 = vmul.f32 %v5024_v38, %v5003_v50 }
0x1102   :  { %vm5012_vm2 = vmor %vm5010_vm1, %vm5011_vm0 }
0x1103   :  { %v5007_v63 = vsub.f32 1.0, %v5006_v37 }
0x1105   :  { %v5008_v13 = vmul.f32 %v6076_v47, %v5007_v63 }
0x1107   :  { %v5009_v46 = vadd.f32 %v6076_v47, %v5008_v13 }
0x1109   :  { %v5013_v18 = vsel %vm5012_vm2, %v6076_v47, %v5009_v46 }
0x110a   :  { %v5018_v52 = vsel %vm5015_vm3, %v5017_v22, %v5013_v18 }
0x110b   :  { %v5029_v55 = vmul.f32 %v5025_v62, %v5018_v52 }
0x1146   :  { %v5033_v32 = vpop.permute.xlu2 %5032 }
0x1147   :  { %v5038_v10 = vmul.f32 %v5033_v32, %v5003_v50 }
0x1149   :  { %5042 = vrot.lane.b32.xlu1 %v5038_v10, %s6143_s10 }
0x115f   :  { %v5035_v58 = vpop.permute.xlu0 %5034 }
0x1160   :  { %v5039_v15 = vmul.f32 %v5035_v58, %v5018_v52 }
0x1162   :  { %5044 = vrot.lane.b32.xlu2 %v5039_v15, %s6143_s10 }
0x11bb   :  { %v5043_v43 = vpop.permute.xlu1 %5042 }
0x11bc   :  { %v5045_v7 = vpop.permute.xlu2 %5044  ;;  %v9980_v24 = vadd.f32 %v5043_v43, %v5028_v30 }
0x11bd   :  { %v9982_v51 = vadd.f32 %v5045_v7, %v5029_v55 }
0x11be   :  { %6077 = vtanh.f32 %v9980_v24  ;;  %v5140_v56 = vrot.slane %v9980_v24, 7 }
0x11bf   :  { %6079 = vtanh.f32 %v9982_v51 }
0x11c4   :  { %v6078_v61 = vpop.eup %6077 }
0x11c5   :  { %v6080_v19 = vpop.eup %6079  ;;  %5054 = vrot.lane.b32.xlu0 %v6078_v61, %s6142_s7 }
0x11c6   :  { %5056 = vrot.lane.b32.xlu1 %v6080_v19, %s6142_s7 }
0x1237   :  { %v5055_v21 = vpop.permute.xlu0 %5054 }
0x1238   :  { %v5057_v2 = vpop.permute.xlu1 %5056  ;;  %v5060_v5 = vmul.f32 %v5055_v21, %v5003_v50 }
0x1239   :  { %v5061_v48 = vmul.f32 %v5057_v2, %v5018_v52  ;;  %v5141_v52 = vrot.slane %v9982_v51, 7 }
0x123a   :  { %v5064_v34 = vrot.slane %v5060_v5, 5 }
0x123b   :  { %v5065_v4 = vrot.slane %v5061_v48, 4 }
0x123d   :  { %v5066_v54 = vsel %vm4487_vm7, %v5065_v4, %v5064_v34 }
0x123e   :  { %5067 = vrot.lane.b32.xlu2 %v5066_v54, %s6143_s10 }
0x1298   :  { %v5068_v53 = vpop.permute.xlu2 %5067 }
0x1299   :  { %5762 = vmatmul.msk.f32.vlgmr.msrb.gmra.mxu1 %vm4380_vm14, %v5068_v53 }
0x1316   :  { %v5088_v6 = vpop.f32.mrf.mxu1 }
0x1317   :  { %v5092_v1 = vrot.slane %v5088_v6, 2  ;;  %v5093_v41 = vrot.slane %v5088_v6, 3 }
0x1319   :  { %v5096_v14 = vadd.f32 %v5092_v1, %v9874_v8  ;;  %v5097_v44 = vadd.f32 %v5093_v41, %v9871_v27 }
0x131b   :  { %6081 = vtanh.f32 %v5096_v14  ;;  %v5763_v9 = vmul.f32 -1.442695, %v5096_v14  ;;  %v5764_v25 = vmul.f32 -1.442695, %v5097_v44 }
0x131c   :  { %6083 = vtanh.f32 %v5097_v44 }
0x131d   :  { %6085 = vpow2.f32 %v5763_v9 }
0x131e   :  { %6087 = vpow2.f32 %v5764_v25 }
0x1321   :  { %v6082_v39 = vpop.eup %6081 }
0x1322   :  { %v6084_v60 = vpop.eup %6083  ;;  %5148 = vrot.lane.b32.xlu0 %v6082_v39, %s6142_s7 }
0x1323   :  { %5150 = vrot.lane.b32.xlu1 %v6084_v60, %s6142_s7  ;;  %v6086_v45 = vpop.eup %6085 }
0x1324   :  { %v6088_v40 = vpop.eup %6087  ;;  %v5104_v57 = vadd.f32 1.0, %v6086_v45 }
0x1325   :  { %v5105_v23 = vadd.f32 1.0, %v6088_v40 }
0x1326   :  { %6089 = vrcp.f32 %v5104_v57  ;;  %v5117_v29 = vand.u32 2147483648, %v5104_v57  ;;  %vm5111_vm6 = vweird.f32 %v5104_v57  ;;  %v5115_v31 = vand.u32 2147483647, %v5104_v57 }
0x1327   :  { %6091 = vrcp.f32 %v5105_v23  ;;  %v5132_v3 = vand.u32 2147483648, %v5105_v23  ;;  %vm5126_vm8 = vweird.f32 %v5105_v23  ;;  %v5130_v16 = vand.u32 2147483647, %v5105_v23 }
0x1328   :  { %v5118_v32 = vor.u32 1.1754944e-38, %v5117_v29  ;;  %vm5116_vm11 = vcmp.eq.f32.partialorder %v5115_v31, 8.507059e+37 }
0x1329   :  { %v5133_v50 = vor.u32 1.1754944e-38, %v5132_v3  ;;  %vm5131_vm12 = vcmp.eq.f32.partialorder %v5130_v16, 8.507059e+37 }
0x132c   :  { %v6090_v49 = vpop.eup %6089 }
0x132d   :  { %v6092_v28 = vpop.eup %6091  ;;  %v5107_v26 = vmul.f32 %v6090_v49, %v5104_v57  ;;  %vm5112_vm4 = vweird.f32 %v6090_v49 }
0x132e   :  { %v5122_v33 = vmul.f32 %v6092_v28, %v5105_v23  ;;  %vm5127_vm5 = vweird.f32 %v6092_v28  ;;  %vm5113_vm9 = vmor %vm5111_vm6, %vm5112_vm4  ;;  %vm5331_vm6 = vcmask 41984  }
0x132f   :  { %v5108_v20 = vsub.f32 1.0, %v5107_v26  ;;  %vm5128_vm10 = vmor %vm5126_vm8, %vm5127_vm5 }
0x1330   :  { %v5123_v11 = vsub.f32 1.0, %v5122_v33 }
0x1331   :  { %v5109_v17 = vmul.f32 %v6090_v49, %v5108_v20 }
0x1332   :  { %v5124_v12 = vmul.f32 %v6092_v28, %v5123_v11 }
0x1333   :  { %v5110_v59 = vadd.f32 %v6090_v49, %v5109_v17 }
0x1334   :  { %v5125_v36 = vadd.f32 %v6092_v28, %v5124_v12 }
0x1335   :  { %v5114_v0 = vsel %vm5113_vm9, %v6090_v49, %v5110_v59 }
0x1336   :  { %v5129_v42 = vsel %vm5128_vm10, %v6092_v28, %v5125_v36  ;;  %v5119_v47 = vsel %vm5116_vm11, %v5118_v32, %v5114_v0 }
0x1337   :  { %v5134_v63 = vsel %vm5131_vm12, %v5133_v50, %v5129_v42  ;;  %v5144_v35 = vmul.f32 %v5140_v56, %v5119_v47 }
0x1338   :  { %v5145_v15 = vmul.f32 %v5141_v52, %v5134_v63 }
0x1394   :  { %v5149_v10 = vpop.permute.xlu0 %5148 }
0x1395   :  { %v5151_v37 = vpop.permute.xlu1 %5150  ;;  %v5154_v13 = vmul.f32 %v5149_v10, %v5119_v47 }
0x1396   :  { %v5155_v46 = vmul.f32 %v5151_v37, %v5134_v63 }
0x1397   :  { %5158 = vrot.lane.b32.xlu2 %v5154_v13, %s6143_s10 }
0x1398   :  { %5160 = vrot.lane.b32.xlu0 %v5155_v46, %s6143_s10 }
0x13f1   :  { %v5159_v18 = vpop.permute.xlu2 %5158 }
0x13f2   :  { %v9998_v22 = vadd.f32 %v5159_v18, %v5144_v35  ;;  %v5297_v35 = vld [vmem:[%s10053_s12 + $0x18] sm:$0xff]  ;;  %v5296_v18 = vld [vmem:[%s10053_s12 + $0x10] sm:$0xff] }
0x13f3   :  { %5323 = vmatpush.msra.mxu3 %v5297_v35 }
0x13f4   :  { %6093 = vtanh.f32 %v9998_v22  ;;  %v5256_v37 = vrot.slane %v9998_v22, 7  ;;  %v5295_v22 = vld [vmem:[%s10053_s12 + $0x8] sm:$0xff] }
0x13f5   :  { %5324 = vmatpush.msra.mxu3 %v5296_v18 }
0x13f7   :  { %5325 = vmatpush.msra.mxu3 %v5295_v22 }
0x13fa   :  { %v6094_v58 = vpop.eup %6093 }
0x13fb   :  { %5170 = vrot.lane.b32.xlu1 %v6094_v58, %s6142_s7  ;;  %v5294_v58 = vld [vmem:[%s10053_s12] sm:$0xff]  ;;  %s6144_s12 = smov [#allocation6]  }
0x13fc   :  { %5326 = vmatpush.msra.mxu3 %v5294_v58  ;;  %s5338_s17 = sshll.u32 %s6144_s12, 4  ;;  %s5339_s17 = int_to_ptr.vmem [resolvable:$true] %s5338_s17 }
0x140a   :  { %v5161_v38 = vpop.permute.xlu0 %5160 }
0x140b   :  { %v10003_v62 = vadd.f32 %v5161_v38, %v5145_v15 }
0x140d   :  { %6095 = vtanh.f32 %v10003_v62  ;;  %v5257_v42 = vrot.slane %v10003_v62, 7 }
0x1413   :  { %v6096_v30 = vpop.eup %6095 }
0x1414   :  { %5172 = vrot.lane.b32.xlu2 %v6096_v30, %s6142_s7 }
0x146d   :  { %v5171_v55 = vpop.permute.xlu1 %5170 }
0x146e   :  { %v5173_v43 = vpop.permute.xlu2 %5172  ;;  %v5176_v7 = vmul.f32 %v5171_v55, %v5119_v47 }
0x146f   :  { %v5177_v24 = vmul.f32 %v5173_v43, %v5134_v63 }
0x1470   :  { %v5180_v61 = vrot.slane %v5176_v7, 6 }
0x1471   :  { %v5181_v19 = vrot.slane %v5177_v24, 5  ;;  %v5776_v24 = vld [vmem:[%s10054_s13] ss:$0 sm:$0xff] }
0x1473   :  { %v5182_v21 = vsel %vm4487_vm7, %v5181_v19, %v5180_v61 }
0x1474   :  { %5183 = vrot.lane.b32.xlu0 %v5182_v21, %s6143_s10 }
0x14e6   :  { %v5184_v51 = vpop.permute.xlu0 %5183 }
0x14e7   :  { %5765 = vmatmul.msk.f32.vlgmr.msrb.gmra.mxu2 %vm4380_vm14, %v5184_v51 }
0x156a   :  { %v5204_v2 = vpop.f32.mrf.mxu2 }
0x156b   :  { %v5208_v5 = vrot.slane %v5204_v2, 1  ;;  %v5209_v48 = vrot.slane %v5204_v2, 2 }
0x156d   :  { %v5212_v34 = vadd.f32 %v5208_v5, %v9874_v8  ;;  %v5213_v4 = vadd.f32 %v5209_v48, %v9871_v27 }
0x156f   :  { %6097 = vtanh.f32 %v5212_v34  ;;  %v5767_v6 = vmul.f32 -1.442695, %v5213_v4  ;;  %v5766_v44 = vmul.f32 -1.442695, %v5212_v34 }
0x1570   :  { %6099 = vtanh.f32 %v5213_v4 }
0x1571   :  { %6101 = vpow2.f32 %v5767_v6 }
0x1575   :  { %v6098_v54 = vpop.eup %6097 }
0x1576   :  { %v6100_v53 = vpop.eup %6099  ;;  %5264 = vrot.lane.b32.xlu1 %v6098_v54, %s6142_s7 }
0x1577   :  { %5266 = vrot.lane.b32.xlu2 %v6100_v53, %s6142_s7  ;;  %v6102_v1 = vpop.eup %6101 }
0x1578   :  { %v5221_v41 = vadd.f32 1.0, %v6102_v1 }
0x157a   :  { %6103 = vrcp.f32 %v5221_v41  ;;  %v5248_v45 = vand.u32 2147483648, %v5221_v41  ;;  %vm5242_vm15 = vweird.f32 %v5221_v41  ;;  %v5246_v40 = vand.u32 2147483647, %v5221_v41 }
0x157b   :  { %6105 = vpow2.f32 %v5766_v44 }
0x157c   :  { %v5249_v23 = vor.u32 1.1754944e-38, %v5248_v45  ;;  %vm5247_vm1 = vcmp.eq.f32.partialorder %v5246_v40, 8.507059e+37 }
0x1580   :  { %v6104_v14 = vpop.eup %6103 }
0x1581   :  { %v5238_v39 = vmul.f32 %v6104_v14, %v5221_v41  ;;  %v6106_v60 = vpop.eup %6105  ;;  %vm5243_vm13 = vweird.f32 %v6104_v14 }
0x1582   :  { %v5220_v9 = vadd.f32 1.0, %v6106_v60  ;;  %vm5244_vm0 = vmor %vm5242_vm15, %vm5243_vm13 }
0x1583   :  { %v5239_v8 = vsub.f32 1.0, %v5238_v39 }
0x1584   :  { %6107 = vrcp.f32 %v5220_v9  ;;  %v5233_v59 = vand.u32 2147483648, %v5220_v9  ;;  %vm5227_vm3 = vweird.f32 %v5220_v9  ;;  %v5231_v36 = vand.u32 2147483647, %v5220_v9 }
0x1585   :  { %v5240_v27 = vmul.f32 %v6104_v14, %v5239_v8 }
0x1586   :  { %v5234_v3 = vor.u32 1.1754944e-38, %v5233_v59  ;;  %vm5232_vm5 = vcmp.eq.f32.partialorder %v5231_v36, 8.507059e+37 }
0x1587   :  { %v5241_v25 = vadd.f32 %v6104_v14, %v5240_v27 }
0x1589   :  { %v5245_v57 = vsel %vm5244_vm0, %v6104_v14, %v5241_v25 }
0x158a   :  { %v5250_v28 = vsel %vm5247_vm1, %v5249_v23, %v5245_v57  ;;  %v6108_v26 = vpop.eup %6107 }
0x158b   :  { %v5223_v20 = vmul.f32 %v6108_v26, %v5220_v9  ;;  %vm5228_vm2 = vweird.f32 %v6108_v26  ;;  %v5261_v32 = vmul.f32 %v5257_v42, %v5250_v28 }
0x158c   :  { %vm5229_vm4 = vmor %vm5227_vm3, %vm5228_vm2 }
0x158d   :  { %v5224_v11 = vsub.f32 1.0, %v5223_v20 }
0x158f   :  { %v5225_v17 = vmul.f32 %v6108_v26, %v5224_v11 }
0x1591   :  { %v5226_v12 = vadd.f32 %v6108_v26, %v5225_v17 }
0x1593   :  { %v5230_v29 = vsel %vm5229_vm4, %v6108_v26, %v5226_v12 }
0x1594   :  { %v5235_v16 = vsel %vm5232_vm5, %v5234_v3, %v5230_v29 }
0x1595   :  { %v5260_v63 = vmul.f32 %v5256_v37, %v5235_v16 }
0x15d1   :  { %v5267_v49 = vpop.permute.xlu2 %5266 }
0x15d2   :  { %v5271_v33 = vmul.f32 %v5267_v49, %v5250_v28 }
0x15d4   :  { %5276 = vrot.lane.b32.xlu1 %v5271_v33, %s6143_s10 }
0x15e8   :  { %v5265_v31 = vpop.permute.xlu1 %5264 }
0x15e9   :  { %v5270_v0 = vmul.f32 %v5265_v31, %v5235_v16 }
0x15eb   :  { %5274 = vrot.lane.b32.xlu0 %v5270_v0, %s6143_s10 }
0x1646   :  { %v5277_v50 = vpop.permute.xlu1 %5276 }
0x1647   :  { %v5281_v10 = vadd.f32 %v5277_v50, %v5261_v32 }
0x1649   :  { %6109 = vtanh.f32 %v5281_v10 }
0x164f   :  { %v6110_v47 = vpop.eup %6109 }
0x1650   :  { %5288 = vrot.lane.b32.xlu0 %v6110_v47, %s6142_s7 }
0x165d   :  { %v5275_v13 = vpop.permute.xlu0 %5274 }
0x165e   :  { %v5280_v46 = vadd.f32 %v5275_v13, %v5260_v63 }
0x1660   :  { %6111 = vtanh.f32 %v5280_v46 }
0x1666   :  { %v6112_v56 = vpop.eup %6111 }
0x1667   :  { %5286 = vrot.lane.b32.xlu2 %v6112_v56, %s6142_s7 }
0x16c1   :  { %v5287_v52 = vpop.permute.xlu2 %5286 }
0x16c2   :  { %v5289_v15 = vpop.permute.xlu0 %5288  ;;  %v5292_v38 = vmul.f32 %v5287_v52, %v5235_v16 }
0x16c3   :  { %v5293_v62 = vmul.f32 %v5289_v15, %v5250_v28 }
0x16c4   :  { %v5304_v30 = vrot.slane %v5292_v38, 7 }
0x16c5   :  { %v5305_v55 = vrot.slane %v5293_v62, 6 }
0x16c7   :  { %v5306_v43 = vsel %vm4487_vm7, %v5305_v55, %v5304_v30 }
0x16c8   :  { %5307 = vrot.lane.b32.xlu1 %v5306_v43, %s6143_s10 }
0x173a   :  { %v5308_v7 = vpop.permute.xlu1 %5307 }
0x173b   :  { %5768 = vmatmul.msk.f32.vlgmr.msra.gmra.mxu3 %vm4380_vm14, %v5308_v7 }
0x17be   :  { %v5328_v61 = vpop.f32.mrf.mxu3 }
0x17bf   :  { %v5329_v19 = vadd.f32 %v5776_v24, %v5328_v61 }
0x17c1   :  { %5332 = vst.msk [vmem:[#allocation6] sm:$0x3] %vm5331_vm6, %v5329_v19 }
0x17c2   :  { %5343 = dma.vmem_to_hbm [thread:$0]  %s5339_s17, 32, %s5341_s8, [#allocation7]  }
0x17c3   :  { %6139 = dma.done.wait [#allocation7], 32  }
0x17c4   :  { %6140 = vsyncadd [#allocation7], 4294967264 }
0x17c5   :  { %5348 = vsyncpa [#allocation7], 1 }

</bundles_post_ra>
